<compile_context>
chip_gen: v7x
topology: tpu7x:2x2x1
jax: 0.10.0
libtpu: 0.0.40
codegen_flags: <defaults>
</compile_context>

<pallas_src>
import functools

import jax
import jax.numpy as jnp
from jax.experimental import pallas as pl
from jax.experimental.pallas import tpu as pltpu

EPS = 1e-5


def _plane_sum(p):
    # Two single-axis reductions (lane reduce, then sublane reduce) -> (1, 1).
    return jnp.sum(jnp.sum(p, axis=1, keepdims=True), axis=0, keepdims=True)


def _instance_norm_relu(p, relu):
    """InstanceNorm2d(affine=False, biased var, eps=1e-5) on one (H, W) plane.

    Fused statistics: one pass over the plane produces sum and sum-of-squares;
    var = E[x^2] - mean^2 (clamped at 0).  rsqrt goes to the EUP (free slot).
    """
    inv_n = 1.0 / float(p.shape[0] * p.shape[1])
    s = _plane_sum(p)                       # (1, 1)
    ss = _plane_sum(p * p)                  # (1, 1)
    mean = s * inv_n
    var = jnp.maximum(ss * inv_n - mean * mean, 0.0)
    y = (p - mean) * jax.lax.rsqrt(var + EPS)
    return jnp.maximum(y, 0.0) if relu else y


def _reflect_pad_into(pad_ref, planes, d, H, W):
    """Write reflection-padded channel planes into the VMEM scratch `pad_ref`.

    pad_ref: (C, H + 2d, W + 2d) scratch.  planes: list of C (H, W) arrays.
    Interior + explicit border row/column writes (no concatenate copies).
    """
    C = len(planes)
    for c in range(C):
        pc = planes[c]
        pad_ref[c, d:d + H, d:d + W] = pc                              # interior
        for j in range(d):                                             # rows
            pad_ref[c, j:j + 1, d:d + W] = pc[d - j:d - j + 1, :]
            pad_ref[c, H + d + j:H + d + j + 1, d:d + W] = (
                pc[H - 2 - j:H - 1 - j, :])
        for j in range(d):                                             # cols
            pad_ref[c, :, j:j + 1] = pad_ref[c, :, 2 * d - j:2 * d - j + 1]
            pad_ref[c, :, W + d + j:W + d + j + 1] = (
                pad_ref[c, :, W + d - 2 - j:W + d - 1 - j])


def _conv3x3(pad_ref, w_ref, C, H, W, d):
    """3x3 conv (dilation d) over the padded scratch as VPU scalar MACs.

    w_ref: flat SMEM weights, indexed ((ky*3 + kx)*Cin + i)*Cout + o.
    Returns a list of C accumulated (H, W) float32 planes.
    """
    acc = [None] * C
    for ky in range(3):
        for kx in range(3):
            for i in range(C):
                win = pad_ref[i, ky * d:ky * d + H, kx * d:kx * d + W]  # (H, W)
                base = ((ky * 3 + kx) * C + i) * C
                for o in range(C):
                    term = w_ref[base + o] * win
                    acc[o] = term if acc[o] is None else acc[o] + term
    return acc


def resnet_block_kernel(x_ref, w1_ref, w2_ref, o_ref, pad1, pad2, *,
                        C, H, W, dilation):
    d = dilation

    # Residual / conv-1 input, loaded once per image (C is small).
    xi = [x_ref[0, c].astype(jnp.float32) for c in range(C)]   # C x (H, W)

    # conv1: reflection-pad by d (VMEM scratch) + 3x3 dilation-d conv.
    # Bias omitted: it is cancelled exactly by the InstanceNorm mean subtract.
    _reflect_pad_into(pad1, xi, d, H, W)
    acc1 = _conv3x3(pad1, w1_ref, C, H, W, d)
    h = [_instance_norm_relu(a, relu=True) for a in acc1]

    # conv2: reflection-pad by 1 + 3x3 dilation-1 conv (as in the module).
    _reflect_pad_into(pad2, h, 1, H, W)
    acc2 = _conv3x3(pad2, w2_ref, C, H, W, 1)

    # InstanceNorm + residual, then write back into the lane-dense (C, H*W)
    # output block (dense HBM writeback DMA; wrapper reshapes to NCHW).
    for c in range(C):
        yc = (xi[c] + _instance_norm_relu(acc2[c], relu=False)).astype(o_ref.dtype)
        for r in range(H):
            o_ref[0, c:c + 1, r * W:(r + 1) * W] = yc[r:r + 1, :]


def resnet_block(x, w1, b1, w2, b2, *, dilation=1):
    """ResnetBlock forward.

    x:  (B, C, H, W) NCHW, matching the PyTorch module.
    w1, w2: conv weights in torch layout (Cout, Cin, 3, 3), Cout == Cin == C.
    b1, b2: conv biases; accepted for API parity but unused -- a per-channel
        bias is cancelled exactly by InstanceNorm(affine=False).
    """
    del b1, b2
    B, C, H, W = x.shape
    d = dilation
    HW = H * W

    # Flat SMEM weights, index ((ky*3+kx)*Cin + i)*Cout + o inside the kernel.
    w1_flat = jnp.transpose(w1, (2, 3, 1, 0)).reshape(-1)
    w2_flat = jnp.transpose(w2, (2, 3, 1, 0)).reshape(-1)

    kernel = functools.partial(resnet_block_kernel, C=C, H=H, W=W, dilation=d)

    # VMEM budget: double-buffered in/out blocks + two padded scratches
    # (sublane-padded to 8, lane-padded to 128), with headroom.
    def rup(v, m):
        return ((v + m - 1) // m) * m
    in_blk = C * rup(H, 8) * rup(W, 128) * 4
    out_blk = rup(C, 8) * rup(HW, 128) * 4
    scr = (C * rup(H + 2 * d, 8) * rup(W + 2 * d, 128)
           + C * rup(H + 2, 8) * rup(W + 2, 128)) * 4
    vmem_limit = int(min(48 * 1024 * 1024,
                         max(4 * 1024 * 1024, 4 * (in_blk + out_blk) + 2 * scr)))

    cost = pl.CostEstimate(
        flops=B * 2 * (2 * HW * 9 * C * C),
        transcendentals=B * 2 * C,
        bytes_accessed=(2 * B * C * HW + int(w1_flat.size) + int(w2_flat.size))
        * x.dtype.itemsize,
    )

    out_flat = pl.pallas_call(
        kernel,
        out_shape=jax.ShapeDtypeStruct((B, C, HW), x.dtype),
        grid_spec=pltpu.PrefetchScalarGridSpec(
            num_scalar_prefetch=0,
            grid=(B,),
            in_specs=[
                pl.BlockSpec((1, C, H, W), lambda b: (b, 0, 0, 0)),
                pl.BlockSpec(memory_space=pltpu.MemorySpace.SMEM),
                pl.BlockSpec(memory_space=pltpu.MemorySpace.SMEM),
            ],
            out_specs=pl.BlockSpec((1, C, HW), lambda b: (b, 0, 0)),
            scratch_shapes=[
                pltpu.VMEM((C, H + 2 * d, W + 2 * d), jnp.float32),
                pltpu.VMEM((C, H + 2, W + 2), jnp.float32),
            ],
        ),
        compiler_params=pltpu.CompilerParams(
            dimension_semantics=("parallel",),
            vmem_limit_bytes=vmem_limit,
        ),
        cost_estimate=cost,
    )(x, w1_flat, w2_flat)
    return out_flat.reshape(B, C, H, W)


# ---------------- pure-JAX reference (with biases) for correctness ----------
def _conv3x3_ref(x, w, b, dilation):
    # x: (B, C, H, W); w: torch layout (Cout, Cin, 3, 3); b: (Cout,)
    d = dilation
    xp = jnp.pad(x, ((0, 0), (0, 0), (d, d), (d, d)), mode="reflect")
    B, C, H, W = x.shape
    out = jnp.zeros((B, w.shape[0], H, W), jnp.float32)
    for ky in range(3):
        for kx in range(3):
            patch = xp[:, :, ky * d:ky * d + H, kx * d:kx * d + W]
            out = out + jnp.einsum("bihw,oi->bohw", patch, w[:, :, ky, kx])
    return out + b.reshape(1, -1, 1, 1)


def _inorm_ref(x):
    mean = jnp.mean(x, axis=(2, 3), keepdims=True)
    var = jnp.mean((x - mean) ** 2, axis=(2, 3), keepdims=True)
    return (x - mean) * jax.lax.rsqrt(var + EPS)


def resnet_block_ref(x, w1, b1, w2, b2, *, dilation=1):
    h = jnp.maximum(_inorm_ref(_conv3x3_ref(x, w1, b1, dilation)), 0.0)
    h = _inorm_ref(_conv3x3_ref(h, w2, b2, 1))
    return x + h


if __name__ == "__main__":
    B, C, H, W = 2, 4, 16, 16      # ResnetBlock(dim=4) on NCHW (2, 4, 16, 16)
    dilation = 1

    key = jax.random.PRNGKey(0)
    kx_, k1, kb1, k2, kb2 = jax.random.split(key, 5)

    x = jax.random.normal(kx_, (B, C, H, W), jnp.float32)      # NCHW

    fan_in = C * 3 * 3
    bound = 1.0 / (fan_in ** 0.5)
    w1 = jax.random.uniform(k1, (C, C, 3, 3), jnp.float32, -bound, bound)
    b1 = jax.random.uniform(kb1, (C,), jnp.float32, -bound, bound)
    w2 = jax.random.uniform(k2, (C, C, 3, 3), jnp.float32, -bound, bound)
    b2 = jax.random.uniform(kb2, (C,), jnp.float32, -bound, bound)

    out = resnet_block(x, w1, b1, w2, b2, dilation=dilation)
    out = jax.block_until_ready(out)

    ref = resnet_block_ref(x, w1, b1, w2, b2, dilation=dilation)
    assert out.shape == (B, C, H, W)
    err = float(jnp.max(jnp.abs(out - ref)))
    assert err < 5e-4, f"mismatch vs reference: {err}"

    print("KERNEL_OK")
</pallas_src>

<mosaic_0001>
module attributes {stable_mosaic.version = 11 : i64} {
  func.func @resnet_block_kernel(%arg0: i32, %arg1: memref<1x4x16x16xf32, #tpu.memory_space<vmem>>, %arg2: memref<144xf32, #tpu.memory_space<smem>>, %arg3: memref<144xf32, #tpu.memory_space<smem>>, %arg4: memref<1x4x256xf32, #tpu.memory_space<vmem>>, %arg5: memref<4x18x18xf32, #tpu.memory_space<vmem>>, %arg6: memref<4x18x18xf32, #tpu.memory_space<vmem>>) attributes {dimension_semantics = [#tpu.dimension_semantics<parallel>], iteration_bounds = array<i64: 2>, scalar_prefetch = 0 : i64, scratch_operands = 2 : i64, tpu.core_type = #tpu.core_type<tc>, window_params = [{transform_indices = @transform_0, window_bounds = array<i64: 1, 4, 16, 16>}, {transform_indices = @transform_1, window_bounds = array<i64: 144>}, {transform_indices = @transform_2, window_bounds = array<i64: 144>}, {transform_indices = @transform_3, window_bounds = array<i64: 1, 4, 256>}]} {
    %c0 = arith.constant 0 : index
    %c0_0 = arith.constant 0 : index
    %c0_1 = arith.constant 0 : index
    %c0_2 = arith.constant 0 : index
    %0 = vector.load %arg1[%c0, %c0_0, %c0_1, %c0_2] : memref<1x4x16x16xf32, #tpu.memory_space<vmem>>, vector<1x1x16x16xf32>
    %1 = vector.shape_cast %0 : vector<1x1x16x16xf32> to vector<16x16xf32>
    %c0_3 = arith.constant 0 : index
    %c1 = arith.constant 1 : index
    %c0_4 = arith.constant 0 : index
    %c0_5 = arith.constant 0 : index
    %2 = vector.load %arg1[%c0_3, %c1, %c0_4, %c0_5] : memref<1x4x16x16xf32, #tpu.memory_space<vmem>>, vector<1x1x16x16xf32>
    %3 = vector.shape_cast %2 : vector<1x1x16x16xf32> to vector<16x16xf32>
    %c0_6 = arith.constant 0 : index
    %c2 = arith.constant 2 : index
    %c0_7 = arith.constant 0 : index
    %c0_8 = arith.constant 0 : index
    %4 = vector.load %arg1[%c0_6, %c2, %c0_7, %c0_8] : memref<1x4x16x16xf32, #tpu.memory_space<vmem>>, vector<1x1x16x16xf32>
    %5 = vector.shape_cast %4 : vector<1x1x16x16xf32> to vector<16x16xf32>
    %c0_9 = arith.constant 0 : index
    %c3 = arith.constant 3 : index
    %c0_10 = arith.constant 0 : index
    %c0_11 = arith.constant 0 : index
    %6 = vector.load %arg1[%c0_9, %c3, %c0_10, %c0_11] : memref<1x4x16x16xf32, #tpu.memory_space<vmem>>, vector<1x1x16x16xf32>
    %7 = vector.shape_cast %6 : vector<1x1x16x16xf32> to vector<16x16xf32>
    %c0_12 = arith.constant 0 : index
    %c1_13 = arith.constant 1 : index
    %c1_14 = arith.constant 1 : index
    %8 = vector.load %arg5[%c0_12, %c1_13, %c1_14] : memref<4x18x18xf32, #tpu.memory_space<vmem>>, vector<1x16x16xf32>
    %9 = vector.shape_cast %8 : vector<1x16x16xf32> to vector<16x16xf32>
    %10 = vector.shape_cast %1 : vector<16x16xf32> to vector<1x16x16xf32>
    tpu.vector_store %arg5[%c0_12, %c1_13, %c1_14], %10 {strides = array<i32>} : memref<4x18x18xf32, #tpu.memory_space<vmem>>, vector<1x16x16xf32>,
    %11 = vector.extract_strided_slice %1 {offsets = [1, 0], sizes = [1, 16], strides = [1, 1]} : vector<16x16xf32> to vector<1x16xf32>
    %c0_15 = arith.constant 0 : index
    %c0_16 = arith.constant 0 : index
    %c1_17 = arith.constant 1 : index
    %12 = vector.load %arg5[%c0_15, %c0_16, %c1_17] : memref<4x18x18xf32, #tpu.memory_space<vmem>>, vector<1x1x16xf32>
    %13 = vector.shape_cast %12 : vector<1x1x16xf32> to vector<1x16xf32>
    %14 = vector.shape_cast %11 : vector<1x16xf32> to vector<1x1x16xf32>
    tpu.vector_store %arg5[%c0_15, %c0_16, %c1_17], %14 {strides = array<i32>} : memref<4x18x18xf32, #tpu.memory_space<vmem>>, vector<1x1x16xf32>,
    %15 = vector.extract_strided_slice %1 {offsets = [14, 0], sizes = [1, 16], strides = [1, 1]} : vector<16x16xf32> to vector<1x16xf32>
    %c0_18 = arith.constant 0 : index
    %c17 = arith.constant 17 : index
    %c1_19 = arith.constant 1 : index
    %16 = vector.load %arg5[%c0_18, %c17, %c1_19] : memref<4x18x18xf32, #tpu.memory_space<vmem>>, vector<1x1x16xf32>
    %17 = vector.shape_cast %16 : vector<1x1x16xf32> to vector<1x16xf32>
    %18 = vector.shape_cast %15 : vector<1x16xf32> to vector<1x1x16xf32>
    tpu.vector_store %arg5[%c0_18, %c17, %c1_19], %18 {strides = array<i32>} : memref<4x18x18xf32, #tpu.memory_space<vmem>>, vector<1x1x16xf32>,
    %c0_20 = arith.constant 0 : index
    %c0_21 = arith.constant 0 : index
    %c2_22 = arith.constant 2 : index
    %19 = vector.load %arg5[%c0_20, %c0_21, %c2_22] : memref<4x18x18xf32, #tpu.memory_space<vmem>>, vector<1x18x1xf32>
    %20 = vector.shape_cast %19 : vector<1x18x1xf32> to vector<18x1xf32>
    %c0_23 = arith.constant 0 : index
    %c0_24 = arith.constant 0 : index
    %c0_25 = arith.constant 0 : index
    %21 = vector.load %arg5[%c0_23, %c0_24, %c0_25] : memref<4x18x18xf32, #tpu.memory_space<vmem>>, vector<1x18x1xf32>
    %22 = vector.shape_cast %21 : vector<1x18x1xf32> to vector<18x1xf32>
    %23 = vector.shape_cast %20 : vector<18x1xf32> to vector<1x18x1xf32>
    tpu.vector_store %arg5[%c0_23, %c0_24, %c0_25], %23 {strides = array<i32>} : memref<4x18x18xf32, #tpu.memory_space<vmem>>, vector<1x18x1xf32>,
    %c0_26 = arith.constant 0 : index
    %c0_27 = arith.constant 0 : index
    %c15 = arith.constant 15 : index
    %24 = vector.load %arg5[%c0_26, %c0_27, %c15] : memref<4x18x18xf32, #tpu.memory_space<vmem>>, vector<1x18x1xf32>
    %25 = vector.shape_cast %24 : vector<1x18x1xf32> to vector<18x1xf32>
    %c0_28 = arith.constant 0 : index
    %c0_29 = arith.constant 0 : index
    %c17_30 = arith.constant 17 : index
    %26 = vector.load %arg5[%c0_28, %c0_29, %c17_30] : memref<4x18x18xf32, #tpu.memory_space<vmem>>, vector<1x18x1xf32>
    %27 = vector.shape_cast %26 : vector<1x18x1xf32> to vector<18x1xf32>
    %28 = vector.shape_cast %25 : vector<18x1xf32> to vector<1x18x1xf32>
    tpu.vector_store %arg5[%c0_28, %c0_29, %c17_30], %28 {strides = array<i32>} : memref<4x18x18xf32, #tpu.memory_space<vmem>>, vector<1x18x1xf32>,
    %c1_31 = arith.constant 1 : index
    %c1_32 = arith.constant 1 : index
    %c1_33 = arith.constant 1 : index
    %29 = vector.load %arg5[%c1_31, %c1_32, %c1_33] : memref<4x18x18xf32, #tpu.memory_space<vmem>>, vector<1x16x16xf32>
    %30 = vector.shape_cast %29 : vector<1x16x16xf32> to vector<16x16xf32>
    %31 = vector.shape_cast %3 : vector<16x16xf32> to vector<1x16x16xf32>
    tpu.vector_store %arg5[%c1_31, %c1_32, %c1_33], %31 {strides = array<i32>} : memref<4x18x18xf32, #tpu.memory_space<vmem>>, vector<1x16x16xf32>,
    %32 = vector.extract_strided_slice %3 {offsets = [1, 0], sizes = [1, 16], strides = [1, 1]} : vector<16x16xf32> to vector<1x16xf32>
    %c1_34 = arith.constant 1 : index
    %c0_35 = arith.constant 0 : index
    %c1_36 = arith.constant 1 : index
    %33 = vector.load %arg5[%c1_34, %c0_35, %c1_36] : memref<4x18x18xf32, #tpu.memory_space<vmem>>, vector<1x1x16xf32>
    %34 = vector.shape_cast %33 : vector<1x1x16xf32> to vector<1x16xf32>
    %35 = vector.shape_cast %32 : vector<1x16xf32> to vector<1x1x16xf32>
    tpu.vector_store %arg5[%c1_34, %c0_35, %c1_36], %35 {strides = array<i32>} : memref<4x18x18xf32, #tpu.memory_space<vmem>>, vector<1x1x16xf32>,
    %36 = vector.extract_strided_slice %3 {offsets = [14, 0], sizes = [1, 16], strides = [1, 1]} : vector<16x16xf32> to vector<1x16xf32>
    %c1_37 = arith.constant 1 : index
    %c17_38 = arith.constant 17 : index
    %c1_39 = arith.constant 1 : index
    %37 = vector.load %arg5[%c1_37, %c17_38, %c1_39] : memref<4x18x18xf32, #tpu.memory_space<vmem>>, vector<1x1x16xf32>
    %38 = vector.shape_cast %37 : vector<1x1x16xf32> to vector<1x16xf32>
    %39 = vector.shape_cast %36 : vector<1x16xf32> to vector<1x1x16xf32>
    tpu.vector_store %arg5[%c1_37, %c17_38, %c1_39], %39 {strides = array<i32>} : memref<4x18x18xf32, #tpu.memory_space<vmem>>, vector<1x1x16xf32>,
    %c1_40 = arith.constant 1 : index
    %c0_41 = arith.constant 0 : index
    %c2_42 = arith.constant 2 : index
    %40 = vector.load %arg5[%c1_40, %c0_41, %c2_42] : memref<4x18x18xf32, #tpu.memory_space<vmem>>, vector<1x18x1xf32>
    %41 = vector.shape_cast %40 : vector<1x18x1xf32> to vector<18x1xf32>
    %c1_43 = arith.constant 1 : index
    %c0_44 = arith.constant 0 : index
    %c0_45 = arith.constant 0 : index
    %42 = vector.load %arg5[%c1_43, %c0_44, %c0_45] : memref<4x18x18xf32, #tpu.memory_space<vmem>>, vector<1x18x1xf32>
    %43 = vector.shape_cast %42 : vector<1x18x1xf32> to vector<18x1xf32>
    %44 = vector.shape_cast %41 : vector<18x1xf32> to vector<1x18x1xf32>
    tpu.vector_store %arg5[%c1_43, %c0_44, %c0_45], %44 {strides = array<i32>} : memref<4x18x18xf32, #tpu.memory_space<vmem>>, vector<1x18x1xf32>,
    %c1_46 = arith.constant 1 : index
    %c0_47 = arith.constant 0 : index
    %c15_48 = arith.constant 15 : index
    %45 = vector.load %arg5[%c1_46, %c0_47, %c15_48] : memref<4x18x18xf32, #tpu.memory_space<vmem>>, vector<1x18x1xf32>
    %46 = vector.shape_cast %45 : vector<1x18x1xf32> to vector<18x1xf32>
    %c1_49 = arith.constant 1 : index
    %c0_50 = arith.constant 0 : index
    %c17_51 = arith.constant 17 : index
    %47 = vector.load %arg5[%c1_49, %c0_50, %c17_51] : memref<4x18x18xf32, #tpu.memory_space<vmem>>, vector<1x18x1xf32>
    %48 = vector.shape_cast %47 : vector<1x18x1xf32> to vector<18x1xf32>
    %49 = vector.shape_cast %46 : vector<18x1xf32> to vector<1x18x1xf32>
    tpu.vector_store %arg5[%c1_49, %c0_50, %c17_51], %49 {strides = array<i32>} : memref<4x18x18xf32, #tpu.memory_space<vmem>>, vector<1x18x1xf32>,
    %c2_52 = arith.constant 2 : index
    %c1_53 = arith.constant 1 : index
    %c1_54 = arith.constant 1 : index
    %50 = vector.load %arg5[%c2_52, %c1_53, %c1_54] : memref<4x18x18xf32, #tpu.memory_space<vmem>>, vector<1x16x16xf32>
    %51 = vector.shape_cast %50 : vector<1x16x16xf32> to vector<16x16xf32>
    %52 = vector.shape_cast %5 : vector<16x16xf32> to vector<1x16x16xf32>
    tpu.vector_store %arg5[%c2_52, %c1_53, %c1_54], %52 {strides = array<i32>} : memref<4x18x18xf32, #tpu.memory_space<vmem>>, vector<1x16x16xf32>,
    %53 = vector.extract_strided_slice %5 {offsets = [1, 0], sizes = [1, 16], strides = [1, 1]} : vector<16x16xf32> to vector<1x16xf32>
    %c2_55 = arith.constant 2 : index
    %c0_56 = arith.constant 0 : index
    %c1_57 = arith.constant 1 : index
    %54 = vector.load %arg5[%c2_55, %c0_56, %c1_57] : memref<4x18x18xf32, #tpu.memory_space<vmem>>, vector<1x1x16xf32>
    %55 = vector.shape_cast %54 : vector<1x1x16xf32> to vector<1x16xf32>
    %56 = vector.shape_cast %53 : vector<1x16xf32> to vector<1x1x16xf32>
    tpu.vector_store %arg5[%c2_55, %c0_56, %c1_57], %56 {strides = array<i32>} : memref<4x18x18xf32, #tpu.memory_space<vmem>>, vector<1x1x16xf32>,
    %57 = vector.extract_strided_slice %5 {offsets = [14, 0], sizes = [1, 16], strides = [1, 1]} : vector<16x16xf32> to vector<1x16xf32>
    %c2_58 = arith.constant 2 : index
    %c17_59 = arith.constant 17 : index
    %c1_60 = arith.constant 1 : index
    %58 = vector.load %arg5[%c2_58, %c17_59, %c1_60] : memref<4x18x18xf32, #tpu.memory_space<vmem>>, vector<1x1x16xf32>
    %59 = vector.shape_cast %58 : vector<1x1x16xf32> to vector<1x16xf32>
    %60 = vector.shape_cast %57 : vector<1x16xf32> to vector<1x1x16xf32>
    tpu.vector_store %arg5[%c2_58, %c17_59, %c1_60], %60 {strides = array<i32>} : memref<4x18x18xf32, #tpu.memory_space<vmem>>, vector<1x1x16xf32>,
    %c2_61 = arith.constant 2 : index
    %c0_62 = arith.constant 0 : index
    %c2_63 = arith.constant 2 : index
    %61 = vector.load %arg5[%c2_61, %c0_62, %c2_63] : memref<4x18x18xf32, #tpu.memory_space<vmem>>, vector<1x18x1xf32>
    %62 = vector.shape_cast %61 : vector<1x18x1xf32> to vector<18x1xf32>
    %c2_64 = arith.constant 2 : index
    %c0_65 = arith.constant 0 : index
    %c0_66 = arith.constant 0 : index
    %63 = vector.load %arg5[%c2_64, %c0_65, %c0_66] : memref<4x18x18xf32, #tpu.memory_space<vmem>>, vector<1x18x1xf32>
    %64 = vector.shape_cast %63 : vector<1x18x1xf32> to vector<18x1xf32>
    %65 = vector.shape_cast %62 : vector<18x1xf32> to vector<1x18x1xf32>
    tpu.vector_store %arg5[%c2_64, %c0_65, %c0_66], %65 {strides = array<i32>} : memref<4x18x18xf32, #tpu.memory_space<vmem>>, vector<1x18x1xf32>,
    %c2_67 = arith.constant 2 : index
    %c0_68 = arith.constant 0 : index
    %c15_69 = arith.constant 15 : index
    %66 = vector.load %arg5[%c2_67, %c0_68, %c15_69] : memref<4x18x18xf32, #tpu.memory_space<vmem>>, vector<1x18x1xf32>
    %67 = vector.shape_cast %66 : vector<1x18x1xf32> to vector<18x1xf32>
    %c2_70 = arith.constant 2 : index
    %c0_71 = arith.constant 0 : index
    %c17_72 = arith.constant 17 : index
    %68 = vector.load %arg5[%c2_70, %c0_71, %c17_72] : memref<4x18x18xf32, #tpu.memory_space<vmem>>, vector<1x18x1xf32>
    %69 = vector.shape_cast %68 : vector<1x18x1xf32> to vector<18x1xf32>
    %70 = vector.shape_cast %67 : vector<18x1xf32> to vector<1x18x1xf32>
    tpu.vector_store %arg5[%c2_70, %c0_71, %c17_72], %70 {strides = array<i32>} : memref<4x18x18xf32, #tpu.memory_space<vmem>>, vector<1x18x1xf32>,
    %c3_73 = arith.constant 3 : index
    %c1_74 = arith.constant 1 : index
    %c1_75 = arith.constant 1 : index
    %71 = vector.load %arg5[%c3_73, %c1_74, %c1_75] : memref<4x18x18xf32, #tpu.memory_space<vmem>>, vector<1x16x16xf32>
    %72 = vector.shape_cast %71 : vector<1x16x16xf32> to vector<16x16xf32>
    %73 = vector.shape_cast %7 : vector<16x16xf32> to vector<1x16x16xf32>
    tpu.vector_store %arg5[%c3_73, %c1_74, %c1_75], %73 {strides = array<i32>} : memref<4x18x18xf32, #tpu.memory_space<vmem>>, vector<1x16x16xf32>,
    %74 = vector.extract_strided_slice %7 {offsets = [1, 0], sizes = [1, 16], strides = [1, 1]} : vector<16x16xf32> to vector<1x16xf32>
    %c3_76 = arith.constant 3 : index
    %c0_77 = arith.constant 0 : index
    %c1_78 = arith.constant 1 : index
    %75 = vector.load %arg5[%c3_76, %c0_77, %c1_78] : memref<4x18x18xf32, #tpu.memory_space<vmem>>, vector<1x1x16xf32>
    %76 = vector.shape_cast %75 : vector<1x1x16xf32> to vector<1x16xf32>
    %77 = vector.shape_cast %74 : vector<1x16xf32> to vector<1x1x16xf32>
    tpu.vector_store %arg5[%c3_76, %c0_77, %c1_78], %77 {strides = array<i32>} : memref<4x18x18xf32, #tpu.memory_space<vmem>>, vector<1x1x16xf32>,
    %78 = vector.extract_strided_slice %7 {offsets = [14, 0], sizes = [1, 16], strides = [1, 1]} : vector<16x16xf32> to vector<1x16xf32>
    %c3_79 = arith.constant 3 : index
    %c17_80 = arith.constant 17 : index
    %c1_81 = arith.constant 1 : index
    %79 = vector.load %arg5[%c3_79, %c17_80, %c1_81] : memref<4x18x18xf32, #tpu.memory_space<vmem>>, vector<1x1x16xf32>
    %80 = vector.shape_cast %79 : vector<1x1x16xf32> to vector<1x16xf32>
    %81 = vector.shape_cast %78 : vector<1x16xf32> to vector<1x1x16xf32>
    tpu.vector_store %arg5[%c3_79, %c17_80, %c1_81], %81 {strides = array<i32>} : memref<4x18x18xf32, #tpu.memory_space<vmem>>, vector<1x1x16xf32>,
    %c3_82 = arith.constant 3 : index
    %c0_83 = arith.constant 0 : index
    %c2_84 = arith.constant 2 : index
    %82 = vector.load %arg5[%c3_82, %c0_83, %c2_84] : memref<4x18x18xf32, #tpu.memory_space<vmem>>, vector<1x18x1xf32>
    %83 = vector.shape_cast %82 : vector<1x18x1xf32> to vector<18x1xf32>
    %c3_85 = arith.constant 3 : index
    %c0_86 = arith.constant 0 : index
    %c0_87 = arith.constant 0 : index
    %84 = vector.load %arg5[%c3_85, %c0_86, %c0_87] : memref<4x18x18xf32, #tpu.memory_space<vmem>>, vector<1x18x1xf32>
    %85 = vector.shape_cast %84 : vector<1x18x1xf32> to vector<18x1xf32>
    %86 = vector.shape_cast %83 : vector<18x1xf32> to vector<1x18x1xf32>
    tpu.vector_store %arg5[%c3_85, %c0_86, %c0_87], %86 {strides = array<i32>} : memref<4x18x18xf32, #tpu.memory_space<vmem>>, vector<1x18x1xf32>,
    %c3_88 = arith.constant 3 : index
    %c0_89 = arith.constant 0 : index
    %c15_90 = arith.constant 15 : index
    %87 = vector.load %arg5[%c3_88, %c0_89, %c15_90] : memref<4x18x18xf32, #tpu.memory_space<vmem>>, vector<1x18x1xf32>
    %88 = vector.shape_cast %87 : vector<1x18x1xf32> to vector<18x1xf32>
    %c3_91 = arith.constant 3 : index
    %c0_92 = arith.constant 0 : index
    %c17_93 = arith.constant 17 : index
    %89 = vector.load %arg5[%c3_91, %c0_92, %c17_93] : memref<4x18x18xf32, #tpu.memory_space<vmem>>, vector<1x18x1xf32>
    %90 = vector.shape_cast %89 : vector<1x18x1xf32> to vector<18x1xf32>
    %91 = vector.shape_cast %88 : vector<18x1xf32> to vector<1x18x1xf32>
    tpu.vector_store %arg5[%c3_91, %c0_92, %c17_93], %91 {strides = array<i32>} : memref<4x18x18xf32, #tpu.memory_space<vmem>>, vector<1x18x1xf32>,
    %c0_94 = arith.constant 0 : index
    %c0_95 = arith.constant 0 : index
    %c0_96 = arith.constant 0 : index
    %92 = vector.load %arg5[%c0_94, %c0_95, %c0_96] : memref<4x18x18xf32, #tpu.memory_space<vmem>>, vector<1x16x16xf32>
    %93 = vector.shape_cast %92 : vector<1x16x16xf32> to vector<16x16xf32>
    %c0_97 = arith.constant 0 : index
    %94 = memref.load %arg2[%c0_97] : memref<144xf32, #tpu.memory_space<smem>>
    %95 = vector.broadcast %94 : f32 to vector<16x16xf32>
    %96 = arith.mulf %95, %93 : vector<16x16xf32>
    %c1_98 = arith.constant 1 : index
    %97 = memref.load %arg2[%c1_98] : memref<144xf32, #tpu.memory_space<smem>>
    %98 = vector.broadcast %97 : f32 to vector<16x16xf32>
    %99 = arith.mulf %98, %93 : vector<16x16xf32>
    %c2_99 = arith.constant 2 : index
    %100 = memref.load %arg2[%c2_99] : memref<144xf32, #tpu.memory_space<smem>>
    %101 = vector.broadcast %100 : f32 to vector<16x16xf32>
    %102 = arith.mulf %101, %93 : vector<16x16xf32>
    %c3_100 = arith.constant 3 : index
    %103 = memref.load %arg2[%c3_100] : memref<144xf32, #tpu.memory_space<smem>>
    %104 = vector.broadcast %103 : f32 to vector<16x16xf32>
    %105 = arith.mulf %104, %93 : vector<16x16xf32>
    %c1_101 = arith.constant 1 : index
    %c0_102 = arith.constant 0 : index
    %c0_103 = arith.constant 0 : index
    %106 = vector.load %arg5[%c1_101, %c0_102, %c0_103] : memref<4x18x18xf32, #tpu.memory_space<vmem>>, vector<1x16x16xf32>
    %107 = vector.shape_cast %106 : vector<1x16x16xf32> to vector<16x16xf32>
    %c4 = arith.constant 4 : index
    %108 = memref.load %arg2[%c4] : memref<144xf32, #tpu.memory_space<smem>>
    %109 = vector.broadcast %108 : f32 to vector<16x16xf32>
    %110 = arith.mulf %109, %107 : vector<16x16xf32>
    %111 = arith.addf %96, %110 : vector<16x16xf32>
    %c5 = arith.constant 5 : index
    %112 = memref.load %arg2[%c5] : memref<144xf32, #tpu.memory_space<smem>>
    %113 = vector.broadcast %112 : f32 to vector<16x16xf32>
    %114 = arith.mulf %113, %107 : vector<16x16xf32>
    %115 = arith.addf %99, %114 : vector<16x16xf32>
    %c6 = arith.constant 6 : index
    %116 = memref.load %arg2[%c6] : memref<144xf32, #tpu.memory_space<smem>>
    %117 = vector.broadcast %116 : f32 to vector<16x16xf32>
    %118 = arith.mulf %117, %107 : vector<16x16xf32>
    %119 = arith.addf %102, %118 : vector<16x16xf32>
    %c7 = arith.constant 7 : index
    %120 = memref.load %arg2[%c7] : memref<144xf32, #tpu.memory_space<smem>>
    %121 = vector.broadcast %120 : f32 to vector<16x16xf32>
    %122 = arith.mulf %121, %107 : vector<16x16xf32>
    %123 = arith.addf %105, %122 : vector<16x16xf32>
    %c2_104 = arith.constant 2 : index
    %c0_105 = arith.constant 0 : index
    %c0_106 = arith.constant 0 : index
    %124 = vector.load %arg5[%c2_104, %c0_105, %c0_106] : memref<4x18x18xf32, #tpu.memory_space<vmem>>, vector<1x16x16xf32>
    %125 = vector.shape_cast %124 : vector<1x16x16xf32> to vector<16x16xf32>
    %c8 = arith.constant 8 : index
    %126 = memref.load %arg2[%c8] : memref<144xf32, #tpu.memory_space<smem>>
    %127 = vector.broadcast %126 : f32 to vector<16x16xf32>
    %128 = arith.mulf %127, %125 : vector<16x16xf32>
    %129 = arith.addf %111, %128 : vector<16x16xf32>
    %c9 = arith.constant 9 : index
    %130 = memref.load %arg2[%c9] : memref<144xf32, #tpu.memory_space<smem>>
    %131 = vector.broadcast %130 : f32 to vector<16x16xf32>
    %132 = arith.mulf %131, %125 : vector<16x16xf32>
    %133 = arith.addf %115, %132 : vector<16x16xf32>
    %c10 = arith.constant 10 : index
    %134 = memref.load %arg2[%c10] : memref<144xf32, #tpu.memory_space<smem>>
    %135 = vector.broadcast %134 : f32 to vector<16x16xf32>
    %136 = arith.mulf %135, %125 : vector<16x16xf32>
    %137 = arith.addf %119, %136 : vector<16x16xf32>
    %c11 = arith.constant 11 : index
    %138 = memref.load %arg2[%c11] : memref<144xf32, #tpu.memory_space<smem>>
    %139 = vector.broadcast %138 : f32 to vector<16x16xf32>
    %140 = arith.mulf %139, %125 : vector<16x16xf32>
    %141 = arith.addf %123, %140 : vector<16x16xf32>
    %c3_107 = arith.constant 3 : index
    %c0_108 = arith.constant 0 : index
    %c0_109 = arith.constant 0 : index
    %142 = vector.load %arg5[%c3_107, %c0_108, %c0_109] : memref<4x18x18xf32, #tpu.memory_space<vmem>>, vector<1x16x16xf32>
    %143 = vector.shape_cast %142 : vector<1x16x16xf32> to vector<16x16xf32>
    %c12 = arith.constant 12 : index
    %144 = memref.load %arg2[%c12] : memref<144xf32, #tpu.memory_space<smem>>
    %145 = vector.broadcast %144 : f32 to vector<16x16xf32>
    %146 = arith.mulf %145, %143 : vector<16x16xf32>
    %147 = arith.addf %129, %146 : vector<16x16xf32>
    %c13 = arith.constant 13 : index
    %148 = memref.load %arg2[%c13] : memref<144xf32, #tpu.memory_space<smem>>
    %149 = vector.broadcast %148 : f32 to vector<16x16xf32>
    %150 = arith.mulf %149, %143 : vector<16x16xf32>
    %151 = arith.addf %133, %150 : vector<16x16xf32>
    %c14 = arith.constant 14 : index
    %152 = memref.load %arg2[%c14] : memref<144xf32, #tpu.memory_space<smem>>
    %153 = vector.broadcast %152 : f32 to vector<16x16xf32>
    %154 = arith.mulf %153, %143 : vector<16x16xf32>
    %155 = arith.addf %137, %154 : vector<16x16xf32>
    %c15_110 = arith.constant 15 : index
    %156 = memref.load %arg2[%c15_110] : memref<144xf32, #tpu.memory_space<smem>>
    %157 = vector.broadcast %156 : f32 to vector<16x16xf32>
    %158 = arith.mulf %157, %143 : vector<16x16xf32>
    %159 = arith.addf %141, %158 : vector<16x16xf32>
    %c0_111 = arith.constant 0 : index
    %c0_112 = arith.constant 0 : index
    %c1_113 = arith.constant 1 : index
    %160 = vector.load %arg5[%c0_111, %c0_112, %c1_113] : memref<4x18x18xf32, #tpu.memory_space<vmem>>, vector<1x16x16xf32>
    %161 = vector.shape_cast %160 : vector<1x16x16xf32> to vector<16x16xf32>
    %c16 = arith.constant 16 : index
    %162 = memref.load %arg2[%c16] : memref<144xf32, #tpu.memory_space<smem>>
    %163 = vector.broadcast %162 : f32 to vector<16x16xf32>
    %164 = arith.mulf %163, %161 : vector<16x16xf32>
    %165 = arith.addf %147, %164 : vector<16x16xf32>
    %c17_114 = arith.constant 17 : index
    %166 = memref.load %arg2[%c17_114] : memref<144xf32, #tpu.memory_space<smem>>
    %167 = vector.broadcast %166 : f32 to vector<16x16xf32>
    %168 = arith.mulf %167, %161 : vector<16x16xf32>
    %169 = arith.addf %151, %168 : vector<16x16xf32>
    %c18 = arith.constant 18 : index
    %170 = memref.load %arg2[%c18] : memref<144xf32, #tpu.memory_space<smem>>
    %171 = vector.broadcast %170 : f32 to vector<16x16xf32>
    %172 = arith.mulf %171, %161 : vector<16x16xf32>
    %173 = arith.addf %155, %172 : vector<16x16xf32>
    %c19 = arith.constant 19 : index
    %174 = memref.load %arg2[%c19] : memref<144xf32, #tpu.memory_space<smem>>
    %175 = vector.broadcast %174 : f32 to vector<16x16xf32>
    %176 = arith.mulf %175, %161 : vector<16x16xf32>
    %177 = arith.addf %159, %176 : vector<16x16xf32>
    %c1_115 = arith.constant 1 : index
    %c0_116 = arith.constant 0 : index
    %c1_117 = arith.constant 1 : index
    %178 = vector.load %arg5[%c1_115, %c0_116, %c1_117] : memref<4x18x18xf32, #tpu.memory_space<vmem>>, vector<1x16x16xf32>
    %179 = vector.shape_cast %178 : vector<1x16x16xf32> to vector<16x16xf32>
    %c20 = arith.constant 20 : index
    %180 = memref.load %arg2[%c20] : memref<144xf32, #tpu.memory_space<smem>>
    %181 = vector.broadcast %180 : f32 to vector<16x16xf32>
    %182 = arith.mulf %181, %179 : vector<16x16xf32>
    %183 = arith.addf %165, %182 : vector<16x16xf32>
    %c21 = arith.constant 21 : index
    %184 = memref.load %arg2[%c21] : memref<144xf32, #tpu.memory_space<smem>>
    %185 = vector.broadcast %184 : f32 to vector<16x16xf32>
    %186 = arith.mulf %185, %179 : vector<16x16xf32>
    %187 = arith.addf %169, %186 : vector<16x16xf32>
    %c22 = arith.constant 22 : index
    %188 = memref.load %arg2[%c22] : memref<144xf32, #tpu.memory_space<smem>>
    %189 = vector.broadcast %188 : f32 to vector<16x16xf32>
    %190 = arith.mulf %189, %179 : vector<16x16xf32>
    %191 = arith.addf %173, %190 : vector<16x16xf32>
    %c23 = arith.constant 23 : index
    %192 = memref.load %arg2[%c23] : memref<144xf32, #tpu.memory_space<smem>>
    %193 = vector.broadcast %192 : f32 to vector<16x16xf32>
    %194 = arith.mulf %193, %179 : vector<16x16xf32>
    %195 = arith.addf %177, %194 : vector<16x16xf32>
    %c2_118 = arith.constant 2 : index
    %c0_119 = arith.constant 0 : index
    %c1_120 = arith.constant 1 : index
    %196 = vector.load %arg5[%c2_118, %c0_119, %c1_120] : memref<4x18x18xf32, #tpu.memory_space<vmem>>, vector<1x16x16xf32>
    %197 = vector.shape_cast %196 : vector<1x16x16xf32> to vector<16x16xf32>
    %c24 = arith.constant 24 : index
    %198 = memref.load %arg2[%c24] : memref<144xf32, #tpu.memory_space<smem>>
    %199 = vector.broadcast %198 : f32 to vector<16x16xf32>
    %200 = arith.mulf %199, %197 : vector<16x16xf32>
    %201 = arith.addf %183, %200 : vector<16x16xf32>
    %c25 = arith.constant 25 : index
    %202 = memref.load %arg2[%c25] : memref<144xf32, #tpu.memory_space<smem>>
    %203 = vector.broadcast %202 : f32 to vector<16x16xf32>
    %204 = arith.mulf %203, %197 : vector<16x16xf32>
    %205 = arith.addf %187, %204 : vector<16x16xf32>
    %c26 = arith.constant 26 : index
    %206 = memref.load %arg2[%c26] : memref<144xf32, #tpu.memory_space<smem>>
    %207 = vector.broadcast %206 : f32 to vector<16x16xf32>
    %208 = arith.mulf %207, %197 : vector<16x16xf32>
    %209 = arith.addf %191, %208 : vector<16x16xf32>
    %c27 = arith.constant 27 : index
    %210 = memref.load %arg2[%c27] : memref<144xf32, #tpu.memory_space<smem>>
    %211 = vector.broadcast %210 : f32 to vector<16x16xf32>
    %212 = arith.mulf %211, %197 : vector<16x16xf32>
    %213 = arith.addf %195, %212 : vector<16x16xf32>
    %c3_121 = arith.constant 3 : index
    %c0_122 = arith.constant 0 : index
    %c1_123 = arith.constant 1 : index
    %214 = vector.load %arg5[%c3_121, %c0_122, %c1_123] : memref<4x18x18xf32, #tpu.memory_space<vmem>>, vector<1x16x16xf32>
    %215 = vector.shape_cast %214 : vector<1x16x16xf32> to vector<16x16xf32>
    %c28 = arith.constant 28 : index
    %216 = memref.load %arg2[%c28] : memref<144xf32, #tpu.memory_space<smem>>
    %217 = vector.broadcast %216 : f32 to vector<16x16xf32>
    %218 = arith.mulf %217, %215 : vector<16x16xf32>
    %219 = arith.addf %201, %218 : vector<16x16xf32>
    %c29 = arith.constant 29 : index
    %220 = memref.load %arg2[%c29] : memref<144xf32, #tpu.memory_space<smem>>
    %221 = vector.broadcast %220 : f32 to vector<16x16xf32>
    %222 = arith.mulf %221, %215 : vector<16x16xf32>
    %223 = arith.addf %205, %222 : vector<16x16xf32>
    %c30 = arith.constant 30 : index
    %224 = memref.load %arg2[%c30] : memref<144xf32, #tpu.memory_space<smem>>
    %225 = vector.broadcast %224 : f32 to vector<16x16xf32>
    %226 = arith.mulf %225, %215 : vector<16x16xf32>
    %227 = arith.addf %209, %226 : vector<16x16xf32>
    %c31 = arith.constant 31 : index
    %228 = memref.load %arg2[%c31] : memref<144xf32, #tpu.memory_space<smem>>
    %229 = vector.broadcast %228 : f32 to vector<16x16xf32>
    %230 = arith.mulf %229, %215 : vector<16x16xf32>
    %231 = arith.addf %213, %230 : vector<16x16xf32>
    %c0_124 = arith.constant 0 : index
    %c0_125 = arith.constant 0 : index
    %c2_126 = arith.constant 2 : index
    %232 = vector.load %arg5[%c0_124, %c0_125, %c2_126] : memref<4x18x18xf32, #tpu.memory_space<vmem>>, vector<1x16x16xf32>
    %233 = vector.shape_cast %232 : vector<1x16x16xf32> to vector<16x16xf32>
    %c32 = arith.constant 32 : index
    %234 = memref.load %arg2[%c32] : memref<144xf32, #tpu.memory_space<smem>>
    %235 = vector.broadcast %234 : f32 to vector<16x16xf32>
    %236 = arith.mulf %235, %233 : vector<16x16xf32>
    %237 = arith.addf %219, %236 : vector<16x16xf32>
    %c33 = arith.constant 33 : index
    %238 = memref.load %arg2[%c33] : memref<144xf32, #tpu.memory_space<smem>>
    %239 = vector.broadcast %238 : f32 to vector<16x16xf32>
    %240 = arith.mulf %239, %233 : vector<16x16xf32>
    %241 = arith.addf %223, %240 : vector<16x16xf32>
    %c34 = arith.constant 34 : index
    %242 = memref.load %arg2[%c34] : memref<144xf32, #tpu.memory_space<smem>>
    %243 = vector.broadcast %242 : f32 to vector<16x16xf32>
    %244 = arith.mulf %243, %233 : vector<16x16xf32>
    %245 = arith.addf %227, %244 : vector<16x16xf32>
    %c35 = arith.constant 35 : index
    %246 = memref.load %arg2[%c35] : memref<144xf32, #tpu.memory_space<smem>>
    %247 = vector.broadcast %246 : f32 to vector<16x16xf32>
    %248 = arith.mulf %247, %233 : vector<16x16xf32>
    %249 = arith.addf %231, %248 : vector<16x16xf32>
    %c1_127 = arith.constant 1 : index
    %c0_128 = arith.constant 0 : index
    %c2_129 = arith.constant 2 : index
    %250 = vector.load %arg5[%c1_127, %c0_128, %c2_129] : memref<4x18x18xf32, #tpu.memory_space<vmem>>, vector<1x16x16xf32>
    %251 = vector.shape_cast %250 : vector<1x16x16xf32> to vector<16x16xf32>
    %c36 = arith.constant 36 : index
    %252 = memref.load %arg2[%c36] : memref<144xf32, #tpu.memory_space<smem>>
    %253 = vector.broadcast %252 : f32 to vector<16x16xf32>
    %254 = arith.mulf %253, %251 : vector<16x16xf32>
    %255 = arith.addf %237, %254 : vector<16x16xf32>
    %c37 = arith.constant 37 : index
    %256 = memref.load %arg2[%c37] : memref<144xf32, #tpu.memory_space<smem>>
    %257 = vector.broadcast %256 : f32 to vector<16x16xf32>
    %258 = arith.mulf %257, %251 : vector<16x16xf32>
    %259 = arith.addf %241, %258 : vector<16x16xf32>
    %c38 = arith.constant 38 : index
    %260 = memref.load %arg2[%c38] : memref<144xf32, #tpu.memory_space<smem>>
    %261 = vector.broadcast %260 : f32 to vector<16x16xf32>
    %262 = arith.mulf %261, %251 : vector<16x16xf32>
    %263 = arith.addf %245, %262 : vector<16x16xf32>
    %c39 = arith.constant 39 : index
    %264 = memref.load %arg2[%c39] : memref<144xf32, #tpu.memory_space<smem>>
    %265 = vector.broadcast %264 : f32 to vector<16x16xf32>
    %266 = arith.mulf %265, %251 : vector<16x16xf32>
    %267 = arith.addf %249, %266 : vector<16x16xf32>
    %c2_130 = arith.constant 2 : index
    %c0_131 = arith.constant 0 : index
    %c2_132 = arith.constant 2 : index
    %268 = vector.load %arg5[%c2_130, %c0_131, %c2_132] : memref<4x18x18xf32, #tpu.memory_space<vmem>>, vector<1x16x16xf32>
    %269 = vector.shape_cast %268 : vector<1x16x16xf32> to vector<16x16xf32>
    %c40 = arith.constant 40 : index
    %270 = memref.load %arg2[%c40] : memref<144xf32, #tpu.memory_space<smem>>
    %271 = vector.broadcast %270 : f32 to vector<16x16xf32>
    %272 = arith.mulf %271, %269 : vector<16x16xf32>
    %273 = arith.addf %255, %272 : vector<16x16xf32>
    %c41 = arith.constant 41 : index
    %274 = memref.load %arg2[%c41] : memref<144xf32, #tpu.memory_space<smem>>
    %275 = vector.broadcast %274 : f32 to vector<16x16xf32>
    %276 = arith.mulf %275, %269 : vector<16x16xf32>
    %277 = arith.addf %259, %276 : vector<16x16xf32>
    %c42 = arith.constant 42 : index
    %278 = memref.load %arg2[%c42] : memref<144xf32, #tpu.memory_space<smem>>
    %279 = vector.broadcast %278 : f32 to vector<16x16xf32>
    %280 = arith.mulf %279, %269 : vector<16x16xf32>
    %281 = arith.addf %263, %280 : vector<16x16xf32>
    %c43 = arith.constant 43 : index
    %282 = memref.load %arg2[%c43] : memref<144xf32, #tpu.memory_space<smem>>
    %283 = vector.broadcast %282 : f32 to vector<16x16xf32>
    %284 = arith.mulf %283, %269 : vector<16x16xf32>
    %285 = arith.addf %267, %284 : vector<16x16xf32>
    %c3_133 = arith.constant 3 : index
    %c0_134 = arith.constant 0 : index
    %c2_135 = arith.constant 2 : index
    %286 = vector.load %arg5[%c3_133, %c0_134, %c2_135] : memref<4x18x18xf32, #tpu.memory_space<vmem>>, vector<1x16x16xf32>
    %287 = vector.shape_cast %286 : vector<1x16x16xf32> to vector<16x16xf32>
    %c44 = arith.constant 44 : index
    %288 = memref.load %arg2[%c44] : memref<144xf32, #tpu.memory_space<smem>>
    %289 = vector.broadcast %288 : f32 to vector<16x16xf32>
    %290 = arith.mulf %289, %287 : vector<16x16xf32>
    %291 = arith.addf %273, %290 : vector<16x16xf32>
    %c45 = arith.constant 45 : index
    %292 = memref.load %arg2[%c45] : memref<144xf32, #tpu.memory_space<smem>>
    %293 = vector.broadcast %292 : f32 to vector<16x16xf32>
    %294 = arith.mulf %293, %287 : vector<16x16xf32>
    %295 = arith.addf %277, %294 : vector<16x16xf32>
    %c46 = arith.constant 46 : index
    %296 = memref.load %arg2[%c46] : memref<144xf32, #tpu.memory_space<smem>>
    %297 = vector.broadcast %296 : f32 to vector<16x16xf32>
    %298 = arith.mulf %297, %287 : vector<16x16xf32>
    %299 = arith.addf %281, %298 : vector<16x16xf32>
    %c47 = arith.constant 47 : index
    %300 = memref.load %arg2[%c47] : memref<144xf32, #tpu.memory_space<smem>>
    %301 = vector.broadcast %300 : f32 to vector<16x16xf32>
    %302 = arith.mulf %301, %287 : vector<16x16xf32>
    %303 = arith.addf %285, %302 : vector<16x16xf32>
    %c0_136 = arith.constant 0 : index
    %c1_137 = arith.constant 1 : index
    %c0_138 = arith.constant 0 : index
    %304 = vector.load %arg5[%c0_136, %c1_137, %c0_138] : memref<4x18x18xf32, #tpu.memory_space<vmem>>, vector<1x16x16xf32>
    %305 = vector.shape_cast %304 : vector<1x16x16xf32> to vector<16x16xf32>
    %c48 = arith.constant 48 : index
    %306 = memref.load %arg2[%c48] : memref<144xf32, #tpu.memory_space<smem>>
    %307 = vector.broadcast %306 : f32 to vector<16x16xf32>
    %308 = arith.mulf %307, %305 : vector<16x16xf32>
    %309 = arith.addf %291, %308 : vector<16x16xf32>
    %c49 = arith.constant 49 : index
    %310 = memref.load %arg2[%c49] : memref<144xf32, #tpu.memory_space<smem>>
    %311 = vector.broadcast %310 : f32 to vector<16x16xf32>
    %312 = arith.mulf %311, %305 : vector<16x16xf32>
    %313 = arith.addf %295, %312 : vector<16x16xf32>
    %c50 = arith.constant 50 : index
    %314 = memref.load %arg2[%c50] : memref<144xf32, #tpu.memory_space<smem>>
    %315 = vector.broadcast %314 : f32 to vector<16x16xf32>
    %316 = arith.mulf %315, %305 : vector<16x16xf32>
    %317 = arith.addf %299, %316 : vector<16x16xf32>
    %c51 = arith.constant 51 : index
    %318 = memref.load %arg2[%c51] : memref<144xf32, #tpu.memory_space<smem>>
    %319 = vector.broadcast %318 : f32 to vector<16x16xf32>
    %320 = arith.mulf %319, %305 : vector<16x16xf32>
    %321 = arith.addf %303, %320 : vector<16x16xf32>
    %c1_139 = arith.constant 1 : index
    %c1_140 = arith.constant 1 : index
    %c0_141 = arith.constant 0 : index
    %322 = vector.load %arg5[%c1_139, %c1_140, %c0_141] : memref<4x18x18xf32, #tpu.memory_space<vmem>>, vector<1x16x16xf32>
    %323 = vector.shape_cast %322 : vector<1x16x16xf32> to vector<16x16xf32>
    %c52 = arith.constant 52 : index
    %324 = memref.load %arg2[%c52] : memref<144xf32, #tpu.memory_space<smem>>
    %325 = vector.broadcast %324 : f32 to vector<16x16xf32>
    %326 = arith.mulf %325, %323 : vector<16x16xf32>
    %327 = arith.addf %309, %326 : vector<16x16xf32>
    %c53 = arith.constant 53 : index
    %328 = memref.load %arg2[%c53] : memref<144xf32, #tpu.memory_space<smem>>
    %329 = vector.broadcast %328 : f32 to vector<16x16xf32>
    %330 = arith.mulf %329, %323 : vector<16x16xf32>
    %331 = arith.addf %313, %330 : vector<16x16xf32>
    %c54 = arith.constant 54 : index
    %332 = memref.load %arg2[%c54] : memref<144xf32, #tpu.memory_space<smem>>
    %333 = vector.broadcast %332 : f32 to vector<16x16xf32>
    %334 = arith.mulf %333, %323 : vector<16x16xf32>
    %335 = arith.addf %317, %334 : vector<16x16xf32>
    %c55 = arith.constant 55 : index
    %336 = memref.load %arg2[%c55] : memref<144xf32, #tpu.memory_space<smem>>
    %337 = vector.broadcast %336 : f32 to vector<16x16xf32>
    %338 = arith.mulf %337, %323 : vector<16x16xf32>
    %339 = arith.addf %321, %338 : vector<16x16xf32>
    %c2_142 = arith.constant 2 : index
    %c1_143 = arith.constant 1 : index
    %c0_144 = arith.constant 0 : index
    %340 = vector.load %arg5[%c2_142, %c1_143, %c0_144] : memref<4x18x18xf32, #tpu.memory_space<vmem>>, vector<1x16x16xf32>
    %341 = vector.shape_cast %340 : vector<1x16x16xf32> to vector<16x16xf32>
    %c56 = arith.constant 56 : index
    %342 = memref.load %arg2[%c56] : memref<144xf32, #tpu.memory_space<smem>>
    %343 = vector.broadcast %342 : f32 to vector<16x16xf32>
    %344 = arith.mulf %343, %341 : vector<16x16xf32>
    %345 = arith.addf %327, %344 : vector<16x16xf32>
    %c57 = arith.constant 57 : index
    %346 = memref.load %arg2[%c57] : memref<144xf32, #tpu.memory_space<smem>>
    %347 = vector.broadcast %346 : f32 to vector<16x16xf32>
    %348 = arith.mulf %347, %341 : vector<16x16xf32>
    %349 = arith.addf %331, %348 : vector<16x16xf32>
    %c58 = arith.constant 58 : index
    %350 = memref.load %arg2[%c58] : memref<144xf32, #tpu.memory_space<smem>>
    %351 = vector.broadcast %350 : f32 to vector<16x16xf32>
    %352 = arith.mulf %351, %341 : vector<16x16xf32>
    %353 = arith.addf %335, %352 : vector<16x16xf32>
    %c59 = arith.constant 59 : index
    %354 = memref.load %arg2[%c59] : memref<144xf32, #tpu.memory_space<smem>>
    %355 = vector.broadcast %354 : f32 to vector<16x16xf32>
    %356 = arith.mulf %355, %341 : vector<16x16xf32>
    %357 = arith.addf %339, %356 : vector<16x16xf32>
    %c3_145 = arith.constant 3 : index
    %c1_146 = arith.constant 1 : index
    %c0_147 = arith.constant 0 : index
    %358 = vector.load %arg5[%c3_145, %c1_146, %c0_147] : memref<4x18x18xf32, #tpu.memory_space<vmem>>, vector<1x16x16xf32>
    %359 = vector.shape_cast %358 : vector<1x16x16xf32> to vector<16x16xf32>
    %c60 = arith.constant 60 : index
    %360 = memref.load %arg2[%c60] : memref<144xf32, #tpu.memory_space<smem>>
    %361 = vector.broadcast %360 : f32 to vector<16x16xf32>
    %362 = arith.mulf %361, %359 : vector<16x16xf32>
    %363 = arith.addf %345, %362 : vector<16x16xf32>
    %c61 = arith.constant 61 : index
    %364 = memref.load %arg2[%c61] : memref<144xf32, #tpu.memory_space<smem>>
    %365 = vector.broadcast %364 : f32 to vector<16x16xf32>
    %366 = arith.mulf %365, %359 : vector<16x16xf32>
    %367 = arith.addf %349, %366 : vector<16x16xf32>
    %c62 = arith.constant 62 : index
    %368 = memref.load %arg2[%c62] : memref<144xf32, #tpu.memory_space<smem>>
    %369 = vector.broadcast %368 : f32 to vector<16x16xf32>
    %370 = arith.mulf %369, %359 : vector<16x16xf32>
    %371 = arith.addf %353, %370 : vector<16x16xf32>
    %c63 = arith.constant 63 : index
    %372 = memref.load %arg2[%c63] : memref<144xf32, #tpu.memory_space<smem>>
    %373 = vector.broadcast %372 : f32 to vector<16x16xf32>
    %374 = arith.mulf %373, %359 : vector<16x16xf32>
    %375 = arith.addf %357, %374 : vector<16x16xf32>
    %c0_148 = arith.constant 0 : index
    %c1_149 = arith.constant 1 : index
    %c1_150 = arith.constant 1 : index
    %376 = vector.load %arg5[%c0_148, %c1_149, %c1_150] : memref<4x18x18xf32, #tpu.memory_space<vmem>>, vector<1x16x16xf32>
    %377 = vector.shape_cast %376 : vector<1x16x16xf32> to vector<16x16xf32>
    %c64 = arith.constant 64 : index
    %378 = memref.load %arg2[%c64] : memref<144xf32, #tpu.memory_space<smem>>
    %379 = vector.broadcast %378 : f32 to vector<16x16xf32>
    %380 = arith.mulf %379, %377 : vector<16x16xf32>
    %381 = arith.addf %363, %380 : vector<16x16xf32>
    %c65 = arith.constant 65 : index
    %382 = memref.load %arg2[%c65] : memref<144xf32, #tpu.memory_space<smem>>
    %383 = vector.broadcast %382 : f32 to vector<16x16xf32>
    %384 = arith.mulf %383, %377 : vector<16x16xf32>
    %385 = arith.addf %367, %384 : vector<16x16xf32>
    %c66 = arith.constant 66 : index
    %386 = memref.load %arg2[%c66] : memref<144xf32, #tpu.memory_space<smem>>
    %387 = vector.broadcast %386 : f32 to vector<16x16xf32>
    %388 = arith.mulf %387, %377 : vector<16x16xf32>
    %389 = arith.addf %371, %388 : vector<16x16xf32>
    %c67 = arith.constant 67 : index
    %390 = memref.load %arg2[%c67] : memref<144xf32, #tpu.memory_space<smem>>
    %391 = vector.broadcast %390 : f32 to vector<16x16xf32>
    %392 = arith.mulf %391, %377 : vector<16x16xf32>
    %393 = arith.addf %375, %392 : vector<16x16xf32>
    %c1_151 = arith.constant 1 : index
    %c1_152 = arith.constant 1 : index
    %c1_153 = arith.constant 1 : index
    %394 = vector.load %arg5[%c1_151, %c1_152, %c1_153] : memref<4x18x18xf32, #tpu.memory_space<vmem>>, vector<1x16x16xf32>
    %395 = vector.shape_cast %394 : vector<1x16x16xf32> to vector<16x16xf32>
    %c68 = arith.constant 68 : index
    %396 = memref.load %arg2[%c68] : memref<144xf32, #tpu.memory_space<smem>>
    %397 = vector.broadcast %396 : f32 to vector<16x16xf32>
    %398 = arith.mulf %397, %395 : vector<16x16xf32>
    %399 = arith.addf %381, %398 : vector<16x16xf32>
    %c69 = arith.constant 69 : index
    %400 = memref.load %arg2[%c69] : memref<144xf32, #tpu.memory_space<smem>>
    %401 = vector.broadcast %400 : f32 to vector<16x16xf32>
    %402 = arith.mulf %401, %395 : vector<16x16xf32>
    %403 = arith.addf %385, %402 : vector<16x16xf32>
    %c70 = arith.constant 70 : index
    %404 = memref.load %arg2[%c70] : memref<144xf32, #tpu.memory_space<smem>>
    %405 = vector.broadcast %404 : f32 to vector<16x16xf32>
    %406 = arith.mulf %405, %395 : vector<16x16xf32>
    %407 = arith.addf %389, %406 : vector<16x16xf32>
    %c71 = arith.constant 71 : index
    %408 = memref.load %arg2[%c71] : memref<144xf32, #tpu.memory_space<smem>>
    %409 = vector.broadcast %408 : f32 to vector<16x16xf32>
    %410 = arith.mulf %409, %395 : vector<16x16xf32>
    %411 = arith.addf %393, %410 : vector<16x16xf32>
    %c2_154 = arith.constant 2 : index
    %c1_155 = arith.constant 1 : index
    %c1_156 = arith.constant 1 : index
    %412 = vector.load %arg5[%c2_154, %c1_155, %c1_156] : memref<4x18x18xf32, #tpu.memory_space<vmem>>, vector<1x16x16xf32>
    %413 = vector.shape_cast %412 : vector<1x16x16xf32> to vector<16x16xf32>
    %c72 = arith.constant 72 : index
    %414 = memref.load %arg2[%c72] : memref<144xf32, #tpu.memory_space<smem>>
    %415 = vector.broadcast %414 : f32 to vector<16x16xf32>
    %416 = arith.mulf %415, %413 : vector<16x16xf32>
    %417 = arith.addf %399, %416 : vector<16x16xf32>
    %c73 = arith.constant 73 : index
    %418 = memref.load %arg2[%c73] : memref<144xf32, #tpu.memory_space<smem>>
    %419 = vector.broadcast %418 : f32 to vector<16x16xf32>
    %420 = arith.mulf %419, %413 : vector<16x16xf32>
    %421 = arith.addf %403, %420 : vector<16x16xf32>
    %c74 = arith.constant 74 : index
    %422 = memref.load %arg2[%c74] : memref<144xf32, #tpu.memory_space<smem>>
    %423 = vector.broadcast %422 : f32 to vector<16x16xf32>
    %424 = arith.mulf %423, %413 : vector<16x16xf32>
    %425 = arith.addf %407, %424 : vector<16x16xf32>
    %c75 = arith.constant 75 : index
    %426 = memref.load %arg2[%c75] : memref<144xf32, #tpu.memory_space<smem>>
    %427 = vector.broadcast %426 : f32 to vector<16x16xf32>
    %428 = arith.mulf %427, %413 : vector<16x16xf32>
    %429 = arith.addf %411, %428 : vector<16x16xf32>
    %c3_157 = arith.constant 3 : index
    %c1_158 = arith.constant 1 : index
    %c1_159 = arith.constant 1 : index
    %430 = vector.load %arg5[%c3_157, %c1_158, %c1_159] : memref<4x18x18xf32, #tpu.memory_space<vmem>>, vector<1x16x16xf32>
    %431 = vector.shape_cast %430 : vector<1x16x16xf32> to vector<16x16xf32>
    %c76 = arith.constant 76 : index
    %432 = memref.load %arg2[%c76] : memref<144xf32, #tpu.memory_space<smem>>
    %433 = vector.broadcast %432 : f32 to vector<16x16xf32>
    %434 = arith.mulf %433, %431 : vector<16x16xf32>
    %435 = arith.addf %417, %434 : vector<16x16xf32>
    %c77 = arith.constant 77 : index
    %436 = memref.load %arg2[%c77] : memref<144xf32, #tpu.memory_space<smem>>
    %437 = vector.broadcast %436 : f32 to vector<16x16xf32>
    %438 = arith.mulf %437, %431 : vector<16x16xf32>
    %439 = arith.addf %421, %438 : vector<16x16xf32>
    %c78 = arith.constant 78 : index
    %440 = memref.load %arg2[%c78] : memref<144xf32, #tpu.memory_space<smem>>
    %441 = vector.broadcast %440 : f32 to vector<16x16xf32>
    %442 = arith.mulf %441, %431 : vector<16x16xf32>
    %443 = arith.addf %425, %442 : vector<16x16xf32>
    %c79 = arith.constant 79 : index
    %444 = memref.load %arg2[%c79] : memref<144xf32, #tpu.memory_space<smem>>
    %445 = vector.broadcast %444 : f32 to vector<16x16xf32>
    %446 = arith.mulf %445, %431 : vector<16x16xf32>
    %447 = arith.addf %429, %446 : vector<16x16xf32>
    %c0_160 = arith.constant 0 : index
    %c1_161 = arith.constant 1 : index
    %c2_162 = arith.constant 2 : index
    %448 = vector.load %arg5[%c0_160, %c1_161, %c2_162] : memref<4x18x18xf32, #tpu.memory_space<vmem>>, vector<1x16x16xf32>
    %449 = vector.shape_cast %448 : vector<1x16x16xf32> to vector<16x16xf32>
    %c80 = arith.constant 80 : index
    %450 = memref.load %arg2[%c80] : memref<144xf32, #tpu.memory_space<smem>>
    %451 = vector.broadcast %450 : f32 to vector<16x16xf32>
    %452 = arith.mulf %451, %449 : vector<16x16xf32>
    %453 = arith.addf %435, %452 : vector<16x16xf32>
    %c81 = arith.constant 81 : index
    %454 = memref.load %arg2[%c81] : memref<144xf32, #tpu.memory_space<smem>>
    %455 = vector.broadcast %454 : f32 to vector<16x16xf32>
    %456 = arith.mulf %455, %449 : vector<16x16xf32>
    %457 = arith.addf %439, %456 : vector<16x16xf32>
    %c82 = arith.constant 82 : index
    %458 = memref.load %arg2[%c82] : memref<144xf32, #tpu.memory_space<smem>>
    %459 = vector.broadcast %458 : f32 to vector<16x16xf32>
    %460 = arith.mulf %459, %449 : vector<16x16xf32>
    %461 = arith.addf %443, %460 : vector<16x16xf32>
    %c83 = arith.constant 83 : index
    %462 = memref.load %arg2[%c83] : memref<144xf32, #tpu.memory_space<smem>>
    %463 = vector.broadcast %462 : f32 to vector<16x16xf32>
    %464 = arith.mulf %463, %449 : vector<16x16xf32>
    %465 = arith.addf %447, %464 : vector<16x16xf32>
    %c1_163 = arith.constant 1 : index
    %c1_164 = arith.constant 1 : index
    %c2_165 = arith.constant 2 : index
    %466 = vector.load %arg5[%c1_163, %c1_164, %c2_165] : memref<4x18x18xf32, #tpu.memory_space<vmem>>, vector<1x16x16xf32>
    %467 = vector.shape_cast %466 : vector<1x16x16xf32> to vector<16x16xf32>
    %c84 = arith.constant 84 : index
    %468 = memref.load %arg2[%c84] : memref<144xf32, #tpu.memory_space<smem>>
    %469 = vector.broadcast %468 : f32 to vector<16x16xf32>
    %470 = arith.mulf %469, %467 : vector<16x16xf32>
    %471 = arith.addf %453, %470 : vector<16x16xf32>
    %c85 = arith.constant 85 : index
    %472 = memref.load %arg2[%c85] : memref<144xf32, #tpu.memory_space<smem>>
    %473 = vector.broadcast %472 : f32 to vector<16x16xf32>
    %474 = arith.mulf %473, %467 : vector<16x16xf32>
    %475 = arith.addf %457, %474 : vector<16x16xf32>
    %c86 = arith.constant 86 : index
    %476 = memref.load %arg2[%c86] : memref<144xf32, #tpu.memory_space<smem>>
    %477 = vector.broadcast %476 : f32 to vector<16x16xf32>
    %478 = arith.mulf %477, %467 : vector<16x16xf32>
    %479 = arith.addf %461, %478 : vector<16x16xf32>
    %c87 = arith.constant 87 : index
    %480 = memref.load %arg2[%c87] : memref<144xf32, #tpu.memory_space<smem>>
    %481 = vector.broadcast %480 : f32 to vector<16x16xf32>
    %482 = arith.mulf %481, %467 : vector<16x16xf32>
    %483 = arith.addf %465, %482 : vector<16x16xf32>
    %c2_166 = arith.constant 2 : index
    %c1_167 = arith.constant 1 : index
    %c2_168 = arith.constant 2 : index
    %484 = vector.load %arg5[%c2_166, %c1_167, %c2_168] : memref<4x18x18xf32, #tpu.memory_space<vmem>>, vector<1x16x16xf32>
    %485 = vector.shape_cast %484 : vector<1x16x16xf32> to vector<16x16xf32>
    %c88 = arith.constant 88 : index
    %486 = memref.load %arg2[%c88] : memref<144xf32, #tpu.memory_space<smem>>
    %487 = vector.broadcast %486 : f32 to vector<16x16xf32>
    %488 = arith.mulf %487, %485 : vector<16x16xf32>
    %489 = arith.addf %471, %488 : vector<16x16xf32>
    %c89 = arith.constant 89 : index
    %490 = memref.load %arg2[%c89] : memref<144xf32, #tpu.memory_space<smem>>
    %491 = vector.broadcast %490 : f32 to vector<16x16xf32>
    %492 = arith.mulf %491, %485 : vector<16x16xf32>
    %493 = arith.addf %475, %492 : vector<16x16xf32>
    %c90 = arith.constant 90 : index
    %494 = memref.load %arg2[%c90] : memref<144xf32, #tpu.memory_space<smem>>
    %495 = vector.broadcast %494 : f32 to vector<16x16xf32>
    %496 = arith.mulf %495, %485 : vector<16x16xf32>
    %497 = arith.addf %479, %496 : vector<16x16xf32>
    %c91 = arith.constant 91 : index
    %498 = memref.load %arg2[%c91] : memref<144xf32, #tpu.memory_space<smem>>
    %499 = vector.broadcast %498 : f32 to vector<16x16xf32>
    %500 = arith.mulf %499, %485 : vector<16x16xf32>
    %501 = arith.addf %483, %500 : vector<16x16xf32>
    %c3_169 = arith.constant 3 : index
    %c1_170 = arith.constant 1 : index
    %c2_171 = arith.constant 2 : index
    %502 = vector.load %arg5[%c3_169, %c1_170, %c2_171] : memref<4x18x18xf32, #tpu.memory_space<vmem>>, vector<1x16x16xf32>
    %503 = vector.shape_cast %502 : vector<1x16x16xf32> to vector<16x16xf32>
    %c92 = arith.constant 92 : index
    %504 = memref.load %arg2[%c92] : memref<144xf32, #tpu.memory_space<smem>>
    %505 = vector.broadcast %504 : f32 to vector<16x16xf32>
    %506 = arith.mulf %505, %503 : vector<16x16xf32>
    %507 = arith.addf %489, %506 : vector<16x16xf32>
    %c93 = arith.constant 93 : index
    %508 = memref.load %arg2[%c93] : memref<144xf32, #tpu.memory_space<smem>>
    %509 = vector.broadcast %508 : f32 to vector<16x16xf32>
    %510 = arith.mulf %509, %503 : vector<16x16xf32>
    %511 = arith.addf %493, %510 : vector<16x16xf32>
    %c94 = arith.constant 94 : index
    %512 = memref.load %arg2[%c94] : memref<144xf32, #tpu.memory_space<smem>>
    %513 = vector.broadcast %512 : f32 to vector<16x16xf32>
    %514 = arith.mulf %513, %503 : vector<16x16xf32>
    %515 = arith.addf %497, %514 : vector<16x16xf32>
    %c95 = arith.constant 95 : index
    %516 = memref.load %arg2[%c95] : memref<144xf32, #tpu.memory_space<smem>>
    %517 = vector.broadcast %516 : f32 to vector<16x16xf32>
    %518 = arith.mulf %517, %503 : vector<16x16xf32>
    %519 = arith.addf %501, %518 : vector<16x16xf32>
    %c0_172 = arith.constant 0 : index
    %c2_173 = arith.constant 2 : index
    %c0_174 = arith.constant 0 : index
    %520 = vector.load %arg5[%c0_172, %c2_173, %c0_174] : memref<4x18x18xf32, #tpu.memory_space<vmem>>, vector<1x16x16xf32>
    %521 = vector.shape_cast %520 : vector<1x16x16xf32> to vector<16x16xf32>
    %c96 = arith.constant 96 : index
    %522 = memref.load %arg2[%c96] : memref<144xf32, #tpu.memory_space<smem>>
    %523 = vector.broadcast %522 : f32 to vector<16x16xf32>
    %524 = arith.mulf %523, %521 : vector<16x16xf32>
    %525 = arith.addf %507, %524 : vector<16x16xf32>
    %c97 = arith.constant 97 : index
    %526 = memref.load %arg2[%c97] : memref<144xf32, #tpu.memory_space<smem>>
    %527 = vector.broadcast %526 : f32 to vector<16x16xf32>
    %528 = arith.mulf %527, %521 : vector<16x16xf32>
    %529 = arith.addf %511, %528 : vector<16x16xf32>
    %c98 = arith.constant 98 : index
    %530 = memref.load %arg2[%c98] : memref<144xf32, #tpu.memory_space<smem>>
    %531 = vector.broadcast %530 : f32 to vector<16x16xf32>
    %532 = arith.mulf %531, %521 : vector<16x16xf32>
    %533 = arith.addf %515, %532 : vector<16x16xf32>
    %c99 = arith.constant 99 : index
    %534 = memref.load %arg2[%c99] : memref<144xf32, #tpu.memory_space<smem>>
    %535 = vector.broadcast %534 : f32 to vector<16x16xf32>
    %536 = arith.mulf %535, %521 : vector<16x16xf32>
    %537 = arith.addf %519, %536 : vector<16x16xf32>
    %c1_175 = arith.constant 1 : index
    %c2_176 = arith.constant 2 : index
    %c0_177 = arith.constant 0 : index
    %538 = vector.load %arg5[%c1_175, %c2_176, %c0_177] : memref<4x18x18xf32, #tpu.memory_space<vmem>>, vector<1x16x16xf32>
    %539 = vector.shape_cast %538 : vector<1x16x16xf32> to vector<16x16xf32>
    %c100 = arith.constant 100 : index
    %540 = memref.load %arg2[%c100] : memref<144xf32, #tpu.memory_space<smem>>
    %541 = vector.broadcast %540 : f32 to vector<16x16xf32>
    %542 = arith.mulf %541, %539 : vector<16x16xf32>
    %543 = arith.addf %525, %542 : vector<16x16xf32>
    %c101 = arith.constant 101 : index
    %544 = memref.load %arg2[%c101] : memref<144xf32, #tpu.memory_space<smem>>
    %545 = vector.broadcast %544 : f32 to vector<16x16xf32>
    %546 = arith.mulf %545, %539 : vector<16x16xf32>
    %547 = arith.addf %529, %546 : vector<16x16xf32>
    %c102 = arith.constant 102 : index
    %548 = memref.load %arg2[%c102] : memref<144xf32, #tpu.memory_space<smem>>
    %549 = vector.broadcast %548 : f32 to vector<16x16xf32>
    %550 = arith.mulf %549, %539 : vector<16x16xf32>
    %551 = arith.addf %533, %550 : vector<16x16xf32>
    %c103 = arith.constant 103 : index
    %552 = memref.load %arg2[%c103] : memref<144xf32, #tpu.memory_space<smem>>
    %553 = vector.broadcast %552 : f32 to vector<16x16xf32>
    %554 = arith.mulf %553, %539 : vector<16x16xf32>
    %555 = arith.addf %537, %554 : vector<16x16xf32>
    %c2_178 = arith.constant 2 : index
    %c2_179 = arith.constant 2 : index
    %c0_180 = arith.constant 0 : index
    %556 = vector.load %arg5[%c2_178, %c2_179, %c0_180] : memref<4x18x18xf32, #tpu.memory_space<vmem>>, vector<1x16x16xf32>
    %557 = vector.shape_cast %556 : vector<1x16x16xf32> to vector<16x16xf32>
    %c104 = arith.constant 104 : index
    %558 = memref.load %arg2[%c104] : memref<144xf32, #tpu.memory_space<smem>>
    %559 = vector.broadcast %558 : f32 to vector<16x16xf32>
    %560 = arith.mulf %559, %557 : vector<16x16xf32>
    %561 = arith.addf %543, %560 : vector<16x16xf32>
    %c105 = arith.constant 105 : index
    %562 = memref.load %arg2[%c105] : memref<144xf32, #tpu.memory_space<smem>>
    %563 = vector.broadcast %562 : f32 to vector<16x16xf32>
    %564 = arith.mulf %563, %557 : vector<16x16xf32>
    %565 = arith.addf %547, %564 : vector<16x16xf32>
    %c106 = arith.constant 106 : index
    %566 = memref.load %arg2[%c106] : memref<144xf32, #tpu.memory_space<smem>>
    %567 = vector.broadcast %566 : f32 to vector<16x16xf32>
    %568 = arith.mulf %567, %557 : vector<16x16xf32>
    %569 = arith.addf %551, %568 : vector<16x16xf32>
    %c107 = arith.constant 107 : index
    %570 = memref.load %arg2[%c107] : memref<144xf32, #tpu.memory_space<smem>>
    %571 = vector.broadcast %570 : f32 to vector<16x16xf32>
    %572 = arith.mulf %571, %557 : vector<16x16xf32>
    %573 = arith.addf %555, %572 : vector<16x16xf32>
    %c3_181 = arith.constant 3 : index
    %c2_182 = arith.constant 2 : index
    %c0_183 = arith.constant 0 : index
    %574 = vector.load %arg5[%c3_181, %c2_182, %c0_183] : memref<4x18x18xf32, #tpu.memory_space<vmem>>, vector<1x16x16xf32>
    %575 = vector.shape_cast %574 : vector<1x16x16xf32> to vector<16x16xf32>
    %c108 = arith.constant 108 : index
    %576 = memref.load %arg2[%c108] : memref<144xf32, #tpu.memory_space<smem>>
    %577 = vector.broadcast %576 : f32 to vector<16x16xf32>
    %578 = arith.mulf %577, %575 : vector<16x16xf32>
    %579 = arith.addf %561, %578 : vector<16x16xf32>
    %c109 = arith.constant 109 : index
    %580 = memref.load %arg2[%c109] : memref<144xf32, #tpu.memory_space<smem>>
    %581 = vector.broadcast %580 : f32 to vector<16x16xf32>
    %582 = arith.mulf %581, %575 : vector<16x16xf32>
    %583 = arith.addf %565, %582 : vector<16x16xf32>
    %c110 = arith.constant 110 : index
    %584 = memref.load %arg2[%c110] : memref<144xf32, #tpu.memory_space<smem>>
    %585 = vector.broadcast %584 : f32 to vector<16x16xf32>
    %586 = arith.mulf %585, %575 : vector<16x16xf32>
    %587 = arith.addf %569, %586 : vector<16x16xf32>
    %c111 = arith.constant 111 : index
    %588 = memref.load %arg2[%c111] : memref<144xf32, #tpu.memory_space<smem>>
    %589 = vector.broadcast %588 : f32 to vector<16x16xf32>
    %590 = arith.mulf %589, %575 : vector<16x16xf32>
    %591 = arith.addf %573, %590 : vector<16x16xf32>
    %c0_184 = arith.constant 0 : index
    %c2_185 = arith.constant 2 : index
    %c1_186 = arith.constant 1 : index
    %592 = vector.load %arg5[%c0_184, %c2_185, %c1_186] : memref<4x18x18xf32, #tpu.memory_space<vmem>>, vector<1x16x16xf32>
    %593 = vector.shape_cast %592 : vector<1x16x16xf32> to vector<16x16xf32>
    %c112 = arith.constant 112 : index
    %594 = memref.load %arg2[%c112] : memref<144xf32, #tpu.memory_space<smem>>
    %595 = vector.broadcast %594 : f32 to vector<16x16xf32>
    %596 = arith.mulf %595, %593 : vector<16x16xf32>
    %597 = arith.addf %579, %596 : vector<16x16xf32>
    %c113 = arith.constant 113 : index
    %598 = memref.load %arg2[%c113] : memref<144xf32, #tpu.memory_space<smem>>
    %599 = vector.broadcast %598 : f32 to vector<16x16xf32>
    %600 = arith.mulf %599, %593 : vector<16x16xf32>
    %601 = arith.addf %583, %600 : vector<16x16xf32>
    %c114 = arith.constant 114 : index
    %602 = memref.load %arg2[%c114] : memref<144xf32, #tpu.memory_space<smem>>
    %603 = vector.broadcast %602 : f32 to vector<16x16xf32>
    %604 = arith.mulf %603, %593 : vector<16x16xf32>
    %605 = arith.addf %587, %604 : vector<16x16xf32>
    %c115 = arith.constant 115 : index
    %606 = memref.load %arg2[%c115] : memref<144xf32, #tpu.memory_space<smem>>
    %607 = vector.broadcast %606 : f32 to vector<16x16xf32>
    %608 = arith.mulf %607, %593 : vector<16x16xf32>
    %609 = arith.addf %591, %608 : vector<16x16xf32>
    %c1_187 = arith.constant 1 : index
    %c2_188 = arith.constant 2 : index
    %c1_189 = arith.constant 1 : index
    %610 = vector.load %arg5[%c1_187, %c2_188, %c1_189] : memref<4x18x18xf32, #tpu.memory_space<vmem>>, vector<1x16x16xf32>
    %611 = vector.shape_cast %610 : vector<1x16x16xf32> to vector<16x16xf32>
    %c116 = arith.constant 116 : index
    %612 = memref.load %arg2[%c116] : memref<144xf32, #tpu.memory_space<smem>>
    %613 = vector.broadcast %612 : f32 to vector<16x16xf32>
    %614 = arith.mulf %613, %611 : vector<16x16xf32>
    %615 = arith.addf %597, %614 : vector<16x16xf32>
    %c117 = arith.constant 117 : index
    %616 = memref.load %arg2[%c117] : memref<144xf32, #tpu.memory_space<smem>>
    %617 = vector.broadcast %616 : f32 to vector<16x16xf32>
    %618 = arith.mulf %617, %611 : vector<16x16xf32>
    %619 = arith.addf %601, %618 : vector<16x16xf32>
    %c118 = arith.constant 118 : index
    %620 = memref.load %arg2[%c118] : memref<144xf32, #tpu.memory_space<smem>>
    %621 = vector.broadcast %620 : f32 to vector<16x16xf32>
    %622 = arith.mulf %621, %611 : vector<16x16xf32>
    %623 = arith.addf %605, %622 : vector<16x16xf32>
    %c119 = arith.constant 119 : index
    %624 = memref.load %arg2[%c119] : memref<144xf32, #tpu.memory_space<smem>>
    %625 = vector.broadcast %624 : f32 to vector<16x16xf32>
    %626 = arith.mulf %625, %611 : vector<16x16xf32>
    %627 = arith.addf %609, %626 : vector<16x16xf32>
    %c2_190 = arith.constant 2 : index
    %c2_191 = arith.constant 2 : index
    %c1_192 = arith.constant 1 : index
    %628 = vector.load %arg5[%c2_190, %c2_191, %c1_192] : memref<4x18x18xf32, #tpu.memory_space<vmem>>, vector<1x16x16xf32>
    %629 = vector.shape_cast %628 : vector<1x16x16xf32> to vector<16x16xf32>
    %c120 = arith.constant 120 : index
    %630 = memref.load %arg2[%c120] : memref<144xf32, #tpu.memory_space<smem>>
    %631 = vector.broadcast %630 : f32 to vector<16x16xf32>
    %632 = arith.mulf %631, %629 : vector<16x16xf32>
    %633 = arith.addf %615, %632 : vector<16x16xf32>
    %c121 = arith.constant 121 : index
    %634 = memref.load %arg2[%c121] : memref<144xf32, #tpu.memory_space<smem>>
    %635 = vector.broadcast %634 : f32 to vector<16x16xf32>
    %636 = arith.mulf %635, %629 : vector<16x16xf32>
    %637 = arith.addf %619, %636 : vector<16x16xf32>
    %c122 = arith.constant 122 : index
    %638 = memref.load %arg2[%c122] : memref<144xf32, #tpu.memory_space<smem>>
    %639 = vector.broadcast %638 : f32 to vector<16x16xf32>
    %640 = arith.mulf %639, %629 : vector<16x16xf32>
    %641 = arith.addf %623, %640 : vector<16x16xf32>
    %c123 = arith.constant 123 : index
    %642 = memref.load %arg2[%c123] : memref<144xf32, #tpu.memory_space<smem>>
    %643 = vector.broadcast %642 : f32 to vector<16x16xf32>
    %644 = arith.mulf %643, %629 : vector<16x16xf32>
    %645 = arith.addf %627, %644 : vector<16x16xf32>
    %c3_193 = arith.constant 3 : index
    %c2_194 = arith.constant 2 : index
    %c1_195 = arith.constant 1 : index
    %646 = vector.load %arg5[%c3_193, %c2_194, %c1_195] : memref<4x18x18xf32, #tpu.memory_space<vmem>>, vector<1x16x16xf32>
    %647 = vector.shape_cast %646 : vector<1x16x16xf32> to vector<16x16xf32>
    %c124 = arith.constant 124 : index
    %648 = memref.load %arg2[%c124] : memref<144xf32, #tpu.memory_space<smem>>
    %649 = vector.broadcast %648 : f32 to vector<16x16xf32>
    %650 = arith.mulf %649, %647 : vector<16x16xf32>
    %651 = arith.addf %633, %650 : vector<16x16xf32>
    %c125 = arith.constant 125 : index
    %652 = memref.load %arg2[%c125] : memref<144xf32, #tpu.memory_space<smem>>
    %653 = vector.broadcast %652 : f32 to vector<16x16xf32>
    %654 = arith.mulf %653, %647 : vector<16x16xf32>
    %655 = arith.addf %637, %654 : vector<16x16xf32>
    %c126 = arith.constant 126 : index
    %656 = memref.load %arg2[%c126] : memref<144xf32, #tpu.memory_space<smem>>
    %657 = vector.broadcast %656 : f32 to vector<16x16xf32>
    %658 = arith.mulf %657, %647 : vector<16x16xf32>
    %659 = arith.addf %641, %658 : vector<16x16xf32>
    %c127 = arith.constant 127 : index
    %660 = memref.load %arg2[%c127] : memref<144xf32, #tpu.memory_space<smem>>
    %661 = vector.broadcast %660 : f32 to vector<16x16xf32>
    %662 = arith.mulf %661, %647 : vector<16x16xf32>
    %663 = arith.addf %645, %662 : vector<16x16xf32>
    %c0_196 = arith.constant 0 : index
    %c2_197 = arith.constant 2 : index
    %c2_198 = arith.constant 2 : index
    %664 = vector.load %arg5[%c0_196, %c2_197, %c2_198] : memref<4x18x18xf32, #tpu.memory_space<vmem>>, vector<1x16x16xf32>
    %665 = vector.shape_cast %664 : vector<1x16x16xf32> to vector<16x16xf32>
    %c128 = arith.constant 128 : index
    %666 = memref.load %arg2[%c128] : memref<144xf32, #tpu.memory_space<smem>>
    %667 = vector.broadcast %666 : f32 to vector<16x16xf32>
    %668 = arith.mulf %667, %665 : vector<16x16xf32>
    %669 = arith.addf %651, %668 : vector<16x16xf32>
    %c129 = arith.constant 129 : index
    %670 = memref.load %arg2[%c129] : memref<144xf32, #tpu.memory_space<smem>>
    %671 = vector.broadcast %670 : f32 to vector<16x16xf32>
    %672 = arith.mulf %671, %665 : vector<16x16xf32>
    %673 = arith.addf %655, %672 : vector<16x16xf32>
    %c130 = arith.constant 130 : index
    %674 = memref.load %arg2[%c130] : memref<144xf32, #tpu.memory_space<smem>>
    %675 = vector.broadcast %674 : f32 to vector<16x16xf32>
    %676 = arith.mulf %675, %665 : vector<16x16xf32>
    %677 = arith.addf %659, %676 : vector<16x16xf32>
    %c131 = arith.constant 131 : index
    %678 = memref.load %arg2[%c131] : memref<144xf32, #tpu.memory_space<smem>>
    %679 = vector.broadcast %678 : f32 to vector<16x16xf32>
    %680 = arith.mulf %679, %665 : vector<16x16xf32>
    %681 = arith.addf %663, %680 : vector<16x16xf32>
    %c1_199 = arith.constant 1 : index
    %c2_200 = arith.constant 2 : index
    %c2_201 = arith.constant 2 : index
    %682 = vector.load %arg5[%c1_199, %c2_200, %c2_201] : memref<4x18x18xf32, #tpu.memory_space<vmem>>, vector<1x16x16xf32>
    %683 = vector.shape_cast %682 : vector<1x16x16xf32> to vector<16x16xf32>
    %c132 = arith.constant 132 : index
    %684 = memref.load %arg2[%c132] : memref<144xf32, #tpu.memory_space<smem>>
    %685 = vector.broadcast %684 : f32 to vector<16x16xf32>
    %686 = arith.mulf %685, %683 : vector<16x16xf32>
    %687 = arith.addf %669, %686 : vector<16x16xf32>
    %c133 = arith.constant 133 : index
    %688 = memref.load %arg2[%c133] : memref<144xf32, #tpu.memory_space<smem>>
    %689 = vector.broadcast %688 : f32 to vector<16x16xf32>
    %690 = arith.mulf %689, %683 : vector<16x16xf32>
    %691 = arith.addf %673, %690 : vector<16x16xf32>
    %c134 = arith.constant 134 : index
    %692 = memref.load %arg2[%c134] : memref<144xf32, #tpu.memory_space<smem>>
    %693 = vector.broadcast %692 : f32 to vector<16x16xf32>
    %694 = arith.mulf %693, %683 : vector<16x16xf32>
    %695 = arith.addf %677, %694 : vector<16x16xf32>
    %c135 = arith.constant 135 : index
    %696 = memref.load %arg2[%c135] : memref<144xf32, #tpu.memory_space<smem>>
    %697 = vector.broadcast %696 : f32 to vector<16x16xf32>
    %698 = arith.mulf %697, %683 : vector<16x16xf32>
    %699 = arith.addf %681, %698 : vector<16x16xf32>
    %c2_202 = arith.constant 2 : index
    %c2_203 = arith.constant 2 : index
    %c2_204 = arith.constant 2 : index
    %700 = vector.load %arg5[%c2_202, %c2_203, %c2_204] : memref<4x18x18xf32, #tpu.memory_space<vmem>>, vector<1x16x16xf32>
    %701 = vector.shape_cast %700 : vector<1x16x16xf32> to vector<16x16xf32>
    %c136 = arith.constant 136 : index
    %702 = memref.load %arg2[%c136] : memref<144xf32, #tpu.memory_space<smem>>
    %703 = vector.broadcast %702 : f32 to vector<16x16xf32>
    %704 = arith.mulf %703, %701 : vector<16x16xf32>
    %705 = arith.addf %687, %704 : vector<16x16xf32>
    %c137 = arith.constant 137 : index
    %706 = memref.load %arg2[%c137] : memref<144xf32, #tpu.memory_space<smem>>
    %707 = vector.broadcast %706 : f32 to vector<16x16xf32>
    %708 = arith.mulf %707, %701 : vector<16x16xf32>
    %709 = arith.addf %691, %708 : vector<16x16xf32>
    %c138 = arith.constant 138 : index
    %710 = memref.load %arg2[%c138] : memref<144xf32, #tpu.memory_space<smem>>
    %711 = vector.broadcast %710 : f32 to vector<16x16xf32>
    %712 = arith.mulf %711, %701 : vector<16x16xf32>
    %713 = arith.addf %695, %712 : vector<16x16xf32>
    %c139 = arith.constant 139 : index
    %714 = memref.load %arg2[%c139] : memref<144xf32, #tpu.memory_space<smem>>
    %715 = vector.broadcast %714 : f32 to vector<16x16xf32>
    %716 = arith.mulf %715, %701 : vector<16x16xf32>
    %717 = arith.addf %699, %716 : vector<16x16xf32>
    %c3_205 = arith.constant 3 : index
    %c2_206 = arith.constant 2 : index
    %c2_207 = arith.constant 2 : index
    %718 = vector.load %arg5[%c3_205, %c2_206, %c2_207] : memref<4x18x18xf32, #tpu.memory_space<vmem>>, vector<1x16x16xf32>
    %719 = vector.shape_cast %718 : vector<1x16x16xf32> to vector<16x16xf32>
    %c140 = arith.constant 140 : index
    %720 = memref.load %arg2[%c140] : memref<144xf32, #tpu.memory_space<smem>>
    %721 = vector.broadcast %720 : f32 to vector<16x16xf32>
    %722 = arith.mulf %721, %719 : vector<16x16xf32>
    %723 = arith.addf %705, %722 : vector<16x16xf32>
    %c141 = arith.constant 141 : index
    %724 = memref.load %arg2[%c141] : memref<144xf32, #tpu.memory_space<smem>>
    %725 = vector.broadcast %724 : f32 to vector<16x16xf32>
    %726 = arith.mulf %725, %719 : vector<16x16xf32>
    %727 = arith.addf %709, %726 : vector<16x16xf32>
    %c142 = arith.constant 142 : index
    %728 = memref.load %arg2[%c142] : memref<144xf32, #tpu.memory_space<smem>>
    %729 = vector.broadcast %728 : f32 to vector<16x16xf32>
    %730 = arith.mulf %729, %719 : vector<16x16xf32>
    %731 = arith.addf %713, %730 : vector<16x16xf32>
    %c143 = arith.constant 143 : index
    %732 = memref.load %arg2[%c143] : memref<144xf32, #tpu.memory_space<smem>>
    %733 = vector.broadcast %732 : f32 to vector<16x16xf32>
    %734 = arith.mulf %733, %719 : vector<16x16xf32>
    %735 = arith.addf %717, %734 : vector<16x16xf32>
    %cst = arith.constant dense<0.000000e+00> : vector<16xf32>
    %736 = vector.multi_reduction <add>, %723, %cst [1] : vector<16x16xf32> to vector<16xf32>
    %737 = vector.shape_cast %736 : vector<16xf32> to vector<16x1xf32>
    %cst_208 = arith.constant dense<0.000000e+00> : vector<1xf32>
    %738 = vector.multi_reduction <add>, %737, %cst_208 [0] : vector<16x1xf32> to vector<1xf32>
    %739 = vector.shape_cast %738 : vector<1xf32> to vector<1x1xf32>
    %740 = arith.mulf %723, %723 : vector<16x16xf32>
    %cst_209 = arith.constant dense<0.000000e+00> : vector<16xf32>
    %741 = vector.multi_reduction <add>, %740, %cst_209 [1] : vector<16x16xf32> to vector<16xf32>
    %742 = vector.shape_cast %741 : vector<16xf32> to vector<16x1xf32>
    %cst_210 = arith.constant dense<0.000000e+00> : vector<1xf32>
    %743 = vector.multi_reduction <add>, %742, %cst_210 [0] : vector<16x1xf32> to vector<1xf32>
    %744 = vector.shape_cast %743 : vector<1xf32> to vector<1x1xf32>
    %cst_211 = arith.constant 3.906250e-03 : f32
    %745 = vector.broadcast %cst_211 : f32 to vector<1x1xf32>
    %746 = arith.mulf %739, %745 : vector<1x1xf32>
    %cst_212 = arith.constant 3.906250e-03 : f32
    %747 = vector.broadcast %cst_212 : f32 to vector<1x1xf32>
    %748 = arith.mulf %744, %747 : vector<1x1xf32>
    %749 = arith.mulf %746, %746 : vector<1x1xf32>
    %750 = arith.subf %748, %749 : vector<1x1xf32>
    %cst_213 = arith.constant 0.000000e+00 : f32
    %751 = vector.broadcast %cst_213 : f32 to vector<1x1xf32>
    %752 = arith.maximumf %750, %751 : vector<1x1xf32>
    %753 = vector.broadcast %746 : vector<1x1xf32> to vector<16x16xf32>
    %754 = arith.subf %723, %753 : vector<16x16xf32>
    %cst_214 = arith.constant 9.99999974E-6 : f32
    %755 = vector.broadcast %cst_214 : f32 to vector<1x1xf32>
    %756 = arith.addf %752, %755 : vector<1x1xf32>
    %757 = math.rsqrt %756 : vector<1x1xf32>
    %758 = vector.broadcast %757 : vector<1x1xf32> to vector<16x16xf32>
    %759 = arith.mulf %754, %758 : vector<16x16xf32>
    %cst_215 = arith.constant 0.000000e+00 : f32
    %760 = vector.broadcast %cst_215 : f32 to vector<16x16xf32>
    %761 = arith.maximumf %759, %760 : vector<16x16xf32>
    %cst_216 = arith.constant dense<0.000000e+00> : vector<16xf32>
    %762 = vector.multi_reduction <add>, %727, %cst_216 [1] : vector<16x16xf32> to vector<16xf32>
    %763 = vector.shape_cast %762 : vector<16xf32> to vector<16x1xf32>
    %cst_217 = arith.constant dense<0.000000e+00> : vector<1xf32>
    %764 = vector.multi_reduction <add>, %763, %cst_217 [0] : vector<16x1xf32> to vector<1xf32>
    %765 = vector.shape_cast %764 : vector<1xf32> to vector<1x1xf32>
    %766 = arith.mulf %727, %727 : vector<16x16xf32>
    %cst_218 = arith.constant dense<0.000000e+00> : vector<16xf32>
    %767 = vector.multi_reduction <add>, %766, %cst_218 [1] : vector<16x16xf32> to vector<16xf32>
    %768 = vector.shape_cast %767 : vector<16xf32> to vector<16x1xf32>
    %cst_219 = arith.constant dense<0.000000e+00> : vector<1xf32>
    %769 = vector.multi_reduction <add>, %768, %cst_219 [0] : vector<16x1xf32> to vector<1xf32>
    %770 = vector.shape_cast %769 : vector<1xf32> to vector<1x1xf32>
    %cst_220 = arith.constant 3.906250e-03 : f32
    %771 = vector.broadcast %cst_220 : f32 to vector<1x1xf32>
    %772 = arith.mulf %765, %771 : vector<1x1xf32>
    %cst_221 = arith.constant 3.906250e-03 : f32
    %773 = vector.broadcast %cst_221 : f32 to vector<1x1xf32>
    %774 = arith.mulf %770, %773 : vector<1x1xf32>
    %775 = arith.mulf %772, %772 : vector<1x1xf32>
    %776 = arith.subf %774, %775 : vector<1x1xf32>
    %cst_222 = arith.constant 0.000000e+00 : f32
    %777 = vector.broadcast %cst_222 : f32 to vector<1x1xf32>
    %778 = arith.maximumf %776, %777 : vector<1x1xf32>
    %779 = vector.broadcast %772 : vector<1x1xf32> to vector<16x16xf32>
    %780 = arith.subf %727, %779 : vector<16x16xf32>
    %cst_223 = arith.constant 9.99999974E-6 : f32
    %781 = vector.broadcast %cst_223 : f32 to vector<1x1xf32>
    %782 = arith.addf %778, %781 : vector<1x1xf32>
    %783 = math.rsqrt %782 : vector<1x1xf32>
    %784 = vector.broadcast %783 : vector<1x1xf32> to vector<16x16xf32>
    %785 = arith.mulf %780, %784 : vector<16x16xf32>
    %cst_224 = arith.constant 0.000000e+00 : f32
    %786 = vector.broadcast %cst_224 : f32 to vector<16x16xf32>
    %787 = arith.maximumf %785, %786 : vector<16x16xf32>
    %cst_225 = arith.constant dense<0.000000e+00> : vector<16xf32>
    %788 = vector.multi_reduction <add>, %731, %cst_225 [1] : vector<16x16xf32> to vector<16xf32>
    %789 = vector.shape_cast %788 : vector<16xf32> to vector<16x1xf32>
    %cst_226 = arith.constant dense<0.000000e+00> : vector<1xf32>
    %790 = vector.multi_reduction <add>, %789, %cst_226 [0] : vector<16x1xf32> to vector<1xf32>
    %791 = vector.shape_cast %790 : vector<1xf32> to vector<1x1xf32>
    %792 = arith.mulf %731, %731 : vector<16x16xf32>
    %cst_227 = arith.constant dense<0.000000e+00> : vector<16xf32>
    %793 = vector.multi_reduction <add>, %792, %cst_227 [1] : vector<16x16xf32> to vector<16xf32>
    %794 = vector.shape_cast %793 : vector<16xf32> to vector<16x1xf32>
    %cst_228 = arith.constant dense<0.000000e+00> : vector<1xf32>
    %795 = vector.multi_reduction <add>, %794, %cst_228 [0] : vector<16x1xf32> to vector<1xf32>
    %796 = vector.shape_cast %795 : vector<1xf32> to vector<1x1xf32>
    %cst_229 = arith.constant 3.906250e-03 : f32
    %797 = vector.broadcast %cst_229 : f32 to vector<1x1xf32>
    %798 = arith.mulf %791, %797 : vector<1x1xf32>
    %cst_230 = arith.constant 3.906250e-03 : f32
    %799 = vector.broadcast %cst_230 : f32 to vector<1x1xf32>
    %800 = arith.mulf %796, %799 : vector<1x1xf32>
    %801 = arith.mulf %798, %798 : vector<1x1xf32>
    %802 = arith.subf %800, %801 : vector<1x1xf32>
    %cst_231 = arith.constant 0.000000e+00 : f32
    %803 = vector.broadcast %cst_231 : f32 to vector<1x1xf32>
    %804 = arith.maximumf %802, %803 : vector<1x1xf32>
    %805 = vector.broadcast %798 : vector<1x1xf32> to vector<16x16xf32>
    %806 = arith.subf %731, %805 : vector<16x16xf32>
    %cst_232 = arith.constant 9.99999974E-6 : f32
    %807 = vector.broadcast %cst_232 : f32 to vector<1x1xf32>
    %808 = arith.addf %804, %807 : vector<1x1xf32>
    %809 = math.rsqrt %808 : vector<1x1xf32>
    %810 = vector.broadcast %809 : vector<1x1xf32> to vector<16x16xf32>
    %811 = arith.mulf %806, %810 : vector<16x16xf32>
    %cst_233 = arith.constant 0.000000e+00 : f32
    %812 = vector.broadcast %cst_233 : f32 to vector<16x16xf32>
    %813 = arith.maximumf %811, %812 : vector<16x16xf32>
    %cst_234 = arith.constant dense<0.000000e+00> : vector<16xf32>
    %814 = vector.multi_reduction <add>, %735, %cst_234 [1] : vector<16x16xf32> to vector<16xf32>
    %815 = vector.shape_cast %814 : vector<16xf32> to vector<16x1xf32>
    %cst_235 = arith.constant dense<0.000000e+00> : vector<1xf32>
    %816 = vector.multi_reduction <add>, %815, %cst_235 [0] : vector<16x1xf32> to vector<1xf32>
    %817 = vector.shape_cast %816 : vector<1xf32> to vector<1x1xf32>
    %818 = arith.mulf %735, %735 : vector<16x16xf32>
    %cst_236 = arith.constant dense<0.000000e+00> : vector<16xf32>
    %819 = vector.multi_reduction <add>, %818, %cst_236 [1] : vector<16x16xf32> to vector<16xf32>
    %820 = vector.shape_cast %819 : vector<16xf32> to vector<16x1xf32>
    %cst_237 = arith.constant dense<0.000000e+00> : vector<1xf32>
    %821 = vector.multi_reduction <add>, %820, %cst_237 [0] : vector<16x1xf32> to vector<1xf32>
    %822 = vector.shape_cast %821 : vector<1xf32> to vector<1x1xf32>
    %cst_238 = arith.constant 3.906250e-03 : f32
    %823 = vector.broadcast %cst_238 : f32 to vector<1x1xf32>
    %824 = arith.mulf %817, %823 : vector<1x1xf32>
    %cst_239 = arith.constant 3.906250e-03 : f32
    %825 = vector.broadcast %cst_239 : f32 to vector<1x1xf32>
    %826 = arith.mulf %822, %825 : vector<1x1xf32>
    %827 = arith.mulf %824, %824 : vector<1x1xf32>
    %828 = arith.subf %826, %827 : vector<1x1xf32>
    %cst_240 = arith.constant 0.000000e+00 : f32
    %829 = vector.broadcast %cst_240 : f32 to vector<1x1xf32>
    %830 = arith.maximumf %828, %829 : vector<1x1xf32>
    %831 = vector.broadcast %824 : vector<1x1xf32> to vector<16x16xf32>
    %832 = arith.subf %735, %831 : vector<16x16xf32>
    %cst_241 = arith.constant 9.99999974E-6 : f32
    %833 = vector.broadcast %cst_241 : f32 to vector<1x1xf32>
    %834 = arith.addf %830, %833 : vector<1x1xf32>
    %835 = math.rsqrt %834 : vector<1x1xf32>
    %836 = vector.broadcast %835 : vector<1x1xf32> to vector<16x16xf32>
    %837 = arith.mulf %832, %836 : vector<16x16xf32>
    %cst_242 = arith.constant 0.000000e+00 : f32
    %838 = vector.broadcast %cst_242 : f32 to vector<16x16xf32>
    %839 = arith.maximumf %837, %838 : vector<16x16xf32>
    %c0_243 = arith.constant 0 : index
    %c1_244 = arith.constant 1 : index
    %c1_245 = arith.constant 1 : index
    %840 = vector.load %arg6[%c0_243, %c1_244, %c1_245] : memref<4x18x18xf32, #tpu.memory_space<vmem>>, vector<1x16x16xf32>
    %841 = vector.shape_cast %840 : vector<1x16x16xf32> to vector<16x16xf32>
    %842 = vector.shape_cast %761 : vector<16x16xf32> to vector<1x16x16xf32>
    tpu.vector_store %arg6[%c0_243, %c1_244, %c1_245], %842 {strides = array<i32>} : memref<4x18x18xf32, #tpu.memory_space<vmem>>, vector<1x16x16xf32>,
    %843 = vector.extract_strided_slice %761 {offsets = [1, 0], sizes = [1, 16], strides = [1, 1]} : vector<16x16xf32> to vector<1x16xf32>
    %c0_246 = arith.constant 0 : index
    %c0_247 = arith.constant 0 : index
    %c1_248 = arith.constant 1 : index
    %844 = vector.load %arg6[%c0_246, %c0_247, %c1_248] : memref<4x18x18xf32, #tpu.memory_space<vmem>>, vector<1x1x16xf32>
    %845 = vector.shape_cast %844 : vector<1x1x16xf32> to vector<1x16xf32>
    %846 = vector.shape_cast %843 : vector<1x16xf32> to vector<1x1x16xf32>
    tpu.vector_store %arg6[%c0_246, %c0_247, %c1_248], %846 {strides = array<i32>} : memref<4x18x18xf32, #tpu.memory_space<vmem>>, vector<1x1x16xf32>,
    %847 = vector.extract_strided_slice %761 {offsets = [14, 0], sizes = [1, 16], strides = [1, 1]} : vector<16x16xf32> to vector<1x16xf32>
    %c0_249 = arith.constant 0 : index
    %c17_250 = arith.constant 17 : index
    %c1_251 = arith.constant 1 : index
    %848 = vector.load %arg6[%c0_249, %c17_250, %c1_251] : memref<4x18x18xf32, #tpu.memory_space<vmem>>, vector<1x1x16xf32>
    %849 = vector.shape_cast %848 : vector<1x1x16xf32> to vector<1x16xf32>
    %850 = vector.shape_cast %847 : vector<1x16xf32> to vector<1x1x16xf32>
    tpu.vector_store %arg6[%c0_249, %c17_250, %c1_251], %850 {strides = array<i32>} : memref<4x18x18xf32, #tpu.memory_space<vmem>>, vector<1x1x16xf32>,
    %c0_252 = arith.constant 0 : index
    %c0_253 = arith.constant 0 : index
    %c2_254 = arith.constant 2 : index
    %851 = vector.load %arg6[%c0_252, %c0_253, %c2_254] : memref<4x18x18xf32, #tpu.memory_space<vmem>>, vector<1x18x1xf32>
    %852 = vector.shape_cast %851 : vector<1x18x1xf32> to vector<18x1xf32>
    %c0_255 = arith.constant 0 : index
    %c0_256 = arith.constant 0 : index
    %c0_257 = arith.constant 0 : index
    %853 = vector.load %arg6[%c0_255, %c0_256, %c0_257] : memref<4x18x18xf32, #tpu.memory_space<vmem>>, vector<1x18x1xf32>
    %854 = vector.shape_cast %853 : vector<1x18x1xf32> to vector<18x1xf32>
    %855 = vector.shape_cast %852 : vector<18x1xf32> to vector<1x18x1xf32>
    tpu.vector_store %arg6[%c0_255, %c0_256, %c0_257], %855 {strides = array<i32>} : memref<4x18x18xf32, #tpu.memory_space<vmem>>, vector<1x18x1xf32>,
    %c0_258 = arith.constant 0 : index
    %c0_259 = arith.constant 0 : index
    %c15_260 = arith.constant 15 : index
    %856 = vector.load %arg6[%c0_258, %c0_259, %c15_260] : memref<4x18x18xf32, #tpu.memory_space<vmem>>, vector<1x18x1xf32>
    %857 = vector.shape_cast %856 : vector<1x18x1xf32> to vector<18x1xf32>
    %c0_261 = arith.constant 0 : index
    %c0_262 = arith.constant 0 : index
    %c17_263 = arith.constant 17 : index
    %858 = vector.load %arg6[%c0_261, %c0_262, %c17_263] : memref<4x18x18xf32, #tpu.memory_space<vmem>>, vector<1x18x1xf32>
    %859 = vector.shape_cast %858 : vector<1x18x1xf32> to vector<18x1xf32>
    %860 = vector.shape_cast %857 : vector<18x1xf32> to vector<1x18x1xf32>
    tpu.vector_store %arg6[%c0_261, %c0_262, %c17_263], %860 {strides = array<i32>} : memref<4x18x18xf32, #tpu.memory_space<vmem>>, vector<1x18x1xf32>,
    %c1_264 = arith.constant 1 : index
    %c1_265 = arith.constant 1 : index
    %c1_266 = arith.constant 1 : index
    %861 = vector.load %arg6[%c1_264, %c1_265, %c1_266] : memref<4x18x18xf32, #tpu.memory_space<vmem>>, vector<1x16x16xf32>
    %862 = vector.shape_cast %861 : vector<1x16x16xf32> to vector<16x16xf32>
    %863 = vector.shape_cast %787 : vector<16x16xf32> to vector<1x16x16xf32>
    tpu.vector_store %arg6[%c1_264, %c1_265, %c1_266], %863 {strides = array<i32>} : memref<4x18x18xf32, #tpu.memory_space<vmem>>, vector<1x16x16xf32>,
    %864 = vector.extract_strided_slice %787 {offsets = [1, 0], sizes = [1, 16], strides = [1, 1]} : vector<16x16xf32> to vector<1x16xf32>
    %c1_267 = arith.constant 1 : index
    %c0_268 = arith.constant 0 : index
    %c1_269 = arith.constant 1 : index
    %865 = vector.load %arg6[%c1_267, %c0_268, %c1_269] : memref<4x18x18xf32, #tpu.memory_space<vmem>>, vector<1x1x16xf32>
    %866 = vector.shape_cast %865 : vector<1x1x16xf32> to vector<1x16xf32>
    %867 = vector.shape_cast %864 : vector<1x16xf32> to vector<1x1x16xf32>
    tpu.vector_store %arg6[%c1_267, %c0_268, %c1_269], %867 {strides = array<i32>} : memref<4x18x18xf32, #tpu.memory_space<vmem>>, vector<1x1x16xf32>,
    %868 = vector.extract_strided_slice %787 {offsets = [14, 0], sizes = [1, 16], strides = [1, 1]} : vector<16x16xf32> to vector<1x16xf32>
    %c1_270 = arith.constant 1 : index
    %c17_271 = arith.constant 17 : index
    %c1_272 = arith.constant 1 : index
    %869 = vector.load %arg6[%c1_270, %c17_271, %c1_272] : memref<4x18x18xf32, #tpu.memory_space<vmem>>, vector<1x1x16xf32>
    %870 = vector.shape_cast %869 : vector<1x1x16xf32> to vector<1x16xf32>
    %871 = vector.shape_cast %868 : vector<1x16xf32> to vector<1x1x16xf32>
    tpu.vector_store %arg6[%c1_270, %c17_271, %c1_272], %871 {strides = array<i32>} : memref<4x18x18xf32, #tpu.memory_space<vmem>>, vector<1x1x16xf32>,
    %c1_273 = arith.constant 1 : index
    %c0_274 = arith.constant 0 : index
    %c2_275 = arith.constant 2 : index
    %872 = vector.load %arg6[%c1_273, %c0_274, %c2_275] : memref<4x18x18xf32, #tpu.memory_space<vmem>>, vector<1x18x1xf32>
    %873 = vector.shape_cast %872 : vector<1x18x1xf32> to vector<18x1xf32>
    %c1_276 = arith.constant 1 : index
    %c0_277 = arith.constant 0 : index
    %c0_278 = arith.constant 0 : index
    %874 = vector.load %arg6[%c1_276, %c0_277, %c0_278] : memref<4x18x18xf32, #tpu.memory_space<vmem>>, vector<1x18x1xf32>
    %875 = vector.shape_cast %874 : vector<1x18x1xf32> to vector<18x1xf32>
    %876 = vector.shape_cast %873 : vector<18x1xf32> to vector<1x18x1xf32>
    tpu.vector_store %arg6[%c1_276, %c0_277, %c0_278], %876 {strides = array<i32>} : memref<4x18x18xf32, #tpu.memory_space<vmem>>, vector<1x18x1xf32>,
    %c1_279 = arith.constant 1 : index
    %c0_280 = arith.constant 0 : index
    %c15_281 = arith.constant 15 : index
    %877 = vector.load %arg6[%c1_279, %c0_280, %c15_281] : memref<4x18x18xf32, #tpu.memory_space<vmem>>, vector<1x18x1xf32>
    %878 = vector.shape_cast %877 : vector<1x18x1xf32> to vector<18x1xf32>
    %c1_282 = arith.constant 1 : index
    %c0_283 = arith.constant 0 : index
    %c17_284 = arith.constant 17 : index
    %879 = vector.load %arg6[%c1_282, %c0_283, %c17_284] : memref<4x18x18xf32, #tpu.memory_space<vmem>>, vector<1x18x1xf32>
    %880 = vector.shape_cast %879 : vector<1x18x1xf32> to vector<18x1xf32>
    %881 = vector.shape_cast %878 : vector<18x1xf32> to vector<1x18x1xf32>
    tpu.vector_store %arg6[%c1_282, %c0_283, %c17_284], %881 {strides = array<i32>} : memref<4x18x18xf32, #tpu.memory_space<vmem>>, vector<1x18x1xf32>,
    %c2_285 = arith.constant 2 : index
    %c1_286 = arith.constant 1 : index
    %c1_287 = arith.constant 1 : index
    %882 = vector.load %arg6[%c2_285, %c1_286, %c1_287] : memref<4x18x18xf32, #tpu.memory_space<vmem>>, vector<1x16x16xf32>
    %883 = vector.shape_cast %882 : vector<1x16x16xf32> to vector<16x16xf32>
    %884 = vector.shape_cast %813 : vector<16x16xf32> to vector<1x16x16xf32>
    tpu.vector_store %arg6[%c2_285, %c1_286, %c1_287], %884 {strides = array<i32>} : memref<4x18x18xf32, #tpu.memory_space<vmem>>, vector<1x16x16xf32>,
    %885 = vector.extract_strided_slice %813 {offsets = [1, 0], sizes = [1, 16], strides = [1, 1]} : vector<16x16xf32> to vector<1x16xf32>
    %c2_288 = arith.constant 2 : index
    %c0_289 = arith.constant 0 : index
    %c1_290 = arith.constant 1 : index
    %886 = vector.load %arg6[%c2_288, %c0_289, %c1_290] : memref<4x18x18xf32, #tpu.memory_space<vmem>>, vector<1x1x16xf32>
    %887 = vector.shape_cast %886 : vector<1x1x16xf32> to vector<1x16xf32>
    %888 = vector.shape_cast %885 : vector<1x16xf32> to vector<1x1x16xf32>
    tpu.vector_store %arg6[%c2_288, %c0_289, %c1_290], %888 {strides = array<i32>} : memref<4x18x18xf32, #tpu.memory_space<vmem>>, vector<1x1x16xf32>,
    %889 = vector.extract_strided_slice %813 {offsets = [14, 0], sizes = [1, 16], strides = [1, 1]} : vector<16x16xf32> to vector<1x16xf32>
    %c2_291 = arith.constant 2 : index
    %c17_292 = arith.constant 17 : index
    %c1_293 = arith.constant 1 : index
    %890 = vector.load %arg6[%c2_291, %c17_292, %c1_293] : memref<4x18x18xf32, #tpu.memory_space<vmem>>, vector<1x1x16xf32>
    %891 = vector.shape_cast %890 : vector<1x1x16xf32> to vector<1x16xf32>
    %892 = vector.shape_cast %889 : vector<1x16xf32> to vector<1x1x16xf32>
    tpu.vector_store %arg6[%c2_291, %c17_292, %c1_293], %892 {strides = array<i32>} : memref<4x18x18xf32, #tpu.memory_space<vmem>>, vector<1x1x16xf32>,
    %c2_294 = arith.constant 2 : index
    %c0_295 = arith.constant 0 : index
    %c2_296 = arith.constant 2 : index
    %893 = vector.load %arg6[%c2_294, %c0_295, %c2_296] : memref<4x18x18xf32, #tpu.memory_space<vmem>>, vector<1x18x1xf32>
    %894 = vector.shape_cast %893 : vector<1x18x1xf32> to vector<18x1xf32>
    %c2_297 = arith.constant 2 : index
    %c0_298 = arith.constant 0 : index
    %c0_299 = arith.constant 0 : index
    %895 = vector.load %arg6[%c2_297, %c0_298, %c0_299] : memref<4x18x18xf32, #tpu.memory_space<vmem>>, vector<1x18x1xf32>
    %896 = vector.shape_cast %895 : vector<1x18x1xf32> to vector<18x1xf32>
    %897 = vector.shape_cast %894 : vector<18x1xf32> to vector<1x18x1xf32>
    tpu.vector_store %arg6[%c2_297, %c0_298, %c0_299], %897 {strides = array<i32>} : memref<4x18x18xf32, #tpu.memory_space<vmem>>, vector<1x18x1xf32>,
    %c2_300 = arith.constant 2 : index
    %c0_301 = arith.constant 0 : index
    %c15_302 = arith.constant 15 : index
    %898 = vector.load %arg6[%c2_300, %c0_301, %c15_302] : memref<4x18x18xf32, #tpu.memory_space<vmem>>, vector<1x18x1xf32>
    %899 = vector.shape_cast %898 : vector<1x18x1xf32> to vector<18x1xf32>
    %c2_303 = arith.constant 2 : index
    %c0_304 = arith.constant 0 : index
    %c17_305 = arith.constant 17 : index
    %900 = vector.load %arg6[%c2_303, %c0_304, %c17_305] : memref<4x18x18xf32, #tpu.memory_space<vmem>>, vector<1x18x1xf32>
    %901 = vector.shape_cast %900 : vector<1x18x1xf32> to vector<18x1xf32>
    %902 = vector.shape_cast %899 : vector<18x1xf32> to vector<1x18x1xf32>
    tpu.vector_store %arg6[%c2_303, %c0_304, %c17_305], %902 {strides = array<i32>} : memref<4x18x18xf32, #tpu.memory_space<vmem>>, vector<1x18x1xf32>,
    %c3_306 = arith.constant 3 : index
    %c1_307 = arith.constant 1 : index
    %c1_308 = arith.constant 1 : index
    %903 = vector.load %arg6[%c3_306, %c1_307, %c1_308] : memref<4x18x18xf32, #tpu.memory_space<vmem>>, vector<1x16x16xf32>
    %904 = vector.shape_cast %903 : vector<1x16x16xf32> to vector<16x16xf32>
    %905 = vector.shape_cast %839 : vector<16x16xf32> to vector<1x16x16xf32>
    tpu.vector_store %arg6[%c3_306, %c1_307, %c1_308], %905 {strides = array<i32>} : memref<4x18x18xf32, #tpu.memory_space<vmem>>, vector<1x16x16xf32>,
    %906 = vector.extract_strided_slice %839 {offsets = [1, 0], sizes = [1, 16], strides = [1, 1]} : vector<16x16xf32> to vector<1x16xf32>
    %c3_309 = arith.constant 3 : index
    %c0_310 = arith.constant 0 : index
    %c1_311 = arith.constant 1 : index
    %907 = vector.load %arg6[%c3_309, %c0_310, %c1_311] : memref<4x18x18xf32, #tpu.memory_space<vmem>>, vector<1x1x16xf32>
    %908 = vector.shape_cast %907 : vector<1x1x16xf32> to vector<1x16xf32>
    %909 = vector.shape_cast %906 : vector<1x16xf32> to vector<1x1x16xf32>
    tpu.vector_store %arg6[%c3_309, %c0_310, %c1_311], %909 {strides = array<i32>} : memref<4x18x18xf32, #tpu.memory_space<vmem>>, vector<1x1x16xf32>,
    %910 = vector.extract_strided_slice %839 {offsets = [14, 0], sizes = [1, 16], strides = [1, 1]} : vector<16x16xf32> to vector<1x16xf32>
    %c3_312 = arith.constant 3 : index
    %c17_313 = arith.constant 17 : index
    %c1_314 = arith.constant 1 : index
    %911 = vector.load %arg6[%c3_312, %c17_313, %c1_314] : memref<4x18x18xf32, #tpu.memory_space<vmem>>, vector<1x1x16xf32>
    %912 = vector.shape_cast %911 : vector<1x1x16xf32> to vector<1x16xf32>
    %913 = vector.shape_cast %910 : vector<1x16xf32> to vector<1x1x16xf32>
    tpu.vector_store %arg6[%c3_312, %c17_313, %c1_314], %913 {strides = array<i32>} : memref<4x18x18xf32, #tpu.memory_space<vmem>>, vector<1x1x16xf32>,
    %c3_315 = arith.constant 3 : index
    %c0_316 = arith.constant 0 : index
    %c2_317 = arith.constant 2 : index
    %914 = vector.load %arg6[%c3_315, %c0_316, %c2_317] : memref<4x18x18xf32, #tpu.memory_space<vmem>>, vector<1x18x1xf32>
    %915 = vector.shape_cast %914 : vector<1x18x1xf32> to vector<18x1xf32>
    %c3_318 = arith.constant 3 : index
    %c0_319 = arith.constant 0 : index
    %c0_320 = arith.constant 0 : index
    %916 = vector.load %arg6[%c3_318, %c0_319, %c0_320] : memref<4x18x18xf32, #tpu.memory_space<vmem>>, vector<1x18x1xf32>
    %917 = vector.shape_cast %916 : vector<1x18x1xf32> to vector<18x1xf32>
    %918 = vector.shape_cast %915 : vector<18x1xf32> to vector<1x18x1xf32>
    tpu.vector_store %arg6[%c3_318, %c0_319, %c0_320], %918 {strides = array<i32>} : memref<4x18x18xf32, #tpu.memory_space<vmem>>, vector<1x18x1xf32>,
    %c3_321 = arith.constant 3 : index
    %c0_322 = arith.constant 0 : index
    %c15_323 = arith.constant 15 : index
    %919 = vector.load %arg6[%c3_321, %c0_322, %c15_323] : memref<4x18x18xf32, #tpu.memory_space<vmem>>, vector<1x18x1xf32>
    %920 = vector.shape_cast %919 : vector<1x18x1xf32> to vector<18x1xf32>
    %c3_324 = arith.constant 3 : index
    %c0_325 = arith.constant 0 : index
    %c17_326 = arith.constant 17 : index
    %921 = vector.load %arg6[%c3_324, %c0_325, %c17_326] : memref<4x18x18xf32, #tpu.memory_space<vmem>>, vector<1x18x1xf32>
    %922 = vector.shape_cast %921 : vector<1x18x1xf32> to vector<18x1xf32>
    %923 = vector.shape_cast %920 : vector<18x1xf32> to vector<1x18x1xf32>
    tpu.vector_store %arg6[%c3_324, %c0_325, %c17_326], %923 {strides = array<i32>} : memref<4x18x18xf32, #tpu.memory_space<vmem>>, vector<1x18x1xf32>,
    %c0_327 = arith.constant 0 : index
    %c0_328 = arith.constant 0 : index
    %c0_329 = arith.constant 0 : index
    %924 = vector.load %arg6[%c0_327, %c0_328, %c0_329] : memref<4x18x18xf32, #tpu.memory_space<vmem>>, vector<1x16x16xf32>
    %925 = vector.shape_cast %924 : vector<1x16x16xf32> to vector<16x16xf32>
    %c0_330 = arith.constant 0 : index
    %926 = memref.load %arg3[%c0_330] : memref<144xf32, #tpu.memory_space<smem>>
    %927 = vector.broadcast %926 : f32 to vector<16x16xf32>
    %928 = arith.mulf %927, %925 : vector<16x16xf32>
    %c1_331 = arith.constant 1 : index
    %929 = memref.load %arg3[%c1_331] : memref<144xf32, #tpu.memory_space<smem>>
    %930 = vector.broadcast %929 : f32 to vector<16x16xf32>
    %931 = arith.mulf %930, %925 : vector<16x16xf32>
    %c2_332 = arith.constant 2 : index
    %932 = memref.load %arg3[%c2_332] : memref<144xf32, #tpu.memory_space<smem>>
    %933 = vector.broadcast %932 : f32 to vector<16x16xf32>
    %934 = arith.mulf %933, %925 : vector<16x16xf32>
    %c3_333 = arith.constant 3 : index
    %935 = memref.load %arg3[%c3_333] : memref<144xf32, #tpu.memory_space<smem>>
    %936 = vector.broadcast %935 : f32 to vector<16x16xf32>
    %937 = arith.mulf %936, %925 : vector<16x16xf32>
    %c1_334 = arith.constant 1 : index
    %c0_335 = arith.constant 0 : index
    %c0_336 = arith.constant 0 : index
    %938 = vector.load %arg6[%c1_334, %c0_335, %c0_336] : memref<4x18x18xf32, #tpu.memory_space<vmem>>, vector<1x16x16xf32>
    %939 = vector.shape_cast %938 : vector<1x16x16xf32> to vector<16x16xf32>
    %c4_337 = arith.constant 4 : index
    %940 = memref.load %arg3[%c4_337] : memref<144xf32, #tpu.memory_space<smem>>
    %941 = vector.broadcast %940 : f32 to vector<16x16xf32>
    %942 = arith.mulf %941, %939 : vector<16x16xf32>
    %943 = arith.addf %928, %942 : vector<16x16xf32>
    %c5_338 = arith.constant 5 : index
    %944 = memref.load %arg3[%c5_338] : memref<144xf32, #tpu.memory_space<smem>>
    %945 = vector.broadcast %944 : f32 to vector<16x16xf32>
    %946 = arith.mulf %945, %939 : vector<16x16xf32>
    %947 = arith.addf %931, %946 : vector<16x16xf32>
    %c6_339 = arith.constant 6 : index
    %948 = memref.load %arg3[%c6_339] : memref<144xf32, #tpu.memory_space<smem>>
    %949 = vector.broadcast %948 : f32 to vector<16x16xf32>
    %950 = arith.mulf %949, %939 : vector<16x16xf32>
    %951 = arith.addf %934, %950 : vector<16x16xf32>
    %c7_340 = arith.constant 7 : index
    %952 = memref.load %arg3[%c7_340] : memref<144xf32, #tpu.memory_space<smem>>
    %953 = vector.broadcast %952 : f32 to vector<16x16xf32>
    %954 = arith.mulf %953, %939 : vector<16x16xf32>
    %955 = arith.addf %937, %954 : vector<16x16xf32>
    %c2_341 = arith.constant 2 : index
    %c0_342 = arith.constant 0 : index
    %c0_343 = arith.constant 0 : index
    %956 = vector.load %arg6[%c2_341, %c0_342, %c0_343] : memref<4x18x18xf32, #tpu.memory_space<vmem>>, vector<1x16x16xf32>
    %957 = vector.shape_cast %956 : vector<1x16x16xf32> to vector<16x16xf32>
    %c8_344 = arith.constant 8 : index
    %958 = memref.load %arg3[%c8_344] : memref<144xf32, #tpu.memory_space<smem>>
    %959 = vector.broadcast %958 : f32 to vector<16x16xf32>
    %960 = arith.mulf %959, %957 : vector<16x16xf32>
    %961 = arith.addf %943, %960 : vector<16x16xf32>
    %c9_345 = arith.constant 9 : index
    %962 = memref.load %arg3[%c9_345] : memref<144xf32, #tpu.memory_space<smem>>
    %963 = vector.broadcast %962 : f32 to vector<16x16xf32>
    %964 = arith.mulf %963, %957 : vector<16x16xf32>
    %965 = arith.addf %947, %964 : vector<16x16xf32>
    %c10_346 = arith.constant 10 : index
    %966 = memref.load %arg3[%c10_346] : memref<144xf32, #tpu.memory_space<smem>>
    %967 = vector.broadcast %966 : f32 to vector<16x16xf32>
    %968 = arith.mulf %967, %957 : vector<16x16xf32>
    %969 = arith.addf %951, %968 : vector<16x16xf32>
    %c11_347 = arith.constant 11 : index
    %970 = memref.load %arg3[%c11_347] : memref<144xf32, #tpu.memory_space<smem>>
    %971 = vector.broadcast %970 : f32 to vector<16x16xf32>
    %972 = arith.mulf %971, %957 : vector<16x16xf32>
    %973 = arith.addf %955, %972 : vector<16x16xf32>
    %c3_348 = arith.constant 3 : index
    %c0_349 = arith.constant 0 : index
    %c0_350 = arith.constant 0 : index
    %974 = vector.load %arg6[%c3_348, %c0_349, %c0_350] : memref<4x18x18xf32, #tpu.memory_space<vmem>>, vector<1x16x16xf32>
    %975 = vector.shape_cast %974 : vector<1x16x16xf32> to vector<16x16xf32>
    %c12_351 = arith.constant 12 : index
    %976 = memref.load %arg3[%c12_351] : memref<144xf32, #tpu.memory_space<smem>>
    %977 = vector.broadcast %976 : f32 to vector<16x16xf32>
    %978 = arith.mulf %977, %975 : vector<16x16xf32>
    %979 = arith.addf %961, %978 : vector<16x16xf32>
    %c13_352 = arith.constant 13 : index
    %980 = memref.load %arg3[%c13_352] : memref<144xf32, #tpu.memory_space<smem>>
    %981 = vector.broadcast %980 : f32 to vector<16x16xf32>
    %982 = arith.mulf %981, %975 : vector<16x16xf32>
    %983 = arith.addf %965, %982 : vector<16x16xf32>
    %c14_353 = arith.constant 14 : index
    %984 = memref.load %arg3[%c14_353] : memref<144xf32, #tpu.memory_space<smem>>
    %985 = vector.broadcast %984 : f32 to vector<16x16xf32>
    %986 = arith.mulf %985, %975 : vector<16x16xf32>
    %987 = arith.addf %969, %986 : vector<16x16xf32>
    %c15_354 = arith.constant 15 : index
    %988 = memref.load %arg3[%c15_354] : memref<144xf32, #tpu.memory_space<smem>>
    %989 = vector.broadcast %988 : f32 to vector<16x16xf32>
    %990 = arith.mulf %989, %975 : vector<16x16xf32>
    %991 = arith.addf %973, %990 : vector<16x16xf32>
    %c0_355 = arith.constant 0 : index
    %c0_356 = arith.constant 0 : index
    %c1_357 = arith.constant 1 : index
    %992 = vector.load %arg6[%c0_355, %c0_356, %c1_357] : memref<4x18x18xf32, #tpu.memory_space<vmem>>, vector<1x16x16xf32>
    %993 = vector.shape_cast %992 : vector<1x16x16xf32> to vector<16x16xf32>
    %c16_358 = arith.constant 16 : index
    %994 = memref.load %arg3[%c16_358] : memref<144xf32, #tpu.memory_space<smem>>
    %995 = vector.broadcast %994 : f32 to vector<16x16xf32>
    %996 = arith.mulf %995, %993 : vector<16x16xf32>
    %997 = arith.addf %979, %996 : vector<16x16xf32>
    %c17_359 = arith.constant 17 : index
    %998 = memref.load %arg3[%c17_359] : memref<144xf32, #tpu.memory_space<smem>>
    %999 = vector.broadcast %998 : f32 to vector<16x16xf32>
    %1000 = arith.mulf %999, %993 : vector<16x16xf32>
    %1001 = arith.addf %983, %1000 : vector<16x16xf32>
    %c18_360 = arith.constant 18 : index
    %1002 = memref.load %arg3[%c18_360] : memref<144xf32, #tpu.memory_space<smem>>
    %1003 = vector.broadcast %1002 : f32 to vector<16x16xf32>
    %1004 = arith.mulf %1003, %993 : vector<16x16xf32>
    %1005 = arith.addf %987, %1004 : vector<16x16xf32>
    %c19_361 = arith.constant 19 : index
    %1006 = memref.load %arg3[%c19_361] : memref<144xf32, #tpu.memory_space<smem>>
    %1007 = vector.broadcast %1006 : f32 to vector<16x16xf32>
    %1008 = arith.mulf %1007, %993 : vector<16x16xf32>
    %1009 = arith.addf %991, %1008 : vector<16x16xf32>
    %c1_362 = arith.constant 1 : index
    %c0_363 = arith.constant 0 : index
    %c1_364 = arith.constant 1 : index
    %1010 = vector.load %arg6[%c1_362, %c0_363, %c1_364] : memref<4x18x18xf32, #tpu.memory_space<vmem>>, vector<1x16x16xf32>
    %1011 = vector.shape_cast %1010 : vector<1x16x16xf32> to vector<16x16xf32>
    %c20_365 = arith.constant 20 : index
    %1012 = memref.load %arg3[%c20_365] : memref<144xf32, #tpu.memory_space<smem>>
    %1013 = vector.broadcast %1012 : f32 to vector<16x16xf32>
    %1014 = arith.mulf %1013, %1011 : vector<16x16xf32>
    %1015 = arith.addf %997, %1014 : vector<16x16xf32>
    %c21_366 = arith.constant 21 : index
    %1016 = memref.load %arg3[%c21_366] : memref<144xf32, #tpu.memory_space<smem>>
    %1017 = vector.broadcast %1016 : f32 to vector<16x16xf32>
    %1018 = arith.mulf %1017, %1011 : vector<16x16xf32>
    %1019 = arith.addf %1001, %1018 : vector<16x16xf32>
    %c22_367 = arith.constant 22 : index
    %1020 = memref.load %arg3[%c22_367] : memref<144xf32, #tpu.memory_space<smem>>
    %1021 = vector.broadcast %1020 : f32 to vector<16x16xf32>
    %1022 = arith.mulf %1021, %1011 : vector<16x16xf32>
    %1023 = arith.addf %1005, %1022 : vector<16x16xf32>
    %c23_368 = arith.constant 23 : index
    %1024 = memref.load %arg3[%c23_368] : memref<144xf32, #tpu.memory_space<smem>>
    %1025 = vector.broadcast %1024 : f32 to vector<16x16xf32>
    %1026 = arith.mulf %1025, %1011 : vector<16x16xf32>
    %1027 = arith.addf %1009, %1026 : vector<16x16xf32>
    %c2_369 = arith.constant 2 : index
    %c0_370 = arith.constant 0 : index
    %c1_371 = arith.constant 1 : index
    %1028 = vector.load %arg6[%c2_369, %c0_370, %c1_371] : memref<4x18x18xf32, #tpu.memory_space<vmem>>, vector<1x16x16xf32>
    %1029 = vector.shape_cast %1028 : vector<1x16x16xf32> to vector<16x16xf32>
    %c24_372 = arith.constant 24 : index
    %1030 = memref.load %arg3[%c24_372] : memref<144xf32, #tpu.memory_space<smem>>
    %1031 = vector.broadcast %1030 : f32 to vector<16x16xf32>
    %1032 = arith.mulf %1031, %1029 : vector<16x16xf32>
    %1033 = arith.addf %1015, %1032 : vector<16x16xf32>
    %c25_373 = arith.constant 25 : index
    %1034 = memref.load %arg3[%c25_373] : memref<144xf32, #tpu.memory_space<smem>>
    %1035 = vector.broadcast %1034 : f32 to vector<16x16xf32>
    %1036 = arith.mulf %1035, %1029 : vector<16x16xf32>
    %1037 = arith.addf %1019, %1036 : vector<16x16xf32>
    %c26_374 = arith.constant 26 : index
    %1038 = memref.load %arg3[%c26_374] : memref<144xf32, #tpu.memory_space<smem>>
    %1039 = vector.broadcast %1038 : f32 to vector<16x16xf32>
    %1040 = arith.mulf %1039, %1029 : vector<16x16xf32>
    %1041 = arith.addf %1023, %1040 : vector<16x16xf32>
    %c27_375 = arith.constant 27 : index
    %1042 = memref.load %arg3[%c27_375] : memref<144xf32, #tpu.memory_space<smem>>
    %1043 = vector.broadcast %1042 : f32 to vector<16x16xf32>
    %1044 = arith.mulf %1043, %1029 : vector<16x16xf32>
    %1045 = arith.addf %1027, %1044 : vector<16x16xf32>
    %c3_376 = arith.constant 3 : index
    %c0_377 = arith.constant 0 : index
    %c1_378 = arith.constant 1 : index
    %1046 = vector.load %arg6[%c3_376, %c0_377, %c1_378] : memref<4x18x18xf32, #tpu.memory_space<vmem>>, vector<1x16x16xf32>
    %1047 = vector.shape_cast %1046 : vector<1x16x16xf32> to vector<16x16xf32>
    %c28_379 = arith.constant 28 : index
    %1048 = memref.load %arg3[%c28_379] : memref<144xf32, #tpu.memory_space<smem>>
    %1049 = vector.broadcast %1048 : f32 to vector<16x16xf32>
    %1050 = arith.mulf %1049, %1047 : vector<16x16xf32>
    %1051 = arith.addf %1033, %1050 : vector<16x16xf32>
    %c29_380 = arith.constant 29 : index
    %1052 = memref.load %arg3[%c29_380] : memref<144xf32, #tpu.memory_space<smem>>
    %1053 = vector.broadcast %1052 : f32 to vector<16x16xf32>
    %1054 = arith.mulf %1053, %1047 : vector<16x16xf32>
    %1055 = arith.addf %1037, %1054 : vector<16x16xf32>
    %c30_381 = arith.constant 30 : index
    %1056 = memref.load %arg3[%c30_381] : memref<144xf32, #tpu.memory_space<smem>>
    %1057 = vector.broadcast %1056 : f32 to vector<16x16xf32>
    %1058 = arith.mulf %1057, %1047 : vector<16x16xf32>
    %1059 = arith.addf %1041, %1058 : vector<16x16xf32>
    %c31_382 = arith.constant 31 : index
    %1060 = memref.load %arg3[%c31_382] : memref<144xf32, #tpu.memory_space<smem>>
    %1061 = vector.broadcast %1060 : f32 to vector<16x16xf32>
    %1062 = arith.mulf %1061, %1047 : vector<16x16xf32>
    %1063 = arith.addf %1045, %1062 : vector<16x16xf32>
    %c0_383 = arith.constant 0 : index
    %c0_384 = arith.constant 0 : index
    %c2_385 = arith.constant 2 : index
    %1064 = vector.load %arg6[%c0_383, %c0_384, %c2_385] : memref<4x18x18xf32, #tpu.memory_space<vmem>>, vector<1x16x16xf32>
    %1065 = vector.shape_cast %1064 : vector<1x16x16xf32> to vector<16x16xf32>
    %c32_386 = arith.constant 32 : index
    %1066 = memref.load %arg3[%c32_386] : memref<144xf32, #tpu.memory_space<smem>>
    %1067 = vector.broadcast %1066 : f32 to vector<16x16xf32>
    %1068 = arith.mulf %1067, %1065 : vector<16x16xf32>
    %1069 = arith.addf %1051, %1068 : vector<16x16xf32>
    %c33_387 = arith.constant 33 : index
    %1070 = memref.load %arg3[%c33_387] : memref<144xf32, #tpu.memory_space<smem>>
    %1071 = vector.broadcast %1070 : f32 to vector<16x16xf32>
    %1072 = arith.mulf %1071, %1065 : vector<16x16xf32>
    %1073 = arith.addf %1055, %1072 : vector<16x16xf32>
    %c34_388 = arith.constant 34 : index
    %1074 = memref.load %arg3[%c34_388] : memref<144xf32, #tpu.memory_space<smem>>
    %1075 = vector.broadcast %1074 : f32 to vector<16x16xf32>
    %1076 = arith.mulf %1075, %1065 : vector<16x16xf32>
    %1077 = arith.addf %1059, %1076 : vector<16x16xf32>
    %c35_389 = arith.constant 35 : index
    %1078 = memref.load %arg3[%c35_389] : memref<144xf32, #tpu.memory_space<smem>>
    %1079 = vector.broadcast %1078 : f32 to vector<16x16xf32>
    %1080 = arith.mulf %1079, %1065 : vector<16x16xf32>
    %1081 = arith.addf %1063, %1080 : vector<16x16xf32>
    %c1_390 = arith.constant 1 : index
    %c0_391 = arith.constant 0 : index
    %c2_392 = arith.constant 2 : index
    %1082 = vector.load %arg6[%c1_390, %c0_391, %c2_392] : memref<4x18x18xf32, #tpu.memory_space<vmem>>, vector<1x16x16xf32>
    %1083 = vector.shape_cast %1082 : vector<1x16x16xf32> to vector<16x16xf32>
    %c36_393 = arith.constant 36 : index
    %1084 = memref.load %arg3[%c36_393] : memref<144xf32, #tpu.memory_space<smem>>
    %1085 = vector.broadcast %1084 : f32 to vector<16x16xf32>
    %1086 = arith.mulf %1085, %1083 : vector<16x16xf32>
    %1087 = arith.addf %1069, %1086 : vector<16x16xf32>
    %c37_394 = arith.constant 37 : index
    %1088 = memref.load %arg3[%c37_394] : memref<144xf32, #tpu.memory_space<smem>>
    %1089 = vector.broadcast %1088 : f32 to vector<16x16xf32>
    %1090 = arith.mulf %1089, %1083 : vector<16x16xf32>
    %1091 = arith.addf %1073, %1090 : vector<16x16xf32>
    %c38_395 = arith.constant 38 : index
    %1092 = memref.load %arg3[%c38_395] : memref<144xf32, #tpu.memory_space<smem>>
    %1093 = vector.broadcast %1092 : f32 to vector<16x16xf32>
    %1094 = arith.mulf %1093, %1083 : vector<16x16xf32>
    %1095 = arith.addf %1077, %1094 : vector<16x16xf32>
    %c39_396 = arith.constant 39 : index
    %1096 = memref.load %arg3[%c39_396] : memref<144xf32, #tpu.memory_space<smem>>
    %1097 = vector.broadcast %1096 : f32 to vector<16x16xf32>
    %1098 = arith.mulf %1097, %1083 : vector<16x16xf32>
    %1099 = arith.addf %1081, %1098 : vector<16x16xf32>
    %c2_397 = arith.constant 2 : index
    %c0_398 = arith.constant 0 : index
    %c2_399 = arith.constant 2 : index
    %1100 = vector.load %arg6[%c2_397, %c0_398, %c2_399] : memref<4x18x18xf32, #tpu.memory_space<vmem>>, vector<1x16x16xf32>
    %1101 = vector.shape_cast %1100 : vector<1x16x16xf32> to vector<16x16xf32>
    %c40_400 = arith.constant 40 : index
    %1102 = memref.load %arg3[%c40_400] : memref<144xf32, #tpu.memory_space<smem>>
    %1103 = vector.broadcast %1102 : f32 to vector<16x16xf32>
    %1104 = arith.mulf %1103, %1101 : vector<16x16xf32>
    %1105 = arith.addf %1087, %1104 : vector<16x16xf32>
    %c41_401 = arith.constant 41 : index
    %1106 = memref.load %arg3[%c41_401] : memref<144xf32, #tpu.memory_space<smem>>
    %1107 = vector.broadcast %1106 : f32 to vector<16x16xf32>
    %1108 = arith.mulf %1107, %1101 : vector<16x16xf32>
    %1109 = arith.addf %1091, %1108 : vector<16x16xf32>
    %c42_402 = arith.constant 42 : index
    %1110 = memref.load %arg3[%c42_402] : memref<144xf32, #tpu.memory_space<smem>>
    %1111 = vector.broadcast %1110 : f32 to vector<16x16xf32>
    %1112 = arith.mulf %1111, %1101 : vector<16x16xf32>
    %1113 = arith.addf %1095, %1112 : vector<16x16xf32>
    %c43_403 = arith.constant 43 : index
    %1114 = memref.load %arg3[%c43_403] : memref<144xf32, #tpu.memory_space<smem>>
    %1115 = vector.broadcast %1114 : f32 to vector<16x16xf32>
    %1116 = arith.mulf %1115, %1101 : vector<16x16xf32>
    %1117 = arith.addf %1099, %1116 : vector<16x16xf32>
    %c3_404 = arith.constant 3 : index
    %c0_405 = arith.constant 0 : index
    %c2_406 = arith.constant 2 : index
    %1118 = vector.load %arg6[%c3_404, %c0_405, %c2_406] : memref<4x18x18xf32, #tpu.memory_space<vmem>>, vector<1x16x16xf32>
    %1119 = vector.shape_cast %1118 : vector<1x16x16xf32> to vector<16x16xf32>
    %c44_407 = arith.constant 44 : index
    %1120 = memref.load %arg3[%c44_407] : memref<144xf32, #tpu.memory_space<smem>>
    %1121 = vector.broadcast %1120 : f32 to vector<16x16xf32>
    %1122 = arith.mulf %1121, %1119 : vector<16x16xf32>
    %1123 = arith.addf %1105, %1122 : vector<16x16xf32>
    %c45_408 = arith.constant 45 : index
    %1124 = memref.load %arg3[%c45_408] : memref<144xf32, #tpu.memory_space<smem>>
    %1125 = vector.broadcast %1124 : f32 to vector<16x16xf32>
    %1126 = arith.mulf %1125, %1119 : vector<16x16xf32>
    %1127 = arith.addf %1109, %1126 : vector<16x16xf32>
    %c46_409 = arith.constant 46 : index
    %1128 = memref.load %arg3[%c46_409] : memref<144xf32, #tpu.memory_space<smem>>
    %1129 = vector.broadcast %1128 : f32 to vector<16x16xf32>
    %1130 = arith.mulf %1129, %1119 : vector<16x16xf32>
    %1131 = arith.addf %1113, %1130 : vector<16x16xf32>
    %c47_410 = arith.constant 47 : index
    %1132 = memref.load %arg3[%c47_410] : memref<144xf32, #tpu.memory_space<smem>>
    %1133 = vector.broadcast %1132 : f32 to vector<16x16xf32>
    %1134 = arith.mulf %1133, %1119 : vector<16x16xf32>
    %1135 = arith.addf %1117, %1134 : vector<16x16xf32>
    %c0_411 = arith.constant 0 : index
    %c1_412 = arith.constant 1 : index
    %c0_413 = arith.constant 0 : index
    %1136 = vector.load %arg6[%c0_411, %c1_412, %c0_413] : memref<4x18x18xf32, #tpu.memory_space<vmem>>, vector<1x16x16xf32>
    %1137 = vector.shape_cast %1136 : vector<1x16x16xf32> to vector<16x16xf32>
    %c48_414 = arith.constant 48 : index
    %1138 = memref.load %arg3[%c48_414] : memref<144xf32, #tpu.memory_space<smem>>
    %1139 = vector.broadcast %1138 : f32 to vector<16x16xf32>
    %1140 = arith.mulf %1139, %1137 : vector<16x16xf32>
    %1141 = arith.addf %1123, %1140 : vector<16x16xf32>
    %c49_415 = arith.constant 49 : index
    %1142 = memref.load %arg3[%c49_415] : memref<144xf32, #tpu.memory_space<smem>>
    %1143 = vector.broadcast %1142 : f32 to vector<16x16xf32>
    %1144 = arith.mulf %1143, %1137 : vector<16x16xf32>
    %1145 = arith.addf %1127, %1144 : vector<16x16xf32>
    %c50_416 = arith.constant 50 : index
    %1146 = memref.load %arg3[%c50_416] : memref<144xf32, #tpu.memory_space<smem>>
    %1147 = vector.broadcast %1146 : f32 to vector<16x16xf32>
    %1148 = arith.mulf %1147, %1137 : vector<16x16xf32>
    %1149 = arith.addf %1131, %1148 : vector<16x16xf32>
    %c51_417 = arith.constant 51 : index
    %1150 = memref.load %arg3[%c51_417] : memref<144xf32, #tpu.memory_space<smem>>
    %1151 = vector.broadcast %1150 : f32 to vector<16x16xf32>
    %1152 = arith.mulf %1151, %1137 : vector<16x16xf32>
    %1153 = arith.addf %1135, %1152 : vector<16x16xf32>
    %c1_418 = arith.constant 1 : index
    %c1_419 = arith.constant 1 : index
    %c0_420 = arith.constant 0 : index
    %1154 = vector.load %arg6[%c1_418, %c1_419, %c0_420] : memref<4x18x18xf32, #tpu.memory_space<vmem>>, vector<1x16x16xf32>
    %1155 = vector.shape_cast %1154 : vector<1x16x16xf32> to vector<16x16xf32>
    %c52_421 = arith.constant 52 : index
    %1156 = memref.load %arg3[%c52_421] : memref<144xf32, #tpu.memory_space<smem>>
    %1157 = vector.broadcast %1156 : f32 to vector<16x16xf32>
    %1158 = arith.mulf %1157, %1155 : vector<16x16xf32>
    %1159 = arith.addf %1141, %1158 : vector<16x16xf32>
    %c53_422 = arith.constant 53 : index
    %1160 = memref.load %arg3[%c53_422] : memref<144xf32, #tpu.memory_space<smem>>
    %1161 = vector.broadcast %1160 : f32 to vector<16x16xf32>
    %1162 = arith.mulf %1161, %1155 : vector<16x16xf32>
    %1163 = arith.addf %1145, %1162 : vector<16x16xf32>
    %c54_423 = arith.constant 54 : index
    %1164 = memref.load %arg3[%c54_423] : memref<144xf32, #tpu.memory_space<smem>>
    %1165 = vector.broadcast %1164 : f32 to vector<16x16xf32>
    %1166 = arith.mulf %1165, %1155 : vector<16x16xf32>
    %1167 = arith.addf %1149, %1166 : vector<16x16xf32>
    %c55_424 = arith.constant 55 : index
    %1168 = memref.load %arg3[%c55_424] : memref<144xf32, #tpu.memory_space<smem>>
    %1169 = vector.broadcast %1168 : f32 to vector<16x16xf32>
    %1170 = arith.mulf %1169, %1155 : vector<16x16xf32>
    %1171 = arith.addf %1153, %1170 : vector<16x16xf32>
    %c2_425 = arith.constant 2 : index
    %c1_426 = arith.constant 1 : index
    %c0_427 = arith.constant 0 : index
    %1172 = vector.load %arg6[%c2_425, %c1_426, %c0_427] : memref<4x18x18xf32, #tpu.memory_space<vmem>>, vector<1x16x16xf32>
    %1173 = vector.shape_cast %1172 : vector<1x16x16xf32> to vector<16x16xf32>
    %c56_428 = arith.constant 56 : index
    %1174 = memref.load %arg3[%c56_428] : memref<144xf32, #tpu.memory_space<smem>>
    %1175 = vector.broadcast %1174 : f32 to vector<16x16xf32>
    %1176 = arith.mulf %1175, %1173 : vector<16x16xf32>
    %1177 = arith.addf %1159, %1176 : vector<16x16xf32>
    %c57_429 = arith.constant 57 : index
    %1178 = memref.load %arg3[%c57_429] : memref<144xf32, #tpu.memory_space<smem>>
    %1179 = vector.broadcast %1178 : f32 to vector<16x16xf32>
    %1180 = arith.mulf %1179, %1173 : vector<16x16xf32>
    %1181 = arith.addf %1163, %1180 : vector<16x16xf32>
    %c58_430 = arith.constant 58 : index
    %1182 = memref.load %arg3[%c58_430] : memref<144xf32, #tpu.memory_space<smem>>
    %1183 = vector.broadcast %1182 : f32 to vector<16x16xf32>
    %1184 = arith.mulf %1183, %1173 : vector<16x16xf32>
    %1185 = arith.addf %1167, %1184 : vector<16x16xf32>
    %c59_431 = arith.constant 59 : index
    %1186 = memref.load %arg3[%c59_431] : memref<144xf32, #tpu.memory_space<smem>>
    %1187 = vector.broadcast %1186 : f32 to vector<16x16xf32>
    %1188 = arith.mulf %1187, %1173 : vector<16x16xf32>
    %1189 = arith.addf %1171, %1188 : vector<16x16xf32>
    %c3_432 = arith.constant 3 : index
    %c1_433 = arith.constant 1 : index
    %c0_434 = arith.constant 0 : index
    %1190 = vector.load %arg6[%c3_432, %c1_433, %c0_434] : memref<4x18x18xf32, #tpu.memory_space<vmem>>, vector<1x16x16xf32>
    %1191 = vector.shape_cast %1190 : vector<1x16x16xf32> to vector<16x16xf32>
    %c60_435 = arith.constant 60 : index
    %1192 = memref.load %arg3[%c60_435] : memref<144xf32, #tpu.memory_space<smem>>
    %1193 = vector.broadcast %1192 : f32 to vector<16x16xf32>
    %1194 = arith.mulf %1193, %1191 : vector<16x16xf32>
    %1195 = arith.addf %1177, %1194 : vector<16x16xf32>
    %c61_436 = arith.constant 61 : index
    %1196 = memref.load %arg3[%c61_436] : memref<144xf32, #tpu.memory_space<smem>>
    %1197 = vector.broadcast %1196 : f32 to vector<16x16xf32>
    %1198 = arith.mulf %1197, %1191 : vector<16x16xf32>
    %1199 = arith.addf %1181, %1198 : vector<16x16xf32>
    %c62_437 = arith.constant 62 : index
    %1200 = memref.load %arg3[%c62_437] : memref<144xf32, #tpu.memory_space<smem>>
    %1201 = vector.broadcast %1200 : f32 to vector<16x16xf32>
    %1202 = arith.mulf %1201, %1191 : vector<16x16xf32>
    %1203 = arith.addf %1185, %1202 : vector<16x16xf32>
    %c63_438 = arith.constant 63 : index
    %1204 = memref.load %arg3[%c63_438] : memref<144xf32, #tpu.memory_space<smem>>
    %1205 = vector.broadcast %1204 : f32 to vector<16x16xf32>
    %1206 = arith.mulf %1205, %1191 : vector<16x16xf32>
    %1207 = arith.addf %1189, %1206 : vector<16x16xf32>
    %c0_439 = arith.constant 0 : index
    %c1_440 = arith.constant 1 : index
    %c1_441 = arith.constant 1 : index
    %1208 = vector.load %arg6[%c0_439, %c1_440, %c1_441] : memref<4x18x18xf32, #tpu.memory_space<vmem>>, vector<1x16x16xf32>
    %1209 = vector.shape_cast %1208 : vector<1x16x16xf32> to vector<16x16xf32>
    %c64_442 = arith.constant 64 : index
    %1210 = memref.load %arg3[%c64_442] : memref<144xf32, #tpu.memory_space<smem>>
    %1211 = vector.broadcast %1210 : f32 to vector<16x16xf32>
    %1212 = arith.mulf %1211, %1209 : vector<16x16xf32>
    %1213 = arith.addf %1195, %1212 : vector<16x16xf32>
    %c65_443 = arith.constant 65 : index
    %1214 = memref.load %arg3[%c65_443] : memref<144xf32, #tpu.memory_space<smem>>
    %1215 = vector.broadcast %1214 : f32 to vector<16x16xf32>
    %1216 = arith.mulf %1215, %1209 : vector<16x16xf32>
    %1217 = arith.addf %1199, %1216 : vector<16x16xf32>
    %c66_444 = arith.constant 66 : index
    %1218 = memref.load %arg3[%c66_444] : memref<144xf32, #tpu.memory_space<smem>>
    %1219 = vector.broadcast %1218 : f32 to vector<16x16xf32>
    %1220 = arith.mulf %1219, %1209 : vector<16x16xf32>
    %1221 = arith.addf %1203, %1220 : vector<16x16xf32>
    %c67_445 = arith.constant 67 : index
    %1222 = memref.load %arg3[%c67_445] : memref<144xf32, #tpu.memory_space<smem>>
    %1223 = vector.broadcast %1222 : f32 to vector<16x16xf32>
    %1224 = arith.mulf %1223, %1209 : vector<16x16xf32>
    %1225 = arith.addf %1207, %1224 : vector<16x16xf32>
    %c1_446 = arith.constant 1 : index
    %c1_447 = arith.constant 1 : index
    %c1_448 = arith.constant 1 : index
    %1226 = vector.load %arg6[%c1_446, %c1_447, %c1_448] : memref<4x18x18xf32, #tpu.memory_space<vmem>>, vector<1x16x16xf32>
    %1227 = vector.shape_cast %1226 : vector<1x16x16xf32> to vector<16x16xf32>
    %c68_449 = arith.constant 68 : index
    %1228 = memref.load %arg3[%c68_449] : memref<144xf32, #tpu.memory_space<smem>>
    %1229 = vector.broadcast %1228 : f32 to vector<16x16xf32>
    %1230 = arith.mulf %1229, %1227 : vector<16x16xf32>
    %1231 = arith.addf %1213, %1230 : vector<16x16xf32>
    %c69_450 = arith.constant 69 : index
    %1232 = memref.load %arg3[%c69_450] : memref<144xf32, #tpu.memory_space<smem>>
    %1233 = vector.broadcast %1232 : f32 to vector<16x16xf32>
    %1234 = arith.mulf %1233, %1227 : vector<16x16xf32>
    %1235 = arith.addf %1217, %1234 : vector<16x16xf32>
    %c70_451 = arith.constant 70 : index
    %1236 = memref.load %arg3[%c70_451] : memref<144xf32, #tpu.memory_space<smem>>
    %1237 = vector.broadcast %1236 : f32 to vector<16x16xf32>
    %1238 = arith.mulf %1237, %1227 : vector<16x16xf32>
    %1239 = arith.addf %1221, %1238 : vector<16x16xf32>
    %c71_452 = arith.constant 71 : index
    %1240 = memref.load %arg3[%c71_452] : memref<144xf32, #tpu.memory_space<smem>>
    %1241 = vector.broadcast %1240 : f32 to vector<16x16xf32>
    %1242 = arith.mulf %1241, %1227 : vector<16x16xf32>
    %1243 = arith.addf %1225, %1242 : vector<16x16xf32>
    %c2_453 = arith.constant 2 : index
    %c1_454 = arith.constant 1 : index
    %c1_455 = arith.constant 1 : index
    %1244 = vector.load %arg6[%c2_453, %c1_454, %c1_455] : memref<4x18x18xf32, #tpu.memory_space<vmem>>, vector<1x16x16xf32>
    %1245 = vector.shape_cast %1244 : vector<1x16x16xf32> to vector<16x16xf32>
    %c72_456 = arith.constant 72 : index
    %1246 = memref.load %arg3[%c72_456] : memref<144xf32, #tpu.memory_space<smem>>
    %1247 = vector.broadcast %1246 : f32 to vector<16x16xf32>
    %1248 = arith.mulf %1247, %1245 : vector<16x16xf32>
    %1249 = arith.addf %1231, %1248 : vector<16x16xf32>
    %c73_457 = arith.constant 73 : index
    %1250 = memref.load %arg3[%c73_457] : memref<144xf32, #tpu.memory_space<smem>>
    %1251 = vector.broadcast %1250 : f32 to vector<16x16xf32>
    %1252 = arith.mulf %1251, %1245 : vector<16x16xf32>
    %1253 = arith.addf %1235, %1252 : vector<16x16xf32>
    %c74_458 = arith.constant 74 : index
    %1254 = memref.load %arg3[%c74_458] : memref<144xf32, #tpu.memory_space<smem>>
    %1255 = vector.broadcast %1254 : f32 to vector<16x16xf32>
    %1256 = arith.mulf %1255, %1245 : vector<16x16xf32>
    %1257 = arith.addf %1239, %1256 : vector<16x16xf32>
    %c75_459 = arith.constant 75 : index
    %1258 = memref.load %arg3[%c75_459] : memref<144xf32, #tpu.memory_space<smem>>
    %1259 = vector.broadcast %1258 : f32 to vector<16x16xf32>
    %1260 = arith.mulf %1259, %1245 : vector<16x16xf32>
    %1261 = arith.addf %1243, %1260 : vector<16x16xf32>
    %c3_460 = arith.constant 3 : index
    %c1_461 = arith.constant 1 : index
    %c1_462 = arith.constant 1 : index
    %1262 = vector.load %arg6[%c3_460, %c1_461, %c1_462] : memref<4x18x18xf32, #tpu.memory_space<vmem>>, vector<1x16x16xf32>
    %1263 = vector.shape_cast %1262 : vector<1x16x16xf32> to vector<16x16xf32>
    %c76_463 = arith.constant 76 : index
    %1264 = memref.load %arg3[%c76_463] : memref<144xf32, #tpu.memory_space<smem>>
    %1265 = vector.broadcast %1264 : f32 to vector<16x16xf32>
    %1266 = arith.mulf %1265, %1263 : vector<16x16xf32>
    %1267 = arith.addf %1249, %1266 : vector<16x16xf32>
    %c77_464 = arith.constant 77 : index
    %1268 = memref.load %arg3[%c77_464] : memref<144xf32, #tpu.memory_space<smem>>
    %1269 = vector.broadcast %1268 : f32 to vector<16x16xf32>
    %1270 = arith.mulf %1269, %1263 : vector<16x16xf32>
    %1271 = arith.addf %1253, %1270 : vector<16x16xf32>
    %c78_465 = arith.constant 78 : index
    %1272 = memref.load %arg3[%c78_465] : memref<144xf32, #tpu.memory_space<smem>>
    %1273 = vector.broadcast %1272 : f32 to vector<16x16xf32>
    %1274 = arith.mulf %1273, %1263 : vector<16x16xf32>
    %1275 = arith.addf %1257, %1274 : vector<16x16xf32>
    %c79_466 = arith.constant 79 : index
    %1276 = memref.load %arg3[%c79_466] : memref<144xf32, #tpu.memory_space<smem>>
    %1277 = vector.broadcast %1276 : f32 to vector<16x16xf32>
    %1278 = arith.mulf %1277, %1263 : vector<16x16xf32>
    %1279 = arith.addf %1261, %1278 : vector<16x16xf32>
    %c0_467 = arith.constant 0 : index
    %c1_468 = arith.constant 1 : index
    %c2_469 = arith.constant 2 : index
    %1280 = vector.load %arg6[%c0_467, %c1_468, %c2_469] : memref<4x18x18xf32, #tpu.memory_space<vmem>>, vector<1x16x16xf32>
    %1281 = vector.shape_cast %1280 : vector<1x16x16xf32> to vector<16x16xf32>
    %c80_470 = arith.constant 80 : index
    %1282 = memref.load %arg3[%c80_470] : memref<144xf32, #tpu.memory_space<smem>>
    %1283 = vector.broadcast %1282 : f32 to vector<16x16xf32>
    %1284 = arith.mulf %1283, %1281 : vector<16x16xf32>
    %1285 = arith.addf %1267, %1284 : vector<16x16xf32>
    %c81_471 = arith.constant 81 : index
    %1286 = memref.load %arg3[%c81_471] : memref<144xf32, #tpu.memory_space<smem>>
    %1287 = vector.broadcast %1286 : f32 to vector<16x16xf32>
    %1288 = arith.mulf %1287, %1281 : vector<16x16xf32>
    %1289 = arith.addf %1271, %1288 : vector<16x16xf32>
    %c82_472 = arith.constant 82 : index
    %1290 = memref.load %arg3[%c82_472] : memref<144xf32, #tpu.memory_space<smem>>
    %1291 = vector.broadcast %1290 : f32 to vector<16x16xf32>
    %1292 = arith.mulf %1291, %1281 : vector<16x16xf32>
    %1293 = arith.addf %1275, %1292 : vector<16x16xf32>
    %c83_473 = arith.constant 83 : index
    %1294 = memref.load %arg3[%c83_473] : memref<144xf32, #tpu.memory_space<smem>>
    %1295 = vector.broadcast %1294 : f32 to vector<16x16xf32>
    %1296 = arith.mulf %1295, %1281 : vector<16x16xf32>
    %1297 = arith.addf %1279, %1296 : vector<16x16xf32>
    %c1_474 = arith.constant 1 : index
    %c1_475 = arith.constant 1 : index
    %c2_476 = arith.constant 2 : index
    %1298 = vector.load %arg6[%c1_474, %c1_475, %c2_476] : memref<4x18x18xf32, #tpu.memory_space<vmem>>, vector<1x16x16xf32>
    %1299 = vector.shape_cast %1298 : vector<1x16x16xf32> to vector<16x16xf32>
    %c84_477 = arith.constant 84 : index
    %1300 = memref.load %arg3[%c84_477] : memref<144xf32, #tpu.memory_space<smem>>
    %1301 = vector.broadcast %1300 : f32 to vector<16x16xf32>
    %1302 = arith.mulf %1301, %1299 : vector<16x16xf32>
    %1303 = arith.addf %1285, %1302 : vector<16x16xf32>
    %c85_478 = arith.constant 85 : index
    %1304 = memref.load %arg3[%c85_478] : memref<144xf32, #tpu.memory_space<smem>>
    %1305 = vector.broadcast %1304 : f32 to vector<16x16xf32>
    %1306 = arith.mulf %1305, %1299 : vector<16x16xf32>
    %1307 = arith.addf %1289, %1306 : vector<16x16xf32>
    %c86_479 = arith.constant 86 : index
    %1308 = memref.load %arg3[%c86_479] : memref<144xf32, #tpu.memory_space<smem>>
    %1309 = vector.broadcast %1308 : f32 to vector<16x16xf32>
    %1310 = arith.mulf %1309, %1299 : vector<16x16xf32>
    %1311 = arith.addf %1293, %1310 : vector<16x16xf32>
    %c87_480 = arith.constant 87 : index
    %1312 = memref.load %arg3[%c87_480] : memref<144xf32, #tpu.memory_space<smem>>
    %1313 = vector.broadcast %1312 : f32 to vector<16x16xf32>
    %1314 = arith.mulf %1313, %1299 : vector<16x16xf32>
    %1315 = arith.addf %1297, %1314 : vector<16x16xf32>
    %c2_481 = arith.constant 2 : index
    %c1_482 = arith.constant 1 : index
    %c2_483 = arith.constant 2 : index
    %1316 = vector.load %arg6[%c2_481, %c1_482, %c2_483] : memref<4x18x18xf32, #tpu.memory_space<vmem>>, vector<1x16x16xf32>
    %1317 = vector.shape_cast %1316 : vector<1x16x16xf32> to vector<16x16xf32>
    %c88_484 = arith.constant 88 : index
    %1318 = memref.load %arg3[%c88_484] : memref<144xf32, #tpu.memory_space<smem>>
    %1319 = vector.broadcast %1318 : f32 to vector<16x16xf32>
    %1320 = arith.mulf %1319, %1317 : vector<16x16xf32>
    %1321 = arith.addf %1303, %1320 : vector<16x16xf32>
    %c89_485 = arith.constant 89 : index
    %1322 = memref.load %arg3[%c89_485] : memref<144xf32, #tpu.memory_space<smem>>
    %1323 = vector.broadcast %1322 : f32 to vector<16x16xf32>
    %1324 = arith.mulf %1323, %1317 : vector<16x16xf32>
    %1325 = arith.addf %1307, %1324 : vector<16x16xf32>
    %c90_486 = arith.constant 90 : index
    %1326 = memref.load %arg3[%c90_486] : memref<144xf32, #tpu.memory_space<smem>>
    %1327 = vector.broadcast %1326 : f32 to vector<16x16xf32>
    %1328 = arith.mulf %1327, %1317 : vector<16x16xf32>
    %1329 = arith.addf %1311, %1328 : vector<16x16xf32>
    %c91_487 = arith.constant 91 : index
    %1330 = memref.load %arg3[%c91_487] : memref<144xf32, #tpu.memory_space<smem>>
    %1331 = vector.broadcast %1330 : f32 to vector<16x16xf32>
    %1332 = arith.mulf %1331, %1317 : vector<16x16xf32>
    %1333 = arith.addf %1315, %1332 : vector<16x16xf32>
    %c3_488 = arith.constant 3 : index
    %c1_489 = arith.constant 1 : index
    %c2_490 = arith.constant 2 : index
    %1334 = vector.load %arg6[%c3_488, %c1_489, %c2_490] : memref<4x18x18xf32, #tpu.memory_space<vmem>>, vector<1x16x16xf32>
    %1335 = vector.shape_cast %1334 : vector<1x16x16xf32> to vector<16x16xf32>
    %c92_491 = arith.constant 92 : index
    %1336 = memref.load %arg3[%c92_491] : memref<144xf32, #tpu.memory_space<smem>>
    %1337 = vector.broadcast %1336 : f32 to vector<16x16xf32>
    %1338 = arith.mulf %1337, %1335 : vector<16x16xf32>
    %1339 = arith.addf %1321, %1338 : vector<16x16xf32>
    %c93_492 = arith.constant 93 : index
    %1340 = memref.load %arg3[%c93_492] : memref<144xf32, #tpu.memory_space<smem>>
    %1341 = vector.broadcast %1340 : f32 to vector<16x16xf32>
    %1342 = arith.mulf %1341, %1335 : vector<16x16xf32>
    %1343 = arith.addf %1325, %1342 : vector<16x16xf32>
    %c94_493 = arith.constant 94 : index
    %1344 = memref.load %arg3[%c94_493] : memref<144xf32, #tpu.memory_space<smem>>
    %1345 = vector.broadcast %1344 : f32 to vector<16x16xf32>
    %1346 = arith.mulf %1345, %1335 : vector<16x16xf32>
    %1347 = arith.addf %1329, %1346 : vector<16x16xf32>
    %c95_494 = arith.constant 95 : index
    %1348 = memref.load %arg3[%c95_494] : memref<144xf32, #tpu.memory_space<smem>>
    %1349 = vector.broadcast %1348 : f32 to vector<16x16xf32>
    %1350 = arith.mulf %1349, %1335 : vector<16x16xf32>
    %1351 = arith.addf %1333, %1350 : vector<16x16xf32>
    %c0_495 = arith.constant 0 : index
    %c2_496 = arith.constant 2 : index
    %c0_497 = arith.constant 0 : index
    %1352 = vector.load %arg6[%c0_495, %c2_496, %c0_497] : memref<4x18x18xf32, #tpu.memory_space<vmem>>, vector<1x16x16xf32>
    %1353 = vector.shape_cast %1352 : vector<1x16x16xf32> to vector<16x16xf32>
    %c96_498 = arith.constant 96 : index
    %1354 = memref.load %arg3[%c96_498] : memref<144xf32, #tpu.memory_space<smem>>
    %1355 = vector.broadcast %1354 : f32 to vector<16x16xf32>
    %1356 = arith.mulf %1355, %1353 : vector<16x16xf32>
    %1357 = arith.addf %1339, %1356 : vector<16x16xf32>
    %c97_499 = arith.constant 97 : index
    %1358 = memref.load %arg3[%c97_499] : memref<144xf32, #tpu.memory_space<smem>>
    %1359 = vector.broadcast %1358 : f32 to vector<16x16xf32>
    %1360 = arith.mulf %1359, %1353 : vector<16x16xf32>
    %1361 = arith.addf %1343, %1360 : vector<16x16xf32>
    %c98_500 = arith.constant 98 : index
    %1362 = memref.load %arg3[%c98_500] : memref<144xf32, #tpu.memory_space<smem>>
    %1363 = vector.broadcast %1362 : f32 to vector<16x16xf32>
    %1364 = arith.mulf %1363, %1353 : vector<16x16xf32>
    %1365 = arith.addf %1347, %1364 : vector<16x16xf32>
    %c99_501 = arith.constant 99 : index
    %1366 = memref.load %arg3[%c99_501] : memref<144xf32, #tpu.memory_space<smem>>
    %1367 = vector.broadcast %1366 : f32 to vector<16x16xf32>
    %1368 = arith.mulf %1367, %1353 : vector<16x16xf32>
    %1369 = arith.addf %1351, %1368 : vector<16x16xf32>
    %c1_502 = arith.constant 1 : index
    %c2_503 = arith.constant 2 : index
    %c0_504 = arith.constant 0 : index
    %1370 = vector.load %arg6[%c1_502, %c2_503, %c0_504] : memref<4x18x18xf32, #tpu.memory_space<vmem>>, vector<1x16x16xf32>
    %1371 = vector.shape_cast %1370 : vector<1x16x16xf32> to vector<16x16xf32>
    %c100_505 = arith.constant 100 : index
    %1372 = memref.load %arg3[%c100_505] : memref<144xf32, #tpu.memory_space<smem>>
    %1373 = vector.broadcast %1372 : f32 to vector<16x16xf32>
    %1374 = arith.mulf %1373, %1371 : vector<16x16xf32>
    %1375 = arith.addf %1357, %1374 : vector<16x16xf32>
    %c101_506 = arith.constant 101 : index
    %1376 = memref.load %arg3[%c101_506] : memref<144xf32, #tpu.memory_space<smem>>
    %1377 = vector.broadcast %1376 : f32 to vector<16x16xf32>
    %1378 = arith.mulf %1377, %1371 : vector<16x16xf32>
    %1379 = arith.addf %1361, %1378 : vector<16x16xf32>
    %c102_507 = arith.constant 102 : index
    %1380 = memref.load %arg3[%c102_507] : memref<144xf32, #tpu.memory_space<smem>>
    %1381 = vector.broadcast %1380 : f32 to vector<16x16xf32>
    %1382 = arith.mulf %1381, %1371 : vector<16x16xf32>
    %1383 = arith.addf %1365, %1382 : vector<16x16xf32>
    %c103_508 = arith.constant 103 : index
    %1384 = memref.load %arg3[%c103_508] : memref<144xf32, #tpu.memory_space<smem>>
    %1385 = vector.broadcast %1384 : f32 to vector<16x16xf32>
    %1386 = arith.mulf %1385, %1371 : vector<16x16xf32>
    %1387 = arith.addf %1369, %1386 : vector<16x16xf32>
    %c2_509 = arith.constant 2 : index
    %c2_510 = arith.constant 2 : index
    %c0_511 = arith.constant 0 : index
    %1388 = vector.load %arg6[%c2_509, %c2_510, %c0_511] : memref<4x18x18xf32, #tpu.memory_space<vmem>>, vector<1x16x16xf32>
    %1389 = vector.shape_cast %1388 : vector<1x16x16xf32> to vector<16x16xf32>
    %c104_512 = arith.constant 104 : index
    %1390 = memref.load %arg3[%c104_512] : memref<144xf32, #tpu.memory_space<smem>>
    %1391 = vector.broadcast %1390 : f32 to vector<16x16xf32>
    %1392 = arith.mulf %1391, %1389 : vector<16x16xf32>
    %1393 = arith.addf %1375, %1392 : vector<16x16xf32>
    %c105_513 = arith.constant 105 : index
    %1394 = memref.load %arg3[%c105_513] : memref<144xf32, #tpu.memory_space<smem>>
    %1395 = vector.broadcast %1394 : f32 to vector<16x16xf32>
    %1396 = arith.mulf %1395, %1389 : vector<16x16xf32>
    %1397 = arith.addf %1379, %1396 : vector<16x16xf32>
    %c106_514 = arith.constant 106 : index
    %1398 = memref.load %arg3[%c106_514] : memref<144xf32, #tpu.memory_space<smem>>
    %1399 = vector.broadcast %1398 : f32 to vector<16x16xf32>
    %1400 = arith.mulf %1399, %1389 : vector<16x16xf32>
    %1401 = arith.addf %1383, %1400 : vector<16x16xf32>
    %c107_515 = arith.constant 107 : index
    %1402 = memref.load %arg3[%c107_515] : memref<144xf32, #tpu.memory_space<smem>>
    %1403 = vector.broadcast %1402 : f32 to vector<16x16xf32>
    %1404 = arith.mulf %1403, %1389 : vector<16x16xf32>
    %1405 = arith.addf %1387, %1404 : vector<16x16xf32>
    %c3_516 = arith.constant 3 : index
    %c2_517 = arith.constant 2 : index
    %c0_518 = arith.constant 0 : index
    %1406 = vector.load %arg6[%c3_516, %c2_517, %c0_518] : memref<4x18x18xf32, #tpu.memory_space<vmem>>, vector<1x16x16xf32>
    %1407 = vector.shape_cast %1406 : vector<1x16x16xf32> to vector<16x16xf32>
    %c108_519 = arith.constant 108 : index
    %1408 = memref.load %arg3[%c108_519] : memref<144xf32, #tpu.memory_space<smem>>
    %1409 = vector.broadcast %1408 : f32 to vector<16x16xf32>
    %1410 = arith.mulf %1409, %1407 : vector<16x16xf32>
    %1411 = arith.addf %1393, %1410 : vector<16x16xf32>
    %c109_520 = arith.constant 109 : index
    %1412 = memref.load %arg3[%c109_520] : memref<144xf32, #tpu.memory_space<smem>>
    %1413 = vector.broadcast %1412 : f32 to vector<16x16xf32>
    %1414 = arith.mulf %1413, %1407 : vector<16x16xf32>
    %1415 = arith.addf %1397, %1414 : vector<16x16xf32>
    %c110_521 = arith.constant 110 : index
    %1416 = memref.load %arg3[%c110_521] : memref<144xf32, #tpu.memory_space<smem>>
    %1417 = vector.broadcast %1416 : f32 to vector<16x16xf32>
    %1418 = arith.mulf %1417, %1407 : vector<16x16xf32>
    %1419 = arith.addf %1401, %1418 : vector<16x16xf32>
    %c111_522 = arith.constant 111 : index
    %1420 = memref.load %arg3[%c111_522] : memref<144xf32, #tpu.memory_space<smem>>
    %1421 = vector.broadcast %1420 : f32 to vector<16x16xf32>
    %1422 = arith.mulf %1421, %1407 : vector<16x16xf32>
    %1423 = arith.addf %1405, %1422 : vector<16x16xf32>
    %c0_523 = arith.constant 0 : index
    %c2_524 = arith.constant 2 : index
    %c1_525 = arith.constant 1 : index
    %1424 = vector.load %arg6[%c0_523, %c2_524, %c1_525] : memref<4x18x18xf32, #tpu.memory_space<vmem>>, vector<1x16x16xf32>
    %1425 = vector.shape_cast %1424 : vector<1x16x16xf32> to vector<16x16xf32>
    %c112_526 = arith.constant 112 : index
    %1426 = memref.load %arg3[%c112_526] : memref<144xf32, #tpu.memory_space<smem>>
    %1427 = vector.broadcast %1426 : f32 to vector<16x16xf32>
    %1428 = arith.mulf %1427, %1425 : vector<16x16xf32>
    %1429 = arith.addf %1411, %1428 : vector<16x16xf32>
    %c113_527 = arith.constant 113 : index
    %1430 = memref.load %arg3[%c113_527] : memref<144xf32, #tpu.memory_space<smem>>
    %1431 = vector.broadcast %1430 : f32 to vector<16x16xf32>
    %1432 = arith.mulf %1431, %1425 : vector<16x16xf32>
    %1433 = arith.addf %1415, %1432 : vector<16x16xf32>
    %c114_528 = arith.constant 114 : index
    %1434 = memref.load %arg3[%c114_528] : memref<144xf32, #tpu.memory_space<smem>>
    %1435 = vector.broadcast %1434 : f32 to vector<16x16xf32>
    %1436 = arith.mulf %1435, %1425 : vector<16x16xf32>
    %1437 = arith.addf %1419, %1436 : vector<16x16xf32>
    %c115_529 = arith.constant 115 : index
    %1438 = memref.load %arg3[%c115_529] : memref<144xf32, #tpu.memory_space<smem>>
    %1439 = vector.broadcast %1438 : f32 to vector<16x16xf32>
    %1440 = arith.mulf %1439, %1425 : vector<16x16xf32>
    %1441 = arith.addf %1423, %1440 : vector<16x16xf32>
    %c1_530 = arith.constant 1 : index
    %c2_531 = arith.constant 2 : index
    %c1_532 = arith.constant 1 : index
    %1442 = vector.load %arg6[%c1_530, %c2_531, %c1_532] : memref<4x18x18xf32, #tpu.memory_space<vmem>>, vector<1x16x16xf32>
    %1443 = vector.shape_cast %1442 : vector<1x16x16xf32> to vector<16x16xf32>
    %c116_533 = arith.constant 116 : index
    %1444 = memref.load %arg3[%c116_533] : memref<144xf32, #tpu.memory_space<smem>>
    %1445 = vector.broadcast %1444 : f32 to vector<16x16xf32>
    %1446 = arith.mulf %1445, %1443 : vector<16x16xf32>
    %1447 = arith.addf %1429, %1446 : vector<16x16xf32>
    %c117_534 = arith.constant 117 : index
    %1448 = memref.load %arg3[%c117_534] : memref<144xf32, #tpu.memory_space<smem>>
    %1449 = vector.broadcast %1448 : f32 to vector<16x16xf32>
    %1450 = arith.mulf %1449, %1443 : vector<16x16xf32>
    %1451 = arith.addf %1433, %1450 : vector<16x16xf32>
    %c118_535 = arith.constant 118 : index
    %1452 = memref.load %arg3[%c118_535] : memref<144xf32, #tpu.memory_space<smem>>
    %1453 = vector.broadcast %1452 : f32 to vector<16x16xf32>
    %1454 = arith.mulf %1453, %1443 : vector<16x16xf32>
    %1455 = arith.addf %1437, %1454 : vector<16x16xf32>
    %c119_536 = arith.constant 119 : index
    %1456 = memref.load %arg3[%c119_536] : memref<144xf32, #tpu.memory_space<smem>>
    %1457 = vector.broadcast %1456 : f32 to vector<16x16xf32>
    %1458 = arith.mulf %1457, %1443 : vector<16x16xf32>
    %1459 = arith.addf %1441, %1458 : vector<16x16xf32>
    %c2_537 = arith.constant 2 : index
    %c2_538 = arith.constant 2 : index
    %c1_539 = arith.constant 1 : index
    %1460 = vector.load %arg6[%c2_537, %c2_538, %c1_539] : memref<4x18x18xf32, #tpu.memory_space<vmem>>, vector<1x16x16xf32>
    %1461 = vector.shape_cast %1460 : vector<1x16x16xf32> to vector<16x16xf32>
    %c120_540 = arith.constant 120 : index
    %1462 = memref.load %arg3[%c120_540] : memref<144xf32, #tpu.memory_space<smem>>
    %1463 = vector.broadcast %1462 : f32 to vector<16x16xf32>
    %1464 = arith.mulf %1463, %1461 : vector<16x16xf32>
    %1465 = arith.addf %1447, %1464 : vector<16x16xf32>
    %c121_541 = arith.constant 121 : index
    %1466 = memref.load %arg3[%c121_541] : memref<144xf32, #tpu.memory_space<smem>>
    %1467 = vector.broadcast %1466 : f32 to vector<16x16xf32>
    %1468 = arith.mulf %1467, %1461 : vector<16x16xf32>
    %1469 = arith.addf %1451, %1468 : vector<16x16xf32>
    %c122_542 = arith.constant 122 : index
    %1470 = memref.load %arg3[%c122_542] : memref<144xf32, #tpu.memory_space<smem>>
    %1471 = vector.broadcast %1470 : f32 to vector<16x16xf32>
    %1472 = arith.mulf %1471, %1461 : vector<16x16xf32>
    %1473 = arith.addf %1455, %1472 : vector<16x16xf32>
    %c123_543 = arith.constant 123 : index
    %1474 = memref.load %arg3[%c123_543] : memref<144xf32, #tpu.memory_space<smem>>
    %1475 = vector.broadcast %1474 : f32 to vector<16x16xf32>
    %1476 = arith.mulf %1475, %1461 : vector<16x16xf32>
    %1477 = arith.addf %1459, %1476 : vector<16x16xf32>
    %c3_544 = arith.constant 3 : index
    %c2_545 = arith.constant 2 : index
    %c1_546 = arith.constant 1 : index
    %1478 = vector.load %arg6[%c3_544, %c2_545, %c1_546] : memref<4x18x18xf32, #tpu.memory_space<vmem>>, vector<1x16x16xf32>
    %1479 = vector.shape_cast %1478 : vector<1x16x16xf32> to vector<16x16xf32>
    %c124_547 = arith.constant 124 : index
    %1480 = memref.load %arg3[%c124_547] : memref<144xf32, #tpu.memory_space<smem>>
    %1481 = vector.broadcast %1480 : f32 to vector<16x16xf32>
    %1482 = arith.mulf %1481, %1479 : vector<16x16xf32>
    %1483 = arith.addf %1465, %1482 : vector<16x16xf32>
    %c125_548 = arith.constant 125 : index
    %1484 = memref.load %arg3[%c125_548] : memref<144xf32, #tpu.memory_space<smem>>
    %1485 = vector.broadcast %1484 : f32 to vector<16x16xf32>
    %1486 = arith.mulf %1485, %1479 : vector<16x16xf32>
    %1487 = arith.addf %1469, %1486 : vector<16x16xf32>
    %c126_549 = arith.constant 126 : index
    %1488 = memref.load %arg3[%c126_549] : memref<144xf32, #tpu.memory_space<smem>>
    %1489 = vector.broadcast %1488 : f32 to vector<16x16xf32>
    %1490 = arith.mulf %1489, %1479 : vector<16x16xf32>
    %1491 = arith.addf %1473, %1490 : vector<16x16xf32>
    %c127_550 = arith.constant 127 : index
    %1492 = memref.load %arg3[%c127_550] : memref<144xf32, #tpu.memory_space<smem>>
    %1493 = vector.broadcast %1492 : f32 to vector<16x16xf32>
    %1494 = arith.mulf %1493, %1479 : vector<16x16xf32>
    %1495 = arith.addf %1477, %1494 : vector<16x16xf32>
    %c0_551 = arith.constant 0 : index
    %c2_552 = arith.constant 2 : index
    %c2_553 = arith.constant 2 : index
    %1496 = vector.load %arg6[%c0_551, %c2_552, %c2_553] : memref<4x18x18xf32, #tpu.memory_space<vmem>>, vector<1x16x16xf32>
    %1497 = vector.shape_cast %1496 : vector<1x16x16xf32> to vector<16x16xf32>
    %c128_554 = arith.constant 128 : index
    %1498 = memref.load %arg3[%c128_554] : memref<144xf32, #tpu.memory_space<smem>>
    %1499 = vector.broadcast %1498 : f32 to vector<16x16xf32>
    %1500 = arith.mulf %1499, %1497 : vector<16x16xf32>
    %1501 = arith.addf %1483, %1500 : vector<16x16xf32>
    %c129_555 = arith.constant 129 : index
    %1502 = memref.load %arg3[%c129_555] : memref<144xf32, #tpu.memory_space<smem>>
    %1503 = vector.broadcast %1502 : f32 to vector<16x16xf32>
    %1504 = arith.mulf %1503, %1497 : vector<16x16xf32>
    %1505 = arith.addf %1487, %1504 : vector<16x16xf32>
    %c130_556 = arith.constant 130 : index
    %1506 = memref.load %arg3[%c130_556] : memref<144xf32, #tpu.memory_space<smem>>
    %1507 = vector.broadcast %1506 : f32 to vector<16x16xf32>
    %1508 = arith.mulf %1507, %1497 : vector<16x16xf32>
    %1509 = arith.addf %1491, %1508 : vector<16x16xf32>
    %c131_557 = arith.constant 131 : index
    %1510 = memref.load %arg3[%c131_557] : memref<144xf32, #tpu.memory_space<smem>>
    %1511 = vector.broadcast %1510 : f32 to vector<16x16xf32>
    %1512 = arith.mulf %1511, %1497 : vector<16x16xf32>
    %1513 = arith.addf %1495, %1512 : vector<16x16xf32>
    %c1_558 = arith.constant 1 : index
    %c2_559 = arith.constant 2 : index
    %c2_560 = arith.constant 2 : index
    %1514 = vector.load %arg6[%c1_558, %c2_559, %c2_560] : memref<4x18x18xf32, #tpu.memory_space<vmem>>, vector<1x16x16xf32>
    %1515 = vector.shape_cast %1514 : vector<1x16x16xf32> to vector<16x16xf32>
    %c132_561 = arith.constant 132 : index
    %1516 = memref.load %arg3[%c132_561] : memref<144xf32, #tpu.memory_space<smem>>
    %1517 = vector.broadcast %1516 : f32 to vector<16x16xf32>
    %1518 = arith.mulf %1517, %1515 : vector<16x16xf32>
    %1519 = arith.addf %1501, %1518 : vector<16x16xf32>
    %c133_562 = arith.constant 133 : index
    %1520 = memref.load %arg3[%c133_562] : memref<144xf32, #tpu.memory_space<smem>>
    %1521 = vector.broadcast %1520 : f32 to vector<16x16xf32>
    %1522 = arith.mulf %1521, %1515 : vector<16x16xf32>
    %1523 = arith.addf %1505, %1522 : vector<16x16xf32>
    %c134_563 = arith.constant 134 : index
    %1524 = memref.load %arg3[%c134_563] : memref<144xf32, #tpu.memory_space<smem>>
    %1525 = vector.broadcast %1524 : f32 to vector<16x16xf32>
    %1526 = arith.mulf %1525, %1515 : vector<16x16xf32>
    %1527 = arith.addf %1509, %1526 : vector<16x16xf32>
    %c135_564 = arith.constant 135 : index
    %1528 = memref.load %arg3[%c135_564] : memref<144xf32, #tpu.memory_space<smem>>
    %1529 = vector.broadcast %1528 : f32 to vector<16x16xf32>
    %1530 = arith.mulf %1529, %1515 : vector<16x16xf32>
    %1531 = arith.addf %1513, %1530 : vector<16x16xf32>
    %c2_565 = arith.constant 2 : index
    %c2_566 = arith.constant 2 : index
    %c2_567 = arith.constant 2 : index
    %1532 = vector.load %arg6[%c2_565, %c2_566, %c2_567] : memref<4x18x18xf32, #tpu.memory_space<vmem>>, vector<1x16x16xf32>
    %1533 = vector.shape_cast %1532 : vector<1x16x16xf32> to vector<16x16xf32>
    %c136_568 = arith.constant 136 : index
    %1534 = memref.load %arg3[%c136_568] : memref<144xf32, #tpu.memory_space<smem>>
    %1535 = vector.broadcast %1534 : f32 to vector<16x16xf32>
    %1536 = arith.mulf %1535, %1533 : vector<16x16xf32>
    %1537 = arith.addf %1519, %1536 : vector<16x16xf32>
    %c137_569 = arith.constant 137 : index
    %1538 = memref.load %arg3[%c137_569] : memref<144xf32, #tpu.memory_space<smem>>
    %1539 = vector.broadcast %1538 : f32 to vector<16x16xf32>
    %1540 = arith.mulf %1539, %1533 : vector<16x16xf32>
    %1541 = arith.addf %1523, %1540 : vector<16x16xf32>
    %c138_570 = arith.constant 138 : index
    %1542 = memref.load %arg3[%c138_570] : memref<144xf32, #tpu.memory_space<smem>>
    %1543 = vector.broadcast %1542 : f32 to vector<16x16xf32>
    %1544 = arith.mulf %1543, %1533 : vector<16x16xf32>
    %1545 = arith.addf %1527, %1544 : vector<16x16xf32>
    %c139_571 = arith.constant 139 : index
    %1546 = memref.load %arg3[%c139_571] : memref<144xf32, #tpu.memory_space<smem>>
    %1547 = vector.broadcast %1546 : f32 to vector<16x16xf32>
    %1548 = arith.mulf %1547, %1533 : vector<16x16xf32>
    %1549 = arith.addf %1531, %1548 : vector<16x16xf32>
    %c3_572 = arith.constant 3 : index
    %c2_573 = arith.constant 2 : index
    %c2_574 = arith.constant 2 : index
    %1550 = vector.load %arg6[%c3_572, %c2_573, %c2_574] : memref<4x18x18xf32, #tpu.memory_space<vmem>>, vector<1x16x16xf32>
    %1551 = vector.shape_cast %1550 : vector<1x16x16xf32> to vector<16x16xf32>
    %c140_575 = arith.constant 140 : index
    %1552 = memref.load %arg3[%c140_575] : memref<144xf32, #tpu.memory_space<smem>>
    %1553 = vector.broadcast %1552 : f32 to vector<16x16xf32>
    %1554 = arith.mulf %1553, %1551 : vector<16x16xf32>
    %1555 = arith.addf %1537, %1554 : vector<16x16xf32>
    %c141_576 = arith.constant 141 : index
    %1556 = memref.load %arg3[%c141_576] : memref<144xf32, #tpu.memory_space<smem>>
    %1557 = vector.broadcast %1556 : f32 to vector<16x16xf32>
    %1558 = arith.mulf %1557, %1551 : vector<16x16xf32>
    %1559 = arith.addf %1541, %1558 : vector<16x16xf32>
    %c142_577 = arith.constant 142 : index
    %1560 = memref.load %arg3[%c142_577] : memref<144xf32, #tpu.memory_space<smem>>
    %1561 = vector.broadcast %1560 : f32 to vector<16x16xf32>
    %1562 = arith.mulf %1561, %1551 : vector<16x16xf32>
    %1563 = arith.addf %1545, %1562 : vector<16x16xf32>
    %c143_578 = arith.constant 143 : index
    %1564 = memref.load %arg3[%c143_578] : memref<144xf32, #tpu.memory_space<smem>>
    %1565 = vector.broadcast %1564 : f32 to vector<16x16xf32>
    %1566 = arith.mulf %1565, %1551 : vector<16x16xf32>
    %1567 = arith.addf %1549, %1566 : vector<16x16xf32>
    %cst_579 = arith.constant dense<0.000000e+00> : vector<16xf32>
    %1568 = vector.multi_reduction <add>, %1555, %cst_579 [1] : vector<16x16xf32> to vector<16xf32>
    %1569 = vector.shape_cast %1568 : vector<16xf32> to vector<16x1xf32>
    %cst_580 = arith.constant dense<0.000000e+00> : vector<1xf32>
    %1570 = vector.multi_reduction <add>, %1569, %cst_580 [0] : vector<16x1xf32> to vector<1xf32>
    %1571 = vector.shape_cast %1570 : vector<1xf32> to vector<1x1xf32>
    %1572 = arith.mulf %1555, %1555 : vector<16x16xf32>
    %cst_581 = arith.constant dense<0.000000e+00> : vector<16xf32>
    %1573 = vector.multi_reduction <add>, %1572, %cst_581 [1] : vector<16x16xf32> to vector<16xf32>
    %1574 = vector.shape_cast %1573 : vector<16xf32> to vector<16x1xf32>
    %cst_582 = arith.constant dense<0.000000e+00> : vector<1xf32>
    %1575 = vector.multi_reduction <add>, %1574, %cst_582 [0] : vector<16x1xf32> to vector<1xf32>
    %1576 = vector.shape_cast %1575 : vector<1xf32> to vector<1x1xf32>
    %cst_583 = arith.constant 3.906250e-03 : f32
    %1577 = vector.broadcast %cst_583 : f32 to vector<1x1xf32>
    %1578 = arith.mulf %1571, %1577 : vector<1x1xf32>
    %cst_584 = arith.constant 3.906250e-03 : f32
    %1579 = vector.broadcast %cst_584 : f32 to vector<1x1xf32>
    %1580 = arith.mulf %1576, %1579 : vector<1x1xf32>
    %1581 = arith.mulf %1578, %1578 : vector<1x1xf32>
    %1582 = arith.subf %1580, %1581 : vector<1x1xf32>
    %cst_585 = arith.constant 0.000000e+00 : f32
    %1583 = vector.broadcast %cst_585 : f32 to vector<1x1xf32>
    %1584 = arith.maximumf %1582, %1583 : vector<1x1xf32>
    %1585 = vector.broadcast %1578 : vector<1x1xf32> to vector<16x16xf32>
    %1586 = arith.subf %1555, %1585 : vector<16x16xf32>
    %cst_586 = arith.constant 9.99999974E-6 : f32
    %1587 = vector.broadcast %cst_586 : f32 to vector<1x1xf32>
    %1588 = arith.addf %1584, %1587 : vector<1x1xf32>
    %1589 = math.rsqrt %1588 : vector<1x1xf32>
    %1590 = vector.broadcast %1589 : vector<1x1xf32> to vector<16x16xf32>
    %1591 = arith.mulf %1586, %1590 : vector<16x16xf32>
    %1592 = arith.addf %1, %1591 : vector<16x16xf32>
    %1593 = vector.extract_strided_slice %1592 {offsets = [0, 0], sizes = [1, 16], strides = [1, 1]} : vector<16x16xf32> to vector<1x16xf32>
    %c0_587 = arith.constant 0 : index
    %c0_588 = arith.constant 0 : index
    %c0_589 = arith.constant 0 : index
    %1594 = vector.load %arg4[%c0_587, %c0_588, %c0_589] : memref<1x4x256xf32, #tpu.memory_space<vmem>>, vector<1x1x16xf32>
    %1595 = vector.shape_cast %1594 : vector<1x1x16xf32> to vector<1x16xf32>
    %1596 = vector.shape_cast %1593 : vector<1x16xf32> to vector<1x1x16xf32>
    tpu.vector_store %arg4[%c0_587, %c0_588, %c0_589], %1596 {strides = array<i32>} : memref<1x4x256xf32, #tpu.memory_space<vmem>>, vector<1x1x16xf32>,
    %1597 = vector.extract_strided_slice %1592 {offsets = [1, 0], sizes = [1, 16], strides = [1, 1]} : vector<16x16xf32> to vector<1x16xf32>
    %c0_590 = arith.constant 0 : index
    %c0_591 = arith.constant 0 : index
    %c16_592 = arith.constant 16 : index
    %1598 = vector.load %arg4[%c0_590, %c0_591, %c16_592] : memref<1x4x256xf32, #tpu.memory_space<vmem>>, vector<1x1x16xf32>
    %1599 = vector.shape_cast %1598 : vector<1x1x16xf32> to vector<1x16xf32>
    %1600 = vector.shape_cast %1597 : vector<1x16xf32> to vector<1x1x16xf32>
    tpu.vector_store %arg4[%c0_590, %c0_591, %c16_592], %1600 {strides = array<i32>} : memref<1x4x256xf32, #tpu.memory_space<vmem>>, vector<1x1x16xf32>,
    %1601 = vector.extract_strided_slice %1592 {offsets = [2, 0], sizes = [1, 16], strides = [1, 1]} : vector<16x16xf32> to vector<1x16xf32>
    %c0_593 = arith.constant 0 : index
    %c0_594 = arith.constant 0 : index
    %c32_595 = arith.constant 32 : index
    %1602 = vector.load %arg4[%c0_593, %c0_594, %c32_595] : memref<1x4x256xf32, #tpu.memory_space<vmem>>, vector<1x1x16xf32>
    %1603 = vector.shape_cast %1602 : vector<1x1x16xf32> to vector<1x16xf32>
    %1604 = vector.shape_cast %1601 : vector<1x16xf32> to vector<1x1x16xf32>
    tpu.vector_store %arg4[%c0_593, %c0_594, %c32_595], %1604 {strides = array<i32>} : memref<1x4x256xf32, #tpu.memory_space<vmem>>, vector<1x1x16xf32>,
    %1605 = vector.extract_strided_slice %1592 {offsets = [3, 0], sizes = [1, 16], strides = [1, 1]} : vector<16x16xf32> to vector<1x16xf32>
    %c0_596 = arith.constant 0 : index
    %c0_597 = arith.constant 0 : index
    %c48_598 = arith.constant 48 : index
    %1606 = vector.load %arg4[%c0_596, %c0_597, %c48_598] : memref<1x4x256xf32, #tpu.memory_space<vmem>>, vector<1x1x16xf32>
    %1607 = vector.shape_cast %1606 : vector<1x1x16xf32> to vector<1x16xf32>
    %1608 = vector.shape_cast %1605 : vector<1x16xf32> to vector<1x1x16xf32>
    tpu.vector_store %arg4[%c0_596, %c0_597, %c48_598], %1608 {strides = array<i32>} : memref<1x4x256xf32, #tpu.memory_space<vmem>>, vector<1x1x16xf32>,
    %1609 = vector.extract_strided_slice %1592 {offsets = [4, 0], sizes = [1, 16], strides = [1, 1]} : vector<16x16xf32> to vector<1x16xf32>
    %c0_599 = arith.constant 0 : index
    %c0_600 = arith.constant 0 : index
    %c64_601 = arith.constant 64 : index
    %1610 = vector.load %arg4[%c0_599, %c0_600, %c64_601] : memref<1x4x256xf32, #tpu.memory_space<vmem>>, vector<1x1x16xf32>
    %1611 = vector.shape_cast %1610 : vector<1x1x16xf32> to vector<1x16xf32>
    %1612 = vector.shape_cast %1609 : vector<1x16xf32> to vector<1x1x16xf32>
    tpu.vector_store %arg4[%c0_599, %c0_600, %c64_601], %1612 {strides = array<i32>} : memref<1x4x256xf32, #tpu.memory_space<vmem>>, vector<1x1x16xf32>,
    %1613 = vector.extract_strided_slice %1592 {offsets = [5, 0], sizes = [1, 16], strides = [1, 1]} : vector<16x16xf32> to vector<1x16xf32>
    %c0_602 = arith.constant 0 : index
    %c0_603 = arith.constant 0 : index
    %c80_604 = arith.constant 80 : index
    %1614 = vector.load %arg4[%c0_602, %c0_603, %c80_604] : memref<1x4x256xf32, #tpu.memory_space<vmem>>, vector<1x1x16xf32>
    %1615 = vector.shape_cast %1614 : vector<1x1x16xf32> to vector<1x16xf32>
    %1616 = vector.shape_cast %1613 : vector<1x16xf32> to vector<1x1x16xf32>
    tpu.vector_store %arg4[%c0_602, %c0_603, %c80_604], %1616 {strides = array<i32>} : memref<1x4x256xf32, #tpu.memory_space<vmem>>, vector<1x1x16xf32>,
    %1617 = vector.extract_strided_slice %1592 {offsets = [6, 0], sizes = [1, 16], strides = [1, 1]} : vector<16x16xf32> to vector<1x16xf32>
    %c0_605 = arith.constant 0 : index
    %c0_606 = arith.constant 0 : index
    %c96_607 = arith.constant 96 : index
    %1618 = vector.load %arg4[%c0_605, %c0_606, %c96_607] : memref<1x4x256xf32, #tpu.memory_space<vmem>>, vector<1x1x16xf32>
    %1619 = vector.shape_cast %1618 : vector<1x1x16xf32> to vector<1x16xf32>
    %1620 = vector.shape_cast %1617 : vector<1x16xf32> to vector<1x1x16xf32>
    tpu.vector_store %arg4[%c0_605, %c0_606, %c96_607], %1620 {strides = array<i32>} : memref<1x4x256xf32, #tpu.memory_space<vmem>>, vector<1x1x16xf32>,
    %1621 = vector.extract_strided_slice %1592 {offsets = [7, 0], sizes = [1, 16], strides = [1, 1]} : vector<16x16xf32> to vector<1x16xf32>
    %c0_608 = arith.constant 0 : index
    %c0_609 = arith.constant 0 : index
    %c112_610 = arith.constant 112 : index
    %1622 = vector.load %arg4[%c0_608, %c0_609, %c112_610] : memref<1x4x256xf32, #tpu.memory_space<vmem>>, vector<1x1x16xf32>
    %1623 = vector.shape_cast %1622 : vector<1x1x16xf32> to vector<1x16xf32>
    %1624 = vector.shape_cast %1621 : vector<1x16xf32> to vector<1x1x16xf32>
    tpu.vector_store %arg4[%c0_608, %c0_609, %c112_610], %1624 {strides = array<i32>} : memref<1x4x256xf32, #tpu.memory_space<vmem>>, vector<1x1x16xf32>,
    %1625 = vector.extract_strided_slice %1592 {offsets = [8, 0], sizes = [1, 16], strides = [1, 1]} : vector<16x16xf32> to vector<1x16xf32>
    %c0_611 = arith.constant 0 : index
    %c0_612 = arith.constant 0 : index
    %c128_613 = arith.constant 128 : index
    %1626 = vector.load %arg4[%c0_611, %c0_612, %c128_613] : memref<1x4x256xf32, #tpu.memory_space<vmem>>, vector<1x1x16xf32>
    %1627 = vector.shape_cast %1626 : vector<1x1x16xf32> to vector<1x16xf32>
    %1628 = vector.shape_cast %1625 : vector<1x16xf32> to vector<1x1x16xf32>
    tpu.vector_store %arg4[%c0_611, %c0_612, %c128_613], %1628 {strides = array<i32>} : memref<1x4x256xf32, #tpu.memory_space<vmem>>, vector<1x1x16xf32>,
    %1629 = vector.extract_strided_slice %1592 {offsets = [9, 0], sizes = [1, 16], strides = [1, 1]} : vector<16x16xf32> to vector<1x16xf32>
    %c0_614 = arith.constant 0 : index
    %c0_615 = arith.constant 0 : index
    %c144 = arith.constant 144 : index
    %1630 = vector.load %arg4[%c0_614, %c0_615, %c144] : memref<1x4x256xf32, #tpu.memory_space<vmem>>, vector<1x1x16xf32>
    %1631 = vector.shape_cast %1630 : vector<1x1x16xf32> to vector<1x16xf32>
    %1632 = vector.shape_cast %1629 : vector<1x16xf32> to vector<1x1x16xf32>
    tpu.vector_store %arg4[%c0_614, %c0_615, %c144], %1632 {strides = array<i32>} : memref<1x4x256xf32, #tpu.memory_space<vmem>>, vector<1x1x16xf32>,
    %1633 = vector.extract_strided_slice %1592 {offsets = [10, 0], sizes = [1, 16], strides = [1, 1]} : vector<16x16xf32> to vector<1x16xf32>
    %c0_616 = arith.constant 0 : index
    %c0_617 = arith.constant 0 : index
    %c160 = arith.constant 160 : index
    %1634 = vector.load %arg4[%c0_616, %c0_617, %c160] : memref<1x4x256xf32, #tpu.memory_space<vmem>>, vector<1x1x16xf32>
    %1635 = vector.shape_cast %1634 : vector<1x1x16xf32> to vector<1x16xf32>
    %1636 = vector.shape_cast %1633 : vector<1x16xf32> to vector<1x1x16xf32>
    tpu.vector_store %arg4[%c0_616, %c0_617, %c160], %1636 {strides = array<i32>} : memref<1x4x256xf32, #tpu.memory_space<vmem>>, vector<1x1x16xf32>,
    %1637 = vector.extract_strided_slice %1592 {offsets = [11, 0], sizes = [1, 16], strides = [1, 1]} : vector<16x16xf32> to vector<1x16xf32>
    %c0_618 = arith.constant 0 : index
    %c0_619 = arith.constant 0 : index
    %c176 = arith.constant 176 : index
    %1638 = vector.load %arg4[%c0_618, %c0_619, %c176] : memref<1x4x256xf32, #tpu.memory_space<vmem>>, vector<1x1x16xf32>
    %1639 = vector.shape_cast %1638 : vector<1x1x16xf32> to vector<1x16xf32>
    %1640 = vector.shape_cast %1637 : vector<1x16xf32> to vector<1x1x16xf32>
    tpu.vector_store %arg4[%c0_618, %c0_619, %c176], %1640 {strides = array<i32>} : memref<1x4x256xf32, #tpu.memory_space<vmem>>, vector<1x1x16xf32>,
    %1641 = vector.extract_strided_slice %1592 {offsets = [12, 0], sizes = [1, 16], strides = [1, 1]} : vector<16x16xf32> to vector<1x16xf32>
    %c0_620 = arith.constant 0 : index
    %c0_621 = arith.constant 0 : index
    %c192 = arith.constant 192 : index
    %1642 = vector.load %arg4[%c0_620, %c0_621, %c192] : memref<1x4x256xf32, #tpu.memory_space<vmem>>, vector<1x1x16xf32>
    %1643 = vector.shape_cast %1642 : vector<1x1x16xf32> to vector<1x16xf32>
    %1644 = vector.shape_cast %1641 : vector<1x16xf32> to vector<1x1x16xf32>
    tpu.vector_store %arg4[%c0_620, %c0_621, %c192], %1644 {strides = array<i32>} : memref<1x4x256xf32, #tpu.memory_space<vmem>>, vector<1x1x16xf32>,
    %1645 = vector.extract_strided_slice %1592 {offsets = [13, 0], sizes = [1, 16], strides = [1, 1]} : vector<16x16xf32> to vector<1x16xf32>
    %c0_622 = arith.constant 0 : index
    %c0_623 = arith.constant 0 : index
    %c208 = arith.constant 208 : index
    %1646 = vector.load %arg4[%c0_622, %c0_623, %c208] : memref<1x4x256xf32, #tpu.memory_space<vmem>>, vector<1x1x16xf32>
    %1647 = vector.shape_cast %1646 : vector<1x1x16xf32> to vector<1x16xf32>
    %1648 = vector.shape_cast %1645 : vector<1x16xf32> to vector<1x1x16xf32>
    tpu.vector_store %arg4[%c0_622, %c0_623, %c208], %1648 {strides = array<i32>} : memref<1x4x256xf32, #tpu.memory_space<vmem>>, vector<1x1x16xf32>,
    %1649 = vector.extract_strided_slice %1592 {offsets = [14, 0], sizes = [1, 16], strides = [1, 1]} : vector<16x16xf32> to vector<1x16xf32>
    %c0_624 = arith.constant 0 : index
    %c0_625 = arith.constant 0 : index
    %c224 = arith.constant 224 : index
    %1650 = vector.load %arg4[%c0_624, %c0_625, %c224] : memref<1x4x256xf32, #tpu.memory_space<vmem>>, vector<1x1x16xf32>
    %1651 = vector.shape_cast %1650 : vector<1x1x16xf32> to vector<1x16xf32>
    %1652 = vector.shape_cast %1649 : vector<1x16xf32> to vector<1x1x16xf32>
    tpu.vector_store %arg4[%c0_624, %c0_625, %c224], %1652 {strides = array<i32>} : memref<1x4x256xf32, #tpu.memory_space<vmem>>, vector<1x1x16xf32>,
    %1653 = vector.extract_strided_slice %1592 {offsets = [15, 0], sizes = [1, 16], strides = [1, 1]} : vector<16x16xf32> to vector<1x16xf32>
    %c0_626 = arith.constant 0 : index
    %c0_627 = arith.constant 0 : index
    %c240 = arith.constant 240 : index
    %1654 = vector.load %arg4[%c0_626, %c0_627, %c240] : memref<1x4x256xf32, #tpu.memory_space<vmem>>, vector<1x1x16xf32>
    %1655 = vector.shape_cast %1654 : vector<1x1x16xf32> to vector<1x16xf32>
    %1656 = vector.shape_cast %1653 : vector<1x16xf32> to vector<1x1x16xf32>
    tpu.vector_store %arg4[%c0_626, %c0_627, %c240], %1656 {strides = array<i32>} : memref<1x4x256xf32, #tpu.memory_space<vmem>>, vector<1x1x16xf32>,
    %cst_628 = arith.constant dense<0.000000e+00> : vector<16xf32>
    %1657 = vector.multi_reduction <add>, %1559, %cst_628 [1] : vector<16x16xf32> to vector<16xf32>
    %1658 = vector.shape_cast %1657 : vector<16xf32> to vector<16x1xf32>
    %cst_629 = arith.constant dense<0.000000e+00> : vector<1xf32>
    %1659 = vector.multi_reduction <add>, %1658, %cst_629 [0] : vector<16x1xf32> to vector<1xf32>
    %1660 = vector.shape_cast %1659 : vector<1xf32> to vector<1x1xf32>
    %1661 = arith.mulf %1559, %1559 : vector<16x16xf32>
    %cst_630 = arith.constant dense<0.000000e+00> : vector<16xf32>
    %1662 = vector.multi_reduction <add>, %1661, %cst_630 [1] : vector<16x16xf32> to vector<16xf32>
    %1663 = vector.shape_cast %1662 : vector<16xf32> to vector<16x1xf32>
    %cst_631 = arith.constant dense<0.000000e+00> : vector<1xf32>
    %1664 = vector.multi_reduction <add>, %1663, %cst_631 [0] : vector<16x1xf32> to vector<1xf32>
    %1665 = vector.shape_cast %1664 : vector<1xf32> to vector<1x1xf32>
    %cst_632 = arith.constant 3.906250e-03 : f32
    %1666 = vector.broadcast %cst_632 : f32 to vector<1x1xf32>
    %1667 = arith.mulf %1660, %1666 : vector<1x1xf32>
    %cst_633 = arith.constant 3.906250e-03 : f32
    %1668 = vector.broadcast %cst_633 : f32 to vector<1x1xf32>
    %1669 = arith.mulf %1665, %1668 : vector<1x1xf32>
    %1670 = arith.mulf %1667, %1667 : vector<1x1xf32>
    %1671 = arith.subf %1669, %1670 : vector<1x1xf32>
    %cst_634 = arith.constant 0.000000e+00 : f32
    %1672 = vector.broadcast %cst_634 : f32 to vector<1x1xf32>
    %1673 = arith.maximumf %1671, %1672 : vector<1x1xf32>
    %1674 = vector.broadcast %1667 : vector<1x1xf32> to vector<16x16xf32>
    %1675 = arith.subf %1559, %1674 : vector<16x16xf32>
    %cst_635 = arith.constant 9.99999974E-6 : f32
    %1676 = vector.broadcast %cst_635 : f32 to vector<1x1xf32>
    %1677 = arith.addf %1673, %1676 : vector<1x1xf32>
    %1678 = math.rsqrt %1677 : vector<1x1xf32>
    %1679 = vector.broadcast %1678 : vector<1x1xf32> to vector<16x16xf32>
    %1680 = arith.mulf %1675, %1679 : vector<16x16xf32>
    %1681 = arith.addf %3, %1680 : vector<16x16xf32>
    %1682 = vector.extract_strided_slice %1681 {offsets = [0, 0], sizes = [1, 16], strides = [1, 1]} : vector<16x16xf32> to vector<1x16xf32>
    %c0_636 = arith.constant 0 : index
    %c1_637 = arith.constant 1 : index
    %c0_638 = arith.constant 0 : index
    %1683 = vector.load %arg4[%c0_636, %c1_637, %c0_638] : memref<1x4x256xf32, #tpu.memory_space<vmem>>, vector<1x1x16xf32>
    %1684 = vector.shape_cast %1683 : vector<1x1x16xf32> to vector<1x16xf32>
    %1685 = vector.shape_cast %1682 : vector<1x16xf32> to vector<1x1x16xf32>
    tpu.vector_store %arg4[%c0_636, %c1_637, %c0_638], %1685 {strides = array<i32>} : memref<1x4x256xf32, #tpu.memory_space<vmem>>, vector<1x1x16xf32>,
    %1686 = vector.extract_strided_slice %1681 {offsets = [1, 0], sizes = [1, 16], strides = [1, 1]} : vector<16x16xf32> to vector<1x16xf32>
    %c0_639 = arith.constant 0 : index
    %c1_640 = arith.constant 1 : index
    %c16_641 = arith.constant 16 : index
    %1687 = vector.load %arg4[%c0_639, %c1_640, %c16_641] : memref<1x4x256xf32, #tpu.memory_space<vmem>>, vector<1x1x16xf32>
    %1688 = vector.shape_cast %1687 : vector<1x1x16xf32> to vector<1x16xf32>
    %1689 = vector.shape_cast %1686 : vector<1x16xf32> to vector<1x1x16xf32>
    tpu.vector_store %arg4[%c0_639, %c1_640, %c16_641], %1689 {strides = array<i32>} : memref<1x4x256xf32, #tpu.memory_space<vmem>>, vector<1x1x16xf32>,
    %1690 = vector.extract_strided_slice %1681 {offsets = [2, 0], sizes = [1, 16], strides = [1, 1]} : vector<16x16xf32> to vector<1x16xf32>
    %c0_642 = arith.constant 0 : index
    %c1_643 = arith.constant 1 : index
    %c32_644 = arith.constant 32 : index
    %1691 = vector.load %arg4[%c0_642, %c1_643, %c32_644] : memref<1x4x256xf32, #tpu.memory_space<vmem>>, vector<1x1x16xf32>
    %1692 = vector.shape_cast %1691 : vector<1x1x16xf32> to vector<1x16xf32>
    %1693 = vector.shape_cast %1690 : vector<1x16xf32> to vector<1x1x16xf32>
    tpu.vector_store %arg4[%c0_642, %c1_643, %c32_644], %1693 {strides = array<i32>} : memref<1x4x256xf32, #tpu.memory_space<vmem>>, vector<1x1x16xf32>,
    %1694 = vector.extract_strided_slice %1681 {offsets = [3, 0], sizes = [1, 16], strides = [1, 1]} : vector<16x16xf32> to vector<1x16xf32>
    %c0_645 = arith.constant 0 : index
    %c1_646 = arith.constant 1 : index
    %c48_647 = arith.constant 48 : index
    %1695 = vector.load %arg4[%c0_645, %c1_646, %c48_647] : memref<1x4x256xf32, #tpu.memory_space<vmem>>, vector<1x1x16xf32>
    %1696 = vector.shape_cast %1695 : vector<1x1x16xf32> to vector<1x16xf32>
    %1697 = vector.shape_cast %1694 : vector<1x16xf32> to vector<1x1x16xf32>
    tpu.vector_store %arg4[%c0_645, %c1_646, %c48_647], %1697 {strides = array<i32>} : memref<1x4x256xf32, #tpu.memory_space<vmem>>, vector<1x1x16xf32>,
    %1698 = vector.extract_strided_slice %1681 {offsets = [4, 0], sizes = [1, 16], strides = [1, 1]} : vector<16x16xf32> to vector<1x16xf32>
    %c0_648 = arith.constant 0 : index
    %c1_649 = arith.constant 1 : index
    %c64_650 = arith.constant 64 : index
    %1699 = vector.load %arg4[%c0_648, %c1_649, %c64_650] : memref<1x4x256xf32, #tpu.memory_space<vmem>>, vector<1x1x16xf32>
    %1700 = vector.shape_cast %1699 : vector<1x1x16xf32> to vector<1x16xf32>
    %1701 = vector.shape_cast %1698 : vector<1x16xf32> to vector<1x1x16xf32>
    tpu.vector_store %arg4[%c0_648, %c1_649, %c64_650], %1701 {strides = array<i32>} : memref<1x4x256xf32, #tpu.memory_space<vmem>>, vector<1x1x16xf32>,
    %1702 = vector.extract_strided_slice %1681 {offsets = [5, 0], sizes = [1, 16], strides = [1, 1]} : vector<16x16xf32> to vector<1x16xf32>
    %c0_651 = arith.constant 0 : index
    %c1_652 = arith.constant 1 : index
    %c80_653 = arith.constant 80 : index
    %1703 = vector.load %arg4[%c0_651, %c1_652, %c80_653] : memref<1x4x256xf32, #tpu.memory_space<vmem>>, vector<1x1x16xf32>
    %1704 = vector.shape_cast %1703 : vector<1x1x16xf32> to vector<1x16xf32>
    %1705 = vector.shape_cast %1702 : vector<1x16xf32> to vector<1x1x16xf32>
    tpu.vector_store %arg4[%c0_651, %c1_652, %c80_653], %1705 {strides = array<i32>} : memref<1x4x256xf32, #tpu.memory_space<vmem>>, vector<1x1x16xf32>,
    %1706 = vector.extract_strided_slice %1681 {offsets = [6, 0], sizes = [1, 16], strides = [1, 1]} : vector<16x16xf32> to vector<1x16xf32>
    %c0_654 = arith.constant 0 : index
    %c1_655 = arith.constant 1 : index
    %c96_656 = arith.constant 96 : index
    %1707 = vector.load %arg4[%c0_654, %c1_655, %c96_656] : memref<1x4x256xf32, #tpu.memory_space<vmem>>, vector<1x1x16xf32>
    %1708 = vector.shape_cast %1707 : vector<1x1x16xf32> to vector<1x16xf32>
    %1709 = vector.shape_cast %1706 : vector<1x16xf32> to vector<1x1x16xf32>
    tpu.vector_store %arg4[%c0_654, %c1_655, %c96_656], %1709 {strides = array<i32>} : memref<1x4x256xf32, #tpu.memory_space<vmem>>, vector<1x1x16xf32>,
    %1710 = vector.extract_strided_slice %1681 {offsets = [7, 0], sizes = [1, 16], strides = [1, 1]} : vector<16x16xf32> to vector<1x16xf32>
    %c0_657 = arith.constant 0 : index
    %c1_658 = arith.constant 1 : index
    %c112_659 = arith.constant 112 : index
    %1711 = vector.load %arg4[%c0_657, %c1_658, %c112_659] : memref<1x4x256xf32, #tpu.memory_space<vmem>>, vector<1x1x16xf32>
    %1712 = vector.shape_cast %1711 : vector<1x1x16xf32> to vector<1x16xf32>
    %1713 = vector.shape_cast %1710 : vector<1x16xf32> to vector<1x1x16xf32>
    tpu.vector_store %arg4[%c0_657, %c1_658, %c112_659], %1713 {strides = array<i32>} : memref<1x4x256xf32, #tpu.memory_space<vmem>>, vector<1x1x16xf32>,
    %1714 = vector.extract_strided_slice %1681 {offsets = [8, 0], sizes = [1, 16], strides = [1, 1]} : vector<16x16xf32> to vector<1x16xf32>
    %c0_660 = arith.constant 0 : index
    %c1_661 = arith.constant 1 : index
    %c128_662 = arith.constant 128 : index
    %1715 = vector.load %arg4[%c0_660, %c1_661, %c128_662] : memref<1x4x256xf32, #tpu.memory_space<vmem>>, vector<1x1x16xf32>
    %1716 = vector.shape_cast %1715 : vector<1x1x16xf32> to vector<1x16xf32>
    %1717 = vector.shape_cast %1714 : vector<1x16xf32> to vector<1x1x16xf32>
    tpu.vector_store %arg4[%c0_660, %c1_661, %c128_662], %1717 {strides = array<i32>} : memref<1x4x256xf32, #tpu.memory_space<vmem>>, vector<1x1x16xf32>,
    %1718 = vector.extract_strided_slice %1681 {offsets = [9, 0], sizes = [1, 16], strides = [1, 1]} : vector<16x16xf32> to vector<1x16xf32>
    %c0_663 = arith.constant 0 : index
    %c1_664 = arith.constant 1 : index
    %c144_665 = arith.constant 144 : index
    %1719 = vector.load %arg4[%c0_663, %c1_664, %c144_665] : memref<1x4x256xf32, #tpu.memory_space<vmem>>, vector<1x1x16xf32>
    %1720 = vector.shape_cast %1719 : vector<1x1x16xf32> to vector<1x16xf32>
    %1721 = vector.shape_cast %1718 : vector<1x16xf32> to vector<1x1x16xf32>
    tpu.vector_store %arg4[%c0_663, %c1_664, %c144_665], %1721 {strides = array<i32>} : memref<1x4x256xf32, #tpu.memory_space<vmem>>, vector<1x1x16xf32>,
    %1722 = vector.extract_strided_slice %1681 {offsets = [10, 0], sizes = [1, 16], strides = [1, 1]} : vector<16x16xf32> to vector<1x16xf32>
    %c0_666 = arith.constant 0 : index
    %c1_667 = arith.constant 1 : index
    %c160_668 = arith.constant 160 : index
    %1723 = vector.load %arg4[%c0_666, %c1_667, %c160_668] : memref<1x4x256xf32, #tpu.memory_space<vmem>>, vector<1x1x16xf32>
    %1724 = vector.shape_cast %1723 : vector<1x1x16xf32> to vector<1x16xf32>
    %1725 = vector.shape_cast %1722 : vector<1x16xf32> to vector<1x1x16xf32>
    tpu.vector_store %arg4[%c0_666, %c1_667, %c160_668], %1725 {strides = array<i32>} : memref<1x4x256xf32, #tpu.memory_space<vmem>>, vector<1x1x16xf32>,
    %1726 = vector.extract_strided_slice %1681 {offsets = [11, 0], sizes = [1, 16], strides = [1, 1]} : vector<16x16xf32> to vector<1x16xf32>
    %c0_669 = arith.constant 0 : index
    %c1_670 = arith.constant 1 : index
    %c176_671 = arith.constant 176 : index
    %1727 = vector.load %arg4[%c0_669, %c1_670, %c176_671] : memref<1x4x256xf32, #tpu.memory_space<vmem>>, vector<1x1x16xf32>
    %1728 = vector.shape_cast %1727 : vector<1x1x16xf32> to vector<1x16xf32>
    %1729 = vector.shape_cast %1726 : vector<1x16xf32> to vector<1x1x16xf32>
    tpu.vector_store %arg4[%c0_669, %c1_670, %c176_671], %1729 {strides = array<i32>} : memref<1x4x256xf32, #tpu.memory_space<vmem>>, vector<1x1x16xf32>,
    %1730 = vector.extract_strided_slice %1681 {offsets = [12, 0], sizes = [1, 16], strides = [1, 1]} : vector<16x16xf32> to vector<1x16xf32>
    %c0_672 = arith.constant 0 : index
    %c1_673 = arith.constant 1 : index
    %c192_674 = arith.constant 192 : index
    %1731 = vector.load %arg4[%c0_672, %c1_673, %c192_674] : memref<1x4x256xf32, #tpu.memory_space<vmem>>, vector<1x1x16xf32>
    %1732 = vector.shape_cast %1731 : vector<1x1x16xf32> to vector<1x16xf32>
    %1733 = vector.shape_cast %1730 : vector<1x16xf32> to vector<1x1x16xf32>
    tpu.vector_store %arg4[%c0_672, %c1_673, %c192_674], %1733 {strides = array<i32>} : memref<1x4x256xf32, #tpu.memory_space<vmem>>, vector<1x1x16xf32>,
    %1734 = vector.extract_strided_slice %1681 {offsets = [13, 0], sizes = [1, 16], strides = [1, 1]} : vector<16x16xf32> to vector<1x16xf32>
    %c0_675 = arith.constant 0 : index
    %c1_676 = arith.constant 1 : index
    %c208_677 = arith.constant 208 : index
    %1735 = vector.load %arg4[%c0_675, %c1_676, %c208_677] : memref<1x4x256xf32, #tpu.memory_space<vmem>>, vector<1x1x16xf32>
    %1736 = vector.shape_cast %1735 : vector<1x1x16xf32> to vector<1x16xf32>
    %1737 = vector.shape_cast %1734 : vector<1x16xf32> to vector<1x1x16xf32>
    tpu.vector_store %arg4[%c0_675, %c1_676, %c208_677], %1737 {strides = array<i32>} : memref<1x4x256xf32, #tpu.memory_space<vmem>>, vector<1x1x16xf32>,
    %1738 = vector.extract_strided_slice %1681 {offsets = [14, 0], sizes = [1, 16], strides = [1, 1]} : vector<16x16xf32> to vector<1x16xf32>
    %c0_678 = arith.constant 0 : index
    %c1_679 = arith.constant 1 : index
    %c224_680 = arith.constant 224 : index
    %1739 = vector.load %arg4[%c0_678, %c1_679, %c224_680] : memref<1x4x256xf32, #tpu.memory_space<vmem>>, vector<1x1x16xf32>
    %1740 = vector.shape_cast %1739 : vector<1x1x16xf32> to vector<1x16xf32>
    %1741 = vector.shape_cast %1738 : vector<1x16xf32> to vector<1x1x16xf32>
    tpu.vector_store %arg4[%c0_678, %c1_679, %c224_680], %1741 {strides = array<i32>} : memref<1x4x256xf32, #tpu.memory_space<vmem>>, vector<1x1x16xf32>,
    %1742 = vector.extract_strided_slice %1681 {offsets = [15, 0], sizes = [1, 16], strides = [1, 1]} : vector<16x16xf32> to vector<1x16xf32>
    %c0_681 = arith.constant 0 : index
    %c1_682 = arith.constant 1 : index
    %c240_683 = arith.constant 240 : index
    %1743 = vector.load %arg4[%c0_681, %c1_682, %c240_683] : memref<1x4x256xf32, #tpu.memory_space<vmem>>, vector<1x1x16xf32>
    %1744 = vector.shape_cast %1743 : vector<1x1x16xf32> to vector<1x16xf32>
    %1745 = vector.shape_cast %1742 : vector<1x16xf32> to vector<1x1x16xf32>
    tpu.vector_store %arg4[%c0_681, %c1_682, %c240_683], %1745 {strides = array<i32>} : memref<1x4x256xf32, #tpu.memory_space<vmem>>, vector<1x1x16xf32>,
    %cst_684 = arith.constant dense<0.000000e+00> : vector<16xf32>
    %1746 = vector.multi_reduction <add>, %1563, %cst_684 [1] : vector<16x16xf32> to vector<16xf32>
    %1747 = vector.shape_cast %1746 : vector<16xf32> to vector<16x1xf32>
    %cst_685 = arith.constant dense<0.000000e+00> : vector<1xf32>
    %1748 = vector.multi_reduction <add>, %1747, %cst_685 [0] : vector<16x1xf32> to vector<1xf32>
    %1749 = vector.shape_cast %1748 : vector<1xf32> to vector<1x1xf32>
    %1750 = arith.mulf %1563, %1563 : vector<16x16xf32>
    %cst_686 = arith.constant dense<0.000000e+00> : vector<16xf32>
    %1751 = vector.multi_reduction <add>, %1750, %cst_686 [1] : vector<16x16xf32> to vector<16xf32>
    %1752 = vector.shape_cast %1751 : vector<16xf32> to vector<16x1xf32>
    %cst_687 = arith.constant dense<0.000000e+00> : vector<1xf32>
    %1753 = vector.multi_reduction <add>, %1752, %cst_687 [0] : vector<16x1xf32> to vector<1xf32>
    %1754 = vector.shape_cast %1753 : vector<1xf32> to vector<1x1xf32>
    %cst_688 = arith.constant 3.906250e-03 : f32
    %1755 = vector.broadcast %cst_688 : f32 to vector<1x1xf32>
    %1756 = arith.mulf %1749, %1755 : vector<1x1xf32>
    %cst_689 = arith.constant 3.906250e-03 : f32
    %1757 = vector.broadcast %cst_689 : f32 to vector<1x1xf32>
    %1758 = arith.mulf %1754, %1757 : vector<1x1xf32>
    %1759 = arith.mulf %1756, %1756 : vector<1x1xf32>
    %1760 = arith.subf %1758, %1759 : vector<1x1xf32>
    %cst_690 = arith.constant 0.000000e+00 : f32
    %1761 = vector.broadcast %cst_690 : f32 to vector<1x1xf32>
    %1762 = arith.maximumf %1760, %1761 : vector<1x1xf32>
    %1763 = vector.broadcast %1756 : vector<1x1xf32> to vector<16x16xf32>
    %1764 = arith.subf %1563, %1763 : vector<16x16xf32>
    %cst_691 = arith.constant 9.99999974E-6 : f32
    %1765 = vector.broadcast %cst_691 : f32 to vector<1x1xf32>
    %1766 = arith.addf %1762, %1765 : vector<1x1xf32>
    %1767 = math.rsqrt %1766 : vector<1x1xf32>
    %1768 = vector.broadcast %1767 : vector<1x1xf32> to vector<16x16xf32>
    %1769 = arith.mulf %1764, %1768 : vector<16x16xf32>
    %1770 = arith.addf %5, %1769 : vector<16x16xf32>
    %1771 = vector.extract_strided_slice %1770 {offsets = [0, 0], sizes = [1, 16], strides = [1, 1]} : vector<16x16xf32> to vector<1x16xf32>
    %c0_692 = arith.constant 0 : index
    %c2_693 = arith.constant 2 : index
    %c0_694 = arith.constant 0 : index
    %1772 = vector.load %arg4[%c0_692, %c2_693, %c0_694] : memref<1x4x256xf32, #tpu.memory_space<vmem>>, vector<1x1x16xf32>
    %1773 = vector.shape_cast %1772 : vector<1x1x16xf32> to vector<1x16xf32>
    %1774 = vector.shape_cast %1771 : vector<1x16xf32> to vector<1x1x16xf32>
    tpu.vector_store %arg4[%c0_692, %c2_693, %c0_694], %1774 {strides = array<i32>} : memref<1x4x256xf32, #tpu.memory_space<vmem>>, vector<1x1x16xf32>,
    %1775 = vector.extract_strided_slice %1770 {offsets = [1, 0], sizes = [1, 16], strides = [1, 1]} : vector<16x16xf32> to vector<1x16xf32>
    %c0_695 = arith.constant 0 : index
    %c2_696 = arith.constant 2 : index
    %c16_697 = arith.constant 16 : index
    %1776 = vector.load %arg4[%c0_695, %c2_696, %c16_697] : memref<1x4x256xf32, #tpu.memory_space<vmem>>, vector<1x1x16xf32>
    %1777 = vector.shape_cast %1776 : vector<1x1x16xf32> to vector<1x16xf32>
    %1778 = vector.shape_cast %1775 : vector<1x16xf32> to vector<1x1x16xf32>
    tpu.vector_store %arg4[%c0_695, %c2_696, %c16_697], %1778 {strides = array<i32>} : memref<1x4x256xf32, #tpu.memory_space<vmem>>, vector<1x1x16xf32>,
    %1779 = vector.extract_strided_slice %1770 {offsets = [2, 0], sizes = [1, 16], strides = [1, 1]} : vector<16x16xf32> to vector<1x16xf32>
    %c0_698 = arith.constant 0 : index
    %c2_699 = arith.constant 2 : index
    %c32_700 = arith.constant 32 : index
    %1780 = vector.load %arg4[%c0_698, %c2_699, %c32_700] : memref<1x4x256xf32, #tpu.memory_space<vmem>>, vector<1x1x16xf32>
    %1781 = vector.shape_cast %1780 : vector<1x1x16xf32> to vector<1x16xf32>
    %1782 = vector.shape_cast %1779 : vector<1x16xf32> to vector<1x1x16xf32>
    tpu.vector_store %arg4[%c0_698, %c2_699, %c32_700], %1782 {strides = array<i32>} : memref<1x4x256xf32, #tpu.memory_space<vmem>>, vector<1x1x16xf32>,
    %1783 = vector.extract_strided_slice %1770 {offsets = [3, 0], sizes = [1, 16], strides = [1, 1]} : vector<16x16xf32> to vector<1x16xf32>
    %c0_701 = arith.constant 0 : index
    %c2_702 = arith.constant 2 : index
    %c48_703 = arith.constant 48 : index
    %1784 = vector.load %arg4[%c0_701, %c2_702, %c48_703] : memref<1x4x256xf32, #tpu.memory_space<vmem>>, vector<1x1x16xf32>
    %1785 = vector.shape_cast %1784 : vector<1x1x16xf32> to vector<1x16xf32>
    %1786 = vector.shape_cast %1783 : vector<1x16xf32> to vector<1x1x16xf32>
    tpu.vector_store %arg4[%c0_701, %c2_702, %c48_703], %1786 {strides = array<i32>} : memref<1x4x256xf32, #tpu.memory_space<vmem>>, vector<1x1x16xf32>,
    %1787 = vector.extract_strided_slice %1770 {offsets = [4, 0], sizes = [1, 16], strides = [1, 1]} : vector<16x16xf32> to vector<1x16xf32>
    %c0_704 = arith.constant 0 : index
    %c2_705 = arith.constant 2 : index
    %c64_706 = arith.constant 64 : index
    %1788 = vector.load %arg4[%c0_704, %c2_705, %c64_706] : memref<1x4x256xf32, #tpu.memory_space<vmem>>, vector<1x1x16xf32>
    %1789 = vector.shape_cast %1788 : vector<1x1x16xf32> to vector<1x16xf32>
    %1790 = vector.shape_cast %1787 : vector<1x16xf32> to vector<1x1x16xf32>
    tpu.vector_store %arg4[%c0_704, %c2_705, %c64_706], %1790 {strides = array<i32>} : memref<1x4x256xf32, #tpu.memory_space<vmem>>, vector<1x1x16xf32>,
    %1791 = vector.extract_strided_slice %1770 {offsets = [5, 0], sizes = [1, 16], strides = [1, 1]} : vector<16x16xf32> to vector<1x16xf32>
    %c0_707 = arith.constant 0 : index
    %c2_708 = arith.constant 2 : index
    %c80_709 = arith.constant 80 : index
    %1792 = vector.load %arg4[%c0_707, %c2_708, %c80_709] : memref<1x4x256xf32, #tpu.memory_space<vmem>>, vector<1x1x16xf32>
    %1793 = vector.shape_cast %1792 : vector<1x1x16xf32> to vector<1x16xf32>
    %1794 = vector.shape_cast %1791 : vector<1x16xf32> to vector<1x1x16xf32>
    tpu.vector_store %arg4[%c0_707, %c2_708, %c80_709], %1794 {strides = array<i32>} : memref<1x4x256xf32, #tpu.memory_space<vmem>>, vector<1x1x16xf32>,
    %1795 = vector.extract_strided_slice %1770 {offsets = [6, 0], sizes = [1, 16], strides = [1, 1]} : vector<16x16xf32> to vector<1x16xf32>
    %c0_710 = arith.constant 0 : index
    %c2_711 = arith.constant 2 : index
    %c96_712 = arith.constant 96 : index
    %1796 = vector.load %arg4[%c0_710, %c2_711, %c96_712] : memref<1x4x256xf32, #tpu.memory_space<vmem>>, vector<1x1x16xf32>
    %1797 = vector.shape_cast %1796 : vector<1x1x16xf32> to vector<1x16xf32>
    %1798 = vector.shape_cast %1795 : vector<1x16xf32> to vector<1x1x16xf32>
    tpu.vector_store %arg4[%c0_710, %c2_711, %c96_712], %1798 {strides = array<i32>} : memref<1x4x256xf32, #tpu.memory_space<vmem>>, vector<1x1x16xf32>,
    %1799 = vector.extract_strided_slice %1770 {offsets = [7, 0], sizes = [1, 16], strides = [1, 1]} : vector<16x16xf32> to vector<1x16xf32>
    %c0_713 = arith.constant 0 : index
    %c2_714 = arith.constant 2 : index
    %c112_715 = arith.constant 112 : index
    %1800 = vector.load %arg4[%c0_713, %c2_714, %c112_715] : memref<1x4x256xf32, #tpu.memory_space<vmem>>, vector<1x1x16xf32>
    %1801 = vector.shape_cast %1800 : vector<1x1x16xf32> to vector<1x16xf32>
    %1802 = vector.shape_cast %1799 : vector<1x16xf32> to vector<1x1x16xf32>
    tpu.vector_store %arg4[%c0_713, %c2_714, %c112_715], %1802 {strides = array<i32>} : memref<1x4x256xf32, #tpu.memory_space<vmem>>, vector<1x1x16xf32>,
    %1803 = vector.extract_strided_slice %1770 {offsets = [8, 0], sizes = [1, 16], strides = [1, 1]} : vector<16x16xf32> to vector<1x16xf32>
    %c0_716 = arith.constant 0 : index
    %c2_717 = arith.constant 2 : index
    %c128_718 = arith.constant 128 : index
    %1804 = vector.load %arg4[%c0_716, %c2_717, %c128_718] : memref<1x4x256xf32, #tpu.memory_space<vmem>>, vector<1x1x16xf32>
    %1805 = vector.shape_cast %1804 : vector<1x1x16xf32> to vector<1x16xf32>
    %1806 = vector.shape_cast %1803 : vector<1x16xf32> to vector<1x1x16xf32>
    tpu.vector_store %arg4[%c0_716, %c2_717, %c128_718], %1806 {strides = array<i32>} : memref<1x4x256xf32, #tpu.memory_space<vmem>>, vector<1x1x16xf32>,
    %1807 = vector.extract_strided_slice %1770 {offsets = [9, 0], sizes = [1, 16], strides = [1, 1]} : vector<16x16xf32> to vector<1x16xf32>
    %c0_719 = arith.constant 0 : index
    %c2_720 = arith.constant 2 : index
    %c144_721 = arith.constant 144 : index
    %1808 = vector.load %arg4[%c0_719, %c2_720, %c144_721] : memref<1x4x256xf32, #tpu.memory_space<vmem>>, vector<1x1x16xf32>
    %1809 = vector.shape_cast %1808 : vector<1x1x16xf32> to vector<1x16xf32>
    %1810 = vector.shape_cast %1807 : vector<1x16xf32> to vector<1x1x16xf32>
    tpu.vector_store %arg4[%c0_719, %c2_720, %c144_721], %1810 {strides = array<i32>} : memref<1x4x256xf32, #tpu.memory_space<vmem>>, vector<1x1x16xf32>,
    %1811 = vector.extract_strided_slice %1770 {offsets = [10, 0], sizes = [1, 16], strides = [1, 1]} : vector<16x16xf32> to vector<1x16xf32>
    %c0_722 = arith.constant 0 : index
    %c2_723 = arith.constant 2 : index
    %c160_724 = arith.constant 160 : index
    %1812 = vector.load %arg4[%c0_722, %c2_723, %c160_724] : memref<1x4x256xf32, #tpu.memory_space<vmem>>, vector<1x1x16xf32>
    %1813 = vector.shape_cast %1812 : vector<1x1x16xf32> to vector<1x16xf32>
    %1814 = vector.shape_cast %1811 : vector<1x16xf32> to vector<1x1x16xf32>
    tpu.vector_store %arg4[%c0_722, %c2_723, %c160_724], %1814 {strides = array<i32>} : memref<1x4x256xf32, #tpu.memory_space<vmem>>, vector<1x1x16xf32>,
    %1815 = vector.extract_strided_slice %1770 {offsets = [11, 0], sizes = [1, 16], strides = [1, 1]} : vector<16x16xf32> to vector<1x16xf32>
    %c0_725 = arith.constant 0 : index
    %c2_726 = arith.constant 2 : index
    %c176_727 = arith.constant 176 : index
    %1816 = vector.load %arg4[%c0_725, %c2_726, %c176_727] : memref<1x4x256xf32, #tpu.memory_space<vmem>>, vector<1x1x16xf32>
    %1817 = vector.shape_cast %1816 : vector<1x1x16xf32> to vector<1x16xf32>
    %1818 = vector.shape_cast %1815 : vector<1x16xf32> to vector<1x1x16xf32>
    tpu.vector_store %arg4[%c0_725, %c2_726, %c176_727], %1818 {strides = array<i32>} : memref<1x4x256xf32, #tpu.memory_space<vmem>>, vector<1x1x16xf32>,
    %1819 = vector.extract_strided_slice %1770 {offsets = [12, 0], sizes = [1, 16], strides = [1, 1]} : vector<16x16xf32> to vector<1x16xf32>
    %c0_728 = arith.constant 0 : index
    %c2_729 = arith.constant 2 : index
    %c192_730 = arith.constant 192 : index
    %1820 = vector.load %arg4[%c0_728, %c2_729, %c192_730] : memref<1x4x256xf32, #tpu.memory_space<vmem>>, vector<1x1x16xf32>
    %1821 = vector.shape_cast %1820 : vector<1x1x16xf32> to vector<1x16xf32>
    %1822 = vector.shape_cast %1819 : vector<1x16xf32> to vector<1x1x16xf32>
    tpu.vector_store %arg4[%c0_728, %c2_729, %c192_730], %1822 {strides = array<i32>} : memref<1x4x256xf32, #tpu.memory_space<vmem>>, vector<1x1x16xf32>,
    %1823 = vector.extract_strided_slice %1770 {offsets = [13, 0], sizes = [1, 16], strides = [1, 1]} : vector<16x16xf32> to vector<1x16xf32>
    %c0_731 = arith.constant 0 : index
    %c2_732 = arith.constant 2 : index
    %c208_733 = arith.constant 208 : index
    %1824 = vector.load %arg4[%c0_731, %c2_732, %c208_733] : memref<1x4x256xf32, #tpu.memory_space<vmem>>, vector<1x1x16xf32>
    %1825 = vector.shape_cast %1824 : vector<1x1x16xf32> to vector<1x16xf32>
    %1826 = vector.shape_cast %1823 : vector<1x16xf32> to vector<1x1x16xf32>
    tpu.vector_store %arg4[%c0_731, %c2_732, %c208_733], %1826 {strides = array<i32>} : memref<1x4x256xf32, #tpu.memory_space<vmem>>, vector<1x1x16xf32>,
    %1827 = vector.extract_strided_slice %1770 {offsets = [14, 0], sizes = [1, 16], strides = [1, 1]} : vector<16x16xf32> to vector<1x16xf32>
    %c0_734 = arith.constant 0 : index
    %c2_735 = arith.constant 2 : index
    %c224_736 = arith.constant 224 : index
    %1828 = vector.load %arg4[%c0_734, %c2_735, %c224_736] : memref<1x4x256xf32, #tpu.memory_space<vmem>>, vector<1x1x16xf32>
    %1829 = vector.shape_cast %1828 : vector<1x1x16xf32> to vector<1x16xf32>
    %1830 = vector.shape_cast %1827 : vector<1x16xf32> to vector<1x1x16xf32>
    tpu.vector_store %arg4[%c0_734, %c2_735, %c224_736], %1830 {strides = array<i32>} : memref<1x4x256xf32, #tpu.memory_space<vmem>>, vector<1x1x16xf32>,
    %1831 = vector.extract_strided_slice %1770 {offsets = [15, 0], sizes = [1, 16], strides = [1, 1]} : vector<16x16xf32> to vector<1x16xf32>
    %c0_737 = arith.constant 0 : index
    %c2_738 = arith.constant 2 : index
    %c240_739 = arith.constant 240 : index
    %1832 = vector.load %arg4[%c0_737, %c2_738, %c240_739] : memref<1x4x256xf32, #tpu.memory_space<vmem>>, vector<1x1x16xf32>
    %1833 = vector.shape_cast %1832 : vector<1x1x16xf32> to vector<1x16xf32>
    %1834 = vector.shape_cast %1831 : vector<1x16xf32> to vector<1x1x16xf32>
    tpu.vector_store %arg4[%c0_737, %c2_738, %c240_739], %1834 {strides = array<i32>} : memref<1x4x256xf32, #tpu.memory_space<vmem>>, vector<1x1x16xf32>,
    %cst_740 = arith.constant dense<0.000000e+00> : vector<16xf32>
    %1835 = vector.multi_reduction <add>, %1567, %cst_740 [1] : vector<16x16xf32> to vector<16xf32>
    %1836 = vector.shape_cast %1835 : vector<16xf32> to vector<16x1xf32>
    %cst_741 = arith.constant dense<0.000000e+00> : vector<1xf32>
    %1837 = vector.multi_reduction <add>, %1836, %cst_741 [0] : vector<16x1xf32> to vector<1xf32>
    %1838 = vector.shape_cast %1837 : vector<1xf32> to vector<1x1xf32>
    %1839 = arith.mulf %1567, %1567 : vector<16x16xf32>
    %cst_742 = arith.constant dense<0.000000e+00> : vector<16xf32>
    %1840 = vector.multi_reduction <add>, %1839, %cst_742 [1] : vector<16x16xf32> to vector<16xf32>
    %1841 = vector.shape_cast %1840 : vector<16xf32> to vector<16x1xf32>
    %cst_743 = arith.constant dense<0.000000e+00> : vector<1xf32>
    %1842 = vector.multi_reduction <add>, %1841, %cst_743 [0] : vector<16x1xf32> to vector<1xf32>
    %1843 = vector.shape_cast %1842 : vector<1xf32> to vector<1x1xf32>
    %cst_744 = arith.constant 3.906250e-03 : f32
    %1844 = vector.broadcast %cst_744 : f32 to vector<1x1xf32>
    %1845 = arith.mulf %1838, %1844 : vector<1x1xf32>
    %cst_745 = arith.constant 3.906250e-03 : f32
    %1846 = vector.broadcast %cst_745 : f32 to vector<1x1xf32>
    %1847 = arith.mulf %1843, %1846 : vector<1x1xf32>
    %1848 = arith.mulf %1845, %1845 : vector<1x1xf32>
    %1849 = arith.subf %1847, %1848 : vector<1x1xf32>
    %cst_746 = arith.constant 0.000000e+00 : f32
    %1850 = vector.broadcast %cst_746 : f32 to vector<1x1xf32>
    %1851 = arith.maximumf %1849, %1850 : vector<1x1xf32>
    %1852 = vector.broadcast %1845 : vector<1x1xf32> to vector<16x16xf32>
    %1853 = arith.subf %1567, %1852 : vector<16x16xf32>
    %cst_747 = arith.constant 9.99999974E-6 : f32
    %1854 = vector.broadcast %cst_747 : f32 to vector<1x1xf32>
    %1855 = arith.addf %1851, %1854 : vector<1x1xf32>
    %1856 = math.rsqrt %1855 : vector<1x1xf32>
    %1857 = vector.broadcast %1856 : vector<1x1xf32> to vector<16x16xf32>
    %1858 = arith.mulf %1853, %1857 : vector<16x16xf32>
    %1859 = arith.addf %7, %1858 : vector<16x16xf32>
    %1860 = vector.extract_strided_slice %1859 {offsets = [0, 0], sizes = [1, 16], strides = [1, 1]} : vector<16x16xf32> to vector<1x16xf32>
    %c0_748 = arith.constant 0 : index
    %c3_749 = arith.constant 3 : index
    %c0_750 = arith.constant 0 : index
    %1861 = vector.load %arg4[%c0_748, %c3_749, %c0_750] : memref<1x4x256xf32, #tpu.memory_space<vmem>>, vector<1x1x16xf32>
    %1862 = vector.shape_cast %1861 : vector<1x1x16xf32> to vector<1x16xf32>
    %1863 = vector.shape_cast %1860 : vector<1x16xf32> to vector<1x1x16xf32>
    tpu.vector_store %arg4[%c0_748, %c3_749, %c0_750], %1863 {strides = array<i32>} : memref<1x4x256xf32, #tpu.memory_space<vmem>>, vector<1x1x16xf32>,
    %1864 = vector.extract_strided_slice %1859 {offsets = [1, 0], sizes = [1, 16], strides = [1, 1]} : vector<16x16xf32> to vector<1x16xf32>
    %c0_751 = arith.constant 0 : index
    %c3_752 = arith.constant 3 : index
    %c16_753 = arith.constant 16 : index
    %1865 = vector.load %arg4[%c0_751, %c3_752, %c16_753] : memref<1x4x256xf32, #tpu.memory_space<vmem>>, vector<1x1x16xf32>
    %1866 = vector.shape_cast %1865 : vector<1x1x16xf32> to vector<1x16xf32>
    %1867 = vector.shape_cast %1864 : vector<1x16xf32> to vector<1x1x16xf32>
    tpu.vector_store %arg4[%c0_751, %c3_752, %c16_753], %1867 {strides = array<i32>} : memref<1x4x256xf32, #tpu.memory_space<vmem>>, vector<1x1x16xf32>,
    %1868 = vector.extract_strided_slice %1859 {offsets = [2, 0], sizes = [1, 16], strides = [1, 1]} : vector<16x16xf32> to vector<1x16xf32>
    %c0_754 = arith.constant 0 : index
    %c3_755 = arith.constant 3 : index
    %c32_756 = arith.constant 32 : index
    %1869 = vector.load %arg4[%c0_754, %c3_755, %c32_756] : memref<1x4x256xf32, #tpu.memory_space<vmem>>, vector<1x1x16xf32>
    %1870 = vector.shape_cast %1869 : vector<1x1x16xf32> to vector<1x16xf32>
    %1871 = vector.shape_cast %1868 : vector<1x16xf32> to vector<1x1x16xf32>
    tpu.vector_store %arg4[%c0_754, %c3_755, %c32_756], %1871 {strides = array<i32>} : memref<1x4x256xf32, #tpu.memory_space<vmem>>, vector<1x1x16xf32>,
    %1872 = vector.extract_strided_slice %1859 {offsets = [3, 0], sizes = [1, 16], strides = [1, 1]} : vector<16x16xf32> to vector<1x16xf32>
    %c0_757 = arith.constant 0 : index
    %c3_758 = arith.constant 3 : index
    %c48_759 = arith.constant 48 : index
    %1873 = vector.load %arg4[%c0_757, %c3_758, %c48_759] : memref<1x4x256xf32, #tpu.memory_space<vmem>>, vector<1x1x16xf32>
    %1874 = vector.shape_cast %1873 : vector<1x1x16xf32> to vector<1x16xf32>
    %1875 = vector.shape_cast %1872 : vector<1x16xf32> to vector<1x1x16xf32>
    tpu.vector_store %arg4[%c0_757, %c3_758, %c48_759], %1875 {strides = array<i32>} : memref<1x4x256xf32, #tpu.memory_space<vmem>>, vector<1x1x16xf32>,
    %1876 = vector.extract_strided_slice %1859 {offsets = [4, 0], sizes = [1, 16], strides = [1, 1]} : vector<16x16xf32> to vector<1x16xf32>
    %c0_760 = arith.constant 0 : index
    %c3_761 = arith.constant 3 : index
    %c64_762 = arith.constant 64 : index
    %1877 = vector.load %arg4[%c0_760, %c3_761, %c64_762] : memref<1x4x256xf32, #tpu.memory_space<vmem>>, vector<1x1x16xf32>
    %1878 = vector.shape_cast %1877 : vector<1x1x16xf32> to vector<1x16xf32>
    %1879 = vector.shape_cast %1876 : vector<1x16xf32> to vector<1x1x16xf32>
    tpu.vector_store %arg4[%c0_760, %c3_761, %c64_762], %1879 {strides = array<i32>} : memref<1x4x256xf32, #tpu.memory_space<vmem>>, vector<1x1x16xf32>,
    %1880 = vector.extract_strided_slice %1859 {offsets = [5, 0], sizes = [1, 16], strides = [1, 1]} : vector<16x16xf32> to vector<1x16xf32>
    %c0_763 = arith.constant 0 : index
    %c3_764 = arith.constant 3 : index
    %c80_765 = arith.constant 80 : index
    %1881 = vector.load %arg4[%c0_763, %c3_764, %c80_765] : memref<1x4x256xf32, #tpu.memory_space<vmem>>, vector<1x1x16xf32>
    %1882 = vector.shape_cast %1881 : vector<1x1x16xf32> to vector<1x16xf32>
    %1883 = vector.shape_cast %1880 : vector<1x16xf32> to vector<1x1x16xf32>
    tpu.vector_store %arg4[%c0_763, %c3_764, %c80_765], %1883 {strides = array<i32>} : memref<1x4x256xf32, #tpu.memory_space<vmem>>, vector<1x1x16xf32>,
    %1884 = vector.extract_strided_slice %1859 {offsets = [6, 0], sizes = [1, 16], strides = [1, 1]} : vector<16x16xf32> to vector<1x16xf32>
    %c0_766 = arith.constant 0 : index
    %c3_767 = arith.constant 3 : index
    %c96_768 = arith.constant 96 : index
    %1885 = vector.load %arg4[%c0_766, %c3_767, %c96_768] : memref<1x4x256xf32, #tpu.memory_space<vmem>>, vector<1x1x16xf32>
    %1886 = vector.shape_cast %1885 : vector<1x1x16xf32> to vector<1x16xf32>
    %1887 = vector.shape_cast %1884 : vector<1x16xf32> to vector<1x1x16xf32>
    tpu.vector_store %arg4[%c0_766, %c3_767, %c96_768], %1887 {strides = array<i32>} : memref<1x4x256xf32, #tpu.memory_space<vmem>>, vector<1x1x16xf32>,
    %1888 = vector.extract_strided_slice %1859 {offsets = [7, 0], sizes = [1, 16], strides = [1, 1]} : vector<16x16xf32> to vector<1x16xf32>
    %c0_769 = arith.constant 0 : index
    %c3_770 = arith.constant 3 : index
    %c112_771 = arith.constant 112 : index
    %1889 = vector.load %arg4[%c0_769, %c3_770, %c112_771] : memref<1x4x256xf32, #tpu.memory_space<vmem>>, vector<1x1x16xf32>
    %1890 = vector.shape_cast %1889 : vector<1x1x16xf32> to vector<1x16xf32>
    %1891 = vector.shape_cast %1888 : vector<1x16xf32> to vector<1x1x16xf32>
    tpu.vector_store %arg4[%c0_769, %c3_770, %c112_771], %1891 {strides = array<i32>} : memref<1x4x256xf32, #tpu.memory_space<vmem>>, vector<1x1x16xf32>,
    %1892 = vector.extract_strided_slice %1859 {offsets = [8, 0], sizes = [1, 16], strides = [1, 1]} : vector<16x16xf32> to vector<1x16xf32>
    %c0_772 = arith.constant 0 : index
    %c3_773 = arith.constant 3 : index
    %c128_774 = arith.constant 128 : index
    %1893 = vector.load %arg4[%c0_772, %c3_773, %c128_774] : memref<1x4x256xf32, #tpu.memory_space<vmem>>, vector<1x1x16xf32>
    %1894 = vector.shape_cast %1893 : vector<1x1x16xf32> to vector<1x16xf32>
    %1895 = vector.shape_cast %1892 : vector<1x16xf32> to vector<1x1x16xf32>
    tpu.vector_store %arg4[%c0_772, %c3_773, %c128_774], %1895 {strides = array<i32>} : memref<1x4x256xf32, #tpu.memory_space<vmem>>, vector<1x1x16xf32>,
    %1896 = vector.extract_strided_slice %1859 {offsets = [9, 0], sizes = [1, 16], strides = [1, 1]} : vector<16x16xf32> to vector<1x16xf32>
    %c0_775 = arith.constant 0 : index
    %c3_776 = arith.constant 3 : index
    %c144_777 = arith.constant 144 : index
    %1897 = vector.load %arg4[%c0_775, %c3_776, %c144_777] : memref<1x4x256xf32, #tpu.memory_space<vmem>>, vector<1x1x16xf32>
    %1898 = vector.shape_cast %1897 : vector<1x1x16xf32> to vector<1x16xf32>
    %1899 = vector.shape_cast %1896 : vector<1x16xf32> to vector<1x1x16xf32>
    tpu.vector_store %arg4[%c0_775, %c3_776, %c144_777], %1899 {strides = array<i32>} : memref<1x4x256xf32, #tpu.memory_space<vmem>>, vector<1x1x16xf32>,
    %1900 = vector.extract_strided_slice %1859 {offsets = [10, 0], sizes = [1, 16], strides = [1, 1]} : vector<16x16xf32> to vector<1x16xf32>
    %c0_778 = arith.constant 0 : index
    %c3_779 = arith.constant 3 : index
    %c160_780 = arith.constant 160 : index
    %1901 = vector.load %arg4[%c0_778, %c3_779, %c160_780] : memref<1x4x256xf32, #tpu.memory_space<vmem>>, vector<1x1x16xf32>
    %1902 = vector.shape_cast %1901 : vector<1x1x16xf32> to vector<1x16xf32>
    %1903 = vector.shape_cast %1900 : vector<1x16xf32> to vector<1x1x16xf32>
    tpu.vector_store %arg4[%c0_778, %c3_779, %c160_780], %1903 {strides = array<i32>} : memref<1x4x256xf32, #tpu.memory_space<vmem>>, vector<1x1x16xf32>,
    %1904 = vector.extract_strided_slice %1859 {offsets = [11, 0], sizes = [1, 16], strides = [1, 1]} : vector<16x16xf32> to vector<1x16xf32>
    %c0_781 = arith.constant 0 : index
    %c3_782 = arith.constant 3 : index
    %c176_783 = arith.constant 176 : index
    %1905 = vector.load %arg4[%c0_781, %c3_782, %c176_783] : memref<1x4x256xf32, #tpu.memory_space<vmem>>, vector<1x1x16xf32>
    %1906 = vector.shape_cast %1905 : vector<1x1x16xf32> to vector<1x16xf32>
    %1907 = vector.shape_cast %1904 : vector<1x16xf32> to vector<1x1x16xf32>
    tpu.vector_store %arg4[%c0_781, %c3_782, %c176_783], %1907 {strides = array<i32>} : memref<1x4x256xf32, #tpu.memory_space<vmem>>, vector<1x1x16xf32>,
    %1908 = vector.extract_strided_slice %1859 {offsets = [12, 0], sizes = [1, 16], strides = [1, 1]} : vector<16x16xf32> to vector<1x16xf32>
    %c0_784 = arith.constant 0 : index
    %c3_785 = arith.constant 3 : index
    %c192_786 = arith.constant 192 : index
    %1909 = vector.load %arg4[%c0_784, %c3_785, %c192_786] : memref<1x4x256xf32, #tpu.memory_space<vmem>>, vector<1x1x16xf32>
    %1910 = vector.shape_cast %1909 : vector<1x1x16xf32> to vector<1x16xf32>
    %1911 = vector.shape_cast %1908 : vector<1x16xf32> to vector<1x1x16xf32>
    tpu.vector_store %arg4[%c0_784, %c3_785, %c192_786], %1911 {strides = array<i32>} : memref<1x4x256xf32, #tpu.memory_space<vmem>>, vector<1x1x16xf32>,
    %1912 = vector.extract_strided_slice %1859 {offsets = [13, 0], sizes = [1, 16], strides = [1, 1]} : vector<16x16xf32> to vector<1x16xf32>
    %c0_787 = arith.constant 0 : index
    %c3_788 = arith.constant 3 : index
    %c208_789 = arith.constant 208 : index
    %1913 = vector.load %arg4[%c0_787, %c3_788, %c208_789] : memref<1x4x256xf32, #tpu.memory_space<vmem>>, vector<1x1x16xf32>
    %1914 = vector.shape_cast %1913 : vector<1x1x16xf32> to vector<1x16xf32>
    %1915 = vector.shape_cast %1912 : vector<1x16xf32> to vector<1x1x16xf32>
    tpu.vector_store %arg4[%c0_787, %c3_788, %c208_789], %1915 {strides = array<i32>} : memref<1x4x256xf32, #tpu.memory_space<vmem>>, vector<1x1x16xf32>,
    %1916 = vector.extract_strided_slice %1859 {offsets = [14, 0], sizes = [1, 16], strides = [1, 1]} : vector<16x16xf32> to vector<1x16xf32>
    %c0_790 = arith.constant 0 : index
    %c3_791 = arith.constant 3 : index
    %c224_792 = arith.constant 224 : index
    %1917 = vector.load %arg4[%c0_790, %c3_791, %c224_792] : memref<1x4x256xf32, #tpu.memory_space<vmem>>, vector<1x1x16xf32>
    %1918 = vector.shape_cast %1917 : vector<1x1x16xf32> to vector<1x16xf32>
    %1919 = vector.shape_cast %1916 : vector<1x16xf32> to vector<1x1x16xf32>
    tpu.vector_store %arg4[%c0_790, %c3_791, %c224_792], %1919 {strides = array<i32>} : memref<1x4x256xf32, #tpu.memory_space<vmem>>, vector<1x1x16xf32>,
    %1920 = vector.extract_strided_slice %1859 {offsets = [15, 0], sizes = [1, 16], strides = [1, 1]} : vector<16x16xf32> to vector<1x16xf32>
    %c0_793 = arith.constant 0 : index
    %c3_794 = arith.constant 3 : index
    %c240_795 = arith.constant 240 : index
    %1921 = vector.load %arg4[%c0_793, %c3_794, %c240_795] : memref<1x4x256xf32, #tpu.memory_space<vmem>>, vector<1x1x16xf32>
    %1922 = vector.shape_cast %1921 : vector<1x1x16xf32> to vector<1x16xf32>
    %1923 = vector.shape_cast %1920 : vector<1x16xf32> to vector<1x1x16xf32>
    tpu.vector_store %arg4[%c0_793, %c3_794, %c240_795], %1923 {strides = array<i32>} : memref<1x4x256xf32, #tpu.memory_space<vmem>>, vector<1x1x16xf32>,
    return
  }
  func.func @transform_0(%arg0: i32) -> (i32, i32, i32, i32) {
    %c0_i32 = arith.constant 0 : i32
    %c0_i32_0 = arith.constant 0 : i32
    %c0_i32_1 = arith.constant 0 : i32
    %c0_i32_2 = arith.constant 0 : i32
    return %arg0, %c0_i32, %c0_i32_0, %c0_i32_1 : i32, i32, i32, i32
  }
  func.func @transform_1(%arg0: i32) -> i32 {
    %c0_i32 = arith.constant 0 : i32
    %c0_i32_0 = arith.constant 0 : i32
    return %c0_i32 : i32
  }
  func.func @transform_2(%arg0: i32) -> i32 {
    %c0_i32 = arith.constant 0 : i32
    %c0_i32_0 = arith.constant 0 : i32
    return %c0_i32 : i32
  }
  func.func @transform_3(%arg0: i32) -> (i32, i32, i32) {
    %c0_i32 = arith.constant 0 : i32
    %c0_i32_0 = arith.constant 0 : i32
    %c0_i32_1 = arith.constant 0 : i32
    return %arg0, %c0_i32, %c0_i32_0 : i32, i32, i32
  }
}

</mosaic_0001>

<bundles_post_ra>
// kernel: tpu_custom_call.1
= control target key start
LH: loop header
LB: loop body
LE: loop exit
PB: predicated region body
PF: predicated region fallthrough
CT: control target
= control target key end

     0   :  { %s9315_s0 = inlined_call_operand.hbm [shape: f32[2,4,16,16], index: 0, kind: input, shape index: {}]   ;;  %s9316_s1 = inlined_call_operand.vmem [shape: f32[144], index: 1, kind: input, shape index: {}]   ;;  %s9317_s2 = inlined_call_operand.vmem [shape: f32[144], index: 2, kind: input, shape index: {}]   ;;  %s9318_s3 = inlined_call_operand.hbm [shape: f32[2,4,256], index: 3, kind: output, shape index: {}]  }
   0x1   :  { %9338 = sst [smem:[#allocation55_spill]] %s9315_s0 }
   0x2   :  { %9339 = sst [smem:[#allocation56_spill]] %s9316_s1 }
   0x3   :  { %9340 = sst [smem:[#allocation57_spill]] %s9317_s2 }
   0x4   :  { %8 = vsyncpa [#allocation5], 0 }
   0x5   :  { %10 = vsyncpa [#allocation5 + $0x1], 0 }
   0x6   :  { %11 = vsyncpa [#allocation7], 0 }
   0x7   :  { %12 = vsyncpa [#allocation10], 0 }
   0x8   :  { %13 = vsyncpa [#allocation6], 0 }
   0x9   :  { %15 = vsyncpa [#allocation6 + $0x1], 0  ;;  %s5345_s12 = smov 0   ;;  %s5347_s13 = smov 0  }
   0xa   :  { %s5349_s14 = smov 0   ;;  %s5351_s15 = smov 0  }
   0xb LB: > { %9341 = sst [smem:[#allocation16_spill]] %s5298_s13  ;;  %s5366_s16 = sadd.s32 4294967295, %s5306_s15   ;;  %s5306_s15 = sphi %s5351_s15, %s9721_s15   ;;  %s5302_s14 = sphi %s5349_s14, %s9720_s14   ;;  %s5298_s13 = sphi %s5347_s13, %s9719_s13   ;;  %s5294_s12 = sphi %s5345_s12, %s9718_s12  }
   0xc   : > { %9342 = sst [smem:[#allocation17_spill]] %s5302_s14  ;;  %s4708_s17 = sadd.s32 4294967294, %s5306_s15  }
   0xd   : > { %s5370_s18 = sadd.s32 1, %s5306_s15   ;;  %s28_s19 = sadd.s32 1, %s5302_s14 }
   0xe   : > { %s25_s20 = ssub.s32 %s5306_s15, %s5370_s18  ;;  %p35_p0 = scmp.ne.s32.totalorder %s5302_s14, %s5298_s13 }
   0xf   : > { %p26_p1 = scmp.eq.s32.totalorder %s25_s20, 0  ;;  %p36_p2 = scmp.eq.s32.totalorder %s5306_s15, 0 }
  0x10   : > { %p41_p3 = scmp.ne.s32.totalorder %s5298_s13, %s5294_s12  ;;  %p9319_p4 = scmp.eq.s32.totalorder %s5366_s16, 0 }
  0x11   : > { %s5382_s21 = scalar_select %p26_p1, %s5302_s14, %s28_s19  }
  0x12   : > { %p5384_p5 = por %p36_p2, %p35_p0  ;;  %p5390_p6 = por %p9319_p4, %p41_p3 }
  0x13   : > { %9343 = sst [smem:[#allocation18_spill]] %s5382_s21  ;;  %p107_p7 = scmp.eq.s32.totalorder %s5366_s16, 1 }
  0x14   : > { %s9345_s23 = scalar_select %p5390_p6, 1, 0 }
  0x15   : > { %p113_p8 = scmp.eq.s32.totalorder %s4708_s17, 1  ;;  %p4709_p9 = scmp.ge.s32.totalorder %s5306_s15, 1 }
  0x16   : > { %p120_p10 = scmp.lt.s32.totalorder %s5306_s15, 3  ;;  %p5397_p11 = por %p107_p7, %p35_p0 }
  0x17   : > { %p5401_p12 = por %p113_p8, %p41_p3  ;;  %s9349_s1 = sld [smem:[#allocation56_spill]] }
  0x18   : > { %s9346_s24 = scalar_select %p5397_p11, 1, 0 }
  0x19   : > { %s9347_s25 = scalar_select %p5401_p12, 1, 0 }
  0x1a   : > { %p5405_p13 = pnand %p4709_p9, %p120_p10  ;;  %p5097_p2 = scmp.lt.s32.totalorder %s5306_s15, 2 }
  0x1b   : > { %s9351_s2 = sld [smem:[#allocation57_spill]] }
  0x1c   : > { %s9348_s26 = scalar_select %p5405_p13, 1, 0 }
  0x1d   : > { %s133_s29 = sshll.u32 %s9349_s1, 4  ;;  %p5080_p1 = pneg %p5405_p13  ;;  %s134_s29 = int_to_ptr.vmem [resolvable:$true] %s133_s29 }
  0x1e   : > { %p5427_p3 = pnand %p5097_p2, %p5384_p5  ;;  %s5172_s8 = scalar_lea.vmem %s134_s29, 32 }
  0x1f   : > { %p5418_p7 = pnand %p5080_p1, %p9319_p4  ;;  %p5173_p8 = scmp.ne.s32.totalorder %s134_s29, %s5172_s8 }
  0x20   : > { %s9352_s7 = scalar_select %p5427_p3, 1, 0 }
  0x21   : > { %s144_s6 = sshll.u32 %s9351_s2, 4  ;;  %p5174_p9 = pneg %p5418_p7  ;;  %s145_s6 = int_to_ptr.vmem [resolvable:$true] %s144_s6 }
  0x22   : > { %p5180_p0 = scmp.lt.s32.totalorder %s134_s29, %s134_s29  ;;  %p5181_p4 = scmp.lt.s32.totalorder %s5172_s8, %s5172_s8 }
  0x23   : > { %p5175_p10 = pnand %p5174_p9, %p5173_p8 }
  0x24   : > { %p5182_p12 = por %p5181_p4, %p5180_p0 }
  0x25   : > { %p5176_p1 = pneg %p5175_p10 }
  0x27   : > { %p5183_p11 = pnand %p5182_p12, %p5176_p1 }
  0x29   : > { %5186 = shalt.err (!%p5183_p11)
}
  0x2a   : > { %s5308_s9 = smov [#allocation8]   ;;  %s155_s10 = sand.u32 1, %s5302_s14  }
  0x2b   : > { %5083 = dma.vmem_to_smem (!%p5418_p7), %s134_s29, 32, %s5308_s9, [#allocation7]  }
  0x2c   : > { %s5187_s11 = scalar_lea.vmem %s145_s6, 32  ;;  %p5195_p8 = scmp.lt.s32.totalorder %s145_s6, %s145_s6 }
  0x2d   : > { %p5188_p5 = scmp.ne.s32.totalorder %s145_s6, %s5187_s11  ;;  %p5196_p10 = scmp.lt.s32.totalorder %s5187_s11, %s5187_s11 }
  0x2f   : > { %p5190_p2 = pnand %p5188_p5, %p5174_p9  ;;  %p5197_p13 = por %p5196_p10, %p5195_p8 }
  0x31   : > { %p5191_p6 = pneg %p5190_p2 }
  0x33   : > { %p5198_p3 = pnand %p5197_p13, %p5191_p6 }
  0x35   : > { %5201 = shalt.err (!%p5198_p3)
}
  0x36   : > { %s5309_s17 = smov [#allocation9]   ;;  %s4713_s19 = sshll.u32 %s155_s10, 6 }
  0x37   : > { %5086 = dma.vmem_to_smem (!%p5418_p7), %s145_s6, 32, %s5309_s17, [#allocation10]  }
  0x38   : > { %s5066_s20 = sshll.u32 %s5306_s15, 10  ;;  %s9353_s0 = sld [smem:[#allocation55_spill]] }
  0x39   : > { %s159_s29 = scalar_lea.vmem [#allocation4], %s4713_s19  ;;  %s5452_s30 = scalar_lea.sflag [#allocation5], %s155_s10 }
  0x3a   : > { %s166_s4 = sshll.u32 %s159_s29, 4  ;;  %p9354_p6 = scmp.ne.s32.totalorder %s9352_s7, 0  ;;  %s5450_s4 = int_to_ptr.vmem [resolvable:$true] %s166_s4 }
  0x3c   : > { %p5204_p11 = pneg %p9354_p6 }
  0x3e   : > { %s5448_s28 = scalar_lea.hbm %s9353_s0, %s5066_s20  ;;  %s5207_s9 = scalar_lea.hbm %s9353_s0, 2048 }
  0x3f   : > { %s5202_s5 = scalar_lea.hbm %s5448_s28, 1024  ;;  %p5208_p0 = scmp.lt.u32.totalorder %s5448_s28, %s9353_s0 }
  0x40   : > { %p5203_p4 = scmp.ne.s32.totalorder %s5448_s28, %s5202_s5  ;;  %p5209_p7 = scmp.lt.u32.totalorder %s5207_s9, %s5202_s5 }
  0x41   : > { %p5211_p9 = scmp.lt.u32.totalorder %s5202_s5, %s5448_s28 }
  0x42   : > { %p5205_p12 = pnand %p5204_p11, %p5203_p4  ;;  %p5210_p3 = por %p5209_p7, %p5208_p0 }
  0x44   : > { %p5206_p13 = pneg %p5205_p12  ;;  %p5212_p1 = por %p5211_p9, %p5210_p3 }
  0x46   : > { %p5213_p5 = pnand %p5212_p1, %p5206_p13 }
  0x48   : > { %5216 = shalt.err (!%p5213_p5)
}
  0x49   : > { %s5217_s10 = scalar_lea.vmem %s5450_s4, 1024  ;;  %s5310_s19 = smov [#allocation4]  }
  0x4a   : > { %p5218_p2 = scmp.ne.s32.totalorder %s5450_s4, %s5217_s10  ;;  %s5222_s20 = sshll.u32 %s5310_s19, 4  ;;  %s5223_s20 = int_to_ptr.vmem [resolvable:$false] %s5222_s20 }
  0x4b   : > { %s5224_s22 = scalar_lea.vmem %s5223_s20, 2048  ;;  %p5225_p4 = scmp.lt.s32.totalorder %s5450_s4, %s5223_s20 }
  0x4c   : > { %p5220_p8 = pnand %p5218_p2, %p5204_p11  ;;  %p5226_p12 = scmp.lt.s32.totalorder %s5224_s22, %s5217_s10 }
  0x4e   : > { %p5221_p10 = pneg %p5220_p8  ;;  %p5227_p0 = por %p5226_p12, %p5225_p4 }
  0x50   : > { %p5228_p7 = pnand %p5227_p0, %p5221_p10 }
  0x52   : > { %5231 = shalt.err (!%p5228_p7)
}
  0x53   : > { %s5311_s27 = smov 128   ;;  %s5312_s29 = smov 8  }
  0x54   : > { %5090 = dma.hbm_to_vmem [thread:$0]  (!%p9354_p6), %s5448_s28, 1024, %s5450_s4, %s5452_s30, %s5311_s27, %s5311_s27, %s5312_s29  }
  0x55   : > { %p9355_p11 = scmp.ne.s32.totalorder %s9348_s26, 0 }
  0x57   : > { %178 = sbr.rel (%p9355_p11) target bundleno = 2478 (0x9ae), region = 32 }
  0x5e   : > { %s5483_s5 = sand.u32 1, %s5298_s13   ;;  %p9356_p13 = scmp.ne.s32.totalorder %s9345_s23, 0 }
  0x5f   : > { %s4717_s6 = sshll.u32 %s5483_s5, 6  ;;  %s181_s8 = scalar_lea.sflag [#allocation5], %s5483_s5 }
  0x60   : > { %s5487_s9 = scalar_lea.vmem [#allocation4], %s4717_s6 }
  0x61   : > { %5277 = dma.done.wait (%p9356_p13), %s181_s8, 1024  }
  0x62   : > { %5279 = vsyncadd (%p9356_p13), %s181_s8, 4294966272  ;;  %p9357_p6 = scmp.eq.s32.totalorder %s5366_s16, 0 }
  0x64   : > { %5281 = dma.done.wait (%p9357_p6), [#allocation7], 32   ;;  %p9358_p3 = pmov %p9357_p6 }
  0x66   : > { %5283 = vsyncadd (%p9358_p3), [#allocation7], 4294967264  ;;  %p9359_p9 = pmov %p9358_p3 }
  0x67   : > { %p9360_p1 = pmov %p9358_p3 }
  0x68   : > { %5285 = dma.done.wait (%p9359_p9), [#allocation10], 32  }
  0x69   : > { %5287 = vsyncadd (%p9360_p1), [#allocation10], 4294967264 }
  0x6a   : > { %197 = sfence }
  0x6b   : > { %v216_v0 = vld [vmem:[%s5487_s9] sm:$0xff]  ;;  %v4722_v1 = vld [vmem:[%s5487_s9 + $0x18] sm:$0xff]  ;;  %s9326_s23 = smov 1   ;;  %v217_v2 = vld [vmem:[%s5487_s9 + $0x8] sm:$0xff]  ;;  %vm235_vm0 = vcmask 138248   ;;  %vm238_vm1 = vcmask 132105  }
  0x6c   : > { %229 = vrot.lane.b32.xlu0 %v216_v0, %s9326_s23  ;;  %286 = vrot.lane.b32.xlu1 %v4722_v1, %s9326_s23  ;;  %v4724_v3 = vld [vmem:[%s5487_s9 + $0x28] sm:$0xff]  ;;  %v4721_v4 = vld [vmem:[%s5487_s9 + $0x10] sm:$0xff]  ;;  %vm240_vm2 = vcmask 137230   ;;  %s9328_s26 = smov 126   ;;  %vm257_vm3 = vcmask 7168   ;;  %vm260_vm4 = vcmask 1024  }
  0x6d   : > { %v4726_v5 = vld [vmem:[%s5487_s9 + $0x38] sm:$0xff]  ;;  %v4723_v6 = vld [vmem:[%s5487_s9 + $0x20] sm:$0xff]  ;;  %v4725_v7 = vld [vmem:[%s5487_s9 + $0x30] sm:$0xff]  ;;  %s9324_s7 = smov 2   ;;  %vm277_vm5 = vcmask 146568   ;;  %s5569_s28 = sld [smem:[#allocation8 + $0x10]] }
  0x6e   : > { %vm280_vm6 = vcmask 140424   ;;  %s5572_s4 = sld [smem:[#allocation8 + $0x11]]  ;;  %s5577_s30 = sld [smem:[#allocation8 + $0x12]]  ;;  %vm2077_vm7 = vcmask 130048   ;;  %vm4126_vm8 = vcmask 122880   ;;  %vm4134_vm9 = vcmask 254080  }
  0x6f   : > { %s5584_s11 = sld [smem:[#allocation8 + $0x13]]  ;;  %s5587_s17 = sld [smem:[#allocation8]]  ;;  %vm4141_vm10 = vcmask 385280   ;;  %vm4148_vm11 = vcmask 516480   ;;  %vm4154_vm12 = vcmask 647680   ;;  %vm4161_vm13 = vcmask 778880  }
  0x70   : > { %231 = vrot.lane.b32.xlu0 %v217_v2, %s9326_s23  ;;  %335 = vrot.lane.b32.xlu1 %v4724_v3, %s9326_s23  ;;  %s5589_s10 = sld [smem:[#allocation8 + $0x4]]  ;;  %s9330_s19 = smov 127   ;;  %vm4168_vm14 = vcmask 910080   ;;  %vm4175_vm15 = vcmask 1041280  }
  0x71   : > { %s5592_s20 = sld [smem:[#allocation8 + $0x1]]  ;;  %s5594_s22 = sld [smem:[#allocation8 + $0x2]] }
  0x72   : > { %s5598_s27 = sld [smem:[#allocation8 + $0x14]]  ;;  %s5600_s29 = sld [smem:[#allocation8 + $0x5]] }
  0x73   : > { %v526_v55 = vstv %s5569_s28  ;;  %s5606_s6 = sld [smem:[#allocation8 + $0x6]]  ;;  %s5608_s8 = sld [smem:[#allocation8 + $0x3]] }
  0x74   : > { %284 = vrot.lane.b32.xlu0 %v4721_v4, %s9326_s23  ;;  %384 = vrot.lane.b32.xlu1 %v4726_v5, %s9326_s23  ;;  %v540_v60 = vstv %s5572_s4  ;;  %v554_v2 = vstv %s5577_s30  ;;  %s5611_s28 = sld [smem:[#allocation8 + $0x15]]  ;;  %s5613_s4 = sld [smem:[#allocation8 + $0x16]] }
  0x75   : > { %s5623_s30 = sld [smem:[#allocation8 + $0x9]]  ;;  %s9361_s0 = smov 127  }
  0x76   : > { %s5634_s1 = sld [smem:[#allocation8 + $0x7]]  ;;  %s6135_s2 = sld [smem:[#allocation8 + $0x5b]] }
  0x77   : > { %s6139_s21 = sld [smem:[#allocation8 + $0x38]]  ;;  %s6141_s14 = sld [smem:[#allocation8 + $0x39]] }
  0x78   : > { %333 = vrot.lane.b32.xlu0 %v4723_v6, %s9326_s23  ;;  %s6143_s13 = sld [smem:[#allocation8 + $0x3a]]  ;;  %p9715_p2 = scmp.ne.s32.totalorder %s9346_s24, 0 }
  0x7c   : > { %382 = vrot.lane.b32.xlu0 %v4725_v7, %s9326_s23  ;;  %s5619_s23 = sld [smem:[#allocation8 + $0x8]]  ;;  %v568_v7 = vstv %s5584_s11  ;;  %s5646_s11 = sld [smem:[#allocation8 + $0xa]] }
  0xde   : > { %v230_v8 = vpop.permute.xlu0 %229  ;;  %v287_v9 = vpop.permute.xlu1 %286 }
  0xdf   : > { %236 = vst.msk [vmem:[#allocation2 + $0x1] sm:$0xff] %vm235_vm0, %v230_v8  ;;  %292 = vst.msk [vmem:[#allocation2 + $0x21] sm:$0xff] %vm235_vm0, %v287_v9 }
  0xe0   : > { %239 = vst.msk [vmem:[#allocation2 - $0x1] sm:$0x2] %vm238_vm1, %v230_v8 }
  0xe1   : > { %294 = vst.msk [vmem:[#allocation2 + $0x23] sm:$0x40] %vm240_vm2, %v287_v9  ;;  %v582_v9 = vstv %s5598_s27  ;;  %s4756_s27 = sld [smem:[#allocation8 + $0x1e]] }
  0xe2   : > { %v232_v10 = vpop.permute.xlu0 %231  ;;  %v336_v11 = vpop.permute.xlu1 %335 }
  0xe3   : > { %237 = vst.msk [vmem:[#allocation2 + $0x9] sm:$0xff] %vm235_vm0, %v232_v10  ;;  %341 = vst.msk [vmem:[#allocation2 + $0x39] sm:$0xff] %vm235_vm0, %v336_v11 }
  0xe4   : > { %241 = vst.msk [vmem:[#allocation2 + $0xb] sm:$0x40] %vm240_vm2, %v232_v10  ;;  %343 = vst.msk [vmem:[#allocation2 + $0x3b] sm:$0x40] %vm240_vm2, %v336_v11  ;;  %v432_v10 = vstv %s5587_s17  ;;  %v450_v11 = vstv %s5589_s10  ;;  %s5651_s17 = sld [smem:[#allocation8 + $0x18]]  ;;  %s5661_s10 = sld [smem:[#allocation8 + $0xe]] }
  0xe6   : > { %v285_v12 = vpop.permute.xlu0 %284  ;;  %v385_v14 = vpop.permute.xlu1 %384 }
  0xe7   : > { %v242_v13 = vld [vmem:[#allocation2] sm:$0xff]  ;;  %291 = vst.msk [vmem:[#allocation2 + $0x19] sm:$0xff] %vm235_vm0, %v285_v12  ;;  %390 = vst.msk [vmem:[#allocation2 + $0x51] sm:$0xff] %vm235_vm0, %v385_v14 }
  0xe8   : > { %293 = vst.msk [vmem:[#allocation2 + $0x17] sm:$0x2] %vm238_vm1, %v285_v12  ;;  %248 = vrot.lane.b32.xlu1 %v242_v13, %s9328_s26  ;;  %v297_v21 = vld [vmem:[#allocation2 + $0x28] sm:$0x3] }
  0xe9   : > { %392 = vst.msk [vmem:[#allocation2 + $0x53] sm:$0x40] %vm240_vm2, %v385_v14 }
  0xea   : > { %v334_v15 = vpop.permute.xlu0 %333  ;;  %v243_v17 = vld [vmem:[#allocation2 + $0x8] sm:$0xff] }
  0xeb   : > { %v244_v16 = vld [vmem:[#allocation2 + $0x10] sm:$0x3]  ;;  %340 = vst.msk [vmem:[#allocation2 + $0x31] sm:$0xff] %vm235_vm0, %v334_v15  ;;  %v346_v25 = vld [vmem:[#allocation2 + $0x40] sm:$0x3] }
  0xec   : > { %342 = vst.msk [vmem:[#allocation2 + $0x2f] sm:$0x2] %vm238_vm1, %v334_v15  ;;  %252 = vrot.lane.b32.xlu0 %v244_v16, %s9328_s26  ;;  %250 = vrot.lane.b32.xlu1 %v243_v17, %s9328_s26  ;;  %v436_v15 = vstv %s5592_s20  ;;  %v440_v16 = vstv %s5594_s22  ;;  %s5669_s20 = sld [smem:[#allocation8 + $0xb]]  ;;  %s4754_s22 = sld [smem:[#allocation8 + $0x1c]] }
  0xee   : > { %v383_v18 = vpop.permute.xlu0 %382  ;;  %v296_v19 = vld [vmem:[#allocation2 + $0x20] sm:$0xff] }
  0xef   : > { %v295_v20 = vld [vmem:[#allocation2 + $0x18] sm:$0xff]  ;;  %389 = vst.msk [vmem:[#allocation2 + $0x49] sm:$0xff] %vm235_vm0, %v383_v18 }
  0xf0   : > { %391 = vst.msk [vmem:[#allocation2 + $0x47] sm:$0x2] %vm238_vm1, %v383_v18  ;;  %303 = vrot.lane.b32.xlu1 %v296_v19, %s9328_s26  ;;  %301 = vrot.lane.b32.xlu0 %v295_v20, %s9328_s26  ;;  %v395_v27 = vld [vmem:[#allocation2 + $0x58] sm:$0x3]  ;;  %v596_v18 = vstv %s5611_s28  ;;  %v456_v19 = vstv %s5600_s29  ;;  %s4757_s29 = sld [smem:[#allocation8 + $0x1f]]  ;;  %s4760_s28 = sld [smem:[#allocation8 + $0x22]] }
  0xf1   : > { %v462_v20 = vstv %s5606_s6  ;;  %s4758_s6 = sld [smem:[#allocation8 + $0x20]] }
  0xf2   : > { %v345_v22 = vld [vmem:[#allocation2 + $0x38] sm:$0xff] }
  0xf3   : > { %v344_v23 = vld [vmem:[#allocation2 + $0x30] sm:$0xff] }
  0xf4   : > { %305 = vrot.lane.b32.xlu0 %v297_v21, %s9328_s26  ;;  %352 = vrot.lane.b32.xlu1 %v345_v22, %s9328_s26  ;;  %v444_v21 = vstv %s5608_s8  ;;  %s4759_s8 = sld [smem:[#allocation8 + $0x21]] }
  0xf6   : > { %v394_v24 = vld [vmem:[#allocation2 + $0x50] sm:$0xff] }
  0xf7   : > { %v393_v26 = vld [vmem:[#allocation2 + $0x48] sm:$0xff] }
  0xf8   : > { %350 = vrot.lane.b32.xlu0 %v344_v23, %s9328_s26  ;;  %401 = vrot.lane.b32.xlu1 %v394_v24, %s9328_s26  ;;  %v610_v23 = vstv %s5613_s4  ;;  %s4761_s4 = sld [smem:[#allocation8 + $0x23]] }
  0xfc   : > { %354 = vrot.lane.b32.xlu0 %v346_v25, %s9328_s26 }
 0x100   : > { %399 = vrot.lane.b32.xlu0 %v393_v26, %s9328_s26 }
 0x104   : > { %403 = vrot.lane.b32.xlu0 %v395_v27, %s9328_s26  ;;  %s5621_s26 = sld [smem:[#allocation8 + $0xc]] }
 0x15a   : > { %v249_v28 = vpop.permute.xlu1 %248 }
 0x15b   : > { %258 = vst.msk [vmem:[#allocation2] sm:$0xff] %vm257_vm3, %v249_v28  ;;  %v476_v28 = vstv %s5619_s23  ;;  %s5692_s23 = sld [smem:[#allocation8 + $0xf]] }
 0x15e   : > { %v251_v29 = vpop.permute.xlu1 %250  ;;  %v253_v30 = vpop.permute.xlu0 %252 }
 0x15f   : > { %259 = vst.msk [vmem:[#allocation2 + $0x8] sm:$0xff] %vm257_vm3, %v251_v29  ;;  %v502_v29 = vstv %s5621_s26  ;;  %s5751_s26 = sld [smem:[#allocation8 + $0x1a]] }
 0x160   : > { %261 = vst.msk [vmem:[#allocation2 + $0x10] sm:$0x3] %vm260_vm4, %v253_v30  ;;  %v482_v30 = vstv %s5623_s30  ;;  %s9362_s30 = smov 126  }
 0x162   : > { %v304_v31 = vpop.permute.xlu1 %303  ;;  %v302_v32 = vpop.permute.xlu0 %301  ;;  %v262_v33 = vld [vmem:[#allocation2] sm:$0xff] }
 0x163   : > { %311 = vst.msk [vmem:[#allocation2 + $0x20] sm:$0xff] %vm257_vm3, %v304_v31  ;;  %310 = vst.msk [vmem:[#allocation2 + $0x18] sm:$0xff] %vm257_vm3, %v302_v32  ;;  %268 = vrot.lane.b32.xlu1 %v262_v33, %s9324_s7 }
 0x166   : > { %v353_v34 = vpop.permute.xlu1 %352  ;;  %v306_v35 = vpop.permute.xlu0 %305  ;;  %v263_v36 = vld [vmem:[#allocation2 + $0x8] sm:$0xff] }
 0x167   : > { %v264_v37 = vld [vmem:[#allocation2 + $0x10] sm:$0x3]  ;;  %360 = vst.msk [vmem:[#allocation2 + $0x38] sm:$0xff] %vm257_vm3, %v353_v34  ;;  %270 = vrot.lane.b32.xlu0 %v263_v36, %s9324_s7 }
 0x168   : > { %312 = vst.msk [vmem:[#allocation2 + $0x28] sm:$0x3] %vm260_vm4, %v306_v35  ;;  %272 = vrot.lane.b32.xlu1 %v264_v37, %s9324_s7 }
 0x16a   : > { %v402_v38 = vpop.permute.xlu1 %401  ;;  %v351_v39 = vpop.permute.xlu0 %350  ;;  %v314_v40 = vld [vmem:[#allocation2 + $0x20] sm:$0xff]  ;;  %v313_v41 = vld [vmem:[#allocation2 + $0x18] sm:$0xff] }
 0x16b   : > { %409 = vst.msk [vmem:[#allocation2 + $0x50] sm:$0xff] %vm257_vm3, %v402_v38  ;;  %359 = vst.msk [vmem:[#allocation2 + $0x30] sm:$0xff] %vm257_vm3, %v351_v39  ;;  %321 = vrot.lane.b32.xlu0 %v314_v40, %s9324_s7 }
 0x16c   : > { %319 = vrot.lane.b32.xlu1 %v313_v41, %s9324_s7 }
 0x16e   : > { %v355_v42 = vpop.permute.xlu0 %354  ;;  %v363_v43 = vld [vmem:[#allocation2 + $0x38] sm:$0xff] }
 0x16f   : > { %v315_v44 = vld [vmem:[#allocation2 + $0x28] sm:$0x3]  ;;  %361 = vst.msk [vmem:[#allocation2 + $0x40] sm:$0x3] %vm260_vm4, %v355_v42  ;;  %370 = vrot.lane.b32.xlu0 %v363_v43, %s9324_s7 }
 0x170   : > { %323 = vrot.lane.b32.xlu1 %v315_v44, %s9324_s7  ;;  %v468_v44 = vstv %s5634_s1  ;;  %s5704_s1 = sld [smem:[#allocation8 + $0x19]] }
 0x172   : > { %v400_v45 = vpop.permute.xlu0 %399  ;;  %v412_v46 = vld [vmem:[#allocation2 + $0x50] sm:$0xff] }
 0x173   : > { %v362_v47 = vld [vmem:[#allocation2 + $0x30] sm:$0xff]  ;;  %408 = vst.msk [vmem:[#allocation2 + $0x48] sm:$0xff] %vm257_vm3, %v400_v45  ;;  %419 = vrot.lane.b32.xlu0 %v412_v46, %s9324_s7 }
 0x174   : > { %368 = vrot.lane.b32.xlu1 %v362_v47, %s9324_s7 }
 0x176   : > { %v364_v48 = vld [vmem:[#allocation2 + $0x40] sm:$0x3]  ;;  %v404_v49 = vpop.permute.xlu0 %403 }
 0x177   : > { %410 = vst.msk [vmem:[#allocation2 + $0x58] sm:$0x3] %vm260_vm4, %v404_v49 }
 0x178   : > { %372 = vrot.lane.b32.xlu1 %v364_v48, %s9324_s7 }
 0x17a   : > { %v411_v50 = vld [vmem:[#allocation2 + $0x48] sm:$0xff] }
 0x17c   : > { %417 = vrot.lane.b32.xlu1 %v411_v50, %s9324_s7 }
 0x17e   : > { %v413_v51 = vld [vmem:[#allocation2 + $0x58] sm:$0x3] }
 0x180   : > { %421 = vrot.lane.b32.xlu1 %v413_v51, %s9324_s7  ;;  %s5617_s7 = sld [smem:[#allocation8 + $0x17]] }
 0x186   : > { %v624_v24 = vstv %s5617_s7  ;;  %s4755_s7 = sld [smem:[#allocation8 + $0x1d]] }
 0x1d5   : > { %v269_v52 = vpop.permute.xlu1 %268 }
 0x1d6   : > { %278 = vst.msk [vmem:[#allocation2] sm:$0xff] %vm277_vm5, %v269_v52 }
 0x1d9   : > { %v271_v54 = vpop.permute.xlu0 %270 }
 0x1da   : > { %v273_v53 = vpop.permute.xlu1 %272  ;;  %279 = vst.msk [vmem:[#allocation2 + $0x8] sm:$0xff] %vm277_vm5, %v271_v54  ;;  %v638_v54 = vstv %s5651_s17  ;;  %s4763_s17 = sld [smem:[#allocation8 + $0x25]] }
 0x1db   : > { %281 = vst.msk [vmem:[#allocation2 + $0x10] sm:$0x3] %vm280_vm6, %v273_v53  ;;  %v488_v53 = vstv %s5646_s11  ;;  %s4762_s11 = sld [smem:[#allocation8 + $0x24]] }
 0x1dd   : > { %v5579_v56 = vld [vmem:[#allocation2] sm:$0xff]  ;;  %v322_v58 = vpop.permute.xlu0 %321 }
 0x1de   : > { %v320_v57 = vpop.permute.xlu1 %319  ;;  %329 = vst.msk [vmem:[#allocation2 + $0x20] sm:$0xff] %vm277_vm5, %v322_v58  ;;  %v527_v59 = vmul.f32 %v526_v55, %v5579_v56  ;;  %v541_v0 = vmul.f32 %v540_v60, %v5579_v56  ;;  %v555_v5 = vmul.f32 %v554_v2, %v5579_v56  ;;  %v569_v13 = vmul.f32 %v568_v7, %v5579_v56 }
 0x1df   : > { %328 = vst.msk [vmem:[#allocation2 + $0x18] sm:$0xff] %vm277_vm5, %v320_v57  ;;  %v433_v36 = vmul.f32 %v432_v10, %v5579_v56  ;;  %v437_v38 = vmul.f32 %v436_v15, %v5579_v56 }
 0x1e0   : > { %531 = vrot.lane.b32.xlu0 %v527_v59, %s9330_s19 }
 0x1e1   : > { %v5596_v61 = vld [vmem:[#allocation2 + $0x8] sm:$0xff]  ;;  %v371_v63 = vpop.permute.xlu0 %370 }
 0x1e2   : > { %v324_v62 = vpop.permute.xlu1 %323  ;;  %378 = vst.msk [vmem:[#allocation2 + $0x38] sm:$0xff] %vm277_vm5, %v371_v63  ;;  %v528_v1 = vmul.f32 %v526_v55, %v5596_v61  ;;  %v542_v6 = vmul.f32 %v540_v60, %v5596_v61  ;;  %v556_v14 = vmul.f32 %v554_v2, %v5596_v61  ;;  %v570_v32 = vmul.f32 %v568_v7, %v5596_v61 }
 0x1e3   : > { %330 = vst.msk [vmem:[#allocation2 + $0x28] sm:$0x3] %vm280_vm6, %v324_v62  ;;  %v434_v37 = vmul.f32 %v432_v10, %v5596_v61  ;;  %v438_v48 = vmul.f32 %v436_v15, %v5596_v61  ;;  %v514_v63 = vstv %s5661_s10  ;;  %v441_v2 = vmul.f32 %v440_v16, %v5579_v56  ;;  %s4764_s10 = sld [smem:[#allocation8 + $0x26]] }
 0x1e4   : > { %545 = vrot.lane.b32.xlu0 %v541_v0, %s9330_s19  ;;  %533 = vrot.lane.b32.xlu1 %v528_v1, %s9330_s19  ;;  %s5629_s19 = sld [smem:[#allocation8 + $0xd]] }
 0x1e5   : > { %v420_v4 = vpop.permute.xlu0 %419  ;;  %v5648_v17 = vld [vmem:[#allocation2 + $0x20] sm:$0xff] }
 0x1e6   : > { %v369_v3 = vpop.permute.xlu1 %368  ;;  %427 = vst.msk [vmem:[#allocation2 + $0x50] sm:$0xff] %vm277_vm5, %v420_v4  ;;  %v5639_v12 = vld [vmem:[#allocation2 + $0x18] sm:$0xff]  ;;  %v452_v33 = vmul.f32 %v450_v11, %v5648_v17  ;;  %v458_v39 = vmul.f32 %v456_v19, %v5648_v17  ;;  %v584_v42 = vmul.f32 %v582_v9, %v5648_v17  ;;  %v494_v4 = vstv %s5669_s20  ;;  %s4765_s20 = sld [smem:[#allocation8 + $0x27]] }
 0x1e7   : > { %377 = vst.msk [vmem:[#allocation2 + $0x30] sm:$0xff] %vm277_vm5, %v369_v3  ;;  %v583_v22 = vmul.f32 %v582_v9, %v5639_v12  ;;  %v451_v27 = vmul.f32 %v450_v11, %v5639_v12  ;;  %v457_v34 = vmul.f32 %v456_v19, %v5639_v12  ;;  %v597_v41 = vmul.f32 %v596_v18, %v5639_v12 }
 0x1e8   : > { %559 = vrot.lane.b32.xlu0 %v555_v5, %s9361_s0  ;;  %547 = vrot.lane.b32.xlu1 %v542_v6, %s9361_s0  ;;  %v454_v50 = vadd.f32 %v452_v33, %v434_v37  ;;  %v460_v58 = vadd.f32 %v458_v39, %v438_v48  ;;  %v463_v3 = vmul.f32 %v462_v20, %v5639_v12  ;;  %v520_v19 = vstv %s5692_s23  ;;  %s4766_s23 = sld [smem:[#allocation8 + $0x28]] }
 0x1e9   : > { %v5663_v25 = vld [vmem:[#allocation2 + $0x38] sm:$0xff]  ;;  %v453_v46 = vadd.f32 %v451_v27, %v433_v36  ;;  %v459_v51 = vadd.f32 %v457_v34, %v437_v38  ;;  %v611_v5 = vmul.f32 %v610_v23, %v5639_v12  ;;  %v598_v6 = vmul.f32 %v596_v18, %v5648_v17 }
 0x1ea   : > { %v373_v8 = vpop.permute.xlu1 %372  ;;  %v508_v35 = vstv %s5629_s19  ;;  %v478_v43 = vmul.f32 %v476_v28, %v5663_v25  ;;  %v484_v49 = vmul.f32 %v482_v30, %v5663_v25  ;;  %v464_v7 = vmul.f32 %v462_v20, %v5648_v17  ;;  %s4753_s19 = sld [smem:[#allocation8 + $0x1b]] }
 0x1eb   : > { %379 = vst.msk [vmem:[#allocation2 + $0x40] sm:$0x3] %vm280_vm6, %v373_v8  ;;  %v445_v8 = vmul.f32 %v444_v21, %v5579_v56  ;;  %v612_v20 = vmul.f32 %v610_v23, %v5648_v17  ;;  %v469_v33 = vmul.f32 %v468_v44, %v5639_v12  ;;  %v446_v34 = vmul.f32 %v444_v21, %v5596_v61 }
 0x1ec   : > { %573 = vrot.lane.b32.xlu0 %v569_v13, %s9361_s0  ;;  %561 = vrot.lane.b32.xlu1 %v556_v14, %s9361_s0  ;;  %v480_v59 = vadd.f32 %v478_v43, %v454_v50  ;;  %v486_v1 = vadd.f32 %v484_v49, %v460_v58  ;;  %v442_v13 = vmul.f32 %v440_v16, %v5596_v61  ;;  %v652_v36 = vstv %s5704_s1  ;;  %s4767_s1 = sld [smem:[#allocation8 + $0x29]] }
 0x1ed   : > { %v5682_v40 = vld [vmem:[#allocation2 + $0x50] sm:$0xff]  ;;  %v625_v14 = vmul.f32 %v624_v24, %v5639_v12  ;;  %v465_v16 = vadd.f32 %v463_v3, %v441_v2  ;;  %v470_v38 = vmul.f32 %v468_v44, %v5648_v17  ;;  %v496_v43 = vmul.f32 %v494_v4, %v5663_v25 }
 0x1ee   : > { %v418_v26 = vpop.permute.xlu1 %417  ;;  %v5671_v31 = vld [vmem:[#allocation2 + $0x30] sm:$0xff]  ;;  %v504_v57 = vmul.f32 %v502_v29, %v5682_v40  ;;  %v510_v62 = vmul.f32 %v508_v35, %v5682_v40  ;;  %v626_v21 = vmul.f32 %v624_v24, %v5648_v17  ;;  %v640_v49 = vmul.f32 %v638_v54, %v5663_v25 }
 0x1ef   : > { %426 = vst.msk [vmem:[#allocation2 + $0x48] sm:$0xff] %vm277_vm5, %v418_v26  ;;  %v477_v47 = vmul.f32 %v476_v28, %v5671_v31  ;;  %v483_v52 = vmul.f32 %v482_v30, %v5671_v31  ;;  %v489_v11 = vmul.f32 %v488_v53, %v5671_v31  ;;  %v466_v28 = vadd.f32 %v464_v7, %v442_v13 }
 0x1f0   : > { %587 = vrot.lane.b32.xlu0 %v583_v22, %s9361_s0  ;;  %575 = vrot.lane.b32.xlu1 %v570_v32, %s9361_s0  ;;  %v5726_v10 = vadd.f32 %v504_v57, %v480_v59  ;;  %v5738_v18 = vadd.f32 %v510_v62, %v486_v1  ;;  %v516_v30 = vmul.f32 %v514_v63, %v5682_v40  ;;  %v680_v57 = vstv %s4753_s19  ;;  %s4769_s19 = sld [smem:[#allocation8 + $0x2b]] }
 0x1f1   : > { %v479_v55 = vadd.f32 %v477_v47, %v453_v46  ;;  %v485_v60 = vadd.f32 %v483_v52, %v459_v51  ;;  %v491_v32 = vadd.f32 %v489_v11, %v465_v16  ;;  %v495_v23 = vmul.f32 %v494_v4, %v5671_v31 }
 0x1f2   : > { %v422_v45 = vpop.permute.xlu1 %421  ;;  %v472_v46 = vadd.f32 %v470_v38, %v446_v34  ;;  %v522_v47 = vmul.f32 %v520_v19, %v5682_v40  ;;  %v653_v44 = vmul.f32 %v652_v36, %v5671_v31  ;;  %v666_v52 = vstv %s5751_s26  ;;  %s4768_s26 = sld [smem:[#allocation8 + $0x2a]] }
 0x1f3   : > { %428 = vst.msk [vmem:[#allocation2 + $0x58] sm:$0x3] %vm280_vm6, %v422_v45  ;;  %v681_v58 = vmul.f32 %v680_v57, %v5671_v31  ;;  %v668_v59 = vmul.f32 %v666_v52, %v5663_v25  ;;  %v708_v62 = vstv %s4755_s7  ;;  %v722_v3 = vstv %s4756_s27  ;;  %s4771_s7 = sld [smem:[#allocation8 + $0x2d]]  ;;  %s4772_s27 = sld [smem:[#allocation8 + $0x2e]] }
 0x1f4   : > { %601 = vrot.lane.b32.xlu0 %v597_v41, %s9361_s0  ;;  %589 = vrot.lane.b32.xlu1 %v584_v42, %s9361_s0  ;;  %v471_v41 = vadd.f32 %v469_v33, %v445_v8  ;;  %v498_v50 = vadd.f32 %v496_v43, %v472_v46  ;;  %v724_v8 = vmul.f32 %v722_v3, %v5682_v40  ;;  %v820_v34 = vstv %s4763_s17  ;;  %s5922_s17 = sld [smem:[#allocation8 + $0x45]] }
 0x1f5   : > { %v848_v38 = vstv %s4765_s20  ;;  %v862_v43 = vstv %s4766_s23  ;;  %s5948_s20 = sld [smem:[#allocation8 + $0x47]]  ;;  %s5959_s23 = sld [smem:[#allocation8 + $0x48]] }
 0x1f6   : > { %v5708_v0 = vld [vmem:[#allocation2 + $0x48] sm:$0xff]  ;;  %v497_v48 = vadd.f32 %v495_v23, %v471_v41  ;;  %v5779_v24 = vadd.f32 %v522_v47, %v498_v50  ;;  %v849_v41 = vmul.f32 %v848_v38, %v5639_v12  ;;  %v850_v46 = vmul.f32 %v848_v38, %v5648_v17 }
 0x1f7   : > { %v503_v9 = vmul.f32 %v502_v29, %v5708_v0  ;;  %v509_v15 = vmul.f32 %v508_v35, %v5708_v0  ;;  %v515_v26 = vmul.f32 %v514_v63, %v5708_v0  ;;  %v490_v29 = vmul.f32 %v488_v53, %v5663_v25 }
 0x1f8   : > { %615 = vrot.lane.b32.xlu0 %v611_v5, %s9361_s0  ;;  %603 = vrot.lane.b32.xlu1 %v598_v6, %s9361_s0  ;;  %v639_v35 = vmul.f32 %v638_v54, %v5671_v31  ;;  %v521_v42 = vmul.f32 %v520_v19, %v5708_v0  ;;  %v667_v53 = vmul.f32 %v666_v52, %v5671_v31  ;;  %v694_v54 = vstv %s4754_s22  ;;  %s4770_s22 = sld [smem:[#allocation8 + $0x2c]] }
 0x1f9   : > { %v5744_v22 = vadd.f32 %v503_v9, %v479_v55  ;;  %v5747_v27 = vadd.f32 %v509_v15, %v485_v60  ;;  %v492_v37 = vadd.f32 %v490_v29, %v466_v28  ;;  %v5763_v39 = vadd.f32 %v515_v26, %v491_v32 }
 0x1fa   : > { %v5777_v51 = vadd.f32 %v521_v42, %v497_v48  ;;  %v654_v55 = vmul.f32 %v652_v36, %v5663_v25  ;;  %v695_v60 = vmul.f32 %v694_v54, %v5708_v0  ;;  %v682_v63 = vmul.f32 %v680_v57, %v5663_v25 }
 0x1fb   : > { %v5770_v45 = vadd.f32 %v516_v30, %v492_v37  ;;  %v709_v1 = vmul.f32 %v708_v62, %v5708_v0  ;;  %v696_v2 = vmul.f32 %v694_v54, %v5682_v40  ;;  %v723_v4 = vmul.f32 %v722_v3, %v5708_v0 }
 0x1fc   : > { %629 = vrot.lane.b32.xlu0 %v625_v14, %s9361_s0  ;;  %617 = vrot.lane.b32.xlu1 %v612_v20, %s9361_s0  ;;  %v710_v5 = vmul.f32 %v708_v62, %v5682_v40  ;;  %v736_v6 = vstv %s4757_s29  ;;  %v750_v9 = vstv %s4758_s6  ;;  %v864_v48 = vmul.f32 %v862_v43, %v5663_v25  ;;  %s4773_s29 = sld [smem:[#allocation8 + $0x2f]]  ;;  %s5864_s6 = sld [smem:[#allocation8 + $0x40]] }
 0x1fd   : > { %v737_v7 = vmul.f32 %v736_v6, %v5708_v0  ;;  %v751_v11 = vmul.f32 %v750_v9, %v5579_v56  ;;  %v738_v13 = vmul.f32 %v736_v6, %v5682_v40  ;;  %v764_v14 = vstv %s4759_s8  ;;  %s5874_s8 = sld [smem:[#allocation8 + $0x41]] }
 0x1fe   : > { %v765_v15 = vmul.f32 %v764_v14, %v5579_v56  ;;  %v752_v19 = vmul.f32 %v750_v9, %v5596_v61  ;;  %v778_v20 = vstv %s4760_s28  ;;  %v766_v26 = vmul.f32 %v764_v14, %v5596_v61  ;;  %s5887_s28 = sld [smem:[#allocation8 + $0x42]] }
 0x1ff   : > { %v779_v16 = vmul.f32 %v778_v20, %v5579_v56  ;;  %v792_v28 = vstv %s4761_s4  ;;  %v780_v30 = vmul.f32 %v778_v20, %v5596_v61  ;;  %v806_v32 = vstv %s4762_s11  ;;  %s5900_s4 = sld [smem:[#allocation8 + $0x43]]  ;;  %s5911_s11 = sld [smem:[#allocation8 + $0x44]] }
 0x200   : > { %643 = vrot.lane.b32.xlu0 %v639_v35, %s9361_s0  ;;  %631 = vrot.lane.b32.xlu1 %v626_v21, %s9361_s0  ;;  %v793_v29 = vmul.f32 %v792_v28, %v5579_v56  ;;  %v807_v33 = vmul.f32 %v806_v32, %v5639_v12  ;;  %v794_v23 = vmul.f32 %v792_v28, %v5596_v61  ;;  %v834_v36 = vstv %s4764_s10  ;;  %s5935_s10 = sld [smem:[#allocation8 + $0x46]] }
 0x201   : > { %v821_v56 = vmul.f32 %v820_v34, %v5639_v12  ;;  %v808_v35 = vmul.f32 %v806_v32, %v5648_v17  ;;  %v835_v37 = vmul.f32 %v834_v36, %v5639_v12  ;;  %v822_v61 = vmul.f32 %v820_v34, %v5648_v17 }
 0x202   : > { %v836_v42 = vmul.f32 %v834_v36, %v5648_v17  ;;  %v863_v21 = vmul.f32 %v862_v43, %v5671_v31  ;;  %v876_v47 = vstv %s4767_s1  ;;  %v904_v50 = vstv %s4769_s19  ;;  %s5970_s1 = sld [smem:[#allocation8 + $0x49]]  ;;  %s5996_s19 = sld [smem:[#allocation8 + $0x4b]] }
 0x203   : > { %v877_v12 = vmul.f32 %v876_v47, %v5671_v31  ;;  %v878_v17 = vmul.f32 %v876_v47, %v5663_v25  ;;  %v905_v52 = vmul.f32 %v904_v50, %v5671_v31  ;;  %v906_v54 = vmul.f32 %v904_v50, %v5663_v25 }
 0x204   : > { %657 = vrot.lane.b32.xlu0 %v653_v44, %s9361_s0  ;;  %645 = vrot.lane.b32.xlu1 %v640_v49, %s9361_s0  ;;  %v890_v44 = vstv %s4768_s26  ;;  %v946_v62 = vstv %s4772_s27  ;;  %s5983_s26 = sld [smem:[#allocation8 + $0x4a]]  ;;  %s6031_s27 = sld [smem:[#allocation8 + $0x4e]] }
 0x205   : > { %v891_v49 = vmul.f32 %v890_v44, %v5671_v31  ;;  %v960_v3 = vstv %s4773_s29  ;;  %v1078_v9 = vstv %s5864_s6  ;;  %s4805_s29 = sld [smem:[#allocation8 + $0x4f]]  ;;  %s6053_s6 = sld [smem:[#allocation8 + $0x50]] }
 0x206   : > { %v961_v6 = vmul.f32 %v960_v3, %v5708_v0 }
 0x208   : > { %671 = vrot.lane.b32.xlu0 %v667_v53, %s9361_s0  ;;  %659 = vrot.lane.b32.xlu1 %v654_v55, %s9361_s0  ;;  %v892_v53 = vmul.f32 %v890_v44, %v5663_v25  ;;  %v918_v55 = vstv %s4770_s22  ;;  %s6007_s22 = sld [smem:[#allocation8 + $0x4c]] }
 0x209   : > { %v919_v57 = vmul.f32 %v918_v55, %v5708_v0 }
 0x20c   : > { %685 = vrot.lane.b32.xlu0 %v681_v58, %s9361_s0  ;;  %673 = vrot.lane.b32.xlu1 %v668_v59, %s9361_s0  ;;  %v932_v58 = vstv %s4771_s7  ;;  %s6018_s7 = sld [smem:[#allocation8 + $0x4d]] }
 0x20d   : > { %v933_v31 = vmul.f32 %v932_v58, %v5708_v0 }
 0x210   : > { %699 = vrot.lane.b32.xlu0 %v695_v60, %s9361_s0  ;;  %687 = vrot.lane.b32.xlu1 %v682_v63, %s9361_s0  ;;  %v920_v60 = vmul.f32 %v918_v55, %v5682_v40  ;;  %v1176_v55 = vstv %s5948_s20  ;;  %s6095_s20 = sld [smem:[#allocation8 + $0x33]] }
 0x214   : > { %713 = vrot.lane.b32.xlu0 %v709_v1, %s9361_s0  ;;  %701 = vrot.lane.b32.xlu1 %v696_v2, %s9361_s0  ;;  %v947_v1 = vmul.f32 %v946_v62, %v5708_v0  ;;  %v934_v2 = vmul.f32 %v932_v58, %v5682_v40  ;;  %v962_v0 = vmul.f32 %v960_v3, %v5682_v40 }
 0x218   : > { %727 = vrot.lane.b32.xlu0 %v723_v4, %s9361_s0  ;;  %715 = vrot.lane.b32.xlu1 %v710_v5, %s9361_s0 }
 0x21c   : > { %741 = vrot.lane.b32.xlu0 %v737_v7, %s9361_s0  ;;  %729 = vrot.lane.b32.xlu1 %v724_v8, %s9361_s0  ;;  %v948_v7 = vmul.f32 %v946_v62, %v5682_v40  ;;  %v5884_v8 = vld [vmem:[#allocation2 + $0x1] sm:$0xff]  ;;  %v1190_v62 = vstv %s5959_s23  ;;  %s6103_s23 = sld [smem:[#allocation8 + $0x54]] }
 0x21d   : > { %v1079_v14 = vmul.f32 %v1078_v9, %v5884_v8 }
 0x220   : > { %755 = vrot.lane.b32.xlu0 %v751_v11, %s9362_s30  ;;  %743 = vrot.lane.b32.xlu1 %v738_v13, %s9361_s0 }
 0x224   : > { %769 = vrot.lane.b32.xlu0 %v765_v15, %s9362_s30  ;;  %757 = vrot.lane.b32.xlu1 %v752_v19, %s9362_s30  ;;  %v5897_v15 = vld [vmem:[#allocation2 + $0x9] sm:$0xff]  ;;  %v1092_v19 = vstv %s5874_s8  ;;  %s6063_s8 = sld [smem:[#allocation8 + $0x51]] }
 0x225   : > { %v1080_v28 = vmul.f32 %v1078_v9, %v5897_v15  ;;  %v1204_v9 = vstv %s5970_s1  ;;  %s6105_s1 = sld [smem:[#allocation8 + $0x55]] }
 0x228   : > { %783 = vrot.lane.b32.xlu0 %v779_v16, %s9362_s30  ;;  %771 = vrot.lane.b32.xlu1 %v766_v26, %s9362_s30  ;;  %v1093_v26 = vmul.f32 %v1092_v19, %v5884_v8 }
 0x22c   : > { %797 = vrot.lane.b32.xlu0 %v793_v29, %s9362_s30  ;;  %785 = vrot.lane.b32.xlu1 %v780_v30, %s9362_s30  ;;  %v1106_v29 = vstv %s5887_s28  ;;  %s6074_s28 = sld [smem:[#allocation8 + $0x52]] }
 0x22d   : > { %v1107_v32 = vmul.f32 %v1106_v29, %v5884_v8  ;;  %v1108_v36 = vmul.f32 %v1106_v29, %v5897_v15 }
 0x230   : > { %811 = vrot.lane.b32.xlu0 %v807_v33, %s9362_s30  ;;  %799 = vrot.lane.b32.xlu1 %v794_v23, %s9362_s30  ;;  %v1094_v33 = vmul.f32 %v1092_v19, %v5897_v15  ;;  %v1120_v23 = vstv %s5900_s4  ;;  %s6085_s4 = sld [smem:[#allocation8 + $0x53]] }
 0x231   : > { %v1122_v43 = vmul.f32 %v1120_v23, %v5897_v15 }
 0x234   : > { %825 = vrot.lane.b32.xlu0 %v821_v56, %s9362_s30  ;;  %813 = vrot.lane.b32.xlu1 %v808_v35, %s9362_s30  ;;  %v1121_v35 = vmul.f32 %v1120_v23, %v5884_v8 }
 0x238   : > { %839 = vrot.lane.b32.xlu0 %v835_v37, %s9362_s30  ;;  %827 = vrot.lane.b32.xlu1 %v822_v61, %s9362_s30  ;;  %v5932_v37 = vld [vmem:[#allocation2 + $0x19] sm:$0xff]  ;;  %v1134_v61 = vstv %s5911_s11  ;;  %s6089_s11 = sld [smem:[#allocation8 + $0x30]] }
 0x239   : > { %v1177_v58 = vmul.f32 %v1176_v55, %v5932_v37 }
 0x23c   : > { %853 = vrot.lane.b32.xlu0 %v849_v41, %s9362_s30  ;;  %841 = vrot.lane.b32.xlu1 %v836_v42, %s9362_s30  ;;  %v1135_v42 = vmul.f32 %v1134_v61, %v5932_v37 }
 0x240   : > { %867 = vrot.lane.b32.xlu0 %v863_v21, %s9362_s30  ;;  %855 = vrot.lane.b32.xlu1 %v850_v46, %s9362_s30  ;;  %v5945_v21 = vld [vmem:[#allocation2 + $0x21] sm:$0xff]  ;;  %v1148_v46 = vstv %s5922_s17  ;;  %s6091_s17 = sld [smem:[#allocation8 + $0x31]] }
 0x241   : > { %9364 = vst [vmem:[#allocation20_spill] sm:$0xff] %v5945_v21  ;;  %v1136_v44 = vmul.f32 %v1134_v61, %v5945_v21 }
 0x244   : > { %881 = vrot.lane.b32.xlu0 %v877_v12, %s9362_s30  ;;  %869 = vrot.lane.b32.xlu1 %v864_v48, %s9362_s30  ;;  %v1149_v48 = vmul.f32 %v1148_v46, %v5932_v37 }
 0x248   : > { %895 = vrot.lane.b32.xlu0 %v891_v49, %s9362_s30  ;;  %883 = vrot.lane.b32.xlu1 %v878_v17, %s9362_s30  ;;  %v1162_v49 = vstv %s5935_s10  ;;  %s6093_s10 = sld [smem:[#allocation8 + $0x32]] }
 0x24c   : > { %909 = vrot.lane.b32.xlu0 %v905_v52, %s9362_s30  ;;  %897 = vrot.lane.b32.xlu1 %v892_v53, %s9362_s30  ;;  %v1163_v52 = vmul.f32 %v1162_v49, %v5932_v37  ;;  %v1150_v53 = vmul.f32 %v1148_v46, %v5945_v21  ;;  %v6028_v46 = vld [vmem:[#allocation2 + $0x49] sm:$0xff] }
 0x250   : > { %923 = vrot.lane.b32.xlu0 %v919_v57, %s9362_s30  ;;  %911 = vrot.lane.b32.xlu1 %v906_v54, %s9362_s30 }
 0x252   : > { %v5860_v59 = vpop.permute.xlu0 %531 }
 0x254   : > { %937 = vrot.lane.b32.xlu0 %v933_v31, %s9362_s30  ;;  %925 = vrot.lane.b32.xlu1 %v920_v60, %s9362_s30  ;;  %v1164_v31 = vmul.f32 %v1162_v49, %v5945_v21  ;;  %v5980_v60 = vld [vmem:[#allocation2 + $0x31] sm:$0xff] }
 0x255   : > { %v1191_v3 = vmul.f32 %v1190_v62, %v5980_v60  ;;  %v1205_v19 = vmul.f32 %v1204_v9, %v5980_v60 }
 0x256   : > { %v5868_v25 = vpop.permute.xlu1 %533  ;;  %v5870_v63 = vpop.permute.xlu0 %545 }
 0x258   : > { %951 = vrot.lane.b32.xlu0 %v947_v1, %s9362_s30  ;;  %939 = vrot.lane.b32.xlu1 %v934_v2, %s9362_s30 }
 0x25a   : > { %v5878_v4 = vpop.permute.xlu1 %547  ;;  %v5880_v5 = vpop.permute.xlu0 %559 }
 0x25c   : > { %965 = vrot.lane.b32.xlu0 %v961_v6, %s9362_s30  ;;  %953 = vrot.lane.b32.xlu1 %v948_v7, %s9362_s30  ;;  %v1178_v6 = vmul.f32 %v1176_v55, %v5945_v21  ;;  %v5993_v7 = vld [vmem:[#allocation2 + $0x39] sm:$0xff]  ;;  %v6041_v55 = vld [vmem:[#allocation2 + $0x51] sm:$0xff] }
 0x25d   : > { %v1206_v23 = vmul.f32 %v1204_v9, %v5993_v7  ;;  %v1274_v9 = vstv %s6031_s27  ;;  %s6118_s27 = sld [smem:[#allocation8 + $0x36]] }
 0x25e   : > { %v5891_v11 = vpop.permute.xlu1 %561  ;;  %v5893_v13 = vpop.permute.xlu0 %573 }
 0x260   : > { %1083 = vrot.lane.b32.xlu0 %v1079_v14, %s9361_s0  ;;  %967 = vrot.lane.b32.xlu1 %v962_v0, %s9362_s30 }
 0x262   : > { %v5904_v20 = vpop.permute.xlu1 %575  ;;  %v5906_v16 = vpop.permute.xlu0 %587 }
 0x264   : > { %1097 = vrot.lane.b32.xlu0 %v1093_v26, %s9361_s0  ;;  %1085 = vrot.lane.b32.xlu1 %v1080_v28, %s9361_s0  ;;  %v1192_v26 = vmul.f32 %v1190_v62, %v5993_v7  ;;  %v1218_v28 = vstv %s5983_s26  ;;  %s6108_s26 = sld [smem:[#allocation8 + $0x56]] }
 0x266   : > { %v5915_v40 = vpop.permute.xlu1 %589  ;;  %v5917_v30 = vpop.permute.xlu0 %601 }
 0x268   : > { %1111 = vrot.lane.b32.xlu0 %v1107_v32, %s9361_s0  ;;  %1099 = vrot.lane.b32.xlu1 %v1094_v33, %s9361_s0  ;;  %v1219_v33 = vmul.f32 %v1218_v28, %v5980_v60 }
 0x26a   : > { %v5926_v34 = vpop.permute.xlu1 %603  ;;  %v5928_v56 = vpop.permute.xlu0 %615 }
 0x26c   : > { %1125 = vrot.lane.b32.xlu0 %v1121_v35, %s9361_s0  ;;  %1113 = vrot.lane.b32.xlu1 %v1108_v36, %s9361_s0  ;;  %v1232_v35 = vstv %s5996_s19  ;;  %s6110_s19 = sld [smem:[#allocation8 + $0x57]] }
 0x26e   : > { %v5939_v38 = vpop.permute.xlu1 %617  ;;  %v5941_v41 = vpop.permute.xlu0 %629 }
 0x26f   : > { %9363 = vst [vmem:[#allocation19_spill] sm:$0xff] %v5941_v41 }
 0x270   : > { %1139 = vrot.lane.b32.xlu0 %v1135_v42, %s9361_s0  ;;  %1127 = vrot.lane.b32.xlu1 %v1122_v43, %s9361_s0  ;;  %v1233_v42 = vmul.f32 %v1232_v35, %v5980_v60  ;;  %v1220_v43 = vmul.f32 %v1218_v28, %v5993_v7  ;;  %v1275_v28 = vmul.f32 %v1274_v9, %v6028_v46 }
 0x272   : > { %v5952_v47 = vpop.permute.xlu1 %631  ;;  %v5954_v12 = vpop.permute.xlu0 %643 }
 0x273   : > { %9365 = vst [vmem:[#allocation21_spill] sm:$0xff] %v5952_v47 }
 0x274   : > { %1153 = vrot.lane.b32.xlu0 %v1149_v48, %s9361_s0  ;;  %1141 = vrot.lane.b32.xlu1 %v1136_v44, %s9361_s0  ;;  %v1246_v48 = vstv %s6007_s22  ;;  %s6114_s22 = sld [smem:[#allocation8 + $0x34]] }
 0x276   : > { %v5963_v17 = vpop.permute.xlu1 %645  ;;  %v5965_v50 = vpop.permute.xlu0 %657 }
 0x278   : > { %1167 = vrot.lane.b32.xlu0 %v1163_v52, %s9361_s0  ;;  %1155 = vrot.lane.b32.xlu1 %v1150_v53, %s9361_s0  ;;  %v1247_v52 = vmul.f32 %v1246_v48, %v6028_v46  ;;  %v1234_v53 = vmul.f32 %v1232_v35, %v5993_v7 }
 0x27a   : > { %v5974_v57 = vpop.permute.xlu1 %659  ;;  %v5976_v54 = vpop.permute.xlu0 %671 }
 0x27c   : > { %1181 = vrot.lane.b32.xlu0 %v1177_v58, %s9361_s0  ;;  %1169 = vrot.lane.b32.xlu1 %v1164_v31, %s9361_s0  ;;  %v1260_v58 = vstv %s6018_s7  ;;  %s6116_s7 = sld [smem:[#allocation8 + $0x35]] }
 0x27e   : > { %v5987_v1 = vpop.permute.xlu1 %673  ;;  %v5989_v2 = vpop.permute.xlu0 %685 }
 0x27f   : > { %9366 = vst [vmem:[#allocation22_spill] sm:$0xff] %v5987_v1  ;;  %9367 = vst [vmem:[#allocation23_spill] sm:$0xff] %v5989_v2  ;;  %v1456_v1 = vstv %s6135_s2  ;;  %s6221_s2 = sld [smem:[#allocation8 + $0x3b]] }
 0x280   : > { %1195 = vrot.lane.b32.xlu0 %v1191_v3, %s9361_s0  ;;  %1183 = vrot.lane.b32.xlu1 %v1178_v6, %s9361_s0  ;;  %v1261_v3 = vmul.f32 %v1260_v58, %v6028_v46  ;;  %v1248_v6 = vmul.f32 %v1246_v48, %v6041_v55  ;;  %v1276_v48 = vmul.f32 %v1274_v9, %v6041_v55 }
 0x282   : > { %v6000_v14 = vpop.permute.xlu1 %687  ;;  %v6002_v0 = vpop.permute.xlu0 %699 }
 0x283   : > { %9368 = vst [vmem:[#allocation24_spill] sm:$0xff] %v6000_v14 }
 0x284   : > { %1209 = vrot.lane.b32.xlu0 %v1205_v19, %s9361_s0  ;;  %1197 = vrot.lane.b32.xlu1 %v1192_v26, %s9361_s0 }
 0x286   : > { %v6011_v29 = vpop.permute.xlu1 %701  ;;  %v6013_v32 = vpop.permute.xlu0 %713 }
 0x288   : > { %1223 = vrot.lane.b32.xlu0 %v1219_v33, %s9361_s0  ;;  %1211 = vrot.lane.b32.xlu1 %v1206_v23, %s9361_s0  ;;  %v1262_v33 = vmul.f32 %v1260_v58, %v6041_v55  ;;  %v1288_v23 = vstv %s4805_s29  ;;  %s6120_s29 = sld [smem:[#allocation8 + $0x37]] }
 0x28a   : > { %v6022_v36 = vpop.permute.xlu1 %715  ;;  %v6024_v61 = vpop.permute.xlu0 %727 }
 0x28b   : > { %9369 = vst [vmem:[#allocation25_spill] sm:$0xff] %v6022_v36  ;;  %9370 = vst [vmem:[#allocation26_spill] sm:$0xff] %v6024_v61 }
 0x28c   : > { %1237 = vrot.lane.b32.xlu0 %v1233_v42, %s9361_s0  ;;  %1225 = vrot.lane.b32.xlu1 %v1220_v43, %s9361_s0  ;;  %v1289_v43 = vmul.f32 %v1288_v23, %v6028_v46 }
 0x28e   : > { %v6035_v44 = vpop.permute.xlu1 %729  ;;  %v6037_v49 = vpop.permute.xlu0 %741 }
 0x28f   : > { %9371 = vst [vmem:[#allocation27_spill] sm:$0xff] %v6035_v44  ;;  %9372 = vst [vmem:[#allocation28_spill] sm:$0xff] %v6037_v49  ;;  %v988_v49 = vstv %s6093_s10  ;;  %v1400_v44 = vstv %s6110_s19  ;;  %s6324_s10 = sld [smem:[#allocation8 + $0x3d]]  ;;  %s4841_s19 = sld [smem:[#allocation8 + $0x73]] }
 0x290   : > { %1251 = vrot.lane.b32.xlu0 %v1247_v52, %s9361_s0  ;;  %1239 = vrot.lane.b32.xlu1 %v1234_v53, %s9361_s0  ;;  %v1302_v52 = vstv %s6053_s6  ;;  %s6128_s6 = sld [smem:[#allocation8 + $0x58]]  ;;  %v1401_v47 = vmul.f32 %v1400_v44, %v5932_v37 }
 0x292   : > { %v6046_v31 = vpop.permute.xlu1 %743  ;;  %v6048_v62 = vpop.permute.xlu0 %755 }
 0x293   : > { %9373 = vst [vmem:[#allocation29_spill] sm:$0xff] %v6046_v31  ;;  %v982_v31 = vstv %s6091_s17  ;;  %s6274_s17 = sld [smem:[#allocation8 + $0x5d]] }
 0x294   : > { %1265 = vrot.lane.b32.xlu0 %v1261_v3, %s9361_s0  ;;  %1253 = vrot.lane.b32.xlu1 %v1248_v6, %s9361_s0  ;;  %v1303_v3 = vmul.f32 %v1302_v52, %v5884_v8  ;;  %v1290_v6 = vmul.f32 %v1288_v23, %v6041_v55  ;;  %v1304_v23 = vmul.f32 %v1302_v52, %v5897_v15 }
 0x296   : > { %v6057_v19 = vpop.permute.xlu1 %757  ;;  %v6059_v26 = vpop.permute.xlu0 %769 }
 0x297   : > { %9374 = vst [vmem:[#allocation30_spill] sm:$0xff] %v6057_v19  ;;  %9375 = vst [vmem:[#allocation31_spill] sm:$0xff] %v6059_v26 }
 0x298   : > { %1279 = vrot.lane.b32.xlu0 %v1275_v28, %s9361_s0  ;;  %1267 = vrot.lane.b32.xlu1 %v1262_v33, %s9361_s0  ;;  %v1316_v28 = vstv %s6063_s8  ;;  %s6130_s8 = sld [smem:[#allocation8 + $0x59]] }
 0x29a   : > { %v6067_v35 = vpop.permute.xlu1 %771  ;;  %v6069_v42 = vpop.permute.xlu0 %783 }
 0x29b   : > { %9376 = vst [vmem:[#allocation32_spill] sm:$0xff] %v6067_v35  ;;  %9377 = vst [vmem:[#allocation33_spill] sm:$0xff] %v6069_v42  ;;  %v1002_v42 = vstv %s6114_s22  ;;  %v1008_v35 = vstv %s6116_s7  ;;  %s6541_s22 = sld [smem:[#allocation8 + $0x74]]  ;;  %s6551_s7 = sld [smem:[#allocation8 + $0x75]] }
 0x29c   : > { %1293 = vrot.lane.b32.xlu0 %v1289_v43, %s9361_s0  ;;  %1281 = vrot.lane.b32.xlu1 %v1276_v48, %s9361_s0  ;;  %v1317_v43 = vmul.f32 %v1316_v28, %v5884_v8  ;;  %v1330_v48 = vstv %s6074_s28  ;;  %s6133_s28 = sld [smem:[#allocation8 + $0x5a]]  ;;  %v6204_v26 = vmul.f32 %v1002_v42, %v5932_v37 }
 0x29e   : > { %v6078_v53 = vpop.permute.xlu1 %785  ;;  %v6080_v58 = vpop.permute.xlu0 %797  ;;  %v1428_v61 = vstv %s6130_s8  ;;  %9390 = vst [vmem:[#allocation46_spill] sm:$0xff] %v6204_v26  ;;  %v6226_v26 = vmul.f32 %v982_v31, %v5884_v8  ;;  %s6593_s8 = sld [smem:[#allocation8 + $0x79]] }
 0x29f   : > { %9378 = vst [vmem:[#allocation34_spill] sm:$0xff] %v6078_v53  ;;  %9379 = vst [vmem:[#allocation35_spill] sm:$0xff] %v6080_v58  ;;  %v1332_v58 = vmul.f32 %v1330_v48, %v5897_v15  ;;  %v1358_v53 = vstv %s6103_s23  ;;  %s6400_s23 = sld [smem:[#allocation8 + $0x3f]] }
 0x2a0   : > { %1307 = vrot.lane.b32.xlu0 %v1303_v3, %s9362_s30  ;;  %1295 = vrot.lane.b32.xlu1 %v1290_v6, %s9361_s0  ;;  %v1318_v6 = vmul.f32 %v1316_v28, %v5897_v15  ;;  %9393 = vst [vmem:[#allocation49_spill] sm:$0xff] %v6226_v26 }
 0x2a2   : > { %v6097_v9 = vpop.permute.xlu1 %799  ;;  %v6099_v33 = vpop.permute.xlu0 %811  ;;  %v1442_v36 = vstv %s6133_s28  ;;  %s4848_s28 = sld [smem:[#allocation8 + $0x7a]] }
 0x2a3   : > { %9380 = vst [vmem:[#allocation36_spill] sm:$0xff] %v6097_v9  ;;  %v1331_v9 = vmul.f32 %v1330_v48, %v5884_v8  ;;  %v1386_v48 = vstv %s6108_s26  ;;  %s4840_s26 = sld [smem:[#allocation8 + $0x72]] }
 0x2a4   : > { %1309 = vrot.lane.b32.xlu1 %v1304_v23, %s9362_s30  ;;  %1321 = vrot.lane.b32.xlu0 %v1317_v43, %s9362_s30  ;;  %v1344_v23 = vstv %s6085_s4  ;;  %s6159_s4 = sld [smem:[#allocation8 + $0x5c]] }
 0x2a6   : > { %v6122_v52 = vpop.permute.xlu1 %813  ;;  %v6124_v3 = vpop.permute.xlu0 %825 }
 0x2a7   : > { %9381 = vst [vmem:[#allocation37_spill] sm:$0xff] %v6122_v52  ;;  %9382 = vst [vmem:[#allocation38_spill] sm:$0xff] %v6124_v3  ;;  %v1014_v3 = vstv %s6118_s27  ;;  %s4844_s27 = sld [smem:[#allocation8 + $0x76]] }
 0x2a8   : > { %1323 = vrot.lane.b32.xlu1 %v1318_v6, %s9362_s30  ;;  %1335 = vrot.lane.b32.xlu0 %v1331_v9, %s9362_s30  ;;  %v1345_v6 = vmul.f32 %v1344_v23, %v5884_v8  ;;  %v976_v9 = vstv %s6089_s11  ;;  %s6180_s11 = sld [smem:[#allocation8 + $0x3c]]  ;;  %v6252_v26 = vmul.f32 %v1014_v3, %v5932_v37 }
 0x2aa   : > { %v6145_v28 = vpop.permute.xlu1 %827  ;;  %v6147_v43 = vpop.permute.xlu0 %839  ;;  %9396 = vst [vmem:[#allocation52_spill] sm:$0xff] %v6252_v26  ;;  %v538_v26 = vadd.f32 %v5868_v25, %v5726_v10 }
 0x2ab   : > { %9383 = vst [vmem:[#allocation39_spill] sm:$0xff] %v6145_v28  ;;  %9384 = vst [vmem:[#allocation40_spill] sm:$0xff] %v6147_v43  ;;  %v1372_v28 = vstv %s6105_s1  ;;  %v1414_v43 = vstv %s6128_s6  ;;  %s6439_s1 = sld [smem:[#allocation8 + $0x5f]]  ;;  %s6583_s6 = sld [smem:[#allocation8 + $0x78]] }
 0x2ac   : > { %1337 = vrot.lane.b32.xlu1 %v1332_v58, %s9362_s30  ;;  %1349 = vrot.lane.b32.xlu0 %v1345_v6, %s9362_s30  ;;  %v1346_v58 = vmul.f32 %v1344_v23, %v5897_v15  ;;  %v1359_v6 = vmul.f32 %v1358_v53, %v5932_v37  ;;  %v1373_v23 = vmul.f32 %v1372_v28, %v5932_v37 }
 0x2ad   : > { %v1374_v41 = vmul.f32 %v1372_v28, %v5945_v21  ;;  %v6201_v28 = vmul.f32 %v976_v9, %v5884_v8 }
 0x2ae   : > { %v6165_v14 = vpop.permute.xlu1 %841  ;;  %v6167_v2 = vpop.permute.xlu0 %853 }
 0x2af   : > { %9385 = vst [vmem:[#allocation41_spill] sm:$0xff] %v6165_v14  ;;  %9386 = vst [vmem:[#allocation42_spill] sm:$0xff] %v6167_v2  ;;  %v1360_v2 = vmul.f32 %v1358_v53, %v5945_v21  ;;  %v6195_v14 = vmul.f32 %v1400_v44, %v5945_v21  ;;  %v6198_v53 = vmul.f32 %v1414_v43, %v5980_v60 }
 0x2b0   : > { %1351 = vrot.lane.b32.xlu1 %v1346_v58, %s9362_s30  ;;  %1363 = vrot.lane.b32.xlu0 %v1359_v6, %s9362_s30  ;;  %v1387_v58 = vmul.f32 %v1386_v48, %v5932_v37  ;;  %v1388_v6 = vmul.f32 %v1386_v48, %v5945_v21  ;;  %9389 = vst [vmem:[#allocation45_spill] sm:$0xff] %v6201_v28  ;;  %v1470_v28 = vstv %s6159_s4  ;;  %s4849_s4 = sld [smem:[#allocation8 + $0x7b]] }
 0x2b1   : > { %v6212_v48 = vmul.f32 %v1428_v61, %v5980_v60  ;;  %v6215_v44 = vmul.f32 %v976_v9, %v5897_v15  ;;  %v6294_v10 = vmul.f32 %v1470_v28, %v6028_v46 }
 0x2b2   : > { %v6187_v52 = vpop.permute.xlu1 %855  ;;  %v6189_v19 = vpop.permute.xlu0 %867 }
 0x2b3   : > { %9387 = vst [vmem:[#allocation43_spill] sm:$0xff] %v6187_v52  ;;  %9388 = vst [vmem:[#allocation44_spill] sm:$0xff] %v6189_v19  ;;  %v6207_v52 = vmul.f32 %v1414_v43, %v5993_v7  ;;  %v6218_v19 = vmul.f32 %v1002_v42, %v5945_v21  ;;  %v537_v43 = vadd.f32 %v5860_v59, %v5744_v22 }
 0x2b4   : > { %1365 = vrot.lane.b32.xlu1 %v1360_v2, %s9362_s30  ;;  %1377 = vrot.lane.b32.xlu0 %v1373_v23, %s9362_s30  ;;  %9391 = vst [vmem:[#allocation47_spill] sm:$0xff] %v6215_v44  ;;  %v6229_v2 = vmul.f32 %v1008_v35, %v5932_v37  ;;  %v6232_v23 = vmul.f32 %v1428_v61, %v5993_v7 }
 0x2b5   : > { %9392 = vst [vmem:[#allocation48_spill] sm:$0xff] %v6218_v19  ;;  %v6239_v19 = vmul.f32 %v1442_v36, %v5980_v60  ;;  %v6242_v22 = vmul.f32 %v982_v31, %v5897_v15  ;;  %v6245_v59 = vmul.f32 %v1008_v35, %v5945_v21  ;;  %v593_v61 = vadd.f32 %v5906_v16, %v537_v43 }
 0x2b6   : > { %9394 = vst [vmem:[#allocation50_spill] sm:$0xff] %v6229_v2  ;;  %v6234_v9 = vpop.permute.xlu1 %869  ;;  %v6236_v42 = vpop.permute.xlu0 %881  ;;  %v6248_v2 = vmul.f32 %v988_v49, %v5884_v8  ;;  %v6255_v44 = vmul.f32 %v1442_v36, %v5993_v7  ;;  %v6263_v31 = vmul.f32 %v988_v49, %v5897_v15  ;;  %v6266_v16 = vmul.f32 %v1014_v3, %v5945_v21 }
 0x2b7   : > { %9395 = vst [vmem:[#allocation51_spill] sm:$0xff] %v6239_v19  ;;  %v6258_v19 = vmul.f32 %v1456_v1, %v5980_v60  ;;  %v9397_v35 = vstv %s6095_s20  ;;  %v1054_v36 = vstv %s6180_s11  ;;  %v9398_v49 = vstv %s6120_s29  ;;  %s6625_s11 = sld [smem:[#allocation8 + $0x7c]] }
 0x2b8   : > { %1379 = vrot.lane.b32.xlu1 %v1374_v41, %s9362_s30  ;;  %1391 = vrot.lane.b32.xlu0 %v1387_v58, %s9362_s30  ;;  %v6271_v43 = vmul.f32 %v9397_v35, %v5884_v8  ;;  %v551_v41 = vadd.f32 %v5870_v63, %v5747_v27  ;;  %v649_v58 = vadd.f32 %v5954_v12, %v593_v61  ;;  %v9400_v27 = vstv %s6095_s20  ;;  %s6380_s20 = sld [smem:[#allocation8 + $0x3e]] }
 0x2b9   : > { %v6284_v3 = vmul.f32 %v9398_v49, %v5932_v37  ;;  %v6291_v35 = vmul.f32 %v1456_v1, %v5993_v7  ;;  %v6299_v25 = vmul.f32 %v9400_v27, %v5897_v15  ;;  %v9401_v63 = vstv %s6139_s21  ;;  %s6357_s21 = sld [smem:[#allocation8 + $0x5e]] }
 0x2ba   : > { %v6286_v21 = vpop.permute.xlu1 %883  ;;  %v6288_v8 = vpop.permute.xlu0 %895  ;;  %v6304_v12 = vmul.f32 %v9401_v63, %v5980_v60  ;;  %v594_v37 = vadd.f32 %v5915_v40, %v538_v26  ;;  %v607_v61 = vadd.f32 %v5917_v30, %v551_v41  ;;  %v705_v49 = vadd.f32 %v6002_v0, %v649_v58 }
 0x2bb   : > { %9399 = vst [vmem:[#allocation53_spill] sm:$0xff] %v6284_v3  ;;  %v6310_v1 = vmul.f32 %v1054_v36, %v6028_v46  ;;  %v552_v3 = vadd.f32 %v5878_v4, %v5738_v18  ;;  %v6317_v15 = vmul.f32 %v1470_v28, %v6041_v55  ;;  %v9402_v27 = vmov %v9401_v63 }
 0x2bc   : > { %1393 = vrot.lane.b32.xlu1 %v1388_v6, %s9362_s30  ;;  %1405 = vrot.lane.b32.xlu0 %v1401_v47, %s9362_s30  ;;  %v6322_v40 = vmul.f32 %v9402_v27, %v5993_v7  ;;  %v1046_v30 = vstv %s6221_s2  ;;  %v565_v0 = vadd.f32 %v5880_v5, %v5763_v39  ;;  %v650_v26 = vadd.f32 %v5963_v17, %v594_v37  ;;  %v9409_v37 = vld [vmem:[#allocation25_spill] sm:$0xff]  ;;  %v9410_v27 = vld [vmem:[#allocation26_spill] sm:$0xff]  ;;  %s6635_s2 = sld [smem:[#allocation8 + $0x7d]] }
 0x2bd   : > { %v663_v18 = vadd.f32 %v5965_v50, %v607_v61  ;;  %v761_v4 = vadd.f32 %v6048_v62, %v705_v49  ;;  %v566_v47 = vadd.f32 %v5891_v11, %v5770_v45  ;;  %v579_v6 = vadd.f32 %v5893_v13, %v5777_v51  ;;  %v9404_v62 = vld [vmem:[#allocation31_spill] sm:$0xff] }
 0x2be   : > { %v608_v28 = vadd.f32 %v5926_v34, %v552_v3  ;;  %v6337_v41 = vpop.permute.xlu1 %897  ;;  %v6339_v58 = vpop.permute.xlu0 %909  ;;  %v6342_v39 = vmul.f32 %v1054_v36, %v6041_v55  ;;  %v621_v5 = vadd.f32 %v5928_v56, %v565_v0  ;;  %v706_v17 = vadd.f32 %v6011_v29, %v650_v26  ;;  %v9403_v29 = vld [vmem:[#allocation30_spill] sm:$0xff]  ;;  %v9407_v36 = vld [vmem:[#allocation21_spill] sm:$0xff] }
 0x2bf   : > { %v719_v50 = vadd.f32 %v6013_v32, %v663_v18  ;;  %v817_v45 = vadd.f32 %v6099_v33, %v761_v4  ;;  %v580_v51 = vadd.f32 %v5904_v20, %v5779_v24  ;;  %v622_v11 = vadd.f32 %v5939_v38, %v566_v47  ;;  %v9405_v24 = vld [vmem:[#allocation44_spill] sm:$0xff]  ;;  %v9406_v38 = vld [vmem:[#allocation19_spill] sm:$0xff]  ;;  %v9411_v0 = vld [vmem:[#allocation37_spill] sm:$0xff] }
 0x2c0   : > { %v664_v13 = vadd.f32 %v5974_v57, %v608_v28  ;;  %1407 = vrot.lane.b32.xlu1 %v6195_v14, %s9362_s30  ;;  %1419 = vrot.lane.b32.xlu0 %v6198_v53, %s9362_s30  ;;  %v1484_v34 = vstv %s6274_s17  ;;  %v677_v56 = vadd.f32 %v5976_v54, %v621_v5  ;;  %v762_v32 = vadd.f32 %v9403_v29, %v706_v17  ;;  %v9408_v14 = vld [vmem:[#allocation22_spill] sm:$0xff]  ;;  %v9413_v28 = vld [vmem:[#allocation23_spill] sm:$0xff]  ;;  %v9414_v17 = vld [vmem:[#allocation24_spill] sm:$0xff]  ;;  %s4852_s17 = sld [smem:[#allocation8 + $0x7e]] }
 0x2c1   : > { %v775_v33 = vadd.f32 %v9404_v62, %v719_v50  ;;  %v873_v20 = vadd.f32 %v9405_v24, %v817_v45  ;;  %v635_v57 = vadd.f32 %v9406_v38, %v579_v6  ;;  %v636_v3 = vadd.f32 %v9407_v36, %v580_v51  ;;  %v9412_v18 = vld [vmem:[#allocation38_spill] sm:$0xff]  ;;  %v9415_v50 = vld [vmem:[#allocation32_spill] sm:$0xff]  ;;  %v9421_v36 = vld [vmem:[#allocation39_spill] sm:$0xff] }
 0x2c2   : > { %v678_v63 = vadd.f32 %v9408_v14, %v622_v11  ;;  %v720_v53 = vadd.f32 %v9409_v37, %v664_v13  ;;  %v6367_v61 = vpop.permute.xlu1 %911  ;;  %v924_v49 = vpop.permute.xlu0 %923  ;;  %v733_v54 = vadd.f32 %v9410_v27, %v677_v56  ;;  %v818_v26 = vadd.f32 %v9411_v0, %v762_v32  ;;  %v9416_v11 = vld [vmem:[#allocation33_spill] sm:$0xff]  ;;  %v9422_v37 = vld [vmem:[#allocation40_spill] sm:$0xff] }
 0x2c3   : > { %v831_v4 = vadd.f32 %v9412_v18, %v775_v33  ;;  %v929_v47 = vadd.f32 %v924_v49, %v873_v20  ;;  %v691_v5 = vadd.f32 %v9413_v28, %v635_v57  ;;  %v692_v6 = vadd.f32 %v9414_v17, %v636_v3  ;;  %v9417_v32 = vld [vmem:[#allocation45_spill] sm:$0xff]  ;;  %v9418_v33 = vld [vmem:[#allocation27_spill] sm:$0xff]  ;;  %v9419_v20 = vld [vmem:[#allocation28_spill] sm:$0xff] }
 0x2c4   : > { %v776_v45 = vadd.f32 %v9415_v50, %v720_v53  ;;  %1421 = vrot.lane.b32.xlu1 %v6207_v52, %s9362_s30  ;;  %1433 = vrot.lane.b32.xlu0 %v6212_v48, %s9362_s30  ;;  %v1060_v51 = vstv %s6324_s10  ;;  %v789_v13 = vadd.f32 %v9416_v11, %v733_v54  ;;  %v874_v56 = vadd.f32 %v6234_v9, %v818_v26  ;;  %v9420_v52 = vld [vmem:[#allocation29_spill] sm:$0xff]  ;;  %v9423_v49 = vld [vmem:[#allocation46_spill] sm:$0xff]  ;;  %v9425_v26 = vld [vmem:[#allocation35_spill] sm:$0xff]  ;;  %s4853_s10 = sld [smem:[#allocation8 + $0x7f]] }
 0x2c5   : > { %v887_v29 = vadd.f32 %v6236_v42, %v831_v4  ;;  %v979_v62 = vadd.f32 %v9417_v32, %v929_v47  ;;  %v734_v24 = vadd.f32 %v9418_v33, %v678_v63  ;;  %v747_v38 = vadd.f32 %v9419_v20, %v691_v5  ;;  %v9424_v42 = vld [vmem:[#allocation34_spill] sm:$0xff]  ;;  %v9426_v4 = vld [vmem:[#allocation51_spill] sm:$0xff]  ;;  %v9429_v11 = vld [vmem:[#allocation36_spill] sm:$0xff] }
 0x2c6   : > { %v748_v57 = vadd.f32 %v9420_v52, %v692_v6  ;;  %v832_v48 = vadd.f32 %v9421_v36, %v776_v45  ;;  %v926_v3 = vpop.permute.xlu1 %925  ;;  %v938_v14 = vpop.permute.xlu0 %937  ;;  %v845_v53 = vadd.f32 %v9422_v37, %v789_v13  ;;  %v1498_v47 = vstv %s6357_s21  ;;  %v9427_v5 = vld [vmem:[#allocation47_spill] sm:$0xff]  ;;  %v9428_v6 = vld [vmem:[#allocation49_spill] sm:$0xff]  ;;  %v9433_v20 = vld [vmem:[#allocation48_spill] sm:$0xff]  ;;  %s6667_s21 = sld [smem:[#allocation8 + $0x80]] }
 0x2c7   : > { %v1005_v27 = vadd.f32 %v9423_v49, %v979_v62  ;;  %v930_v9 = vadd.f32 %v926_v3, %v874_v56  ;;  %v943_v54 = vadd.f32 %v938_v14, %v887_v29  ;;  %v790_v0 = vadd.f32 %v9424_v42, %v734_v24  ;;  %v9430_v13 = vld [vmem:[#allocation41_spill] sm:$0xff] }
 0x2c8   : > { %v803_v18 = vadd.f32 %v9425_v26, %v747_v38  ;;  %v888_v63 = vadd.f32 %v6286_v21, %v832_v48  ;;  %1435 = vrot.lane.b32.xlu1 %v6232_v23, %s9362_s30  ;;  %1447 = vrot.lane.b32.xlu0 %v9426_v4, %s9362_s30  ;;  %v901_v28 = vadd.f32 %v6288_v8, %v845_v53  ;;  %v9431_v23 = vld [vmem:[#allocation42_spill] sm:$0xff]  ;;  %v9432_v33 = vstv %s6141_s14  ;;  %s6471_s14 = sld [smem:[#allocation8 + $0x70]] }
 0x2c9   : > { %v980_v17 = vadd.f32 %v9427_v5, %v930_v9  ;;  %v985_v50 = vadd.f32 %v9428_v6, %v943_v54  ;;  %v1031_v45 = vadd.f32 %v6304_v12, %v1005_v27  ;;  %v804_v21 = vadd.f32 %v9429_v11, %v748_v57  ;;  %v9434_v38 = vld [vmem:[#allocation50_spill] sm:$0xff] }
 0x2ca   : > { %v846_v56 = vadd.f32 %v9430_v13, %v790_v0  ;;  %v859_v29 = vadd.f32 %v9431_v23, %v803_v18  ;;  %v940_v32 = vpop.permute.xlu1 %939  ;;  %v952_v62 = vpop.permute.xlu0 %951  ;;  %v1035_v24 = vmul.f32 %v9432_v33, %v5980_v60  ;;  %v1066_v14 = vstv %s6380_s20  ;;  %v9440_v13 = vld [vmem:[#allocation53_spill] sm:$0xff]  ;;  %s6677_s20 = sld [smem:[#allocation8 + $0x81]] }
 0x2cb   : > { %v1006_v8 = vadd.f32 %v9433_v20, %v980_v17  ;;  %v1011_v52 = vadd.f32 %v9434_v38, %v985_v50  ;;  %v944_v36 = vadd.f32 %v940_v32, %v888_v63  ;;  %v957_v12 = vadd.f32 %v952_v62, %v901_v28 }
 0x2cc   : > { %v902_v57 = vadd.f32 %v6337_v41, %v846_v56  ;;  %v915_v48 = vadd.f32 %v6339_v58, %v859_v29  ;;  %1449 = vrot.lane.b32.xlu1 %v6255_v44, %s9362_s30  ;;  %1461 = vrot.lane.b32.xlu0 %v6258_v19, %s9362_s30  ;;  %v6421_v3 = vadd.f32 %v6310_v1, %v1031_v45  ;;  %v9435_v41 = vld [vmem:[#allocation43_spill] sm:$0xff]  ;;  %v9437_v42 = vstv %s6143_s13  ;;  %v9441_v29 = vld [vmem:[#allocation20_spill] sm:$0xff]  ;;  %s6502_s13 = sld [smem:[#allocation8 + $0x71]] }
 0x2cd   : > { %v986_v37 = vadd.f32 %v6242_v22, %v944_v36  ;;  %v991_v53 = vadd.f32 %v6248_v2, %v957_v12  ;;  %v1032_v49 = vadd.f32 %v6322_v40, %v1006_v8  ;;  %v1037_v27 = vadd.f32 %v1035_v24, %v1011_v52  ;;  %v9438_v2 = vld [vmem:[#allocation52_spill] sm:$0xff] }
 0x2ce   : > { %v860_v9 = vadd.f32 %v9435_v41, %v804_v21  ;;  %v954_v58 = vpop.permute.xlu1 %953  ;;  %v966_v54 = vpop.permute.xlu0 %965  ;;  %v1061_v44 = vmul.f32 %v1060_v51, %v6028_v46  ;;  %v9436_v19 = vmov %v9432_v33  ;;  %v1041_v0 = vmul.f32 %v9437_v42, %v5980_v60 }
 0x2cf   : > { %v1036_v1 = vmul.f32 %v9436_v19, %v5993_v7  ;;  %v1012_v22 = vadd.f32 %v6245_v59, %v986_v37  ;;  %v1017_v26 = vadd.f32 %v9438_v2, %v991_v53  ;;  %v958_v40 = vadd.f32 %v954_v58, %v902_v57  ;;  %v6530_v19 = vld [vmem:[#allocation2 + $0xa] sm:$0xff] }
 0x2d0   : > { %v971_v18 = vadd.f32 %v966_v54, %v915_v48  ;;  %v916_v63 = vadd.f32 %v6367_v61, %v860_v9  ;;  %1463 = vrot.lane.b32.xlu1 %v6291_v35, %s9362_s30  ;;  %1475 = vrot.lane.b32.xlu0 %v6294_v10, %s9362_s30  ;;  %v6447_v4 = vadd.f32 %v6342_v39, %v1032_v49  ;;  %v1072_v28 = vstv %s6400_s23  ;;  %s6688_s23 = sld [smem:[#allocation8 + $0x82]] }
 0x2d1   : > { %v6449_v59 = vadd.f32 %v1061_v44, %v1037_v27  ;;  %v992_v5 = vadd.f32 %v6263_v31, %v958_v40  ;;  %v1038_v6 = vadd.f32 %v1036_v1, %v1012_v22  ;;  %v1043_v61 = vadd.f32 %v1041_v0, %v1017_v26 }
 0x2d2   : > { %v997_v17 = vadd.f32 %v6271_v43, %v971_v18  ;;  %v968_v50 = vpop.permute.xlu1 %967  ;;  %v6454_v45 = vpop.permute.xlu0 %1083  ;;  %v1485_v35 = vmul.f32 %v1484_v34, %v6028_v46  ;;  %v1062_v10 = vmul.f32 %v1060_v51, %v6041_v55  ;;  %v1067_v39 = vmul.f32 %v1066_v14, %v6028_v46 }
 0x2d3   : > { %v9439_v11 = vmov %v9437_v42  ;;  %v1018_v31 = vadd.f32 %v6266_v16, %v992_v5  ;;  %v972_v56 = vadd.f32 %v968_v50, %v916_v63  ;;  %v1047_v23 = vmul.f32 %v1046_v30, %v5980_v60 }
 0x2d4   : > { %v1042_v21 = vmul.f32 %v9439_v11, %v5993_v7  ;;  %v1023_v43 = vadd.f32 %v9440_v13, %v997_v17  ;;  %v9442_v32 = vstv %s6120_s29  ;;  %1477 = vrot.lane.b32.xlu1 %v6317_v15, %s9362_s30  ;;  %1489 = vrot.lane.b32.xlu0 %v1485_v35, %s9362_s30  ;;  %v6479_v16 = vadd.f32 %v1062_v10, %v1038_v6  ;;  %s4845_s29 = sld [smem:[#allocation8 + $0x77]] }
 0x2d5   : > { %v1022_v51 = vmul.f32 %v9442_v32, %v9441_v29  ;;  %v6481_v62 = vadd.f32 %v1067_v39, %v1043_v61  ;;  %v998_v33 = vadd.f32 %v6299_v25, %v972_v56  ;;  %v1068_v60 = vmul.f32 %v1066_v14, %v6041_v55  ;;  %v6561_v61 = vld [vmem:[#allocation2 + $0x1a] sm:$0xff] }
 0x2d6   : > { %v1044_v24 = vadd.f32 %v1042_v21, %v1018_v31  ;;  %v1049_v20 = vadd.f32 %v1047_v23, %v1023_v43  ;;  %v6485_v8 = vpop.permute.xlu1 %1085  ;;  %v6487_v38 = vpop.permute.xlu0 %1097  ;;  %v1486_v15 = vmul.f32 %v1484_v34, %v6041_v55  ;;  %v1499_v52 = vmul.f32 %v1498_v47, %v6028_v46  ;;  %v6572_v21 = vld [vmem:[#allocation2 + $0x22] sm:$0xff] }
 0x2d7   : > { %v1073_v36 = vmul.f32 %v1072_v28, %v6028_v46  ;;  %v1024_v12 = vadd.f32 %v1022_v51, %v998_v33  ;;  %v1512_v25 = vstv %s6439_s1  ;;  %v1048_v48 = vmul.f32 %v1046_v30, %v5993_v7  ;;  %v6517_v30 = vld [vmem:[#allocation2 + $0x2] sm:$0xff]  ;;  %9444 = vst [vmem:[#allocation31_spill] sm:$0xff] %v6572_v21  ;;  %s6699_s1 = sld [smem:[#allocation8 + $0x83]] }
 0x2d8   : > { %v6497_v57 = vadd.f32 %v1068_v60, %v1044_v24  ;;  %1491 = vrot.lane.b32.xlu1 %v1486_v15, %s9362_s30  ;;  %1503 = vrot.lane.b32.xlu0 %v1499_v52, %s9362_s30  ;;  %v1074_v14 = vmul.f32 %v1072_v28, %v6041_v55  ;;  %v1500_v27 = vmul.f32 %v1498_v47, %v6041_v55  ;;  %v1630_v41 = vstv %s6471_s14  ;;  %s6703_s14 = sld [smem:[#allocation8 + $0x60]] }
 0x2d9   : > { %v6506_v34 = vadd.f32 %v1073_v36, %v1049_v20  ;;  %v1050_v37 = vadd.f32 %v1048_v48, %v1024_v12  ;;  %v1513_v7 = vmul.f32 %v1512_v25, %v6028_v46  ;;  %v1514_v44 = vmul.f32 %v1512_v25, %v6041_v55  ;;  %v6603_v12 = vld [vmem:[#allocation2 + $0x32] sm:$0xff] }
 0x2da   : > { %v6509_v53 = vpop.permute.xlu1 %1099  ;;  %v6511_v49 = vpop.permute.xlu0 %1111  ;;  %v1631_v47 = vmul.f32 %v1630_v41, %v6517_v30  ;;  %v1644_v46 = vstv %s6502_s13  ;;  %v1632_v0 = vmul.f32 %v1630_v41, %v6530_v19  ;;  %v1658_v2 = vstv %s4840_s26  ;;  %s6705_s13 = sld [smem:[#allocation8 + $0x61]]  ;;  %s6707_s26 = sld [smem:[#allocation8 + $0x62]] }
 0x2db   : > { %v6520_v9 = vadd.f32 %v1074_v14, %v1050_v37  ;;  %v1645_v22 = vmul.f32 %v1644_v46, %v6517_v30  ;;  %v1646_v40 = vmul.f32 %v1644_v46, %v6530_v19  ;;  %v1659_v18 = vmul.f32 %v1658_v2, %v6517_v30 }
 0x2dc   : > { %1505 = vrot.lane.b32.xlu1 %v1500_v27, %s9362_s30  ;;  %1517 = vrot.lane.b32.xlu0 %v1513_v7, %s9362_s30  ;;  %v1672_v63 = vstv %s4841_s19  ;;  %v1660_v17 = vmul.f32 %v1658_v2, %v6530_v19  ;;  %v1686_v50 = vstv %s6541_s22  ;;  %v6614_v7 = vld [vmem:[#allocation2 + $0x3a] sm:$0xff]  ;;  %s6709_s19 = sld [smem:[#allocation8 + $0x63]]  ;;  %s6717_s22 = sld [smem:[#allocation8 + $0x84]] }
 0x2dd   : > { %v1673_v6 = vmul.f32 %v1672_v63, %v6517_v30  ;;  %v1674_v39 = vmul.f32 %v1672_v63, %v6530_v19  ;;  %v1687_v11 = vmul.f32 %v1686_v50, %v6561_v61  ;;  %v1700_v31 = vstv %s6551_s7  ;;  %s6719_s7 = sld [smem:[#allocation8 + $0x85]] }
 0x2de   : > { %v6524_v58 = vpop.permute.xlu1 %1113  ;;  %v6526_v54 = vpop.permute.xlu0 %1125  ;;  %v1688_v56 = vmul.f32 %v1686_v50, %v6572_v21  ;;  %v1701_v23 = vmul.f32 %v1700_v31, %v6561_v61  ;;  %v1714_v29 = vstv %s4844_s27  ;;  %v1702_v33 = vmul.f32 %v1700_v31, %v6572_v21  ;;  %v6645_v31 = vld [vmem:[#allocation2 + $0x4a] sm:$0xff]  ;;  %s6722_s27 = sld [smem:[#allocation8 + $0x86]] }
 0x2df   : > { %v1715_v60 = vmul.f32 %v1714_v29, %v6561_v61  ;;  %v1728_v24 = vstv %s4845_s29  ;;  %v1716_v52 = vmul.f32 %v1714_v29, %v6572_v21  ;;  %v1742_v25 = vstv %s6583_s6  ;;  %s6724_s29 = sld [smem:[#allocation8 + $0x87]]  ;;  %s6728_s6 = sld [smem:[#allocation8 + $0x64]] }
 0x2e0   : > { %1519 = vrot.lane.b32.xlu1 %v1514_v44, %s9362_s30  ;;  %1635 = vrot.lane.b32.xlu0 %v1631_v47, %s9361_s0  ;;  %v1729_v36 = vmul.f32 %v1728_v24, %v6561_v61  ;;  %v1730_v37 = vmul.f32 %v1728_v24, %v6572_v21  ;;  %v1743_v27 = vmul.f32 %v1742_v25, %v6603_v12  ;;  %v1756_v41 = vstv %s6593_s8  ;;  %v6656_v24 = vld [vmem:[#allocation2 + $0x52] sm:$0xff]  ;;  %s6730_s8 = sld [smem:[#allocation8 + $0x65]] }
 0x2e1   : > { %v1744_v46 = vmul.f32 %v1742_v25, %v6614_v7 }
 0x2e2   : > { %v6535_v1 = vpop.permute.xlu1 %1127  ;;  %v6537_v42 = vpop.permute.xlu0 %1139 }
 0x2e4   : > { %1637 = vrot.lane.b32.xlu1 %v1632_v0, %s9361_s0  ;;  %1649 = vrot.lane.b32.xlu0 %v1645_v22, %s9361_s0  ;;  %v1757_v0 = vmul.f32 %v1756_v41, %v6603_v12  ;;  %v1770_v22 = vstv %s4848_s28  ;;  %s6732_s28 = sld [smem:[#allocation8 + $0x66]] }
 0x2e5   : > { %v1771_v63 = vmul.f32 %v1770_v22, %v6603_v12 }
 0x2e6   : > { %v6545_v55 = vpop.permute.xlu1 %1141  ;;  %v6547_v26 = vpop.permute.xlu0 %1153 }
 0x2e8   : > { %1651 = vrot.lane.b32.xlu1 %v1646_v40, %s9361_s0  ;;  %1663 = vrot.lane.b32.xlu0 %v1659_v18, %s9361_s0  ;;  %v1758_v18 = vmul.f32 %v1756_v41, %v6614_v7  ;;  %v1826_v41 = vstv %s4852_s17  ;;  %s6747_s17 = sld [smem:[#allocation8 + $0x8a]] }
 0x2ea   : > { %v6555_v28 = vpop.permute.xlu1 %1155  ;;  %v6557_v5 = vpop.permute.xlu0 %1167 }
 0x2ec   : > { %1665 = vrot.lane.b32.xlu1 %v1660_v17, %s9361_s0  ;;  %1677 = vrot.lane.b32.xlu0 %v1673_v6, %s9361_s0  ;;  %v1784_v17 = vstv %s4849_s4  ;;  %s6734_s4 = sld [smem:[#allocation8 + $0x67]] }
 0x2ee   : > { %v6566_v35 = vpop.permute.xlu1 %1169  ;;  %v6568_v10 = vpop.permute.xlu0 %1181 }
 0x2ef   : > { %9443 = vst [vmem:[#allocation30_spill] sm:$0xff] %v6568_v10 }
 0x2f0   : > { %1679 = vrot.lane.b32.xlu1 %v1674_v39, %s9361_s0  ;;  %1691 = vrot.lane.b32.xlu0 %v1687_v11, %s9361_s0  ;;  %v1772_v39 = vmul.f32 %v1770_v22, %v6614_v7  ;;  %v1785_v11 = vmul.f32 %v1784_v17, %v6603_v12 }
 0x2f2   : > { %v6577_v13 = vpop.permute.xlu1 %1183  ;;  %v6579_v43 = vpop.permute.xlu0 %1195 }
 0x2f3   : > { %9445 = vst [vmem:[#allocation44_spill] sm:$0xff] %v6577_v13 }
 0x2f4   : > { %1693 = vrot.lane.b32.xlu1 %v1688_v56, %s9361_s0  ;;  %1705 = vrot.lane.b32.xlu0 %v1701_v23, %s9361_s0  ;;  %v1798_v56 = vstv %s6625_s11  ;;  %s6742_s11 = sld [smem:[#allocation8 + $0x88]] }
 0x2f6   : > { %v6587_v32 = vpop.permute.xlu1 %1197  ;;  %v6589_v51 = vpop.permute.xlu0 %1209 }
 0x2f8   : > { %1707 = vrot.lane.b32.xlu1 %v1702_v33, %s9361_s0  ;;  %1719 = vrot.lane.b32.xlu0 %v1715_v60, %s9361_s0  ;;  %v1786_v33 = vmul.f32 %v1784_v17, %v6614_v7  ;;  %v1799_v60 = vmul.f32 %v1798_v56, %v6645_v31 }
 0x2fa   : > { %v6597_v20 = vpop.permute.xlu1 %1211  ;;  %v6599_v15 = vpop.permute.xlu0 %1223 }
 0x2fc   : > { %1721 = vrot.lane.b32.xlu1 %v1716_v52, %s9361_s0  ;;  %1733 = vrot.lane.b32.xlu0 %v1729_v36, %s9361_s0  ;;  %v1812_v52 = vstv %s6635_s2  ;;  %s6744_s2 = sld [smem:[#allocation8 + $0x89]] }
 0x2fd   : > { %v1814_v22 = vmul.f32 %v1812_v52, %v6656_v24 }
 0x2fe   : > { %v6608_v48 = vpop.permute.xlu1 %1225  ;;  %v6610_v14 = vpop.permute.xlu0 %1237 }
 0x2ff   : > { %9446 = vst [vmem:[#allocation19_spill] sm:$0xff] %v6608_v48  ;;  %9447 = vst [vmem:[#allocation21_spill] sm:$0xff] %v6610_v14 }
 0x300   : > { %1735 = vrot.lane.b32.xlu1 %v1730_v37, %s9361_s0  ;;  %1747 = vrot.lane.b32.xlu0 %v1743_v27, %s9361_s0  ;;  %v1800_v37 = vmul.f32 %v1798_v56, %v6656_v24  ;;  %v1813_v27 = vmul.f32 %v1812_v52, %v6645_v31 }
 0x302   : > { %v6619_v44 = vpop.permute.xlu1 %1239  ;;  %v6621_v47 = vpop.permute.xlu0 %1251 }
 0x303   : > { %9448 = vst [vmem:[#allocation22_spill] sm:$0xff] %v6619_v44 }
 0x304   : > { %1749 = vrot.lane.b32.xlu1 %v1744_v46, %s9361_s0  ;;  %1761 = vrot.lane.b32.xlu0 %v1757_v0, %s9361_s0 }
 0x306   : > { %v6629_v2 = vpop.permute.xlu1 %1253  ;;  %v6631_v40 = vpop.permute.xlu0 %1265 }
 0x308   : > { %1763 = vrot.lane.b32.xlu1 %v1758_v18, %s9361_s0  ;;  %1775 = vrot.lane.b32.xlu0 %v1771_v63, %s9361_s0  ;;  %v1827_v18 = vmul.f32 %v1826_v41, %v6645_v31  ;;  %v1840_v63 = vstv %s4853_s10  ;;  %s6749_s10 = sld [smem:[#allocation8 + $0x8b]] }
 0x309   : > { %v1841_v56 = vmul.f32 %v1840_v63, %v6645_v31 }
 0x30a   : > { %v6639_v6 = vpop.permute.xlu1 %1267  ;;  %v6641_v50 = vpop.permute.xlu0 %1279 }
 0x30b   : > { %9449 = vst [vmem:[#allocation25_spill] sm:$0xff] %v6639_v6  ;;  %9450 = vst [vmem:[#allocation26_spill] sm:$0xff] %v6641_v50  ;;  %v1980_v50 = vstv %s6744_s2  ;;  %v1994_v6 = vstv %s6747_s17  ;;  %s7348_s2 = sld [smem:[#allocation9 + $0x13]]  ;;  %s7351_s17 = sld [smem:[#allocation9 + $0x14]] }
 0x30c   : > { %1777 = vrot.lane.b32.xlu1 %v1772_v39, %s9361_s0  ;;  %1789 = vrot.lane.b32.xlu0 %v1785_v11, %s9361_s0  ;;  %v1828_v11 = vmul.f32 %v1826_v41, %v6656_v24 }
 0x30e   : > { %v6650_v23 = vpop.permute.xlu1 %1281  ;;  %v6652_v29 = vpop.permute.xlu0 %1293  ;;  %v2008_v48 = vstv %s6749_s10  ;;  %s7353_s10 = sld [smem:[#allocation9 + $0x15]] }
 0x30f   : > { %9451 = vst [vmem:[#allocation37_spill] sm:$0xff] %v6650_v23  ;;  %9452 = vst [vmem:[#allocation38_spill] sm:$0xff] %v6652_v29  ;;  %v1540_v29 = vstv %s6707_s26  ;;  %v1952_v23 = vstv %s6724_s29  ;;  %s6888_s26 = sld [smem:[#allocation8 + $0x8d]]  ;;  %s7053_s29 = sld [smem:[#allocation8 + $0x8f]] }
 0x310   : > { %1791 = vrot.lane.b32.xlu1 %v1786_v33, %s9361_s0  ;;  %1803 = vrot.lane.b32.xlu0 %v1799_v60, %s9361_s0  ;;  %v1854_v33 = vstv %s6667_s21  ;;  %s6753_s21 = sld [smem:[#allocation8 + $0x68]]  ;;  %v1953_v13 = vmul.f32 %v1952_v23, %v6561_v61 }
 0x312   : > { %v6661_v36 = vpop.permute.xlu1 %1295  ;;  %v6663_v25 = vpop.permute.xlu0 %1307 }
 0x313   : > { %9453 = vst [vmem:[#allocation23_spill] sm:$0xff] %v6661_v36  ;;  %v1534_v36 = vstv %s6705_s13  ;;  %s6835_s13 = sld [smem:[#allocation8 + $0x6b]] }
 0x314   : > { %1805 = vrot.lane.b32.xlu1 %v1800_v37, %s9361_s0  ;;  %1817 = vrot.lane.b32.xlu0 %v1813_v27, %s9361_s0  ;;  %v1842_v37 = vmul.f32 %v1840_v63, %v6656_v24  ;;  %v1855_v27 = vmul.f32 %v1854_v33, %v6517_v30  ;;  %v1856_v63 = vmul.f32 %v1854_v33, %v6530_v19 }
 0x316   : > { %v6671_v46 = vpop.permute.xlu1 %1309  ;;  %v6673_v0 = vpop.permute.xlu0 %1321 }
 0x317   : > { %9454 = vst [vmem:[#allocation24_spill] sm:$0xff] %v6671_v46  ;;  %9455 = vst [vmem:[#allocation32_spill] sm:$0xff] %v6673_v0 }
 0x318   : > { %1819 = vrot.lane.b32.xlu1 %v1814_v22, %s9361_s0  ;;  %1831 = vrot.lane.b32.xlu0 %v1827_v18, %s9361_s0  ;;  %v1868_v22 = vstv %s6677_s20  ;;  %s6755_s20 = sld [smem:[#allocation8 + $0x69]] }
 0x31a   : > { %v6681_v17 = vpop.permute.xlu1 %1323  ;;  %v6683_v39 = vpop.permute.xlu0 %1335 }
 0x31b   : > { %9456 = vst [vmem:[#allocation33_spill] sm:$0xff] %v6681_v17  ;;  %9457 = vst [vmem:[#allocation45_spill] sm:$0xff] %v6683_v39  ;;  %v1554_v39 = vstv %s6728_s6  ;;  %v1560_v17 = vstv %s6730_s8  ;;  %s9537_s6 = smov 1   ;;  %s9538_s8 = smov 2  }
 0x31c   : > { %1833 = vrot.lane.b32.xlu1 %v1828_v11, %s9361_s0  ;;  %1845 = vrot.lane.b32.xlu0 %v1841_v56, %s9361_s0  ;;  %v1869_v11 = vmul.f32 %v1868_v22, %v6517_v30  ;;  %v1882_v56 = vstv %s6688_s23  ;;  %s6757_s23 = sld [smem:[#allocation8 + $0x6a]]  ;;  %v6818_v0 = vmul.f32 %v1554_v39, %v6561_v61 }
 0x31e   : > { %v6692_v60 = vpop.permute.xlu1 %1337  ;;  %v6694_v52 = vpop.permute.xlu0 %1349  ;;  %9470 = vst [vmem:[#allocation41_spill] sm:$0xff] %v6818_v0  ;;  %v6840_v0 = vmul.f32 %v1534_v36, %v6517_v30 }
 0x31f   : > { %9458 = vst [vmem:[#allocation27_spill] sm:$0xff] %v6692_v60  ;;  %9459 = vst [vmem:[#allocation28_spill] sm:$0xff] %v6694_v52  ;;  %v1884_v52 = vmul.f32 %v1882_v56, %v6530_v19  ;;  %v1910_v60 = vstv %s6717_s22  ;;  %s6971_s22 = sld [smem:[#allocation8 + $0x8e]] }
 0x320   : > { %1847 = vrot.lane.b32.xlu1 %v1842_v37, %s9361_s0  ;;  %1859 = vrot.lane.b32.xlu0 %v1855_v27, %s9362_s30  ;;  %v1870_v27 = vmul.f32 %v1868_v22, %v6530_v19  ;;  %9473 = vst [vmem:[#allocation50_spill] sm:$0xff] %v6840_v0 }
 0x322   : > { %v6711_v41 = vpop.permute.xlu1 %1351  ;;  %v6713_v18 = vpop.permute.xlu0 %1363 }
 0x323   : > { %9460 = vst [vmem:[#allocation29_spill] sm:$0xff] %v6711_v41  ;;  %v1883_v41 = vmul.f32 %v1882_v56, %v6517_v30  ;;  %v1938_v56 = vstv %s6722_s27  ;;  %s7014_s27 = sld [smem:[#allocation8 + $0x6f]] }
 0x324   : > { %1861 = vrot.lane.b32.xlu1 %v1856_v63, %s9362_s30  ;;  %1873 = vrot.lane.b32.xlu0 %v1869_v11, %s9362_s30  ;;  %v1896_v63 = vstv %s6699_s1  ;;  %s6773_s1 = sld [smem:[#allocation8 + $0x8c]] }
 0x326   : > { %v6736_v33 = vpop.permute.xlu1 %1365  ;;  %v6738_v37 = vpop.permute.xlu0 %1377 }
 0x327   : > { %9461 = vst [vmem:[#allocation39_spill] sm:$0xff] %v6736_v33  ;;  %9462 = vst [vmem:[#allocation40_spill] sm:$0xff] %v6738_v37  ;;  %v1566_v37 = vstv %s6732_s28  ;;  %s7333_s28 = sld [smem:[#allocation9 + $0x10]] }
 0x328   : > { %1875 = vrot.lane.b32.xlu1 %v1870_v27, %s9362_s30  ;;  %1887 = vrot.lane.b32.xlu0 %v1883_v41, %s9362_s30  ;;  %v1897_v27 = vmul.f32 %v1896_v63, %v6517_v30  ;;  %v1528_v41 = vstv %s6703_s14  ;;  %s6794_s14 = sld [smem:[#allocation8 + $0x6c]]  ;;  %v6866_v0 = vmul.f32 %v1566_v37, %v6561_v61 }
 0x32a   : > { %v6759_v22 = vpop.permute.xlu1 %1379  ;;  %v6761_v11 = vpop.permute.xlu0 %1391  ;;  %9476 = vst [vmem:[#allocation53_spill] sm:$0xff] %v6866_v0  ;;  %v1090_v0 = vadd.f32 %v6485_v8, %v6447_v4 }
 0x32b   : > { %9463 = vst [vmem:[#allocation46_spill] sm:$0xff] %v6759_v22  ;;  %9464 = vst [vmem:[#allocation34_spill] sm:$0xff] %v6761_v11  ;;  %v1924_v22 = vstv %s6719_s7  ;;  %v1966_v11 = vstv %s6742_s11  ;;  %s6994_s7 = sld [smem:[#allocation8 + $0x6e]]  ;;  %s7341_s11 = sld [smem:[#allocation9 + $0x12]] }
 0x32c   : > { %1889 = vrot.lane.b32.xlu1 %v1884_v52, %s9362_s30  ;;  %1901 = vrot.lane.b32.xlu0 %v1897_v27, %s9362_s30  ;;  %v1898_v52 = vmul.f32 %v1896_v63, %v6530_v19  ;;  %v1911_v27 = vmul.f32 %v1910_v60, %v6561_v61  ;;  %v1925_v63 = vmul.f32 %v1924_v22, %v6561_v61 }
 0x32d   : > { %v1926_v10 = vmul.f32 %v1924_v22, %v6572_v21  ;;  %v6815_v22 = vmul.f32 %v1528_v41, %v6517_v30 }
 0x32e   : > { %v6779_v44 = vpop.permute.xlu1 %1393  ;;  %v6781_v14 = vpop.permute.xlu0 %1405 }
 0x32f   : > { %9465 = vst [vmem:[#allocation35_spill] sm:$0xff] %v6779_v44  ;;  %9466 = vst [vmem:[#allocation51_spill] sm:$0xff] %v6781_v14  ;;  %v1912_v14 = vmul.f32 %v1910_v60, %v6572_v21  ;;  %v6809_v44 = vmul.f32 %v1952_v23, %v6572_v21  ;;  %v6812_v60 = vmul.f32 %v1966_v11, %v6603_v12 }
 0x330   : > { %1903 = vrot.lane.b32.xlu1 %v1898_v52, %s9362_s30  ;;  %1915 = vrot.lane.b32.xlu0 %v1911_v27, %s9362_s30  ;;  %v1939_v52 = vmul.f32 %v1938_v56, %v6561_v61  ;;  %v1940_v27 = vmul.f32 %v1938_v56, %v6572_v21  ;;  %9469 = vst [vmem:[#allocation36_spill] sm:$0xff] %v6815_v22  ;;  %v2022_v22 = vstv %s6773_s1  ;;  %s7364_s1 = sld [smem:[#allocation9 + $0x1]] }
 0x331   : > { %v6826_v56 = vmul.f32 %v1980_v50, %v6603_v12  ;;  %v6829_v23 = vmul.f32 %v1528_v41, %v6530_v19  ;;  %v6908_v4 = vmul.f32 %v2022_v22, %v6645_v31 }
 0x332   : > { %v6801_v33 = vpop.permute.xlu1 %1407  ;;  %v6803_v46 = vpop.permute.xlu0 %1419 }
 0x333   : > { %9467 = vst [vmem:[#allocation47_spill] sm:$0xff] %v6801_v33  ;;  %9468 = vst [vmem:[#allocation49_spill] sm:$0xff] %v6803_v46  ;;  %v6821_v33 = vmul.f32 %v1966_v11, %v6614_v7  ;;  %v6832_v46 = vmul.f32 %v1554_v39, %v6572_v21  ;;  %v1089_v11 = vadd.f32 %v6454_v45, %v6421_v3 }
 0x334   : > { %1917 = vrot.lane.b32.xlu1 %v1912_v14, %s9362_s30  ;;  %1929 = vrot.lane.b32.xlu0 %v1925_v63, %s9362_s30  ;;  %9471 = vst [vmem:[#allocation42_spill] sm:$0xff] %v6829_v23  ;;  %v6843_v14 = vmul.f32 %v1560_v17, %v6561_v61  ;;  %v6846_v63 = vmul.f32 %v1980_v50, %v6614_v7 }
 0x335   : > { %9472 = vst [vmem:[#allocation48_spill] sm:$0xff] %v6832_v46  ;;  %v6853_v46 = vmul.f32 %v1994_v6, %v6603_v12  ;;  %v6856_v3 = vmul.f32 %v1534_v36, %v6530_v19  ;;  %v6859_v45 = vmul.f32 %v1560_v17, %v6572_v21  ;;  %v1145_v50 = vadd.f32 %v6537_v42, %v1089_v11 }
 0x336   : > { %9474 = vst [vmem:[#allocation43_spill] sm:$0xff] %v6843_v14  ;;  %v6848_v41 = vpop.permute.xlu1 %1421  ;;  %v6850_v39 = vpop.permute.xlu0 %1433  ;;  %v6862_v14 = vmul.f32 %v1540_v29, %v6517_v30  ;;  %v6869_v23 = vmul.f32 %v1994_v6, %v6614_v7  ;;  %v6877_v36 = vmul.f32 %v1540_v29, %v6530_v19  ;;  %v6880_v42 = vmul.f32 %v1566_v37, %v6572_v21 }
 0x337   : > { %9475 = vst [vmem:[#allocation52_spill] sm:$0xff] %v6853_v46  ;;  %v6872_v46 = vmul.f32 %v2008_v48, %v6603_v12  ;;  %v9477_v17 = vstv %s6709_s19  ;;  %v1606_v6 = vstv %s6794_s14  ;;  %v9478_v29 = vstv %s6734_s4  ;;  %s7370_s14 = sld [smem:[#allocation9 + $0x4]] }
 0x338   : > { %1931 = vrot.lane.b32.xlu1 %v1926_v10, %s9362_s30  ;;  %1943 = vrot.lane.b32.xlu0 %v1939_v52, %s9362_s30  ;;  %v6885_v11 = vmul.f32 %v9477_v17, %v6517_v30  ;;  %v1103_v10 = vadd.f32 %v6487_v38, %v6449_v59  ;;  %v1201_v52 = vadd.f32 %v6579_v43, %v1145_v50  ;;  %v9480_v59 = vstv %s6709_s19  ;;  %s6938_s19 = sld [smem:[#allocation8 + $0x6d]] }
 0x339   : > { %v6898_v37 = vmul.f32 %v9478_v29, %v6561_v61  ;;  %v6905_v17 = vmul.f32 %v2008_v48, %v6614_v7  ;;  %v6913_v8 = vmul.f32 %v9480_v59, %v6530_v19  ;;  %v9481_v38 = vstv %s6753_s21  ;;  %s7356_s21 = sld [smem:[#allocation9 + $0x16]] }
 0x33a   : > { %v6900_v21 = vpop.permute.xlu1 %1435  ;;  %v6902_v30 = vpop.permute.xlu0 %1447  ;;  %v6918_v43 = vmul.f32 %v9481_v38, %v6603_v12  ;;  %v1146_v61 = vadd.f32 %v6545_v55, %v1090_v0  ;;  %v1159_v50 = vadd.f32 %v6547_v26, %v1103_v10  ;;  %v1257_v29 = vadd.f32 %v6621_v47, %v1201_v52 }
 0x33b   : > { %9479 = vst [vmem:[#allocation20_spill] sm:$0xff] %v6898_v37  ;;  %v6924_v48 = vmul.f32 %v1606_v6, %v6645_v31  ;;  %v1104_v37 = vadd.f32 %v6509_v53, %v6479_v16  ;;  %v6931_v19 = vmul.f32 %v2022_v22, %v6656_v24  ;;  %v9482_v59 = vmov %v9481_v38 }
 0x33c   : > { %1945 = vrot.lane.b32.xlu1 %v1940_v27, %s9362_s30  ;;  %1957 = vrot.lane.b32.xlu0 %v1953_v13, %s9362_s30  ;;  %v6936_v55 = vmul.f32 %v9482_v59, %v6614_v7  ;;  %v1598_v26 = vstv %s6835_s13  ;;  %v1117_v47 = vadd.f32 %v6511_v49, %v6481_v62  ;;  %v1202_v0 = vadd.f32 %v6587_v32, %v1146_v61  ;;  %v9489_v61 = vld [vmem:[#allocation25_spill] sm:$0xff]  ;;  %v9490_v59 = vld [vmem:[#allocation26_spill] sm:$0xff]  ;;  %s7372_s13 = sld [smem:[#allocation9 + $0x2]] }
 0x33d   : > { %v1215_v16 = vadd.f32 %v6589_v51, %v1159_v50  ;;  %v1313_v53 = vadd.f32 %v6663_v25, %v1257_v29  ;;  %v1118_v13 = vadd.f32 %v6524_v58, %v6497_v57  ;;  %v1131_v27 = vadd.f32 %v6526_v54, %v6506_v34  ;;  %v9484_v25 = vld [vmem:[#allocation32_spill] sm:$0xff] }
 0x33e   : > { %v1160_v22 = vadd.f32 %v6555_v28, %v1104_v37  ;;  %v6951_v10 = vpop.permute.xlu1 %1449  ;;  %v6953_v52 = vpop.permute.xlu0 %1461  ;;  %v6956_v62 = vmul.f32 %v1606_v6, %v6656_v24  ;;  %v1173_v49 = vadd.f32 %v6557_v5, %v1117_v47  ;;  %v1258_v32 = vadd.f32 %v6629_v2, %v1202_v0  ;;  %v9483_v2 = vld [vmem:[#allocation24_spill] sm:$0xff]  ;;  %v9491_v47 = vld [vmem:[#allocation39_spill] sm:$0xff] }
 0x33f   : > { %v1271_v51 = vadd.f32 %v6631_v40, %v1215_v16  ;;  %v1369_v57 = vadd.f32 %v6713_v18, %v1313_v53  ;;  %v1132_v34 = vadd.f32 %v6535_v1, %v6520_v9  ;;  %v1174_v58 = vadd.f32 %v6566_v35, %v1118_v13  ;;  %v9485_v9 = vld [vmem:[#allocation49_spill] sm:$0xff]  ;;  %v9486_v35 = vld [vmem:[#allocation30_spill] sm:$0xff]  ;;  %v9487_v6 = vld [vmem:[#allocation44_spill] sm:$0xff] }
 0x340   : > { %v1216_v54 = vadd.f32 %v6597_v20, %v1160_v22  ;;  %1959 = vrot.lane.b32.xlu1 %v6809_v44, %s9362_s30  ;;  %1971 = vrot.lane.b32.xlu0 %v6812_v60, %s9362_s30  ;;  %v2036_v28 = vstv %s6888_s26  ;;  %v1229_v5 = vadd.f32 %v6599_v15, %v1173_v49  ;;  %v1314_v40 = vadd.f32 %v9483_v2, %v1258_v32  ;;  %v9488_v44 = vld [vmem:[#allocation19_spill] sm:$0xff]  ;;  %v9492_v16 = vld [vmem:[#allocation40_spill] sm:$0xff]  ;;  %v9493_v22 = vld [vmem:[#allocation21_spill] sm:$0xff]  ;;  %s7375_s26 = sld [smem:[#allocation9 + $0x5]] }
 0x341   : > { %v1327_v18 = vadd.f32 %v9484_v25, %v1271_v51  ;;  %v1425_v1 = vadd.f32 %v9485_v9, %v1369_v57  ;;  %v1187_v20 = vadd.f32 %v9486_v35, %v1131_v27  ;;  %v1188_v37 = vadd.f32 %v9487_v6, %v1132_v34  ;;  %v9494_v32 = vld [vmem:[#allocation22_spill] sm:$0xff]  ;;  %v9495_v51 = vld [vmem:[#allocation33_spill] sm:$0xff] }
 0x342   : > { %v1230_v38 = vadd.f32 %v9488_v44, %v1174_v58  ;;  %v1272_v60 = vadd.f32 %v9489_v61, %v1216_v54  ;;  %v6981_v50 = vpop.permute.xlu1 %1463  ;;  %v1476_v29 = vpop.permute.xlu0 %1475  ;;  %v1285_v15 = vadd.f32 %v9490_v59, %v1229_v5  ;;  %v1370_v0 = vadd.f32 %v9491_v47, %v1314_v40  ;;  %v9496_v58 = vld [vmem:[#allocation45_spill] sm:$0xff]  ;;  %v9497_v40 = vld [vmem:[#allocation36_spill] sm:$0xff]  ;;  %v9501_v6 = vld [vmem:[#allocation46_spill] sm:$0xff] }
 0x343   : > { %v1383_v53 = vadd.f32 %v9492_v16, %v1327_v18  ;;  %v1481_v13 = vadd.f32 %v1476_v29, %v1425_v1  ;;  %v1243_v49 = vadd.f32 %v9493_v22, %v1187_v20  ;;  %v1244_v27 = vadd.f32 %v9494_v32, %v1188_v37  ;;  %v9498_v18 = vld [vmem:[#allocation37_spill] sm:$0xff]  ;;  %v9499_v1 = vld [vmem:[#allocation38_spill] sm:$0xff] }
 0x344   : > { %v1328_v57 = vadd.f32 %v9495_v51, %v1272_v60  ;;  %1973 = vrot.lane.b32.xlu1 %v6821_v33, %s9362_s30  ;;  %1985 = vrot.lane.b32.xlu0 %v6826_v56, %s9362_s30  ;;  %v1612_v34 = vstv %s6938_s19  ;;  %v1341_v54 = vadd.f32 %v9496_v58, %v1285_v15  ;;  %v1426_v5 = vadd.f32 %v6848_v41, %v1370_v0  ;;  %v9500_v33 = vld [vmem:[#allocation23_spill] sm:$0xff]  ;;  %v9502_v61 = vld [vmem:[#allocation34_spill] sm:$0xff]  ;;  %v9503_v29 = vld [vmem:[#allocation41_spill] sm:$0xff]  ;;  %s7377_s19 = sld [smem:[#allocation9 + $0x3]] }
 0x345   : > { %v1439_v2 = vadd.f32 %v6850_v39, %v1383_v53  ;;  %v1531_v25 = vadd.f32 %v9497_v40, %v1481_v13  ;;  %v1286_v9 = vadd.f32 %v9498_v18, %v1230_v38  ;;  %v1299_v35 = vadd.f32 %v9499_v1, %v1243_v49  ;;  %v9504_v39 = vld [vmem:[#allocation27_spill] sm:$0xff]  ;;  %v9505_v0 = vld [vmem:[#allocation28_spill] sm:$0xff]  ;;  %v9507_v49 = vld [vmem:[#allocation42_spill] sm:$0xff] }
 0x346   : > { %v1300_v20 = vadd.f32 %v9500_v33, %v1244_v27  ;;  %v1384_v56 = vadd.f32 %v9501_v6, %v1328_v57  ;;  %v1478_v37 = vpop.permute.xlu1 %1477  ;;  %v1490_v44 = vpop.permute.xlu0 %1489  ;;  %v1397_v60 = vadd.f32 %v9502_v61, %v1341_v54  ;;  %v9506_v53 = vld [vmem:[#allocation52_spill] sm:$0xff]  ;;  %v2050_v13 = vstv %s6971_s22  ;;  %v9508_v27 = vld [vmem:[#allocation50_spill] sm:$0xff]  ;;  %v9509_v58 = vld [vmem:[#allocation29_spill] sm:$0xff]  ;;  %s7381_s22 = sld [smem:[#allocation9 + $0x6]] }
 0x347   : > { %v1557_v59 = vadd.f32 %v9503_v29, %v1531_v25  ;;  %v1482_v41 = vadd.f32 %v1478_v37, %v1426_v5  ;;  %v1495_v15 = vadd.f32 %v1490_v44, %v1439_v2  ;;  %v1342_v47 = vadd.f32 %v9504_v39, %v1286_v9  ;;  %v9510_v54 = vld [vmem:[#allocation35_spill] sm:$0xff]  ;;  %v9513_v1 = vld [vmem:[#allocation48_spill] sm:$0xff] }
 0x348   : > { %v1355_v16 = vadd.f32 %v9505_v0, %v1299_v35  ;;  %v1440_v38 = vadd.f32 %v6900_v21, %v1384_v56  ;;  %1987 = vrot.lane.b32.xlu1 %v6846_v63, %s9362_s30  ;;  %1999 = vrot.lane.b32.xlu0 %v9506_v53, %s9362_s30  ;;  %v1453_v22 = vadd.f32 %v6902_v30, %v1397_v60  ;;  %v9511_v63 = vld [vmem:[#allocation51_spill] sm:$0xff]  ;;  %v9512_v18 = vstv %s6755_s20  ;;  %s7358_s20 = sld [smem:[#allocation9 + $0x17]] }
 0x349   : > { %v1532_v32 = vadd.f32 %v9507_v49, %v1482_v41  ;;  %v1537_v51 = vadd.f32 %v9508_v27, %v1495_v15  ;;  %v1583_v57 = vadd.f32 %v6918_v43, %v1557_v59  ;;  %v1356_v21 = vadd.f32 %v9509_v58, %v1300_v20  ;;  %v9514_v35 = vld [vmem:[#allocation43_spill] sm:$0xff] }
 0x34a   : > { %v1398_v5 = vadd.f32 %v9510_v54, %v1342_v47  ;;  %v1411_v2 = vadd.f32 %v9511_v63, %v1355_v16  ;;  %v1492_v40 = vpop.permute.xlu1 %1491  ;;  %v1504_v25 = vpop.permute.xlu0 %1503  ;;  %v1587_v9 = vmul.f32 %v9512_v18, %v6603_v12  ;;  %v1618_v44 = vstv %s6994_s7  ;;  %s7383_s7 = sld [smem:[#allocation9 + $0x7]] }
 0x34b   : > { %v1558_v30 = vadd.f32 %v9513_v1, %v1532_v32  ;;  %v1563_v33 = vadd.f32 %v9514_v35, %v1537_v51  ;;  %v1496_v6 = vadd.f32 %v1492_v40, %v1440_v38  ;;  %v1509_v43 = vadd.f32 %v1504_v25, %v1453_v22 }
 0x34c   : > { %v1454_v20 = vadd.f32 %v6951_v10, %v1398_v5  ;;  %v1467_v56 = vadd.f32 %v6953_v52, %v1411_v2  ;;  %2001 = vrot.lane.b32.xlu1 %v6869_v23, %s9362_s30  ;;  %2013 = vrot.lane.b32.xlu0 %v6872_v46, %s9362_s30  ;;  %v7035_v37 = vadd.f32 %v6924_v48, %v1583_v57  ;;  %v9515_v10 = vld [vmem:[#allocation47_spill] sm:$0xff]  ;;  %v9517_v39 = vstv %s6757_s23  ;;  %s7362_s23 = sld [smem:[#allocation9]] }
 0x34d   : > { %v1538_v61 = vadd.f32 %v6856_v3, %v1496_v6  ;;  %v1543_v60 = vadd.f32 %v6862_v14, %v1509_v43  ;;  %v1584_v29 = vadd.f32 %v6936_v55, %v1558_v30  ;;  %v1589_v59 = vadd.f32 %v1587_v9, %v1563_v33  ;;  %v9518_v14 = vld [vmem:[#allocation53_spill] sm:$0xff]  ;;  %v9521_v2 = vld [vmem:[#allocation31_spill] sm:$0xff] }
 0x34e   : > { %v1412_v41 = vadd.f32 %v9515_v10, %v1356_v21  ;;  %v1506_v52 = vpop.permute.xlu1 %1505  ;;  %v1518_v15 = vpop.permute.xlu0 %1517  ;;  %v1613_v23 = vmul.f32 %v1612_v34, %v6645_v31  ;;  %v9516_v46 = vmov %v9512_v18  ;;  %v1593_v47 = vmul.f32 %v9517_v39, %v6603_v12 }
 0x34f   : > { %v1588_v48 = vmul.f32 %v9516_v46, %v6614_v7  ;;  %v1564_v3 = vadd.f32 %v6859_v45, %v1538_v61  ;;  %v1569_v0 = vadd.f32 %v9518_v14, %v1543_v60  ;;  %v1510_v55 = vadd.f32 %v1506_v52, %v1454_v20 }
 0x350   : > { %v1523_v16 = vadd.f32 %v1518_v15, %v1467_v56  ;;  %v1468_v38 = vadd.f32 %v6981_v50, %v1412_v41  ;;  %2015 = vrot.lane.b32.xlu1 %v6905_v17, %s9362_s30  ;;  %2027 = vrot.lane.b32.xlu0 %v6908_v4, %s9362_s30  ;;  %v7061_v53 = vadd.f32 %v6956_v62, %v1584_v29  ;;  %v1624_v22 = vstv %s7014_s27  ;;  %s7385_s27 = sld [smem:[#allocation9 + $0x8]] }
 0x351   : > { %v7063_v45 = vadd.f32 %v1613_v23, %v1589_v59  ;;  %v1544_v49 = vadd.f32 %v6877_v36, %v1510_v55  ;;  %v1590_v27 = vadd.f32 %v1588_v48, %v1564_v3  ;;  %v1595_v50 = vadd.f32 %v1593_v47, %v1569_v0 }
 0x352   : > { %v1549_v32 = vadd.f32 %v6885_v11, %v1523_v16  ;;  %v1520_v51 = vpop.permute.xlu1 %1519  ;;  %v7068_v57 = vpop.permute.xlu0 %1635  ;;  %v2037_v17 = vmul.f32 %v2036_v28, %v6645_v31  ;;  %v1614_v4 = vmul.f32 %v1612_v34, %v6656_v24  ;;  %v1619_v62 = vmul.f32 %v1618_v44, %v6645_v31  ;;  %v9520_v11 = vld [vmem:[#allocation20_spill] sm:$0xff] }
 0x353   : > { %v9519_v58 = vmov %v9517_v39  ;;  %v1570_v36 = vadd.f32 %v6880_v42, %v1544_v49  ;;  %v1524_v5 = vadd.f32 %v1520_v51, %v1468_v38  ;;  %v1599_v63 = vmul.f32 %v1598_v26, %v6603_v12 }
 0x354   : > { %v1594_v21 = vmul.f32 %v9519_v58, %v6614_v7  ;;  %v1575_v54 = vadd.f32 %v9520_v11, %v1549_v32  ;;  %v9522_v40 = vstv %s6734_s4  ;;  %2029 = vrot.lane.b32.xlu1 %v6931_v19, %s9362_s30  ;;  %2041 = vrot.lane.b32.xlu0 %v2037_v17, %s9362_s30  ;;  %v7091_v34 = vadd.f32 %v1614_v4, %v1590_v27  ;;  %s7336_s4 = sld [smem:[#allocation9 + $0x11]] }
 0x355   : > { %v1574_v25 = vmul.f32 %v9522_v40, %v9521_v2  ;;  %v7093_v42 = vadd.f32 %v1619_v62, %v1595_v50  ;;  %v1550_v18 = vadd.f32 %v6913_v8, %v1524_v5  ;;  %v1620_v9 = vmul.f32 %v1618_v44, %v6656_v24 }
 0x356   : > { %v1596_v1 = vadd.f32 %v1594_v21, %v1570_v36  ;;  %v1601_v12 = vadd.f32 %v1599_v63, %v1575_v54  ;;  %v7097_v30 = vpop.permute.xlu1 %1637  ;;  %v7099_v35 = vpop.permute.xlu0 %1649  ;;  %v2038_v19 = vmul.f32 %v2036_v28, %v6656_v24  ;;  %v2051_v33 = vmul.f32 %v2050_v13, %v6645_v31 }
 0x357   : > { %v1625_v6 = vmul.f32 %v1624_v22, %v6645_v31  ;;  %v1576_v43 = vadd.f32 %v1574_v25, %v1550_v18  ;;  %v2064_v20 = vstv %s7053_s29  ;;  %v1600_v56 = vmul.f32 %v1598_v26, %v6614_v7  ;;  %s7387_s29 = sld [smem:[#allocation9 + $0x9]] }
 0x358   : > { %v7109_v8 = vadd.f32 %v1620_v9, %v1596_v1  ;;  %2043 = vrot.lane.b32.xlu1 %v2038_v19, %s9362_s30  ;;  %2055 = vrot.lane.b32.xlu0 %v2051_v33, %s9362_s30  ;;  %v1626_v28 = vmul.f32 %v1624_v22, %v6656_v24  ;;  %v2052_v59 = vmul.f32 %v2050_v13, %v6656_v24 }
 0x359   : > { %v7116_v44 = vadd.f32 %v1625_v6, %v1601_v12  ;;  %v1602_v61 = vadd.f32 %v1600_v56, %v1576_v43  ;;  %v2065_v10 = vmul.f32 %v2064_v20, %v6645_v31  ;;  %v2066_v52 = vmul.f32 %v2064_v20, %v6656_v24 }
 0x35a   : > { %v7119_v60 = vpop.permute.xlu1 %1651  ;;  %v7121_v29 = vpop.permute.xlu0 %1663  ;;  %v1641_v20 = vadd.f32 %v7068_v57, %v7035_v37 }
 0x35b   : > { %v7127_v41 = vadd.f32 %v1626_v28, %v1602_v61  ;;  %v1669_v57 = vadd.f32 %v7121_v29, %v7093_v42 }
 0x35c   : > { %2057 = vrot.lane.b32.xlu1 %v2052_v59, %s9362_s30  ;;  %2069 = vrot.lane.b32.xlu0 %v2065_v10, %s9362_s30  ;;  %v1642_v59 = vadd.f32 %v7097_v30, %v7061_v53 }
 0x35e   : > { %v7131_v7 = vpop.permute.xlu1 %1665  ;;  %v7133_v26 = vpop.permute.xlu0 %1677 }
 0x360   : > { %2071 = vrot.lane.b32.xlu1 %v2066_v52, %s9362_s30 }
 0x362   : > { %v7137_v15 = vpop.permute.xlu1 %1679  ;;  %v1692_v23 = vpop.permute.xlu0 %1691 }
 0x363   : > { %v1697_v61 = vadd.f32 %v1692_v23, %v1641_v20 }
 0x366   : > { %v1694_v13 = vpop.permute.xlu1 %1693  ;;  %v1706_v46 = vpop.permute.xlu0 %1705 }
 0x36a   : > { %v1708_v31 = vpop.permute.xlu1 %1707  ;;  %v1720_v48 = vpop.permute.xlu0 %1719 }
 0x36e   : > { %v7139_v39 = vpop.permute.xlu1 %1721  ;;  %v7141_v47 = vpop.permute.xlu0 %1733 }
 0x372   : > { %v7143_v3 = vpop.permute.xlu1 %1735  ;;  %v1748_v14 = vpop.permute.xlu0 %1747 }
 0x373   : > { %v1753_v10 = vadd.f32 %v1748_v14, %v1697_v61 }
 0x376   : > { %v1750_v0 = vpop.permute.xlu1 %1749  ;;  %v1762_v55 = vpop.permute.xlu0 %1761 }
 0x37a   : > { %v1764_v16 = vpop.permute.xlu1 %1763  ;;  %v1776_v24 = vpop.permute.xlu0 %1775 }
 0x37e   : > { %v7145_v38 = vpop.permute.xlu1 %1777  ;;  %v7147_v22 = vpop.permute.xlu0 %1789 }
 0x382   : > { %v7149_v49 = vpop.permute.xlu1 %1791  ;;  %v1804_v32 = vpop.permute.xlu0 %1803 }
 0x386   : > { %v1806_v27 = vpop.permute.xlu1 %1805  ;;  %v1818_v50 = vpop.permute.xlu0 %1817 }
 0x38a   : > { %v1820_v51 = vpop.permute.xlu1 %1819  ;;  %v1832_v17 = vpop.permute.xlu0 %1831 }
 0x38e   : > { %v7151_v4 = vpop.permute.xlu1 %1833  ;;  %v7153_v62 = vpop.permute.xlu0 %1845 }
 0x392   : > { %v7155_v58 = vpop.permute.xlu1 %1847  ;;  %v1860_v21 = vpop.permute.xlu0 %1859 }
 0x393   : > { %9523 = vst [vmem:[#allocation24_spill] sm:$0xff] %v7155_v58 }
 0x396   : > { %v1862_v36 = vpop.permute.xlu1 %1861  ;;  %v1874_v11 = vpop.permute.xlu0 %1873 }
 0x39a   : > { %v1876_v54 = vpop.permute.xlu1 %1875  ;;  %v7157_v5 = vpop.permute.xlu0 %1887 }
 0x39e   : > { %v7159_v63 = vpop.permute.xlu1 %1889  ;;  %v7161_v2 = vpop.permute.xlu0 %1901 }
 0x39f   : > { %9524 = vst [vmem:[#allocation32_spill] sm:$0xff] %v7161_v2  ;;  %v1698_v2 = vadd.f32 %v1694_v13, %v1642_v59 }
 0x3a2   : > { %v7163_v40 = vpop.permute.xlu1 %1903  ;;  %v1916_v25 = vpop.permute.xlu0 %1915 }
 0x3a3   : > { %9525 = vst [vmem:[#allocation49_spill] sm:$0xff] %v7163_v40 }
 0x3a6   : > { %v1918_v18 = vpop.permute.xlu1 %1917  ;;  %v1930_v9 = vpop.permute.xlu0 %1929 }
 0x3aa   : > { %v1932_v1 = vpop.permute.xlu1 %1931  ;;  %v7165_v12 = vpop.permute.xlu0 %1943 }
 0x3ab   : > { %9526 = vst [vmem:[#allocation30_spill] sm:$0xff] %v7165_v12  ;;  %v1754_v12 = vadd.f32 %v1750_v0, %v1698_v2 }
 0x3ad   : > { %v1810_v14 = vadd.f32 %v1806_v27, %v1754_v12  ;;  %v9531_v12 = vld [vmem:[#allocation24_spill] sm:$0xff] }
 0x3ae   : > { %v7167_v19 = vpop.permute.xlu1 %1945  ;;  %v7169_v33 = vpop.permute.xlu0 %1957 }
 0x3af   : > { %9527 = vst [vmem:[#allocation44_spill] sm:$0xff] %v7167_v19  ;;  %9528 = vst [vmem:[#allocation19_spill] sm:$0xff] %v7169_v33  ;;  %v1655_v19 = vadd.f32 %v7099_v35, %v7063_v45  ;;  %v1809_v33 = vadd.f32 %v1804_v32, %v1753_v10  ;;  %v1670_v45 = vadd.f32 %v7131_v7, %v7109_v8 }
 0x3b0   : > { %v1725_v35 = vadd.f32 %v1720_v48, %v1669_v57  ;;  %v1684_v8 = vadd.f32 %v7137_v15, %v7127_v41 }
 0x3b1   : > { %v1711_v58 = vadd.f32 %v1706_v46, %v1655_v19  ;;  %v1865_v37 = vadd.f32 %v1860_v21, %v1809_v33  ;;  %v1683_v46 = vadd.f32 %v7133_v26, %v7116_v44  ;;  %v1726_v42 = vadd.f32 %v7139_v39, %v1670_v45 }
 0x3b2   : > { %v7171_v6 = vpop.permute.xlu1 %1959  ;;  %v1972_v43 = vpop.permute.xlu0 %1971  ;;  %v1781_v29 = vadd.f32 %v1776_v24, %v1725_v35 }
 0x3b3   : > { %9529 = vst [vmem:[#allocation25_spill] sm:$0xff] %v7171_v6  ;;  %v1656_v6 = vadd.f32 %v7119_v60, %v7091_v34  ;;  %v1767_v30 = vadd.f32 %v1762_v55, %v1711_v58  ;;  %v1921_v61 = vadd.f32 %v1916_v25, %v1865_v37  ;;  %v1866_v34 = vadd.f32 %v1862_v36, %v1810_v14 }
 0x3b4   : > { %v1739_v7 = vadd.f32 %v7141_v47, %v1683_v46  ;;  %v1782_v48 = vadd.f32 %v7145_v38, %v1726_v42 }
 0x3b5   : > { %v1712_v53 = vadd.f32 %v1708_v31, %v1656_v6  ;;  %v1823_v32 = vadd.f32 %v1818_v50, %v1767_v30  ;;  %v1977_v60 = vadd.f32 %v1972_v43, %v1921_v61  ;;  %v1922_v27 = vadd.f32 %v1918_v18, %v1866_v34 }
 0x3b6   : > { %v1974_v56 = vpop.permute.xlu1 %1973  ;;  %v1986_v28 = vpop.permute.xlu0 %1985  ;;  %v1740_v50 = vadd.f32 %v7143_v3, %v1684_v8  ;;  %v1838_v36 = vadd.f32 %v7151_v4, %v1782_v48  ;;  %v9530_v3 = vld [vmem:[#allocation30_spill] sm:$0xff]  ;;  %v9535_v59 = vld [vmem:[#allocation19_spill] sm:$0xff] }
 0x3b7   : > { %v1768_v13 = vadd.f32 %v1764_v16, %v1712_v53  ;;  %v1879_v55 = vadd.f32 %v1874_v11, %v1823_v32  ;;  %v1837_v16 = vadd.f32 %v1832_v17, %v1781_v29  ;;  %v1978_v39 = vadd.f32 %v1974_v56, %v1922_v27 }
 0x3b8   : > { %v1894_v25 = vadd.f32 %v7159_v63, %v1838_v36  ;;  %v9534_v63 = vld [vmem:[#allocation49_spill] sm:$0xff] }
 0x3b9   : > { %v1824_v31 = vadd.f32 %v1820_v51, %v1768_v13  ;;  %v1935_v26 = vadd.f32 %v1930_v9, %v1879_v55  ;;  %v1795_v51 = vadd.f32 %v7147_v22, %v1739_v7  ;;  %v1893_v15 = vadd.f32 %v7157_v5, %v1837_v16 }
 0x3ba   : > { %v1988_v52 = vpop.permute.xlu1 %1987  ;;  %v2000_v40 = vpop.permute.xlu0 %1999 }
 0x3bb   : > { %v1880_v44 = vadd.f32 %v1876_v54, %v1824_v31  ;;  %v1991_v38 = vadd.f32 %v1986_v28, %v1935_v26  ;;  %v1796_v54 = vadd.f32 %v7149_v49, %v1740_v50  ;;  %v1851_v2 = vadd.f32 %v7153_v62, %v1795_v51  ;;  %v9533_v49 = vld [vmem:[#allocation44_spill] sm:$0xff] }
 0x3bc   : > { %v1949_v18 = vadd.f32 %v9530_v3, %v1893_v15  ;;  %v1950_v43 = vadd.f32 %v9533_v49, %v1894_v25 }
 0x3bd   : > { %v1936_v47 = vadd.f32 %v1932_v1, %v1880_v44  ;;  %v1852_v5 = vadd.f32 %v9531_v12, %v1796_v54  ;;  %v9532_v1 = vld [vmem:[#allocation32_spill] sm:$0xff] }
 0x3be   : > { %v2002_v23 = vpop.permute.xlu1 %2001  ;;  %v7183_v20 = vpop.permute.xlu0 %2013  ;;  %v1907_v19 = vadd.f32 %v9532_v1, %v1851_v2  ;;  %v2005_v62 = vadd.f32 %v2000_v40, %v1949_v18  ;;  %v9536_v40 = vld [vmem:[#allocation25_spill] sm:$0xff] }
 0x3bf   : > { %v1992_v22 = vadd.f32 %v1988_v52, %v1936_v47  ;;  %v1908_v28 = vadd.f32 %v9534_v63, %v1852_v5  ;;  %v2006_v52 = vadd.f32 %v2002_v23, %v1950_v43 }
 0x3c0   : > { %v1963_v10 = vadd.f32 %v9535_v59, %v1907_v19 }
 0x3c1   : > { %v1964_v61 = vadd.f32 %v9536_v40, %v1908_v28 }
 0x3c2   : > { %v2016_v0 = vpop.permute.xlu1 %2015  ;;  %v2028_v21 = vpop.permute.xlu0 %2027  ;;  %v2019_v45 = vadd.f32 %v7183_v20, %v1963_v10 }
 0x3c3   : > { %v7190_v58 = vadd.f32 %v2028_v21, %v1977_v60  ;;  %v2020_v13 = vadd.f32 %v2016_v0, %v1964_v61 }
 0x3c5   : > { %v2078_v24 = vsel %vm2077_vm7, %v7190_v58, 0.0  ;;  %v2091_v29 = vmul.f32 %v7190_v58, %v7190_v58 }
 0x3c6   : > { %v2030_v11 = vpop.permute.xlu1 %2029  ;;  %2079 = vadd.xlane.f32.xlu0 %v2078_v24  ;;  %v2042_v41 = vpop.permute.xlu0 %2041 }
 0x3c7   : > { %v7202_v17 = vadd.f32 %v2030_v11, %v1978_v39  ;;  %v7208_v9 = vadd.f32 %v2042_v41, %v1991_v38  ;;  %v2093_v21 = vsel %vm2077_vm7, %v2091_v29, 0.0 }
 0x3c9   : > { %v2081_v4 = vsel %vm2077_vm7, %v7202_v17, 0.0  ;;  %v2119_v53 = vsel %vm2077_vm7, %v7208_v9, 0.0  ;;  %v2132_v0 = vmul.f32 %v7208_v9, %v7208_v9  ;;  %v2092_v55 = vmul.f32 %v7202_v17, %v7202_v17 }
 0x3ca   : > { %v2044_v33 = vpop.permute.xlu1 %2043  ;;  %2082 = vadd.xlane.f32.xlu1 %v2081_v4  ;;  %v2056_v6 = vpop.permute.xlu0 %2055 }
 0x3cb   : > { %v7215_v56 = vadd.f32 %v2044_v33, %v1992_v22  ;;  %v7219_v37 = vadd.f32 %v2056_v6, %v2005_v62  ;;  %v2134_v31 = vsel %vm2077_vm7, %v2132_v0, 0.0  ;;  %v2096_v8 = vsel %vm2077_vm7, %v2092_v55, 0.0 }
 0x3cd   : > { %v2122_v57 = vsel %vm2077_vm7, %v7215_v56, 0.0  ;;  %v2160_v34 = vsel %vm2077_vm7, %v7219_v37, 0.0  ;;  %v2173_v27 = vmul.f32 %v7219_v37, %v7219_v37  ;;  %v2133_v48 = vmul.f32 %v7215_v56, %v7215_v56 }
 0x3ce   : > { %v2058_v30 = vpop.permute.xlu1 %2057  ;;  %2123 = vadd.xlane.f32.xlu0 %v2122_v57  ;;  %2120 = vadd.xlane.f32.xlu1 %v2119_v53  ;;  %v2070_v14 = vpop.permute.xlu0 %2069 }
 0x3cf   : > { %v7227_v35 = vadd.f32 %v2058_v30, %v2006_v52  ;;  %v7229_v23 = vadd.f32 %v2070_v14, %v2019_v45  ;;  %v2175_v7 = vsel %vm2077_vm7, %v2173_v27, 0.0  ;;  %v2137_v44 = vsel %vm2077_vm7, %v2133_v48, 0.0 }
 0x3d1   : > { %v2163_v32 = vsel %vm2077_vm7, %v7227_v35, 0.0  ;;  %v2201_v20 = vsel %vm2077_vm7, %v7229_v23, 0.0  ;;  %v2214_v16 = vmul.f32 %v7229_v23, %v7229_v23  ;;  %v2174_v39 = vmul.f32 %v7227_v35, %v7227_v35 }
 0x3d2   : > { %v2072_v60 = vpop.permute.xlu1 %2071  ;;  %2164 = vadd.xlane.f32.xlu0 %v2163_v32  ;;  %2161 = vadd.xlane.f32.xlu1 %v2160_v34 }
 0x3d3   : > { %v7235_v46 = vadd.f32 %v2072_v60, %v2020_v13  ;;  %v2216_v26 = vsel %vm2077_vm7, %v2214_v16, 0.0  ;;  %v2178_v24 = vsel %vm2077_vm7, %v2174_v39, 0.0 }
 0x3d5   : > { %v2204_v42 = vsel %vm2077_vm7, %v7235_v46, 0.0  ;;  %v2215_v50 = vmul.f32 %v7235_v46, %v7235_v46 }
 0x3d6   : > { %2205 = vadd.xlane.f32.xlu0 %v2204_v42  ;;  %2202 = vadd.xlane.f32.xlu1 %v2201_v20 }
 0x3d7   : > { %v2219_v51 = vsel %vm2077_vm7, %v2215_v50, 0.0 }
 0x3da   : > { %2094 = vadd.xlane.f32.xlu0 %v2093_v21  ;;  %2135 = vadd.xlane.f32.xlu1 %v2134_v31 }
 0x3de   : > { %2097 = vadd.xlane.f32.xlu0 %v2096_v8  ;;  %2176 = vadd.xlane.f32.xlu1 %v2175_v7 }
 0x3e2   : > { %2138 = vadd.xlane.f32.xlu0 %v2137_v44  ;;  %2217 = vadd.xlane.f32.xlu1 %v2216_v26 }
 0x3e6   : > { %2179 = vadd.xlane.f32.xlu0 %v2178_v24 }
 0x3ea   : > { %2220 = vadd.xlane.f32.xlu0 %v2219_v51 }
 0x453   : > { %v2080_v36 = vpop.xlane.xlu0 %2079 }
 0x457   : > { %v2083_v11 = vpop.xlane.xlu1 %2082 }
 0x458   : > { %v2084_v41 = vadd.f32 %v2083_v11, %v2080_v36 }
 0x45a   : > { %v2085_v38 = vrot.slane %v2084_v41, 4 }
 0x45b   : > { %v2121_v15 = vpop.xlane.xlu1 %2120  ;;  %v2124_v47 = vpop.xlane.xlu0 %2123 }
 0x45c   : > { %v2125_v54 = vadd.f32 %v2124_v47, %v2121_v15  ;;  %v2086_v3 = vadd.f32 %v2085_v38, %v2084_v41 }
 0x45e   : > { %v2126_v18 = vrot.slane %v2125_v54, 4  ;;  %v2087_v5 = vrot.slane %v2086_v3, 2 }
 0x45f   : > { %v2162_v2 = vpop.xlane.xlu1 %2161  ;;  %v2165_v25 = vpop.xlane.xlu0 %2164 }
 0x460   : > { %v2166_v22 = vadd.f32 %v2165_v25, %v2162_v2  ;;  %v2127_v1 = vadd.f32 %v2126_v18, %v2125_v54  ;;  %v2088_v49 = vadd.f32 %v2087_v5, %v2086_v3 }
 0x462   : > { %v2167_v19 = vrot.slane %v2166_v22, 4  ;;  %v2128_v43 = vrot.slane %v2127_v1, 2  ;;  %v2089_v52 = vrot.slane %v2088_v49, 1 }
 0x463   : > { %v2203_v4 = vpop.xlane.xlu1 %2202  ;;  %v2206_v12 = vpop.xlane.xlu0 %2205 }
 0x464   : > { %v2207_v33 = vadd.f32 %v2206_v12, %v2203_v4  ;;  %v2168_v62 = vadd.f32 %v2167_v19, %v2166_v22  ;;  %v2129_v57 = vadd.f32 %v2128_v43, %v2127_v1  ;;  %v2090_v13 = vadd.f32 %v2089_v52, %v2088_v49 }
 0x466   : > { %v2208_v63 = vrot.slane %v2207_v33, 4  ;;  %v2169_v53 = vrot.slane %v2168_v62, 2  ;;  %v2130_v32 = vrot.slane %v2129_v57, 1  ;;  %v2106_v27 = vmul.f32 0.00390625, %v2090_v13 }
 0x467   : > { %v2095_v6 = vpop.xlane.xlu0 %2094  ;;  %v2136_v28 = vpop.xlane.xlu1 %2135 }
 0x468   : > { %v2209_v30 = vadd.f32 %v2208_v63, %v2207_v33  ;;  %v2170_v34 = vadd.f32 %v2169_v53, %v2168_v62  ;;  %v2131_v8 = vadd.f32 %v2130_v32, %v2129_v57  ;;  %v2108_v38 = vmul.f32 %v2106_v27, %v2106_v27 }
 0x46a   : > { %v2210_v60 = vrot.slane %v2209_v30, 2  ;;  %v2171_v7 = vrot.slane %v2170_v34, 1  ;;  %v2147_v41 = vmul.f32 0.00390625, %v2131_v8 }
 0x46b   : > { %v2098_v59 = vpop.xlane.xlu0 %2097  ;;  %v2177_v42 = vpop.xlane.xlu1 %2176 }
 0x46c   : > { %v2099_v10 = vadd.f32 %v2098_v59, %v2095_v6  ;;  %v2211_v48 = vadd.f32 %v2210_v60, %v2209_v30  ;;  %v2172_v15 = vadd.f32 %v2171_v7, %v2170_v34  ;;  %v2149_v19 = vmul.f32 %v2147_v41, %v2147_v41 }
 0x46e   : > { %v2100_v14 = vrot.slane %v2099_v10, 4  ;;  %v2212_v47 = vrot.slane %v2211_v48, 1  ;;  %v2188_v5 = vmul.f32 0.00390625, %v2172_v15 }
 0x46f   : > { %v2139_v40 = vpop.xlane.xlu0 %2138  ;;  %v2218_v39 = vpop.xlane.xlu1 %2217 }
 0x470   : > { %v2101_v61 = vadd.f32 %v2100_v14, %v2099_v10  ;;  %v2140_v45 = vadd.f32 %v2139_v40, %v2136_v28  ;;  %v2213_v1 = vadd.f32 %v2212_v47, %v2211_v48  ;;  %v2190_v52 = vmul.f32 %v2188_v5, %v2188_v5 }
 0x471   : > { %v2153_v48 = vsub.f32 %v7215_v56, %v2147_v41 }
 0x472   : > { %v2102_v20 = vrot.slane %v2101_v61, 2  ;;  %v2141_v29 = vrot.slane %v2140_v45, 4  ;;  %v2229_v10 = vmul.f32 0.00390625, %v2213_v1 }
 0x473   : > { %v2180_v0 = vpop.xlane.xlu0 %2179 }
 0x474   : > { %v2103_v21 = vadd.f32 %v2102_v20, %v2101_v61  ;;  %v2142_v31 = vadd.f32 %v2141_v29, %v2140_v45  ;;  %v2181_v55 = vadd.f32 %v2180_v0, %v2177_v42  ;;  %v2231_v13 = vmul.f32 %v2229_v10, %v2229_v10 }
 0x475   : > { %v2112_v20 = vsub.f32 %v7202_v17, %v2106_v27  ;;  %v2111_v29 = vsub.f32 %v7190_v58, %v2106_v27  ;;  %v2194_v27 = vsub.f32 %v7227_v35, %v2188_v5 }
 0x476   : > { %v2104_v16 = vrot.slane %v2103_v21, 1  ;;  %v2143_v44 = vrot.slane %v2142_v31, 2  ;;  %v2182_v26 = vrot.slane %v2181_v55, 4 }
 0x477   : > { %v2221_v24 = vpop.xlane.xlu0 %2220 }
 0x478   : > { %v2105_v50 = vadd.f32 %v2104_v16, %v2103_v21  ;;  %v2144_v51 = vadd.f32 %v2143_v44, %v2142_v31  ;;  %v2183_v36 = vadd.f32 %v2182_v26, %v2181_v55  ;;  %v2222_v11 = vadd.f32 %v2221_v24, %v2218_v39 }
 0x479   : > { %v2152_v16 = vsub.f32 %v7208_v9, %v2147_v41  ;;  %v2193_v24 = vsub.f32 %v7219_v37, %v2188_v5  ;;  %v2234_v41 = vsub.f32 %v7229_v23, %v2229_v10 }
 0x47a   : > { %v2107_v54 = vmul.f32 0.00390625, %v2105_v50  ;;  %v2145_v2 = vrot.slane %v2144_v51, 1  ;;  %v2184_v25 = vrot.slane %v2183_v36, 2  ;;  %v2223_v3 = vrot.slane %v2222_v11, 4 }
 0x47c   : > { %v2109_v18 = vsub.f32 %v2107_v54, %v2108_v38  ;;  %v2146_v22 = vadd.f32 %v2145_v2, %v2144_v51  ;;  %v2185_v4 = vadd.f32 %v2184_v25, %v2183_v36  ;;  %v2224_v12 = vadd.f32 %v2223_v3, %v2222_v11 }
 0x47d   : > { %v2235_v11 = vsub.f32 %v7235_v46, %v2229_v10 }
 0x47e   : > { %v2110_v33 = vmax.f32 %v2109_v18, 0.0  ;;  %v2148_v6 = vmul.f32 0.00390625, %v2146_v22  ;;  %v2186_v49 = vrot.slane %v2185_v4, 1  ;;  %v2225_v43 = vrot.slane %v2224_v12, 2 }
 0x480   : > { %v2113_v62 = vadd.f32 1e-05, %v2110_v33  ;;  %v2150_v63 = vsub.f32 %v2148_v6, %v2149_v19  ;;  %v2187_v28 = vadd.f32 %v2186_v49, %v2185_v4  ;;  %v2226_v59 = vadd.f32 %v2225_v43, %v2224_v12 }
 0x482   : > { %5148 = vrsqrt.f32 %v2113_v62  ;;  %v2151_v57 = vmax.f32 %v2150_v63, 0.0  ;;  %v2189_v53 = vmul.f32 0.00390625, %v2187_v28  ;;  %v2227_v30 = vrot.slane %v2226_v59, 1 }
 0x484   : > { %v2154_v14 = vadd.f32 1e-05, %v2151_v57  ;;  %v2191_v40 = vsub.f32 %v2189_v53, %v2190_v52  ;;  %v2228_v61 = vadd.f32 %v2227_v30, %v2226_v59 }
 0x486   : > { %5150 = vrsqrt.f32 %v2154_v14  ;;  %v2192_v45 = vmax.f32 %v2191_v40, 0.0  ;;  %v2230_v32 = vmul.f32 0.00390625, %v2228_v61 }
 0x488   : > { %v2195_v34 = vadd.f32 1e-05, %v2192_v45  ;;  %v2232_v60 = vsub.f32 %v2230_v32, %v2231_v13 }
 0x48a   : > { %5152 = vrsqrt.f32 %v2195_v34  ;;  %v2233_v42 = vmax.f32 %v2232_v60, 0.0 }
 0x48c   : > { %v5149_v0 = vpop.eup %5148  ;;  %v2236_v21 = vadd.f32 1e-05, %v2233_v42 }
 0x48d   : > { %v2116_v31 = vmul.f32 %v5149_v0, %v2112_v20  ;;  %v2115_v55 = vmul.f32 %v5149_v0, %v2111_v29 }
 0x48e   : > { %5154 = vrsqrt.f32 %v2236_v21 }
 0x48f   : > { %v2118_v8 = vmax.f32 %v2116_v31, 0.0  ;;  %v2117_v7 = vmax.f32 %v2115_v55, 0.0 }
 0x490   : > { %v5151_v44 = vpop.eup %5150 }
 0x491   : > { %2246 = vrot.lane.b32.xlu0 %v2118_v8, %s9537_s6  ;;  %2244 = vrot.lane.b32.xlu1 %v2117_v7, %s9537_s6  ;;  %v2157_v26 = vmul.f32 %v5151_v44, %v2153_v48  ;;  %v2156_v17 = vmul.f32 %v5151_v44, %v2152_v16 }
 0x493   : > { %v2159_v39 = vmax.f32 %v2157_v26, 0.0  ;;  %v2158_v58 = vmax.f32 %v2156_v17, 0.0  ;;  %v2534_v17 = vstv %s7333_s28  ;;  %s7416_s28 = sld [smem:[#allocation9 + $0xa]] }
 0x494   : > { %v5153_v50 = vpop.eup %5152 }
 0x495   : > { %2294 = vrot.lane.b32.xlu1 %v2159_v39, %s9537_s6  ;;  %2292 = vrot.lane.b32.xlu0 %v2158_v58, %s9537_s6  ;;  %v2198_v56 = vmul.f32 %v5153_v50, %v2194_v27  ;;  %v2197_v9 = vmul.f32 %v5153_v50, %v2193_v24  ;;  %v2548_v50 = vstv %s7336_s4  ;;  %s7422_s4 = sld [smem:[#allocation9 + $0xb]] }
 0x497   : > { %v2200_v51 = vmax.f32 %v2198_v56, 0.0  ;;  %v2199_v36 = vmax.f32 %v2197_v9, 0.0 }
 0x498   : > { %v5155_v15 = vpop.eup %5154 }
 0x499   : > { %2343 = vrot.lane.b32.xlu1 %v2200_v51, %s9537_s6  ;;  %2341 = vrot.lane.b32.xlu0 %v2199_v36, %s9537_s6  ;;  %v2239_v35 = vmul.f32 %v5155_v15, %v2235_v11  ;;  %v2238_v37 = vmul.f32 %v5155_v15, %v2234_v41  ;;  %v2562_v41 = vstv %s7341_s11  ;;  %s7429_s11 = sld [smem:[#allocation9 + $0xe]] }
 0x49b   : > { %v2241_v47 = vmax.f32 %v2239_v35, 0.0  ;;  %v2240_v38 = vmax.f32 %v2238_v37, 0.0 }
 0x49d   : > { %2392 = vrot.lane.b32.xlu1 %v2241_v47, %s9537_s6  ;;  %2390 = vrot.lane.b32.xlu0 %v2240_v38, %s9537_s6  ;;  %v2576_v38 = vstv %s7348_s2  ;;  %s7394_s6 = sld [smem:[#allocation9 + $0xc]]  ;;  %s7451_s2 = sld [smem:[#allocation9 + $0xf]] }
 0x503   : > { %v2245_v54 = vpop.permute.xlu1 %2244  ;;  %v2247_v2 = vpop.permute.xlu0 %2246 }
 0x504   : > { %2250 = vst.msk [vmem:[#allocation3 + $0x1] sm:$0xff] %vm235_vm0, %v2245_v54  ;;  %2251 = vst.msk [vmem:[#allocation3 + $0x9] sm:$0xff] %vm235_vm0, %v2247_v2 }
 0x505   : > { %2252 = vst.msk [vmem:[#allocation3 - $0x1] sm:$0x2] %vm238_vm1, %v2245_v54 }
 0x506   : > { %2253 = vst.msk [vmem:[#allocation3 + $0xb] sm:$0x40] %vm240_vm2, %v2247_v2  ;;  %v2590_v2 = vstv %s7351_s17  ;;  %s7465_s17 = sld [smem:[#allocation9 + $0x18]] }
 0x507   : > { %v2295_v23 = vpop.permute.xlu1 %2294  ;;  %v2293_v46 = vpop.permute.xlu0 %2292 }
 0x508   : > { %2300 = vst.msk [vmem:[#allocation3 + $0x21] sm:$0xff] %vm235_vm0, %v2295_v23  ;;  %2299 = vst.msk [vmem:[#allocation3 + $0x19] sm:$0xff] %vm235_vm0, %v2293_v46 }
 0x509   : > { %2302 = vst.msk [vmem:[#allocation3 + $0x23] sm:$0x40] %vm240_vm2, %v2295_v23  ;;  %v2604_v23 = vstv %s7353_s10  ;;  %s7505_s10 = sld [smem:[#allocation9 + $0x19]] }
 0x50a   : > { %2301 = vst.msk [vmem:[#allocation3 + $0x17] sm:$0x2] %vm238_vm1, %v2293_v46  ;;  %v2618_v46 = vstv %s7356_s21  ;;  %s4895_s21 = sld [smem:[#allocation9 + $0x1a]] }
 0x50b   : > { %v2344_v25 = vpop.permute.xlu1 %2343  ;;  %v2342_v3 = vpop.permute.xlu0 %2341  ;;  %v2255_v5 = vld [vmem:[#allocation3 + $0x8] sm:$0xff] }
 0x50c   : > { %v2254_v18 = vld [vmem:[#allocation3] sm:$0xff]  ;;  %2349 = vst.msk [vmem:[#allocation3 + $0x39] sm:$0xff] %vm235_vm0, %v2344_v25  ;;  %2348 = vst.msk [vmem:[#allocation3 + $0x31] sm:$0xff] %vm235_vm0, %v2342_v3 }
 0x50d   : > { %v2256_v22 = vld [vmem:[#allocation3 + $0x10] sm:$0x3]  ;;  %2351 = vst.msk [vmem:[#allocation3 + $0x3b] sm:$0x40] %vm240_vm2, %v2344_v25  ;;  %2260 = vrot.lane.b32.xlu1 %v2254_v18, %s9362_s30 }
 0x50e   : > { %2350 = vst.msk [vmem:[#allocation3 + $0x2f] sm:$0x2] %vm238_vm1, %v2342_v3  ;;  %2264 = vrot.lane.b32.xlu0 %v2256_v22, %s9362_s30  ;;  %v2632_v22 = vstv %s7358_s20  ;;  %s4896_s20 = sld [smem:[#allocation9 + $0x1b]] }
 0x50f   : > { %v2393_v4 = vpop.permute.xlu1 %2392  ;;  %v2391_v12 = vpop.permute.xlu0 %2390  ;;  %v2304_v19 = vld [vmem:[#allocation3 + $0x20] sm:$0xff] }
 0x510   : > { %2398 = vst.msk [vmem:[#allocation3 + $0x51] sm:$0xff] %vm235_vm0, %v2393_v4  ;;  %2397 = vst.msk [vmem:[#allocation3 + $0x49] sm:$0xff] %vm235_vm0, %v2391_v12  ;;  %v2305_v33 = vld [vmem:[#allocation3 + $0x28] sm:$0x3] }
 0x511   : > { %v2303_v1 = vld [vmem:[#allocation3 + $0x18] sm:$0xff]  ;;  %2400 = vst.msk [vmem:[#allocation3 + $0x53] sm:$0x40] %vm240_vm2, %v2393_v4  ;;  %2262 = vrot.lane.b32.xlu1 %v2255_v5, %s9362_s30  ;;  %v2458_v4 = vstv %s7370_s14  ;;  %v2440_v5 = vstv %s7362_s23  ;;  %s4897_s23 = sld [smem:[#allocation9 + $0x1c]]  ;;  %s4899_s14 = sld [smem:[#allocation9 + $0x1e]] }
 0x512   : > { %2399 = vst.msk [vmem:[#allocation3 + $0x47] sm:$0x2] %vm238_vm1, %v2391_v12  ;;  %2309 = vrot.lane.b32.xlu0 %v2303_v1, %s9362_s30  ;;  %v2444_v1 = vstv %s7364_s1  ;;  %s4898_s1 = sld [smem:[#allocation9 + $0x1d]] }
 0x513   : > { %v2353_v6 = vld [vmem:[#allocation3 + $0x38] sm:$0xff] }
 0x514   : > { %v2354_v43 = vld [vmem:[#allocation3 + $0x40] sm:$0x3] }
 0x515   : > { %2311 = vrot.lane.b32.xlu1 %v2304_v19, %s9362_s30  ;;  %v2352_v49 = vld [vmem:[#allocation3 + $0x30] sm:$0xff]  ;;  %v2464_v19 = vstv %s7375_s26  ;;  %s4901_s26 = sld [smem:[#allocation9 + $0x20]] }
 0x516   : > { %2313 = vrot.lane.b32.xlu0 %v2305_v33, %s9362_s30  ;;  %v2448_v33 = vstv %s7372_s13  ;;  %s4900_s13 = sld [smem:[#allocation9 + $0x1f]] }
 0x517   : > { %v2402_v62 = vld [vmem:[#allocation3 + $0x50] sm:$0xff] }
 0x518   : > { %v2403_v28 = vld [vmem:[#allocation3 + $0x58] sm:$0x3] }
 0x519   : > { %2360 = vrot.lane.b32.xlu1 %v2353_v6, %s9362_s30  ;;  %v2401_v63 = vld [vmem:[#allocation3 + $0x48] sm:$0xff]  ;;  %v2470_v6 = vstv %s7381_s22  ;;  %s4903_s22 = sld [smem:[#allocation9 + $0x22]] }
 0x51a   : > { %2358 = vrot.lane.b32.xlu0 %v2352_v49, %s9362_s30  ;;  %v2452_v49 = vstv %s7377_s19  ;;  %s4902_s19 = sld [smem:[#allocation9 + $0x21]] }
 0x51d   : > { %2409 = vrot.lane.b32.xlu1 %v2402_v62, %s9362_s30 }
 0x51e   : > { %2362 = vrot.lane.b32.xlu0 %v2354_v43, %s9362_s30 }
 0x522   : > { %2407 = vrot.lane.b32.xlu0 %v2401_v63, %s9362_s30 }
 0x526   : > { %2411 = vrot.lane.b32.xlu0 %v2403_v28, %s9362_s30  ;;  %v2484_v28 = vstv %s7385_s27  ;;  %s4905_s27 = sld [smem:[#allocation9 + $0x24]] }
 0x57f   : > { %v2261_v59 = vpop.permute.xlu1 %2260 }
 0x580   : > { %v2265_v10 = vpop.permute.xlu0 %2264  ;;  %2269 = vst.msk [vmem:[#allocation3] sm:$0xff] %vm257_vm3, %v2261_v59  ;;  %v2490_v59 = vstv %s7387_s29  ;;  %s4906_s29 = sld [smem:[#allocation9 + $0x25]] }
 0x581   : > { %2271 = vst.msk [vmem:[#allocation3 + $0x10] sm:$0x3] %vm260_vm4, %v2265_v10  ;;  %v2476_v10 = vstv %s7383_s7  ;;  %s4904_s7 = sld [smem:[#allocation9 + $0x23]] }
 0x583   : > { %v2263_v52 = vpop.permute.xlu1 %2262 }
 0x584   : > { %v2310_v57 = vpop.permute.xlu0 %2309  ;;  %2270 = vst.msk [vmem:[#allocation3 + $0x8] sm:$0xff] %vm257_vm3, %v2263_v52 }
 0x585   : > { %2318 = vst.msk [vmem:[#allocation3 + $0x18] sm:$0xff] %vm257_vm3, %v2310_v57 }
 0x587   : > { %v2312_v53 = vpop.permute.xlu1 %2311  ;;  %v2272_v14 = vld [vmem:[#allocation3] sm:$0xff] }
 0x588   : > { %v2314_v30 = vpop.permute.xlu0 %2313  ;;  %2319 = vst.msk [vmem:[#allocation3 + $0x20] sm:$0xff] %vm257_vm3, %v2312_v53  ;;  %2278 = vrot.lane.b32.xlu1 %v2272_v14, %s9538_s8  ;;  %v2274_v13 = vld [vmem:[#allocation3 + $0x10] sm:$0x3] }
 0x589   : > { %2320 = vst.msk [vmem:[#allocation3 + $0x28] sm:$0x3] %vm260_vm4, %v2314_v30 }
 0x58b   : > { %v2361_v40 = vpop.permute.xlu1 %2360  ;;  %v2273_v45 = vld [vmem:[#allocation3 + $0x8] sm:$0xff] }
 0x58c   : > { %v2359_v61 = vpop.permute.xlu0 %2358  ;;  %2368 = vst.msk [vmem:[#allocation3 + $0x38] sm:$0xff] %vm257_vm3, %v2361_v40  ;;  %2280 = vrot.lane.b32.xlu0 %v2273_v45, %s9538_s8  ;;  %2282 = vrot.lane.b32.xlu1 %v2274_v13, %s9538_s8  ;;  %v2321_v42 = vld [vmem:[#allocation3 + $0x18] sm:$0xff] }
 0x58d   : > { %2367 = vst.msk [vmem:[#allocation3 + $0x30] sm:$0xff] %vm257_vm3, %v2359_v61  ;;  %v2510_v61 = vstv %s7394_s6  ;;  %s4907_s6 = sld [smem:[#allocation9 + $0x26]] }
 0x58f   : > { %v2410_v32 = vpop.permute.xlu1 %2409  ;;  %v2322_v60 = vld [vmem:[#allocation3 + $0x20] sm:$0xff] }
 0x590   : > { %v2363_v34 = vpop.permute.xlu0 %2362  ;;  %2417 = vst.msk [vmem:[#allocation3 + $0x50] sm:$0xff] %vm257_vm3, %v2410_v32  ;;  %2329 = vrot.lane.b32.xlu0 %v2322_v60, %s9538_s8  ;;  %2327 = vrot.lane.b32.xlu1 %v2321_v42, %s9538_s8  ;;  %v2323_v0 = vld [vmem:[#allocation3 + $0x28] sm:$0x3] }
 0x591   : > { %2369 = vst.msk [vmem:[#allocation3 + $0x40] sm:$0x3] %vm260_vm4, %v2363_v34 }
 0x593   : > { %v2371_v29 = vld [vmem:[#allocation3 + $0x38] sm:$0xff] }
 0x594   : > { %v2408_v20 = vpop.permute.xlu0 %2407  ;;  %2378 = vrot.lane.b32.xlu0 %v2371_v29, %s9538_s8  ;;  %2331 = vrot.lane.b32.xlu1 %v2323_v0, %s9538_s8  ;;  %v2370_v55 = vld [vmem:[#allocation3 + $0x30] sm:$0xff] }
 0x595   : > { %2416 = vst.msk [vmem:[#allocation3 + $0x48] sm:$0xff] %vm257_vm3, %v2408_v20 }
 0x597   : > { %v2420_v31 = vld [vmem:[#allocation3 + $0x50] sm:$0xff] }
 0x598   : > { %v2412_v21 = vpop.permute.xlu0 %2411  ;;  %2427 = vrot.lane.b32.xlu0 %v2420_v31, %s9538_s8  ;;  %2376 = vrot.lane.b32.xlu1 %v2370_v55, %s9538_s8  ;;  %v2372_v8 = vld [vmem:[#allocation3 + $0x40] sm:$0x3] }
 0x599   : > { %2418 = vst.msk [vmem:[#allocation3 + $0x58] sm:$0x3] %vm260_vm4, %v2412_v21 }
 0x59c   : > { %2380 = vrot.lane.b32.xlu1 %v2372_v8, %s9538_s8  ;;  %v2419_v7 = vld [vmem:[#allocation3 + $0x48] sm:$0xff] }
 0x5a0   : > { %2425 = vrot.lane.b32.xlu1 %v2419_v7, %s9538_s8  ;;  %v2421_v48 = vld [vmem:[#allocation3 + $0x58] sm:$0x3] }
 0x5a4   : > { %2429 = vrot.lane.b32.xlu1 %v2421_v48, %s9538_s8  ;;  %s7398_s8 = sld [smem:[#allocation9 + $0xd]] }
 0x5aa   : > { %v2516_v42 = vstv %s7398_s8  ;;  %s4908_s8 = sld [smem:[#allocation9 + $0x27]] }
 0x5fa   : > { %v2279_v16 = vpop.permute.xlu1 %2278 }
 0x5fb   : > { %2287 = vst.msk [vmem:[#allocation3] sm:$0xff] %vm277_vm5, %v2279_v16 }
 0x5fe   : > { %v2283_v44 = vpop.permute.xlu1 %2282  ;;  %v2281_v26 = vpop.permute.xlu0 %2280 }
 0x5ff   : > { %2289 = vst.msk [vmem:[#allocation3 + $0x10] sm:$0x3] %vm280_vm6, %v2283_v44 }
 0x600   : > { %2288 = vst.msk [vmem:[#allocation3 + $0x8] sm:$0xff] %vm277_vm5, %v2281_v26 }
 0x602   : > { %v7343_v39 = vld [vmem:[#allocation3] sm:$0xff]  ;;  %v2328_v58 = vpop.permute.xlu1 %2327  ;;  %v2330_v27 = vpop.permute.xlu0 %2329 }
 0x603   : > { %2336 = vst.msk [vmem:[#allocation3 + $0x18] sm:$0xff] %vm277_vm5, %v2328_v58  ;;  %2337 = vst.msk [vmem:[#allocation3 + $0x20] sm:$0xff] %vm277_vm5, %v2330_v27  ;;  %v2535_v24 = vmul.f32 %v2534_v17, %v7343_v39  ;;  %v2549_v36 = vmul.f32 %v2548_v50, %v7343_v39  ;;  %v2563_v37 = vmul.f32 %v2562_v41, %v7343_v39  ;;  %v2496_v58 = vstv %s7416_s28  ;;  %s4909_s28 = sld [smem:[#allocation9 + $0x28]] }
 0x604   : > { %v2577_v3 = vmul.f32 %v2576_v38, %v7343_v39  ;;  %v2441_v40 = vmul.f32 %v2440_v5, %v7343_v39  ;;  %v2445_v45 = vmul.f32 %v2444_v1, %v7343_v39 }
 0x605   : > { %2539 = vrot.lane.b32.xlu0 %v2535_v24, %s9361_s0 }
 0x606   : > { %v2332_v9 = vpop.permute.xlu1 %2331  ;;  %v2379_v51 = vpop.permute.xlu0 %2378 }
 0x607   : > { %v7360_v56 = vld [vmem:[#allocation3 + $0x8] sm:$0xff]  ;;  %2338 = vst.msk [vmem:[#allocation3 + $0x28] sm:$0x3] %vm280_vm6, %v2332_v9  ;;  %v2502_v9 = vstv %s7422_s4  ;;  %s4910_s4 = sld [smem:[#allocation9 + $0x29]] }
 0x608   : > { %2386 = vst.msk [vmem:[#allocation3 + $0x38] sm:$0xff] %vm277_vm5, %v2379_v51  ;;  %v2536_v11 = vmul.f32 %v2534_v17, %v7360_v56  ;;  %v2550_v47 = vmul.f32 %v2548_v50, %v7360_v56  ;;  %v2564_v18 = vmul.f32 %v2562_v41, %v7360_v56  ;;  %v2578_v53 = vmul.f32 %v2576_v38, %v7360_v56 }
 0x609   : > { %2553 = vrot.lane.b32.xlu0 %v2549_v36, %s9361_s0  ;;  %v2442_v34 = vmul.f32 %v2440_v5, %v7360_v56  ;;  %v2446_v20 = vmul.f32 %v2444_v1, %v7360_v56  ;;  %v2453_v38 = vmul.f32 %v2452_v49, %v7343_v39  ;;  %v2528_v1 = vstv %s7451_s2  ;;  %s4912_s2 = sld [smem:[#allocation9 + $0x2b]] }
 0x60a   : > { %2541 = vrot.lane.b32.xlu1 %v2536_v11, %s9361_s0  ;;  %v2377_v15 = vpop.permute.xlu1 %2376  ;;  %v2428_v35 = vpop.permute.xlu0 %2427  ;;  %v7403_v25 = vld [vmem:[#allocation3 + $0x18] sm:$0xff]  ;;  %v7410_v12 = vld [vmem:[#allocation3 + $0x20] sm:$0xff]  ;;  %v2449_v11 = vmul.f32 %v2448_v33, %v7343_v39 }
 0x60b   : > { %2385 = vst.msk [vmem:[#allocation3 + $0x30] sm:$0xff] %vm277_vm5, %v2377_v15  ;;  %2435 = vst.msk [vmem:[#allocation3 + $0x50] sm:$0xff] %vm277_vm5, %v2428_v35  ;;  %v2459_v63 = vmul.f32 %v2458_v4, %v7403_v25  ;;  %v2591_v57 = vmul.f32 %v2590_v2, %v7403_v25  ;;  %v2460_v30 = vmul.f32 %v2458_v4, %v7410_v12  ;;  %v2522_v15 = vstv %s7429_s11  ;;  %s4911_s11 = sld [smem:[#allocation9 + $0x2a]] }
 0x60c   : > { %v2465_v14 = vmul.f32 %v2464_v19, %v7403_v25  ;;  %v2466_v13 = vmul.f32 %v2464_v19, %v7410_v12  ;;  %v2605_v0 = vmul.f32 %v2604_v23, %v7403_v25  ;;  %v2592_v8 = vmul.f32 %v2590_v2, %v7410_v12 }
 0x60d   : > { %2567 = vrot.lane.b32.xlu0 %v2563_v37, %s9361_s0  ;;  %v2461_v21 = vadd.f32 %v2459_v63, %v2441_v40  ;;  %v2462_v7 = vadd.f32 %v2460_v30, %v2442_v34  ;;  %v2471_v41 = vmul.f32 %v2470_v6, %v7403_v25  ;;  %v2619_v35 = vmul.f32 %v2618_v46, %v7403_v25 }
 0x60e   : > { %2555 = vrot.lane.b32.xlu1 %v2550_v47, %s9361_s0  ;;  %v2381_v54 = vpop.permute.xlu1 %2380  ;;  %v2467_v48 = vadd.f32 %v2465_v14, %v2445_v45  ;;  %v2468_v17 = vadd.f32 %v2466_v13, %v2446_v20  ;;  %v2606_v37 = vmul.f32 %v2604_v23, %v7410_v12  ;;  %v2472_v47 = vmul.f32 %v2470_v6, %v7410_v12 }
 0x60f   : > { %2387 = vst.msk [vmem:[#allocation3 + $0x40] sm:$0x3] %vm280_vm6, %v2381_v54  ;;  %v7424_v43 = vld [vmem:[#allocation3 + $0x38] sm:$0xff]  ;;  %v2633_v23 = vmul.f32 %v2632_v22, %v7403_v25  ;;  %v2620_v19 = vmul.f32 %v2618_v46, %v7410_v12  ;;  %v2473_v6 = vadd.f32 %v2471_v41, %v2449_v11  ;;  %v2477_v46 = vmul.f32 %v2476_v10, %v7403_v25 }
 0x610   : > { %v2486_v60 = vmul.f32 %v2484_v28, %v7424_v43  ;;  %v2492_v55 = vmul.f32 %v2490_v59, %v7424_v43  ;;  %v2454_v14 = vmul.f32 %v2452_v49, %v7360_v56  ;;  %v2646_v40 = vstv %s7465_s17  ;;  %s4913_s17 = sld [smem:[#allocation9 + $0x2c]] }
 0x611   : > { %2581 = vrot.lane.b32.xlu0 %v2577_v3, %s9361_s0  ;;  %v2478_v13 = vmul.f32 %v2476_v10, %v7410_v12  ;;  %v2504_v49 = vmul.f32 %v2502_v9, %v7424_v43 }
 0x612   : > { %2569 = vrot.lane.b32.xlu1 %v2564_v18, %s9361_s0  ;;  %v2426_v62 = vpop.permute.xlu1 %2425  ;;  %v7432_v52 = vld [vmem:[#allocation3 + $0x30] sm:$0xff]  ;;  %v2488_v27 = vadd.f32 %v2486_v60, %v2462_v7  ;;  %v2494_v36 = vadd.f32 %v2492_v55, %v2468_v17  ;;  %v2450_v18 = vmul.f32 %v2448_v33, %v7360_v56  ;;  %v2479_v60 = vadd.f32 %v2477_v46, %v2453_v38 }
 0x613   : > { %2434 = vst.msk [vmem:[#allocation3 + $0x48] sm:$0xff] %vm277_vm5, %v2426_v62  ;;  %v7443_v32 = vld [vmem:[#allocation3 + $0x50] sm:$0xff]  ;;  %v2485_v31 = vmul.f32 %v2484_v28, %v7432_v52  ;;  %v2491_v16 = vmul.f32 %v2490_v59, %v7432_v52  ;;  %v2497_v3 = vmul.f32 %v2496_v58, %v7432_v52  ;;  %v2498_v59 = vmul.f32 %v2496_v58, %v7424_v43 }
 0x614   : > { %v2512_v26 = vmul.f32 %v2510_v61, %v7443_v32  ;;  %v2518_v50 = vmul.f32 %v2516_v42, %v7443_v32  ;;  %v2474_v28 = vadd.f32 %v2472_v47, %v2450_v18  ;;  %v2503_v30 = vmul.f32 %v2502_v9, %v7432_v52 }
 0x615   : > { %2595 = vrot.lane.b32.xlu0 %v2591_v57, %s9361_s0  ;;  %v2487_v44 = vadd.f32 %v2485_v31, %v2461_v21  ;;  %v2493_v24 = vadd.f32 %v2491_v16, %v2467_v48  ;;  %v2524_v57 = vmul.f32 %v2522_v15, %v7443_v32  ;;  %v2647_v20 = vmul.f32 %v2646_v40, %v7432_v52 }
 0x616   : > { %2583 = vrot.lane.b32.xlu1 %v2578_v53, %s9361_s0  ;;  %v2430_v29 = vpop.permute.xlu1 %2429  ;;  %v7487_v2 = vadd.f32 %v2512_v26, %v2488_v27  ;;  %v7499_v5 = vadd.f32 %v2518_v50, %v2494_v36  ;;  %v2499_v53 = vadd.f32 %v2497_v3, %v2473_v6  ;;  %v2500_v45 = vadd.f32 %v2498_v59, %v2474_v28 }
 0x617   : > { %2436 = vst.msk [vmem:[#allocation3 + $0x58] sm:$0x3] %vm280_vm6, %v2430_v29  ;;  %v2505_v21 = vadd.f32 %v2503_v30, %v2479_v60  ;;  %v2660_v31 = vstv %s7505_s10  ;;  %v2648_v7 = vmul.f32 %v2646_v40, %v7424_v43  ;;  %v2674_v16 = vstv %s4895_s21  ;;  %s4914_s10 = sld [smem:[#allocation9 + $0x2d]]  ;;  %s4915_s21 = sld [smem:[#allocation9 + $0x2e]] }
 0x618   : > { %v7535_v29 = vadd.f32 %v2524_v57, %v2500_v45  ;;  %v2662_v26 = vmul.f32 %v2660_v31, %v7424_v43  ;;  %v2688_v17 = vstv %s4896_s20  ;;  %v2676_v27 = vmul.f32 %v2674_v16, %v7424_v43  ;;  %s4916_s20 = sld [smem:[#allocation9 + $0x2f]] }
 0x619   : > { %2609 = vrot.lane.b32.xlu0 %v2605_v0, %s9361_s0  ;;  %v2480_v0 = vadd.f32 %v2478_v13, %v2454_v14  ;;  %v2689_v58 = vmul.f32 %v2688_v17, %v7432_v52  ;;  %v2690_v9 = vmul.f32 %v2688_v17, %v7424_v43  ;;  %v2716_v36 = vstv %s4898_s1  ;;  %s7639_s1 = sld [smem:[#allocation9 + $0x41]] }
 0x61a   : > { %2597 = vrot.lane.b32.xlu1 %v2592_v8, %s9361_s0  ;;  %v7469_v51 = vld [vmem:[#allocation3 + $0x48] sm:$0xff]  ;;  %v2661_v8 = vmul.f32 %v2660_v31, %v7432_v52  ;;  %v2744_v47 = vstv %s4900_s13  ;;  %v2758_v3 = vstv %s4901_s26  ;;  %v2786_v6 = vstv %s4903_s22  ;;  %s7665_s13 = sld [smem:[#allocation9 + $0x43]]  ;;  %s7676_s26 = sld [smem:[#allocation9 + $0x44]] }
 0x61b   : > { %v2511_v54 = vmul.f32 %v2510_v61, %v7469_v51  ;;  %v2517_v4 = vmul.f32 %v2516_v42, %v7469_v51  ;;  %v2523_v62 = vmul.f32 %v2522_v15, %v7469_v51  ;;  %v2634_v61 = vmul.f32 %v2632_v22, %v7410_v12  ;;  %s7700_s22 = sld [smem:[#allocation9 + $0x46]] }
 0x61c   : > { %v2529_v42 = vmul.f32 %v2528_v1, %v7469_v51  ;;  %v2530_v22 = vmul.f32 %v2528_v1, %v7443_v32  ;;  %v2506_v10 = vadd.f32 %v2504_v49, %v2480_v0  ;;  %v2717_v11 = vmul.f32 %v2716_v36, %v7469_v51 }
 0x61d   : > { %2623 = vrot.lane.b32.xlu0 %v2619_v35, %s9361_s0  ;;  %v7507_v33 = vadd.f32 %v2511_v54, %v2487_v44  ;;  %v7510_v63 = vadd.f32 %v2517_v4, %v2493_v24  ;;  %v7530_v34 = vadd.f32 %v2523_v62, %v2499_v53  ;;  %v2675_v44 = vmul.f32 %v2674_v16, %v7432_v52 }
 0x61e   : > { %2611 = vrot.lane.b32.xlu1 %v2606_v37, %s9361_s0  ;;  %v7541_v55 = vadd.f32 %v2529_v42, %v2505_v21  ;;  %v7545_v48 = vadd.f32 %v2530_v22, %v2506_v10  ;;  %v2702_v24 = vstv %s4897_s23  ;;  %v2730_v15 = vstv %s4899_s14  ;;  %s7629_s23 = sld [smem:[#allocation9 + $0x40]]  ;;  %s7652_s14 = sld [smem:[#allocation9 + $0x42]] }
 0x61f   : > { %v2703_v50 = vmul.f32 %v2702_v24, %v7469_v51  ;;  %v2704_v41 = vmul.f32 %v2702_v24, %v7443_v32  ;;  %v2731_v35 = vmul.f32 %v2730_v15, %v7469_v51  ;;  %v2718_v37 = vmul.f32 %v2716_v36, %v7443_v32 }
 0x620   : > { %v2745_v38 = vmul.f32 %v2744_v47, %v7469_v51  ;;  %v2732_v54 = vmul.f32 %v2730_v15, %v7443_v32  ;;  %v2759_v18 = vmul.f32 %v2758_v3, %v7343_v39  ;;  %v2772_v4 = vstv %s4902_s19  ;;  %s7687_s19 = sld [smem:[#allocation9 + $0x45]] }
 0x621   : > { %2637 = vrot.lane.b32.xlu0 %v2633_v23, %s9361_s0  ;;  %v2746_v23 = vmul.f32 %v2744_v47, %v7443_v32  ;;  %v2773_v1 = vmul.f32 %v2772_v4, %v7343_v39  ;;  %v2787_v62 = vmul.f32 %v2786_v6, %v7343_v39  ;;  %v2774_v28 = vmul.f32 %v2772_v4, %v7360_v56 }
 0x622   : > { %2625 = vrot.lane.b32.xlu1 %v2620_v19, %s9361_s0  ;;  %v2760_v19 = vmul.f32 %v2758_v3, %v7360_v56  ;;  %v2800_v59 = vstv %s4904_s7  ;;  %v2788_v53 = vmul.f32 %v2786_v6, %v7360_v56  ;;  %v2814_v46 = vstv %s4905_s27  ;;  %s7713_s7 = sld [smem:[#allocation9 + $0x47]]  ;;  %s7724_s27 = sld [smem:[#allocation9 + $0x48]] }
 0x623   : > { %v2801_v57 = vmul.f32 %v2800_v59, %v7343_v39  ;;  %v2815_v30 = vmul.f32 %v2814_v46, %v7403_v25  ;;  %v2802_v14 = vmul.f32 %v2800_v59, %v7360_v56  ;;  %v2828_v40 = vstv %s4906_s29  ;;  %s7735_s29 = sld [smem:[#allocation9 + $0x49]] }
 0x624   : > { %v2829_v39 = vmul.f32 %v2828_v40, %v7403_v25  ;;  %v2842_v45 = vstv %s4907_s6  ;;  %v2830_v56 = vmul.f32 %v2828_v40, %v7410_v12  ;;  %v2856_v60 = vstv %s4908_s8  ;;  %s7748_s6 = sld [smem:[#allocation9 + $0x4a]]  ;;  %s7761_s8 = sld [smem:[#allocation9 + $0x4b]] }
 0x625   : > { %2651 = vrot.lane.b32.xlu0 %v2647_v20, %s9361_s0  ;;  %v2843_v13 = vmul.f32 %v2842_v45, %v7403_v25  ;;  %v2857_v42 = vmul.f32 %v2856_v60, %v7403_v25  ;;  %v2844_v49 = vmul.f32 %v2842_v45, %v7410_v12  ;;  %v2870_v20 = vstv %s4909_s28  ;;  %s7772_s28 = sld [smem:[#allocation9 + $0x4c]] }
 0x626   : > { %2639 = vrot.lane.b32.xlu1 %v2634_v61, %s9361_s0  ;;  %v2816_v61 = vmul.f32 %v2814_v46, %v7410_v12  ;;  %v2871_v0 = vmul.f32 %v2870_v20, %v7432_v52  ;;  %v2858_v22 = vmul.f32 %v2856_v60, %v7410_v12  ;;  %v2884_v21 = vstv %s4910_s4  ;;  %s7783_s4 = sld [smem:[#allocation9 + $0x4d]] }
 0x627   : > { %v2885_v25 = vmul.f32 %v2884_v21, %v7432_v52  ;;  %v2872_v10 = vmul.f32 %v2870_v20, %v7424_v43  ;;  %v2898_v31 = vstv %s4911_s11  ;;  %v2886_v12 = vmul.f32 %v2884_v21, %v7424_v43  ;;  %s7796_s11 = sld [smem:[#allocation9 + $0x4e]] }
 0x628   : > { %v2968_v15 = vstv %s4916_s20  ;;  %v3086_v3 = vstv %s7629_s23  ;;  %s7850_s20 = sld [smem:[#allocation9 + $0x53]]  ;;  %s7854_s23 = sld [smem:[#allocation9 + $0x54]] }
 0x629   : > { %2665 = vrot.lane.b32.xlu0 %v2661_v8, %s9361_s0  ;;  %v2899_v8 = vmul.f32 %v2898_v31, %v7432_v52  ;;  %v2969_v47 = vmul.f32 %v2968_v15, %v7469_v51 }
 0x62a   : > { %2653 = vrot.lane.b32.xlu1 %v2648_v7, %s9361_s0  ;;  %v2912_v7 = vstv %s4912_s2  ;;  %s4948_s2 = sld [smem:[#allocation9 + $0x4f]] }
 0x62b   : > { %v2913_v16 = vmul.f32 %v2912_v7, %v7432_v52 }
 0x62d   : > { %2679 = vrot.lane.b32.xlu0 %v2675_v44, %s9361_s0  ;;  %v2900_v44 = vmul.f32 %v2898_v31, %v7424_v43 }
 0x62e   : > { %2667 = vrot.lane.b32.xlu1 %v2662_v26, %s9361_s0  ;;  %v2926_v26 = vstv %s4913_s17  ;;  %s7818_s17 = sld [smem:[#allocation9 + $0x50]] }
 0x62f   : > { %v2927_v17 = vmul.f32 %v2926_v26, %v7469_v51 }
 0x631   : > { %2693 = vrot.lane.b32.xlu0 %v2689_v58, %s9361_s0  ;;  %v2914_v58 = vmul.f32 %v2912_v7, %v7424_v43  ;;  %v2954_v43 = vstv %s4915_s21  ;;  %s7839_s21 = sld [smem:[#allocation9 + $0x52]] }
 0x632   : > { %2681 = vrot.lane.b32.xlu1 %v2676_v27, %s9361_s0  ;;  %v2940_v27 = vstv %s4914_s10  ;;  %s7828_s10 = sld [smem:[#allocation9 + $0x51]] }
 0x633   : > { %v2941_v52 = vmul.f32 %v2940_v27, %v7469_v51 }
 0x635   : > { %2707 = vrot.lane.b32.xlu0 %v2703_v50, %s9361_s0  ;;  %v2928_v50 = vmul.f32 %v2926_v26, %v7443_v32  ;;  %v3184_v26 = vstv %s7713_s7  ;;  %s7875_s7 = sld [smem:[#allocation9 + $0x59]] }
 0x636   : > { %2695 = vrot.lane.b32.xlu1 %v2690_v9, %s9361_s0 }
 0x639   : > { %2721 = vrot.lane.b32.xlu0 %v2717_v11, %s9361_s0  ;;  %v2955_v11 = vmul.f32 %v2954_v43, %v7469_v51  ;;  %v2970_v51 = vmul.f32 %v2968_v15, %v7443_v32 }
 0x63a   : > { %2709 = vrot.lane.b32.xlu1 %v2704_v41, %s9361_s0  ;;  %v2942_v41 = vmul.f32 %v2940_v27, %v7443_v32 }
 0x63d   : > { %2735 = vrot.lane.b32.xlu0 %v2731_v35, %s9361_s0 }
 0x63e   : > { %2723 = vrot.lane.b32.xlu1 %v2718_v37, %s9361_s0 }
 0x641   : > { %2749 = vrot.lane.b32.xlu0 %v2745_v38, %s9361_s0  ;;  %v2956_v38 = vmul.f32 %v2954_v43, %v7443_v32  ;;  %v3198_v43 = vstv %s7724_s27  ;;  %s7879_s27 = sld [smem:[#allocation9 + $0x31]] }
 0x642   : > { %2737 = vrot.lane.b32.xlu1 %v2732_v54, %s9361_s0  ;;  %v7649_v54 = vld [vmem:[#allocation3 + $0x1] sm:$0xff] }
 0x643   : > { %v3087_v4 = vmul.f32 %v3086_v3, %v7649_v54 }
 0x645   : > { %2763 = vrot.lane.b32.xlu0 %v2759_v18, %s9362_s30 }
 0x646   : > { %2751 = vrot.lane.b32.xlu1 %v2746_v23, %s9361_s0 }
 0x649   : > { %2777 = vrot.lane.b32.xlu0 %v2773_v1, %s9362_s30  ;;  %v7662_v1 = vld [vmem:[#allocation3 + $0x9] sm:$0xff] }
 0x64a   : > { %2765 = vrot.lane.b32.xlu1 %v2760_v19, %s9362_s30  ;;  %v3100_v19 = vstv %s7639_s1  ;;  %v3088_v59 = vmul.f32 %v3086_v3, %v7662_v1  ;;  %v3212_v3 = vstv %s7735_s29  ;;  %s7856_s1 = sld [smem:[#allocation9 + $0x55]] }
 0x64b   : > { %s7881_s29 = sld [smem:[#allocation9 + $0x35]] }
 0x64d   : > { %2791 = vrot.lane.b32.xlu0 %v2787_v62, %s9362_s30 }
 0x64e   : > { %2779 = vrot.lane.b32.xlu1 %v2774_v28, %s9362_s30  ;;  %v3101_v28 = vmul.f32 %v3100_v19, %v7649_v54 }
 0x651   : > { %2805 = vrot.lane.b32.xlu0 %v2801_v57, %s9362_s30  ;;  %v3114_v57 = vstv %s7652_s14  ;;  %s7858_s14 = sld [smem:[#allocation9 + $0x56]] }
 0x652   : > { %2793 = vrot.lane.b32.xlu1 %v2788_v53, %s9362_s30  ;;  %v3115_v46 = vmul.f32 %v3114_v57, %v7649_v54  ;;  %v3116_v45 = vmul.f32 %v3114_v57, %v7662_v1 }
 0x655   : > { %2819 = vrot.lane.b32.xlu0 %v2815_v30, %s9362_s30  ;;  %v3102_v30 = vmul.f32 %v3100_v19, %v7662_v1 }
 0x656   : > { %2807 = vrot.lane.b32.xlu1 %v2802_v14, %s9362_s30  ;;  %v3128_v14 = vstv %s7665_s13  ;;  %s7860_s13 = sld [smem:[#allocation9 + $0x57]] }
 0x657   : > { %v3130_v20 = vmul.f32 %v3128_v14, %v7662_v1 }
 0x659   : > { %2833 = vrot.lane.b32.xlu0 %v2829_v39, %s9362_s30 }
 0x65a   : > { %2821 = vrot.lane.b32.xlu1 %v2816_v61, %s9362_s30  ;;  %v3129_v61 = vmul.f32 %v3128_v14, %v7649_v54 }
 0x65d   : > { %2847 = vrot.lane.b32.xlu0 %v2843_v13, %s9362_s30  ;;  %v7697_v13 = vld [vmem:[#allocation3 + $0x19] sm:$0xff] }
 0x65e   : > { %2835 = vrot.lane.b32.xlu1 %v2830_v56, %s9362_s30  ;;  %v3142_v56 = vstv %s7676_s26  ;;  %v3185_v27 = vmul.f32 %v3184_v26, %v7697_v13  ;;  %s7868_s26 = sld [smem:[#allocation9 + $0x58]] }
 0x661   : > { %2861 = vrot.lane.b32.xlu0 %v2857_v42, %s9362_s30 }
 0x662   : > { %2849 = vrot.lane.b32.xlu1 %v2844_v49, %s9362_s30  ;;  %v3143_v49 = vmul.f32 %v3142_v56, %v7697_v13 }
 0x665   : > { %2875 = vrot.lane.b32.xlu0 %v2871_v0, %s9362_s30  ;;  %v7710_v0 = vld [vmem:[#allocation3 + $0x21] sm:$0xff] }
 0x666   : > { %2863 = vrot.lane.b32.xlu1 %v2858_v22, %s9362_s30  ;;  %9541 = vst [vmem:[#allocation40_spill] sm:$0xff] %v7710_v0  ;;  %v3156_v22 = vstv %s7687_s19  ;;  %v3144_v31 = vmul.f32 %v3142_v56, %v7710_v0  ;;  %s7870_s19 = sld [smem:[#allocation9 + $0x30]] }
 0x669   : > { %2889 = vrot.lane.b32.xlu0 %v2885_v25, %s9362_s30 }
 0x66a   : > { %2877 = vrot.lane.b32.xlu1 %v2872_v10, %s9362_s30  ;;  %v3157_v10 = vmul.f32 %v3156_v22, %v7697_v13 }
 0x66d   : > { %2903 = vrot.lane.b32.xlu0 %v2899_v8, %s9362_s30  ;;  %v3170_v8 = vstv %s7700_s22  ;;  %s7873_s22 = sld [smem:[#allocation9 + $0x34]] }
 0x66e   : > { %2891 = vrot.lane.b32.xlu1 %v2886_v12, %s9362_s30 }
 0x671   : > { %2917 = vrot.lane.b32.xlu0 %v2913_v16, %s9362_s30  ;;  %v3171_v16 = vmul.f32 %v3170_v8, %v7697_v13 }
 0x672   : > { %2905 = vrot.lane.b32.xlu1 %v2900_v44, %s9362_s30  ;;  %v3158_v44 = vmul.f32 %v3156_v22, %v7710_v0  ;;  %v7793_v22 = vld [vmem:[#allocation3 + $0x49] sm:$0xff] }
 0x675   : > { %2931 = vrot.lane.b32.xlu0 %v2927_v17, %s9362_s30 }
 0x676   : > { %2919 = vrot.lane.b32.xlu1 %v2914_v58, %s9362_s30 }
 0x677   : > { %v7625_v24 = vpop.permute.xlu0 %2539 }
 0x679   : > { %2945 = vrot.lane.b32.xlu0 %v2941_v52, %s9362_s30  ;;  %v3172_v52 = vmul.f32 %v3170_v8, %v7710_v0 }
 0x67a   : > { %2933 = vrot.lane.b32.xlu1 %v2928_v50, %s9362_s30  ;;  %v7745_v50 = vld [vmem:[#allocation3 + $0x31] sm:$0xff] }
 0x67b   : > { %v7635_v36 = vpop.permute.xlu0 %2553  ;;  %v3199_v15 = vmul.f32 %v3198_v43, %v7745_v50  ;;  %v3213_v19 = vmul.f32 %v3212_v3, %v7745_v50 }
 0x67c   : > { %v7633_v9 = vpop.permute.xlu1 %2541 }
 0x67d   : > { %2959 = vrot.lane.b32.xlu0 %v2955_v11, %s9362_s30 }
 0x67e   : > { %2947 = vrot.lane.b32.xlu1 %v2942_v41, %s9362_s30 }
 0x67f   : > { %v7645_v37 = vpop.permute.xlu0 %2567 }
 0x680   : > { %v7643_v35 = vpop.permute.xlu1 %2555 }
 0x681   : > { %2973 = vrot.lane.b32.xlu0 %v2969_v47, %s9362_s30  ;;  %v3186_v47 = vmul.f32 %v3184_v26, %v7710_v0  ;;  %v7806_v26 = vld [vmem:[#allocation3 + $0x51] sm:$0xff] }
 0x682   : > { %2961 = vrot.lane.b32.xlu1 %v2956_v38, %s9362_s30  ;;  %v7758_v38 = vld [vmem:[#allocation3 + $0x39] sm:$0xff] }
 0x683   : > { %v7658_v23 = vpop.permute.xlu0 %2581  ;;  %v3214_v14 = vmul.f32 %v3212_v3, %v7758_v38  ;;  %v3282_v3 = vstv %s7796_s11  ;;  %s7898_s11 = sld [smem:[#allocation9 + $0x33]] }
 0x684   : > { %v7656_v18 = vpop.permute.xlu1 %2569 }
 0x685   : > { %3091 = vrot.lane.b32.xlu0 %v3087_v4, %s9361_s0 }
 0x686   : > { %2975 = vrot.lane.b32.xlu1 %v2970_v51, %s9362_s30 }
 0x687   : > { %v7671_v62 = vpop.permute.xlu0 %2595 }
 0x688   : > { %v7669_v6 = vpop.permute.xlu1 %2583 }
 0x689   : > { %3105 = vrot.lane.b32.xlu0 %v3101_v28, %s9361_s0  ;;  %v3200_v28 = vmul.f32 %v3198_v43, %v7758_v38 }
 0x68a   : > { %3093 = vrot.lane.b32.xlu1 %v3088_v59, %s9361_s0  ;;  %v3226_v59 = vstv %s7748_s6  ;;  %s7883_s6 = sld [smem:[#allocation9 + $0x5a]] }
 0x68b   : > { %v7682_v53 = vpop.permute.xlu0 %2609 }
 0x68c   : > { %v7680_v32 = vpop.permute.xlu1 %2597 }
 0x68d   : > { %3119 = vrot.lane.b32.xlu0 %v3115_v46, %s9361_s0 }
 0x68e   : > { %3107 = vrot.lane.b32.xlu1 %v3102_v30, %s9361_s0  ;;  %v3227_v30 = vmul.f32 %v3226_v59, %v7745_v50 }
 0x68f   : > { %v7693_v39 = vpop.permute.xlu0 %2623 }
 0x690   : > { %v7691_v40 = vpop.permute.xlu1 %2611 }
 0x691   : > { %3133 = vrot.lane.b32.xlu0 %v3129_v61, %s9361_s0  ;;  %v3240_v61 = vstv %s7761_s8  ;;  %s7885_s8 = sld [smem:[#allocation9 + $0x32]] }
 0x692   : > { %3121 = vrot.lane.b32.xlu1 %v3116_v45, %s9361_s0 }
 0x693   : > { %v7706_v42 = vpop.permute.xlu0 %2637 }
 0x694   : > { %v7704_v60 = vpop.permute.xlu1 %2625  ;;  %9540 = vst [vmem:[#allocation39_spill] sm:$0xff] %v7706_v42 }
 0x695   : > { %9539 = vst [vmem:[#allocation26_spill] sm:$0xff] %v7704_v60  ;;  %3147 = vrot.lane.b32.xlu0 %v3143_v49, %s9361_s0  ;;  %v3241_v49 = vmul.f32 %v3240_v61, %v7745_v50 }
 0x696   : > { %3135 = vrot.lane.b32.xlu1 %v3130_v20, %s9361_s0  ;;  %v3228_v20 = vmul.f32 %v3226_v59, %v7758_v38  ;;  %v3283_v59 = vmul.f32 %v3282_v3, %v7793_v22 }
 0x697   : > { %v7719_v25 = vpop.permute.xlu0 %2651 }
 0x698   : > { %v7717_v21 = vpop.permute.xlu1 %2639 }
 0x699   : > { %9542 = vst [vmem:[#allocation21_spill] sm:$0xff] %v7717_v21  ;;  %3161 = vrot.lane.b32.xlu0 %v3157_v10, %s9361_s0  ;;  %v3254_v10 = vstv %s7772_s28  ;;  %s7893_s28 = sld [smem:[#allocation9 + $0x36]] }
 0x69a   : > { %3149 = vrot.lane.b32.xlu1 %v3144_v31, %s9361_s0 }
 0x69b   : > { %v7730_v7 = vpop.permute.xlu0 %2665 }
 0x69c   : > { %v7728_v12 = vpop.permute.xlu1 %2653 }
 0x69d   : > { %3175 = vrot.lane.b32.xlu0 %v3171_v16, %s9361_s0  ;;  %v3255_v16 = vmul.f32 %v3254_v10, %v7793_v22 }
 0x69e   : > { %3163 = vrot.lane.b32.xlu1 %v3158_v44, %s9361_s0  ;;  %v3242_v44 = vmul.f32 %v3240_v61, %v7758_v38 }
 0x69f   : > { %v7741_v58 = vpop.permute.xlu0 %2679 }
 0x6a0   : > { %v7739_v17 = vpop.permute.xlu1 %2667  ;;  %9544 = vst [vmem:[#allocation33_spill] sm:$0xff] %v7741_v58 }
 0x6a1   : > { %9543 = vst [vmem:[#allocation22_spill] sm:$0xff] %v7739_v17  ;;  %3189 = vrot.lane.b32.xlu0 %v3185_v27, %s9361_s0  ;;  %v3268_v27 = vstv %s7783_s4  ;;  %s7895_s4 = sld [smem:[#allocation9 + $0x5b]] }
 0x6a2   : > { %3177 = vrot.lane.b32.xlu1 %v3172_v52, %s9361_s0 }
 0x6a3   : > { %v7754_v41 = vpop.permute.xlu0 %2693 }
 0x6a4   : > { %v7752_v11 = vpop.permute.xlu1 %2681  ;;  %9546 = vst [vmem:[#allocation36_spill] sm:$0xff] %v7754_v41 }
 0x6a5   : > { %9545 = vst [vmem:[#allocation45_spill] sm:$0xff] %v7752_v11  ;;  %3203 = vrot.lane.b32.xlu0 %v3199_v15, %s9361_s0  ;;  %v3269_v15 = vmul.f32 %v3268_v27, %v7793_v22  ;;  %v3002_v11 = vstv %s7898_s11  ;;  %s4987_s11 = sld [smem:[#allocation9 + $0x76]] }
 0x6a6   : > { %3191 = vrot.lane.b32.xlu1 %v3186_v47, %s9361_s0  ;;  %v3256_v47 = vmul.f32 %v3254_v10, %v7806_v26  ;;  %v3284_v10 = vmul.f32 %v3282_v3, %v7806_v26 }
 0x6a7   : > { %v7767_v51 = vpop.permute.xlu0 %2707 }
 0x6a8   : > { %v7765_v4 = vpop.permute.xlu1 %2695 }
 0x6a9   : > { %9547 = vst [vmem:[#allocation37_spill] sm:$0xff] %v7765_v4  ;;  %3217 = vrot.lane.b32.xlu0 %v3213_v19, %s9361_s0 }
 0x6aa   : > { %3205 = vrot.lane.b32.xlu1 %v3200_v28, %s9361_s0 }
 0x6ab   : > { %v7778_v46 = vpop.permute.xlu0 %2721 }
 0x6ac   : > { %v7776_v57 = vpop.permute.xlu1 %2709 }
 0x6ad   : > { %3231 = vrot.lane.b32.xlu0 %v3227_v30, %s9361_s0  ;;  %v3270_v30 = vmul.f32 %v3268_v27, %v7806_v26 }
 0x6ae   : > { %3219 = vrot.lane.b32.xlu1 %v3214_v14, %s9361_s0  ;;  %v3296_v14 = vstv %s4948_s2  ;;  %s7900_s2 = sld [smem:[#allocation9 + $0x37]] }
 0x6af   : > { %v7789_v56 = vpop.permute.xlu0 %2735 }
 0x6b0   : > { %v7787_v45 = vpop.permute.xlu1 %2723  ;;  %9549 = vst [vmem:[#allocation23_spill] sm:$0xff] %v7789_v56  ;;  %v3022_v56 = vstv %s7893_s28  ;;  %s8302_s28 = sld [smem:[#allocation9 + $0x74]] }
 0x6b1   : > { %9548 = vst [vmem:[#allocation38_spill] sm:$0xff] %v7787_v45  ;;  %3245 = vrot.lane.b32.xlu0 %v3241_v49, %s9361_s0  ;;  %v3464_v45 = vstv %s7895_s4  ;;  %s8312_s4 = sld [smem:[#allocation9 + $0x75]] }
 0x6b2   : > { %3233 = vrot.lane.b32.xlu1 %v3228_v20, %s9361_s0  ;;  %v3297_v20 = vmul.f32 %v3296_v14, %v7793_v22 }
 0x6b3   : > { %v7802_v8 = vpop.permute.xlu0 %2749 }
 0x6b4   : > { %v7800_v31 = vpop.permute.xlu1 %2737  ;;  %9551 = vst [vmem:[#allocation34_spill] sm:$0xff] %v7802_v8  ;;  %v3408_v8 = vstv %s7860_s13  ;;  %s8084_s13 = sld [smem:[#allocation9 + $0x3a]] }
 0x6b5   : > { %9550 = vst [vmem:[#allocation46_spill] sm:$0xff] %v7800_v31  ;;  %3259 = vrot.lane.b32.xlu0 %v3255_v16, %s9361_s0  ;;  %v3310_v16 = vstv %s7818_s17  ;;  %s7904_s17 = sld [smem:[#allocation9 + $0x5c]]  ;;  %v3436_v31 = vstv %s7875_s7  ;;  %v3409_v21 = vmul.f32 %v3408_v8, %v7697_v13  ;;  %v7960_v60 = vmul.f32 %v3408_v8, %v7710_v0  ;;  %s8200_s7 = sld [smem:[#allocation9 + $0x5f]] }
 0x6b6   : > { %3247 = vrot.lane.b32.xlu1 %v3242_v44, %s9361_s0 }
 0x6b7   : > { %v7813_v43 = vpop.permute.xlu0 %2763 }
 0x6b8   : > { %v7811_v52 = vpop.permute.xlu1 %2751 }
 0x6b9   : > { %9552 = vst [vmem:[#allocation41_spill] sm:$0xff] %v7811_v52  ;;  %3273 = vrot.lane.b32.xlu0 %v3269_v15, %s9361_s0  ;;  %v3311_v15 = vmul.f32 %v3310_v16, %v7649_v54  ;;  %v3394_v52 = vstv %s7858_s14  ;;  %s8037_s14 = sld [smem:[#allocation9 + $0x5e]] }
 0x6ba   : > { %3261 = vrot.lane.b32.xlu1 %v3256_v47, %s9361_s0  ;;  %v3298_v47 = vmul.f32 %v3296_v14, %v7806_v26  ;;  %v3312_v14 = vmul.f32 %v3310_v16, %v7662_v1 }
 0x6bb   : > { %v7824_v28 = vpop.permute.xlu0 %2777  ;;  %v3478_v42 = vstv %s7904_s17  ;;  %s8344_s17 = sld [smem:[#allocation9 + $0x78]] }
 0x6bc   : > { %v7822_v19 = vpop.permute.xlu1 %2765  ;;  %9554 = vst [vmem:[#allocation28_spill] sm:$0xff] %v7824_v28 }
 0x6bd   : > { %9553 = vst [vmem:[#allocation27_spill] sm:$0xff] %v7822_v19  ;;  %3287 = vrot.lane.b32.xlu0 %v3283_v59, %s9361_s0  ;;  %v3324_v59 = vstv %s7828_s10  ;;  %s7906_s10 = sld [smem:[#allocation9 + $0x38]] }
 0x6be   : > { %3275 = vrot.lane.b32.xlu1 %v3270_v30, %s9361_s0 }
 0x6bf   : > { %v7834_v49 = vpop.permute.xlu0 %2791 }
 0x6c0   : > { %v7832_v61 = vpop.permute.xlu1 %2779  ;;  %9556 = vst [vmem:[#allocation42_spill] sm:$0xff] %v7834_v49  ;;  %v2990_v49 = vstv %s7879_s27  ;;  %s8232_s27 = sld [smem:[#allocation9 + $0x70]] }
 0x6c1   : > { %9555 = vst [vmem:[#allocation52_spill] sm:$0xff] %v7832_v61  ;;  %3301 = vrot.lane.b32.xlu0 %v3297_v20, %s9361_s0  ;;  %v3325_v20 = vmul.f32 %v3324_v59, %v7649_v54  ;;  %v3016_v61 = vstv %s7881_s29  ;;  %s8263_s29 = sld [smem:[#allocation9 + $0x71]] }
 0x6c2   : > { %3289 = vrot.lane.b32.xlu1 %v3284_v10, %s9361_s0  ;;  %v3338_v10 = vstv %s7839_s21  ;;  %s7908_s21 = sld [smem:[#allocation9 + $0x3c]] }
 0x6c3   : > { %v7845_v27 = vpop.permute.xlu0 %2805  ;;  %v3036_v28 = vstv %s7906_s10  ;;  %s8354_s10 = sld [smem:[#allocation9 + $0x79]] }
 0x6c4   : > { %v7843_v44 = vpop.permute.xlu1 %2793  ;;  %9558 = vst [vmem:[#allocation29_spill] sm:$0xff] %v7845_v27  ;;  %v3340_v27 = vmul.f32 %v3338_v10, %v7662_v1 }
 0x6c5   : > { %9557 = vst [vmem:[#allocation50_spill] sm:$0xff] %v7843_v44  ;;  %3315 = vrot.lane.b32.xlu0 %v3311_v15, %s9362_s30  ;;  %v3366_v44 = vstv %s7854_s23  ;;  %s7946_s23 = sld [smem:[#allocation9 + $0x39]] }
 0x6c6   : > { %3303 = vrot.lane.b32.xlu1 %v3298_v47, %s9361_s0  ;;  %v3326_v47 = vmul.f32 %v3324_v59, %v7662_v1 }
 0x6c7   : > { %v7864_v30 = vpop.permute.xlu0 %2819 }
 0x6c8   : > { %v7862_v3 = vpop.permute.xlu1 %2807 }
 0x6c9   : > { %9559 = vst [vmem:[#allocation35_spill] sm:$0xff] %v7862_v3  ;;  %3329 = vrot.lane.b32.xlu0 %v3325_v20, %s9362_s30  ;;  %v3339_v3 = vmul.f32 %v3338_v10, %v7649_v54  ;;  %v3010_v10 = vstv %s7873_s22  ;;  %s8161_s22 = sld [smem:[#allocation9 + $0x3f]] }
 0x6ca   : > { %3317 = vrot.lane.b32.xlu1 %v3312_v14, %s9362_s30  ;;  %v3352_v14 = vstv %s7850_s20  ;;  %s7924_s20 = sld [smem:[#allocation9 + $0x5d]]  ;;  %v7969_v19 = vmul.f32 %v3010_v10, %v7697_v13 }
 0x6cb   : > { %v7889_v15 = vpop.permute.xlu0 %2833 }
 0x6cc   : > { %v7887_v16 = vpop.permute.xlu1 %2821  ;;  %9561 = vst [vmem:[#allocation48_spill] sm:$0xff] %v7889_v15  ;;  %v3450_v15 = vstv %s7883_s6  ;;  %9569 = vst [vmem:[#allocation32_spill] sm:$0xff] %v7969_v19  ;;  %v7991_v19 = vmul.f32 %v2990_v49, %v7649_v54  ;;  %s4983_s6 = sld [smem:[#allocation9 + $0x72]] }
 0x6cd   : > { %9560 = vst [vmem:[#allocation51_spill] sm:$0xff] %v7887_v16  ;;  %3343 = vrot.lane.b32.xlu0 %v3339_v3, %s9362_s30  ;;  %v3380_v3 = vstv %s7856_s1  ;;  %v2996_v16 = vstv %s7885_s8  ;;  %s7986_s1 = sld [smem:[#allocation9 + $0x3d]]  ;;  %s4984_s8 = sld [smem:[#allocation9 + $0x73]] }
 0x6ce   : > { %3331 = vrot.lane.b32.xlu1 %v3326_v47, %s9362_s30  ;;  %v3353_v47 = vmul.f32 %v3352_v14, %v7649_v54  ;;  %9572 = vst [vmem:[#allocation19_spill] sm:$0xff] %v7991_v19  ;;  %v8020_v19 = vmul.f32 %v3450_v15, %v7758_v38 }
 0x6cf   : > { %v7912_v20 = vpop.permute.xlu0 %2847 }
 0x6d0   : > { %v7910_v59 = vpop.permute.xlu1 %2835  ;;  %9563 = vst [vmem:[#allocation47_spill] sm:$0xff] %v7912_v20  ;;  %v2984_v20 = vstv %s7870_s19  ;;  %s8141_s19 = sld [smem:[#allocation9 + $0x3b]] }
 0x6d1   : > { %9562 = vst [vmem:[#allocation43_spill] sm:$0xff] %v7910_v59  ;;  %3357 = vrot.lane.b32.xlu0 %v3353_v47, %s9362_s30  ;;  %v3422_v59 = vstv %s7868_s26  ;;  %v3367_v47 = vmul.f32 %v3366_v44, %v7697_v13  ;;  %v7980_v8 = vmul.f32 %v2984_v20, %v7662_v1  ;;  %s8118_s26 = sld [smem:[#allocation9 + $0x3e]] }
 0x6d2   : > { %3345 = vrot.lane.b32.xlu1 %v3340_v27, %s9362_s30  ;;  %v3354_v27 = vmul.f32 %v3352_v14, %v7662_v1  ;;  %v3381_v14 = vmul.f32 %v3380_v3, %v7697_v13 }
 0x6d3   : > { %v7932_v41 = vpop.permute.xlu0 %2861  ;;  %9570 = vst [vmem:[#allocation44_spill] sm:$0xff] %v7980_v8  ;;  %v8023_v8 = vmul.f32 %v3464_v45, %v7745_v50 }
 0x6d4   : > { %v7930_v4 = vpop.permute.xlu1 %2849  ;;  %9565 = vst [vmem:[#allocation20_spill] sm:$0xff] %v7932_v41  ;;  %v3368_v41 = vmul.f32 %v3366_v44, %v7710_v0  ;;  %v7963_v44 = vmul.f32 %v3422_v59, %v7745_v50 }
 0x6d5   : > { %9564 = vst [vmem:[#allocation53_spill] sm:$0xff] %v7930_v4  ;;  %3371 = vrot.lane.b32.xlu0 %v3367_v47, %s9362_s30  ;;  %v3382_v4 = vmul.f32 %v3380_v3, %v7710_v0  ;;  %v3396_v47 = vmul.f32 %v3394_v52, %v7710_v0  ;;  %v7966_v3 = vmul.f32 %v2984_v20, %v7649_v54 }
 0x6d6   : > { %3359 = vrot.lane.b32.xlu1 %v3354_v27, %s9362_s30  ;;  %v3395_v27 = vmul.f32 %v3394_v52, %v7697_v13  ;;  %v7977_v52 = vmul.f32 %v3436_v31, %v7745_v50 }
 0x6d7   : > { %v7954_v17 = vpop.permute.xlu0 %2875  ;;  %9568 = vst [vmem:[#allocation24_spill] sm:$0xff] %v7966_v3  ;;  %v8004_v3 = vmul.f32 %v3450_v15, %v7745_v50  ;;  %v2546_v15 = vadd.f32 %v7633_v9, %v7487_v2  ;;  %v8060_v2 = vmul.f32 %v3002_v11, %v7662_v1 }
 0x6d8   : > { %v7952_v58 = vpop.permute.xlu1 %2863  ;;  %9567 = vst [vmem:[#allocation30_spill] sm:$0xff] %v7954_v17  ;;  %v7983_v17 = vmul.f32 %v3010_v10, %v7710_v0 }
 0x6d9   : > { %9566 = vst [vmem:[#allocation31_spill] sm:$0xff] %v7952_v58  ;;  %v7972_v58 = vmul.f32 %v3422_v59, %v7758_v38  ;;  %3385 = vrot.lane.b32.xlu0 %v3381_v14, %s9362_s30  ;;  %v2545_v59 = vadd.f32 %v7625_v24, %v7507_v33  ;;  %v7997_v14 = vmul.f32 %v3436_v31, %v7758_v38 }
 0x6da   : > { %3373 = vrot.lane.b32.xlu1 %v3368_v41, %s9362_s30  ;;  %9571 = vst [vmem:[#allocation49_spill] sm:$0xff] %v7983_v17  ;;  %v7994_v41 = vmul.f32 %v3016_v61, %v7697_v13  ;;  %v8007_v17 = vmul.f32 %v2990_v49, %v7662_v1  ;;  %v8010_v33 = vmul.f32 %v3016_v61, %v7710_v0 }
 0x6db   : > { %v8001_v10 = vpop.permute.xlu0 %2889  ;;  %v8013_v24 = vmul.f32 %v2996_v16, %v7649_v54  ;;  %v2601_v31 = vadd.f32 %v7671_v62, %v2545_v59  ;;  %v8028_v61 = vmul.f32 %v2996_v16, %v7662_v1  ;;  %v8031_v49 = vmul.f32 %v3022_v56, %v7710_v0 }
 0x6dc   : > { %9573 = vst [vmem:[#allocation25_spill] sm:$0xff] %v7994_v41  ;;  %v7999_v20 = vpop.permute.xlu1 %2877  ;;  %v8017_v41 = vmul.f32 %v3022_v56, %v7697_v13  ;;  %v8034_v62 = vmul.f32 %v3002_v11, %v7649_v54  ;;  %v9575_v16 = vstv %s7900_s2  ;;  %v8054_v59 = vmul.f32 %v3464_v45, %v7758_v38 }
 0x6dd   : > { %3399 = vrot.lane.b32.xlu0 %v3395_v27, %s9362_s30  ;;  %9574 = vst [vmem:[#allocation54_spill] sm:$0xff] %v8028_v61  ;;  %v2657_v27 = vadd.f32 %v7719_v25, %v2601_v31  ;;  %v8047_v61 = vmul.f32 %v9575_v16, %v7697_v13  ;;  %v8057_v0 = vmul.f32 %v3478_v42, %v7793_v22  ;;  %v9576_v25 = vstv %s7908_s21  ;;  %v9582_v16 = vld [vmem:[#allocation28_spill] sm:$0xff]  ;;  %s4991_s21 = sld [smem:[#allocation9 + $0x7a]] }
 0x6de   : > { %3387 = vrot.lane.b32.xlu1 %v3382_v4, %s9362_s30  ;;  %v2559_v4 = vadd.f32 %v7635_v36, %v7510_v63  ;;  %v8063_v63 = vmul.f32 %v3036_v28, %v7745_v50  ;;  %v2602_v9 = vadd.f32 %v7680_v32, %v2546_v15  ;;  %v8071_v31 = vmul.f32 %v9576_v25, %v7793_v22 }
 0x6df   : > { %v8051_v54 = vpop.permute.xlu0 %2903  ;;  %v2713_v13 = vadd.f32 %v7767_v51, %v2657_v27  ;;  %v2560_v45 = vadd.f32 %v7643_v35, %v7499_v5  ;;  %v8078_v1 = vmul.f32 %v3478_v42, %v7806_v26  ;;  %v8081_v32 = vmul.f32 %v3036_v28, %v7758_v38  ;;  %v9581_v27 = vld [vmem:[#allocation27_spill] sm:$0xff] }
 0x6e0   : > { %v8049_v56 = vpop.permute.xlu1 %2891  ;;  %v2615_v36 = vadd.f32 %v7682_v53, %v2559_v4  ;;  %v3068_v53 = vstv %s7986_s1  ;;  %v2573_v11 = vadd.f32 %v7645_v37, %v7530_v34  ;;  %v2658_v51 = vadd.f32 %v7728_v12, %v2602_v9  ;;  %s8396_s1 = sld [smem:[#allocation9 + $0x7d]] }
 0x6e1   : > { %3413 = vrot.lane.b32.xlu0 %v3409_v21, %s9362_s30  ;;  %v2769_v35 = vadd.f32 %v7813_v43, %v2713_v13  ;;  %v2574_v42 = vadd.f32 %v7656_v18, %v7535_v29  ;;  %v2587_v21 = vadd.f32 %v7658_v23, %v7541_v55  ;;  %v2616_v28 = vadd.f32 %v7691_v40, %v2560_v45  ;;  %v9578_v18 = vld [vmem:[#allocation26_spill] sm:$0xff] }
 0x6e2   : > { %3401 = vrot.lane.b32.xlu1 %v3396_v47, %s9362_s30  ;;  %v2671_v5 = vadd.f32 %v7730_v7, %v2615_v36  ;;  %v9577_v34 = vmov %v9576_v25  ;;  %v2629_v12 = vadd.f32 %v7693_v39, %v2573_v11  ;;  %v2714_v7 = vadd.f32 %v7776_v57, %v2658_v51  ;;  %v9579_v40 = vld [vmem:[#allocation22_spill] sm:$0xff]  ;;  %v9580_v57 = vld [vmem:[#allocation33_spill] sm:$0xff]  ;;  %v9584_v36 = vld [vmem:[#allocation39_spill] sm:$0xff] }
 0x6e3   : > { %v8098_v15 = vpop.permute.xlu0 %2917  ;;  %v8103_v37 = vmul.f32 %v9577_v34, %v7806_v26  ;;  %v2825_v29 = vadd.f32 %v7864_v30, %v2769_v35  ;;  %v2588_v55 = vadd.f32 %v7669_v6, %v7545_v48  ;;  %v2630_v23 = vadd.f32 %v9578_v18, %v2574_v42  ;;  %v9583_v48 = vld [vmem:[#allocation30_spill] sm:$0xff]  ;;  %v9585_v25 = vld [vmem:[#allocation21_spill] sm:$0xff]  ;;  %v9588_v42 = vld [vmem:[#allocation23_spill] sm:$0xff] }
 0x6e4   : > { %v8096_v47 = vpop.permute.xlu1 %2905  ;;  %v2727_v43 = vadd.f32 %v7778_v46, %v2671_v5  ;;  %v2672_v4 = vadd.f32 %v9579_v40, %v2616_v28  ;;  %v3506_v39 = vstv %s8037_s14  ;;  %v2685_v46 = vadd.f32 %v9580_v57, %v2629_v12  ;;  %v9587_v51 = vld [vmem:[#allocation38_spill] sm:$0xff]  ;;  %v9589_v34 = vld [vmem:[#allocation51_spill] sm:$0xff]  ;;  %v9592_v57 = vld [vmem:[#allocation37_spill] sm:$0xff]  ;;  %s4995_s14 = sld [smem:[#allocation9 + $0x7e]] }
 0x6e5   : > { %3427 = vrot.lane.b32.xlu0 %v7963_v44, %s9362_s30  ;;  %v2770_v30 = vadd.f32 %v9581_v27, %v2714_v7  ;;  %v2881_v6 = vadd.f32 %v9583_v48, %v2825_v29  ;;  %v2643_v13 = vadd.f32 %v9584_v36, %v2587_v21  ;;  %v2644_v45 = vadd.f32 %v9585_v25, %v2588_v55  ;;  %v9590_v7 = vld [vmem:[#allocation48_spill] sm:$0xff] }
 0x6e6   : > { %3415 = vrot.lane.b32.xlu1 %v7960_v60, %s9362_s30  ;;  %v2783_v9 = vadd.f32 %v9582_v16, %v2727_v43  ;;  %v9586_v60 = vld [vmem:[#allocation45_spill] sm:$0xff]  ;;  %v2728_v44 = vadd.f32 %v9587_v51, %v2672_v4  ;;  %v2741_v28 = vadd.f32 %v9588_v42, %v2685_v46  ;;  %v9591_v29 = vld [vmem:[#allocation36_spill] sm:$0xff]  ;;  %v9594_v4 = vld [vmem:[#allocation42_spill] sm:$0xff] }
 0x6e7   : > { %v2686_v11 = vadd.f32 %v9586_v60, %v2630_v23  ;;  %v2932_v35 = vpop.permute.xlu0 %2931  ;;  %v2826_v12 = vadd.f32 %v9589_v34, %v2770_v30  ;;  %v2699_v40 = vadd.f32 %v9591_v29, %v2643_v13  ;;  %v2700_v21 = vadd.f32 %v9592_v57, %v2644_v45  ;;  %v9593_v27 = vld [vmem:[#allocation52_spill] sm:$0xff]  ;;  %v9597_v13 = vld [vmem:[#allocation34_spill] sm:$0xff]  ;;  %v9599_v60 = vld [vmem:[#allocation43_spill] sm:$0xff] }
 0x6e8   : > { %v8128_v5 = vpop.permute.xlu1 %2919  ;;  %v2839_v43 = vadd.f32 %v9590_v7, %v2783_v9  ;;  %v2937_v18 = vadd.f32 %v2932_v35, %v2881_v6  ;;  %v2784_v55 = vadd.f32 %v9593_v27, %v2728_v44  ;;  %v3048_v23 = vstv %s8084_s13  ;;  %v9595_v9 = vld [vmem:[#allocation24_spill] sm:$0xff]  ;;  %v9596_v6 = vld [vmem:[#allocation46_spill] sm:$0xff]  ;;  %v9600_v35 = vld [vmem:[#allocation47_spill] sm:$0xff]  ;;  %s4996_s13 = sld [smem:[#allocation9 + $0x7f]] }
 0x6e9   : > { %3441 = vrot.lane.b32.xlu0 %v7977_v52, %s9362_s30  ;;  %v2797_v46 = vadd.f32 %v9594_v4, %v2741_v28  ;;  %v2882_v30 = vadd.f32 %v7999_v20, %v2826_v12  ;;  %v2742_v36 = vadd.f32 %v9596_v6, %v2686_v11  ;;  %v2755_v25 = vadd.f32 %v9597_v13, %v2699_v40  ;;  %v9601_v28 = vld [vmem:[#allocation32_spill] sm:$0xff]  ;;  %v9605_v27 = vld [vmem:[#allocation19_spill] sm:$0xff]  ;;  %v9610_v13 = vld [vmem:[#allocation49_spill] sm:$0xff] }
 0x6ea   : > { %3429 = vrot.lane.b32.xlu1 %v7972_v58, %s9362_s30  ;;  %v2895_v16 = vadd.f32 %v8001_v10, %v2839_v43  ;;  %v2987_v48 = vadd.f32 %v9595_v9, %v2937_v18  ;;  %v9598_v58 = vld [vmem:[#allocation41_spill] sm:$0xff]  ;;  %v2840_v52 = vadd.f32 %v9599_v60, %v2784_v55  ;;  %v9602_v10 = vld [vmem:[#allocation50_spill] sm:$0xff]  ;;  %v3074_v29 = vstv %s8118_s26  ;;  %v9604_v57 = vld [vmem:[#allocation44_spill] sm:$0xff]  ;;  %s8428_s26 = sld [smem:[#allocation9 + $0x80]] }
 0x6eb   : > { %v2756_v45 = vadd.f32 %v9598_v58, %v2700_v21  ;;  %v2946_v44 = vpop.permute.xlu0 %2945  ;;  %v2853_v42 = vadd.f32 %v9600_v35, %v2797_v46  ;;  %v2798_v7 = vadd.f32 %v9602_v10, %v2742_v36  ;;  %v9603_v43 = vld [vmem:[#allocation29_spill] sm:$0xff]  ;;  %v9606_v46 = vld [vmem:[#allocation35_spill] sm:$0xff]  ;;  %v9609_v6 = vstv %s7946_s23  ;;  %s8386_s23 = sld [smem:[#allocation9 + $0x7c]] }
 0x6ec   : > { %v2934_v51 = vpop.permute.xlu1 %2933  ;;  %v3013_v34 = vadd.f32 %v9601_v28, %v2987_v48  ;;  %v2951_v12 = vadd.f32 %v2946_v44, %v2895_v16  ;;  %v2811_v18 = vadd.f32 %v9603_v43, %v2755_v25  ;;  %v2896_v11 = vadd.f32 %v8049_v56, %v2840_v52  ;;  %v9611_v25 = vld [vmem:[#allocation25_spill] sm:$0xff] }
 0x6ed   : > { %v2938_v20 = vadd.f32 %v2934_v51, %v2882_v30  ;;  %3455 = vrot.lane.b32.xlu0 %v8004_v3, %s9362_s30  ;;  %v2909_v40 = vadd.f32 %v8051_v54, %v2853_v42  ;;  %v2812_v56 = vadd.f32 %v9606_v46, %v2756_v45  ;;  %v9607_v30 = vld [vmem:[#allocation53_spill] sm:$0xff]  ;;  %v3043_v36 = vmul.f32 %v9609_v6, %v7745_v50 }
 0x6ee   : > { %3443 = vrot.lane.b32.xlu1 %v7997_v14, %s9362_s30  ;;  %v2993_v55 = vadd.f32 %v9605_v27, %v2951_v12  ;;  %v3039_v4 = vadd.f32 %v8063_v63, %v3013_v34  ;;  %v2854_v16 = vadd.f32 %v9607_v30, %v2798_v7  ;;  %v9608_v14 = vld [vmem:[#allocation20_spill] sm:$0xff]  ;;  %v3054_v44 = vstv %s8141_s19  ;;  %s8438_s19 = sld [smem:[#allocation9 + $0x81]] }
 0x6ef   : > { %v2988_v21 = vadd.f32 %v9604_v57, %v2938_v20  ;;  %v2867_v9 = vadd.f32 %v9608_v14, %v2811_v18  ;;  %v2960_v3 = vpop.permute.xlu0 %2959  ;;  %v3049_v10 = vmul.f32 %v3048_v23, %v7745_v50  ;;  %v3080_v18 = vstv %s8161_s22  ;;  %v9616_v14 = vld [vmem:[#allocation40_spill] sm:$0xff]  ;;  %s8449_s22 = sld [smem:[#allocation9 + $0x82]] }
 0x6f0   : > { %v2948_v48 = vpop.permute.xlu1 %2947  ;;  %v3019_v58 = vadd.f32 %v9611_v25, %v2993_v55  ;;  %v2965_v63 = vadd.f32 %v2960_v3, %v2909_v40  ;;  %v2910_v45 = vadd.f32 %v8096_v47, %v2854_v16  ;;  %v8182_v51 = vadd.f32 %v8071_v31, %v3039_v4  ;;  %v9612_v47 = vld [vmem:[#allocation31_spill] sm:$0xff] }
 0x6f1   : > { %v3014_v54 = vadd.f32 %v9610_v13, %v2988_v21  ;;  %v2952_v60 = vadd.f32 %v2948_v48, %v2896_v11  ;;  %v2923_v52 = vadd.f32 %v8098_v15, %v2867_v9  ;;  %3469 = vrot.lane.b32.xlu0 %v8023_v8, %s9362_s30  ;;  %v2868_v20 = vadd.f32 %v9612_v47, %v2812_v56  ;;  %v9614_v11 = vld [vmem:[#allocation54_spill] sm:$0xff] }
 0x6f2   : > { %3457 = vrot.lane.b32.xlu1 %v8020_v19, %s9362_s30  ;;  %v2999_v42 = vadd.f32 %v8013_v24, %v2965_v63  ;;  %v3045_v34 = vadd.f32 %v3043_v36, %v3019_v58  ;;  %v3069_v19 = vmul.f32 %v3068_v53, %v7793_v22  ;;  %v9613_v8 = vmov %v9609_v6 }
 0x6f3   : > { %v2994_v35 = vadd.f32 %v8007_v17, %v2952_v60  ;;  %v3040_v28 = vadd.f32 %v8081_v32, %v3014_v54  ;;  %v2974_v12 = vpop.permute.xlu0 %2973  ;;  %v3044_v31 = vmul.f32 %v9613_v8, %v7758_v38  ;;  %v2924_v43 = vadd.f32 %v8128_v5, %v2868_v20 }
 0x6f4   : > { %v2962_v15 = vpop.permute.xlu1 %2961  ;;  %v3025_v24 = vadd.f32 %v8017_v41, %v2999_v42  ;;  %v2979_v7 = vadd.f32 %v2974_v12, %v2923_v52  ;;  %v8210_v41 = vadd.f32 %v3069_v19, %v3045_v34  ;;  %v3075_v4 = vmul.f32 %v3074_v29, %v7793_v22  ;;  %v8291_v19 = vld [vmem:[#allocation3 + $0xa] sm:$0xff] }
 0x6f5   : > { %v3020_v17 = vadd.f32 %v8010_v33, %v2994_v35  ;;  %v2966_v32 = vadd.f32 %v2962_v15, %v2910_v45  ;;  %3483 = vrot.lane.b32.xlu0 %v8057_v0, %s9362_s30  ;;  %v8208_v33 = vadd.f32 %v8103_v37, %v3040_v28  ;;  %v3070_v37 = vmul.f32 %v3068_v53, %v7806_v26 }
 0x6f6   : > { %3471 = vrot.lane.b32.xlu1 %v8054_v59, %s9362_s30  ;;  %v3005_v57 = vadd.f32 %v8034_v62, %v2979_v7  ;;  %v3051_v27 = vadd.f32 %v3049_v10, %v3025_v24  ;;  %v9615_v59 = vstv %s7924_s20  ;;  %v3050_v46 = vmul.f32 %v3048_v23, %v7758_v38  ;;  %s4992_s20 = sld [smem:[#allocation9 + $0x7b]] }
 0x6f7   : > { %v3000_v40 = vadd.f32 %v9614_v11, %v2966_v32  ;;  %v3046_v21 = vadd.f32 %v3044_v31, %v3020_v17  ;;  %v8215_v55 = vpop.permute.xlu0 %3091  ;;  %v3493_v0 = vmul.f32 %v9615_v59, %v7793_v22  ;;  %v3055_v16 = vmul.f32 %v3054_v44, %v7745_v50 }
 0x6f8   : > { %v2976_v5 = vpop.permute.xlu1 %2975  ;;  %v3031_v56 = vadd.f32 %v8047_v61, %v3005_v57  ;;  %v9617_v9 = vstv %s7900_s2  ;;  %v3076_v50 = vmul.f32 %v3074_v29, %v7806_v26  ;;  %v9618_v13 = vmov %v9615_v59  ;;  %s4988_s2 = sld [smem:[#allocation9 + $0x77]] }
 0x6f9   : > { %v3026_v62 = vadd.f32 %v8031_v49, %v3000_v40  ;;  %v2980_v30 = vadd.f32 %v2976_v5, %v2924_v43  ;;  %v3030_v53 = vmul.f32 %v9617_v9, %v9616_v14  ;;  %3497 = vrot.lane.b32.xlu0 %v3493_v0, %s9362_s30  ;;  %v8240_v23 = vadd.f32 %v3070_v37, %v3046_v21 }
 0x6fa   : > { %3485 = vrot.lane.b32.xlu1 %v8078_v1, %s9362_s30  ;;  %v8242_v49 = vadd.f32 %v3075_v4, %v3051_v27  ;;  %v3057_v3 = vadd.f32 %v3055_v16, %v3031_v56  ;;  %v3494_v1 = vmul.f32 %v9618_v13, %v7806_v26  ;;  %v3507_v54 = vmul.f32 %v3506_v39, %v7793_v22  ;;  %v8322_v27 = vld [vmem:[#allocation3 + $0x1a] sm:$0xff] }
 0x6fb   : > { %v3006_v61 = vadd.f32 %v8060_v2, %v2980_v30  ;;  %v3052_v48 = vadd.f32 %v3050_v46, %v3026_v62  ;;  %v8250_v36 = vpop.permute.xlu0 %3105  ;;  %v3081_v25 = vmul.f32 %v3080_v18, %v7793_v22  ;;  %v3520_v58 = vstv %s8200_s7  ;;  %v8333_v46 = vld [vmem:[#allocation3 + $0x22] sm:$0xff]  ;;  %s8460_s7 = sld [smem:[#allocation9 + $0x83]] }
 0x6fc   : > { %v8248_v6 = vpop.permute.xlu1 %3093  ;;  %v3056_v29 = vmul.f32 %v3054_v44, %v7758_v38  ;;  %v3082_v45 = vmul.f32 %v3080_v18, %v7806_v26  ;;  %v3508_v28 = vmul.f32 %v3506_v39, %v7806_v26  ;;  %v3521_v38 = vmul.f32 %v3520_v58, %v7793_v22  ;;  %v8278_v44 = vld [vmem:[#allocation3 + $0x2] sm:$0xff]  ;;  %9621 = vst [vmem:[#allocation33_spill] sm:$0xff] %v8333_v46 }
 0x6fd   : > { %v3032_v2 = vadd.f32 %v3030_v53, %v3006_v61  ;;  %v8260_v60 = vadd.f32 %v3076_v50, %v3052_v48  ;;  %3511 = vrot.lane.b32.xlu0 %v3507_v54, %s9362_s30  ;;  %v8267_v63 = vadd.f32 %v3081_v25, %v3057_v3  ;;  %v3638_v34 = vstv %s8232_s27  ;;  %s8464_s27 = sld [smem:[#allocation9 + $0x84]] }
 0x6fe   : > { %3499 = vrot.lane.b32.xlu1 %v3494_v1, %s9362_s30  ;;  %v3522_v12 = vmul.f32 %v3520_v58, %v7806_v26  ;;  %v3639_v39 = vmul.f32 %v3638_v34, %v8278_v44  ;;  %v3652_v22 = vstv %s8263_s29  ;;  %v3640_v10 = vmul.f32 %v3638_v34, %v8291_v19  ;;  %s8466_s29 = sld [smem:[#allocation9 + $0x85]] }
 0x6ff   : > { %v3058_v52 = vadd.f32 %v3056_v29, %v3032_v2  ;;  %v8272_v42 = vpop.permute.xlu0 %3119  ;;  %v3653_v17 = vmul.f32 %v3652_v22, %v8278_v44  ;;  %v3666_v24 = vstv %s4983_s6  ;;  %v3654_v7 = vmul.f32 %v3652_v22, %v8291_v19  ;;  %v8364_v2 = vld [vmem:[#allocation3 + $0x32] sm:$0xff]  ;;  %s8468_s6 = sld [smem:[#allocation9 + $0x86]] }
 0x700   : > { %v8270_v35 = vpop.permute.xlu1 %3107  ;;  %v3667_v43 = vmul.f32 %v3666_v24, %v8278_v44  ;;  %v3680_v18 = vstv %s4984_s8  ;;  %v3668_v57 = vmul.f32 %v3666_v24, %v8291_v19  ;;  %v3694_v5 = vstv %s8302_s28  ;;  %s8470_s8 = sld [smem:[#allocation9 + $0x87]]  ;;  %s8478_s28 = sld [smem:[#allocation9 + $0x88]] }
 0x701   : > { %v8281_v47 = vadd.f32 %v3082_v45, %v3058_v52  ;;  %3525 = vrot.lane.b32.xlu0 %v3521_v38, %s9362_s30  ;;  %v3681_v21 = vmul.f32 %v3680_v18, %v8278_v44  ;;  %v3682_v37 = vmul.f32 %v3680_v18, %v8291_v19  ;;  %v3695_v4 = vmul.f32 %v3694_v5, %v8322_v27  ;;  %v8375_v38 = vld [vmem:[#allocation3 + $0x3a] sm:$0xff] }
 0x702   : > { %3513 = vrot.lane.b32.xlu1 %v3508_v28, %s9362_s30  ;;  %v3708_v62 = vstv %s8312_s4  ;;  %v3696_v16 = vmul.f32 %v3694_v5, %v8333_v46  ;;  %v3722_v9 = vstv %s4987_s11  ;;  %v3736_v3 = vstv %s4988_s2  ;;  %s8483_s4 = sld [smem:[#allocation9 + $0x64]]  ;;  %s8485_s11 = sld [smem:[#allocation9 + $0x89]] }
 0x703   : > { %v8287_v15 = vpop.permute.xlu0 %3133  ;;  %v3709_v14 = vmul.f32 %v3708_v62, %v8322_v27  ;;  %v3710_v50 = vmul.f32 %v3708_v62, %v8333_v46  ;;  %v3723_v48 = vmul.f32 %v3722_v9, %v8322_v27  ;;  %v3724_v54 = vmul.f32 %v3722_v9, %v8333_v46  ;;  %v8406_v62 = vld [vmem:[#allocation3 + $0x4a] sm:$0xff]  ;;  %s8489_s2 = sld [smem:[#allocation9 + $0x61]] }
 0x704   : > { %v8285_v20 = vpop.permute.xlu1 %3121  ;;  %v3737_v25 = vmul.f32 %v3736_v3, %v8322_v27  ;;  %v3750_v58 = vstv %s8344_s17  ;;  %v3738_v52 = vmul.f32 %v3736_v3, %v8333_v46  ;;  %v3764_v34 = vstv %s8354_s10  ;;  %v8417_v3 = vld [vmem:[#allocation3 + $0x52] sm:$0xff]  ;;  %s8491_s17 = sld [smem:[#allocation9 + $0x65]]  ;;  %s8493_s10 = sld [smem:[#allocation9 + $0x8a]] }
 0x705   : > { %3643 = vrot.lane.b32.xlu0 %v3639_v39, %s9361_s0  ;;  %v3751_v28 = vmul.f32 %v3750_v58, %v8364_v2  ;;  %v3752_v22 = vmul.f32 %v3750_v58, %v8375_v38 }
 0x706   : > { %3527 = vrot.lane.b32.xlu1 %v3522_v12, %s9362_s30 }
 0x707   : > { %v8298_v31 = vpop.permute.xlu0 %3147 }
 0x708   : > { %v8296_v8 = vpop.permute.xlu1 %3135 }
 0x709   : > { %3657 = vrot.lane.b32.xlu0 %v3653_v17, %s9361_s0  ;;  %v3778_v17 = vstv %s4991_s21  ;;  %s8495_s21 = sld [smem:[#allocation9 + $0x62]] }
 0x70a   : > { %3645 = vrot.lane.b32.xlu1 %v3640_v10, %s9361_s0  ;;  %v3765_v10 = vmul.f32 %v3764_v34, %v8364_v2  ;;  %v3779_v18 = vmul.f32 %v3778_v17, %v8364_v2 }
 0x70b   : > { %v8308_v32 = vpop.permute.xlu0 %3161 }
 0x70c   : > { %v8306_v26 = vpop.permute.xlu1 %3149 }
 0x70d   : > { %3671 = vrot.lane.b32.xlu0 %v3667_v43, %s9361_s0  ;;  %v3766_v43 = vmul.f32 %v3764_v34, %v8375_v38  ;;  %v3834_v34 = vstv %s4995_s14  ;;  %s8510_s14 = sld [smem:[#allocation9 + $0x67]] }
 0x70e   : > { %3659 = vrot.lane.b32.xlu1 %v3654_v7, %s9361_s0 }
 0x70f   : > { %v8318_v40 = vpop.permute.xlu0 %3175 }
 0x710   : > { %v8316_v11 = vpop.permute.xlu1 %3163 }
 0x711   : > { %3685 = vrot.lane.b32.xlu0 %v3681_v21, %s9361_s0 }
 0x712   : > { %3673 = vrot.lane.b32.xlu1 %v3668_v57, %s9361_s0  ;;  %v3792_v57 = vstv %s4992_s20  ;;  %s8503_s20 = sld [smem:[#allocation9 + $0x66]] }
 0x713   : > { %v8329_v0 = vpop.permute.xlu0 %3189 }
 0x714   : > { %v8327_v59 = vpop.permute.xlu1 %3177  ;;  %9620 = vst [vmem:[#allocation22_spill] sm:$0xff] %v8329_v0 }
 0x715   : > { %9619 = vst [vmem:[#allocation26_spill] sm:$0xff] %v8327_v59  ;;  %3699 = vrot.lane.b32.xlu0 %v3695_v4, %s9361_s0  ;;  %v3793_v4 = vmul.f32 %v3792_v57, %v8364_v2 }
 0x716   : > { %3687 = vrot.lane.b32.xlu1 %v3682_v37, %s9361_s0  ;;  %v3780_v37 = vmul.f32 %v3778_v17, %v8375_v38 }
 0x717   : > { %v8340_v30 = vpop.permute.xlu0 %3203 }
 0x718   : > { %v8338_v56 = vpop.permute.xlu1 %3191 }
 0x719   : > { %9622 = vst [vmem:[#allocation27_spill] sm:$0xff] %v8338_v56  ;;  %3713 = vrot.lane.b32.xlu0 %v3709_v14, %s9361_s0 }
 0x71a   : > { %3701 = vrot.lane.b32.xlu1 %v3696_v16, %s9361_s0  ;;  %v3806_v16 = vstv %s8386_s23  ;;  %s8505_s23 = sld [smem:[#allocation9 + $0x8b]] }
 0x71b   : > { %v8350_v61 = vpop.permute.xlu0 %3217 }
 0x71c   : > { %v8348_v53 = vpop.permute.xlu1 %3205 }
 0x71d   : > { %3727 = vrot.lane.b32.xlu0 %v3723_v48, %s9361_s0  ;;  %v3807_v48 = vmul.f32 %v3806_v16, %v8406_v62 }
 0x71e   : > { %3715 = vrot.lane.b32.xlu1 %v3710_v50, %s9361_s0  ;;  %v3794_v50 = vmul.f32 %v3792_v57, %v8375_v38 }
 0x71f   : > { %v8360_v1 = vpop.permute.xlu0 %3231 }
 0x720   : > { %v8358_v13 = vpop.permute.xlu1 %3219  ;;  %9624 = vst [vmem:[#allocation30_spill] sm:$0xff] %v8360_v1 }
 0x721   : > { %9623 = vst [vmem:[#allocation28_spill] sm:$0xff] %v8358_v13  ;;  %3741 = vrot.lane.b32.xlu0 %v3737_v25, %s9361_s0 }
 0x722   : > { %3729 = vrot.lane.b32.xlu1 %v3724_v54, %s9361_s0  ;;  %v3820_v54 = vstv %s8396_s1  ;;  %s8508_s1 = sld [smem:[#allocation9 + $0x63]] }
 0x723   : > { %v8371_v45 = vpop.permute.xlu0 %3245  ;;  %v3822_v17 = vmul.f32 %v3820_v54, %v8417_v3 }
 0x724   : > { %v8369_v29 = vpop.permute.xlu1 %3233  ;;  %9626 = vst [vmem:[#allocation21_spill] sm:$0xff] %v8371_v45 }
 0x725   : > { %9625 = vst [vmem:[#allocation39_spill] sm:$0xff] %v8369_v29  ;;  %3755 = vrot.lane.b32.xlu0 %v3751_v28, %s9361_s0  ;;  %v3821_v28 = vmul.f32 %v3820_v54, %v8406_v62 }
 0x726   : > { %3743 = vrot.lane.b32.xlu1 %v3738_v52, %s9361_s0  ;;  %v3808_v52 = vmul.f32 %v3806_v16, %v8417_v3 }
 0x727   : > { %v8382_v39 = vpop.permute.xlu0 %3259 }
 0x728   : > { %v8380_v12 = vpop.permute.xlu1 %3247  ;;  %v3554_v29 = vstv %s8508_s1  ;;  %s5067_s1 = sshll.u32 %s5366_s16, 7  ;;  %s5324_s16 = smov [#allocation11]  }
 0x729   : > { %9627 = vst [vmem:[#allocation45_spill] sm:$0xff] %v8380_v12  ;;  %3769 = vrot.lane.b32.xlu0 %v3765_v10, %s9361_s0 }
 0x72a   : > { %3757 = vrot.lane.b32.xlu1 %v3752_v22, %s9361_s0 }
 0x72b   : > { %v8392_v7 = vpop.permute.xlu0 %3273 }
 0x72c   : > { %v8390_v24 = vpop.permute.xlu1 %3261 }
 0x72d   : > { %3783 = vrot.lane.b32.xlu0 %v3779_v18, %s9361_s0  ;;  %v3848_v18 = vstv %s4996_s13  ;;  %s8514_s13 = sld [smem:[#allocation9 + $0x8c]] }
 0x72e   : > { %3771 = vrot.lane.b32.xlu1 %v3766_v43, %s9361_s0  ;;  %v3835_v43 = vmul.f32 %v3834_v34, %v8406_v62  ;;  %v3849_v16 = vmul.f32 %v3848_v18, %v8406_v62 }
 0x72f   : > { %v8402_v5 = vpop.permute.xlu0 %3287 }
 0x730   : > { %v8400_v21 = vpop.permute.xlu1 %3275  ;;  %9629 = vst [vmem:[#allocation23_spill] sm:$0xff] %v8402_v5  ;;  %v3574_v5 = vstv %s8503_s20  ;;  %s5322_s20 = smov 112  }
 0x731   : > { %9628 = vst [vmem:[#allocation38_spill] sm:$0xff] %v8400_v21  ;;  %3797 = vrot.lane.b32.xlu0 %v3793_v4, %s9361_s0  ;;  %v3836_v4 = vmul.f32 %v3834_v34, %v8417_v3  ;;  %v4016_v21 = vstv %s8505_s23  ;;  %s5323_s23 = smov 96  }
 0x732   : > { %3785 = vrot.lane.b32.xlu1 %v3780_v37, %s9361_s0 }
 0x733   : > { %v8413_v9 = vpop.permute.xlu0 %3301  ;;  %v4030_v0 = vstv %s8514_s13 }
 0x734   : > { %v8411_v14 = vpop.permute.xlu1 %3289  ;;  %9631 = vst [vmem:[#allocation48_spill] sm:$0xff] %v8413_v9  ;;  %v3960_v9 = vstv %s8470_s8  ;;  %s8728_s8 = sld [smem:[#allocation9 + $0x6e]] }
 0x735   : > { %9630 = vst [vmem:[#allocation51_spill] sm:$0xff] %v8411_v14  ;;  %3811 = vrot.lane.b32.xlu0 %v3807_v48, %s9361_s0  ;;  %v3988_v14 = vstv %s8485_s11  ;;  %v3961_v56 = vmul.f32 %v3960_v9, %v8322_v27  ;;  %v8570_v59 = vmul.f32 %v3960_v9, %v8333_v46 }
 0x736   : > { %3799 = vrot.lane.b32.xlu1 %v3794_v50, %s9361_s0  ;;  %v3862_v50 = vstv %s8428_s26  ;;  %s8516_s26 = sld [smem:[#allocation9 + $0x68]] }
 0x737   : > { %v8424_v58 = vpop.permute.xlu0 %3315 }
 0x738   : > { %v8422_v25 = vpop.permute.xlu1 %3303 }
 0x739   : > { %9632 = vst [vmem:[#allocation36_spill] sm:$0xff] %v8422_v25  ;;  %3825 = vrot.lane.b32.xlu0 %v3821_v28, %s9361_s0  ;;  %v3863_v28 = vmul.f32 %v3862_v50, %v8278_v44  ;;  %v3946_v25 = vstv %s8468_s6  ;;  %s8694_s6 = sld [smem:[#allocation9 + $0x6a]] }
 0x73a   : > { %3813 = vrot.lane.b32.xlu1 %v3808_v52, %s9361_s0  ;;  %v3850_v52 = vmul.f32 %v3848_v18, %v8417_v3  ;;  %v3864_v18 = vmul.f32 %v3862_v50, %v8291_v19 }
 0x73b   : > { %v8434_v10 = vpop.permute.xlu0 %3329 }
 0x73c   : > { %v8432_v22 = vpop.permute.xlu1 %3317  ;;  %9634 = vst [vmem:[#allocation52_spill] sm:$0xff] %v8434_v10  ;;  %v3588_v10 = vstv %s8516_s26 }
 0x73d   : > { %9633 = vst [vmem:[#allocation37_spill] sm:$0xff] %v8432_v22  ;;  %3839 = vrot.lane.b32.xlu0 %v3835_v43, %s9361_s0 }
 0x73e   : > { %3827 = vrot.lane.b32.xlu1 %v3822_v17, %s9361_s0  ;;  %v3876_v17 = vstv %s8438_s19  ;;  %s8518_s19 = sld [smem:[#allocation9 + $0x6c]] }
 0x73f   : > { %v8444_v37 = vpop.permute.xlu0 %3343 }
 0x740   : > { %v8442_v57 = vpop.permute.xlu1 %3331  ;;  %9636 = vst [vmem:[#allocation24_spill] sm:$0xff] %v8444_v37  ;;  %v3542_v37 = vstv %s8489_s2  ;;  %s5317_s2 = smov 32  }
 0x741   : > { %9635 = vst [vmem:[#allocation42_spill] sm:$0xff] %v8442_v57  ;;  %3853 = vrot.lane.b32.xlu0 %v3849_v16, %s9361_s0  ;;  %v3890_v16 = vstv %s8449_s22  ;;  %s8534_s22 = sld [smem:[#allocation9 + $0x8d]]  ;;  %v3568_v57 = vstv %s8491_s17  ;;  %s5318_s17 = smov 16  }
 0x742   : > { %3841 = vrot.lane.b32.xlu1 %v3836_v4, %s9361_s0  ;;  %v3877_v4 = vmul.f32 %v3876_v17, %v8278_v44 }
 0x743   : > { %v8455_v54 = vpop.permute.xlu0 %3357 }
 0x744   : > { %v8453_v48 = vpop.permute.xlu1 %3345  ;;  %9638 = vst [vmem:[#allocation34_spill] sm:$0xff] %v8455_v54  ;;  %v3892_v54 = vmul.f32 %v3890_v16, %v8291_v19 }
 0x745   : > { %9637 = vst [vmem:[#allocation46_spill] sm:$0xff] %v8453_v48  ;;  %3867 = vrot.lane.b32.xlu0 %v3863_v28, %s9362_s30  ;;  %v3878_v28 = vmul.f32 %v3876_v17, %v8291_v19  ;;  %v3918_v48 = vstv %s8464_s27  ;;  %s8596_s27 = sld [smem:[#allocation9 + $0x6d]] }
 0x746   : > { %3855 = vrot.lane.b32.xlu1 %v3850_v52, %s9361_s0  ;;  %s8480_s0 = sld [smem:[#allocation9 + $0x60]] }
 0x747   : > { %v8474_v43 = vpop.permute.xlu0 %3371 }
 0x748   : > { %v8472_v34 = vpop.permute.xlu1 %3359 }
 0x749   : > { %9639 = vst [vmem:[#allocation41_spill] sm:$0xff] %v8472_v34  ;;  %3881 = vrot.lane.b32.xlu0 %v3877_v4, %s9362_s30  ;;  %v3891_v34 = vmul.f32 %v3890_v16, %v8278_v44  ;;  %v3562_v16 = vstv %s8483_s4  ;;  %s8810_s4 = sld [smem:[#allocation9 + $0x8f]] }
 0x74a   : > { %3869 = vrot.lane.b32.xlu1 %v3864_v18, %s9362_s30  ;;  %v3904_v18 = vstv %s8460_s7  ;;  %s8556_s7 = sld [smem:[#allocation9 + $0x69]]  ;;  %v8579_v22 = vmul.f32 %v3562_v16, %v8322_v27 }
 0x74b   : > { %v8499_v52 = vpop.permute.xlu0 %3385 }
 0x74c   : > { %v8497_v50 = vpop.permute.xlu1 %3373  ;;  %9641 = vst [vmem:[#allocation47_spill] sm:$0xff] %v8499_v52  ;;  %v4002_v52 = vstv %s8493_s10  ;;  %9649 = vst [vmem:[#allocation20_spill] sm:$0xff] %v8579_v22  ;;  %v8601_v22 = vmul.f32 %v3542_v37, %v8278_v44  ;;  %s5319_s10 = smov 48  }
 0x74d   : > { %9640 = vst [vmem:[#allocation43_spill] sm:$0xff] %v8497_v50  ;;  %3895 = vrot.lane.b32.xlu0 %v3891_v34, %s9362_s30  ;;  %v3932_v34 = vstv %s8466_s29  ;;  %v3548_v50 = vstv %s8495_s21  ;;  %s8647_s29 = sld [smem:[#allocation9 + $0x8e]]  ;;  %s5320_s21 = smov 64  }
 0x74e   : > { %3883 = vrot.lane.b32.xlu1 %v3878_v28, %s9362_s30  ;;  %v3905_v28 = vmul.f32 %v3904_v18, %v8278_v44  ;;  %9652 = vst [vmem:[#allocation31_spill] sm:$0xff] %v8601_v22  ;;  %v8630_v22 = vmul.f32 %v4002_v52, %v8375_v38 }
 0x74f   : > { %v8522_v4 = vpop.permute.xlu0 %3399 }
 0x750   : > { %v8520_v17 = vpop.permute.xlu1 %3387  ;;  %9643 = vst [vmem:[#allocation50_spill] sm:$0xff] %v8522_v4  ;;  %v3536_v4 = vstv %s8480_s0  ;;  %s8771_s0 = sld [smem:[#allocation9 + $0x6f]] }
 0x751   : > { %9642 = vst [vmem:[#allocation32_spill] sm:$0xff] %v8520_v17  ;;  %3909 = vrot.lane.b32.xlu0 %v3905_v28, %s9362_s30  ;;  %v3974_v17 = vstv %s8478_s28  ;;  %v3919_v28 = vmul.f32 %v3918_v48, %v8322_v27  ;;  %v8590_v9 = vmul.f32 %v3536_v4, %v8291_v19  ;;  %s8751_s28 = sld [smem:[#allocation9 + $0x6b]] }
 0x752   : > { %3897 = vrot.lane.b32.xlu1 %v3892_v54, %s9362_s30  ;;  %v3906_v54 = vmul.f32 %v3904_v18, %v8291_v19  ;;  %v3933_v18 = vmul.f32 %v3932_v34, %v8322_v27 }
 0x753   : > { %v8542_v45 = vpop.permute.xlu0 %3413  ;;  %9650 = vst [vmem:[#allocation49_spill] sm:$0xff] %v8590_v9  ;;  %v8633_v9 = vmul.f32 %v4016_v21, %v8364_v2 }
 0x754   : > { %v8540_v12 = vpop.permute.xlu1 %3401  ;;  %9645 = vst [vmem:[#allocation44_spill] sm:$0xff] %v8542_v45  ;;  %v3920_v45 = vmul.f32 %v3918_v48, %v8333_v46  ;;  %v8573_v48 = vmul.f32 %v3974_v17, %v8364_v2 }
 0x755   : > { %9644 = vst [vmem:[#allocation29_spill] sm:$0xff] %v8540_v12  ;;  %3923 = vrot.lane.b32.xlu0 %v3919_v28, %s9362_s30  ;;  %v3934_v12 = vmul.f32 %v3932_v34, %v8333_v46  ;;  %v3948_v28 = vmul.f32 %v3946_v25, %v8333_v46  ;;  %v8576_v34 = vmul.f32 %v3536_v4, %v8278_v44 }
 0x756   : > { %3911 = vrot.lane.b32.xlu1 %v3906_v54, %s9362_s30  ;;  %v3947_v54 = vmul.f32 %v3946_v25, %v8322_v27  ;;  %v8587_v25 = vmul.f32 %v3988_v14, %v8364_v2 }
 0x757   : > { %v8564_v13 = vpop.permute.xlu0 %3427  ;;  %9648 = vst [vmem:[#allocation53_spill] sm:$0xff] %v8576_v34  ;;  %v8614_v34 = vmul.f32 %v4002_v52, %v8364_v2  ;;  %v3098_v52 = vadd.f32 %v8248_v6, %v8208_v33  ;;  %v8670_v33 = vmul.f32 %v3554_v29, %v8291_v19 }
 0x758   : > { %v8562_v1 = vpop.permute.xlu1 %3415  ;;  %9647 = vst [vmem:[#allocation35_spill] sm:$0xff] %v8564_v13  ;;  %v8593_v13 = vmul.f32 %v3562_v16, %v8333_v46 }
 0x759   : > { %9646 = vst [vmem:[#allocation19_spill] sm:$0xff] %v8562_v1  ;;  %v8582_v1 = vmul.f32 %v3974_v17, %v8375_v38  ;;  %3937 = vrot.lane.b32.xlu0 %v3933_v18, %s9362_s30  ;;  %v3097_v17 = vadd.f32 %v8215_v55, %v8182_v51  ;;  %v8607_v18 = vmul.f32 %v3988_v14, %v8375_v38 }
 0x75a   : > { %3925 = vrot.lane.b32.xlu1 %v3920_v45, %s9362_s30  ;;  %9651 = vst [vmem:[#allocation25_spill] sm:$0xff] %v8593_v13  ;;  %v8604_v45 = vmul.f32 %v3568_v57, %v8322_v27  ;;  %v8617_v13 = vmul.f32 %v3542_v37, %v8291_v19  ;;  %v8620_v51 = vmul.f32 %v3568_v57, %v8333_v46 }
 0x75b   : > { %v8611_v16 = vpop.permute.xlu0 %3441  ;;  %v8623_v55 = vmul.f32 %v3548_v50, %v8278_v44  ;;  %v3153_v14 = vadd.f32 %v8298_v31, %v3097_v17  ;;  %v8638_v57 = vmul.f32 %v3548_v50, %v8291_v19  ;;  %v8641_v37 = vmul.f32 %v3574_v5, %v8333_v46 }
 0x75c   : > { %9653 = vst [vmem:[#allocation54_spill] sm:$0xff] %v8604_v45  ;;  %v8609_v4 = vpop.permute.xlu1 %3429  ;;  %v8627_v45 = vmul.f32 %v3574_v5, %v8322_v27  ;;  %v8644_v31 = vmul.f32 %v3554_v29, %v8278_v44  ;;  %v9655_v50 = vstv %s8510_s14  ;;  %v8664_v17 = vmul.f32 %v4016_v21, %v8375_v38 }
 0x75d   : > { %3951 = vrot.lane.b32.xlu0 %v3947_v54, %s9362_s30  ;;  %9654 = vst [vmem:[#allocation40_spill] sm:$0xff] %v8638_v57  ;;  %v3209_v54 = vadd.f32 %v8340_v30, %v3153_v14  ;;  %v8657_v57 = vmul.f32 %v9655_v50, %v8322_v27  ;;  %v8667_v46 = vmul.f32 %v4030_v0, %v8406_v62  ;;  %v9656_v30 = vstv %s8518_s19  ;;  %v9662_v50 = vld [vmem:[#allocation52_spill] sm:$0xff]  ;;  %s9269_s19 = scalar_lea.hbm %s9318_s3, %s5067_s1 }
 0x75e   : > { %3939 = vrot.lane.b32.xlu1 %v3934_v12, %s9362_s30  ;;  %v3111_v12 = vadd.f32 %v8250_v36, %v8210_v41  ;;  %v8673_v41 = vmul.f32 %v3588_v10, %v8364_v2  ;;  %v3154_v6 = vadd.f32 %v8306_v26, %v3098_v52  ;;  %v8681_v14 = vmul.f32 %v9656_v30, %v8406_v62 }
 0x75f   : > { %v8661_v44 = vpop.permute.xlu0 %3455  ;;  %v3265_v27 = vadd.f32 %v8382_v39, %v3209_v54  ;;  %v3112_v21 = vadd.f32 %v8270_v35, %v8240_v23  ;;  %v8688_v19 = vmul.f32 %v4030_v0, %v8417_v3  ;;  %v8691_v26 = vmul.f32 %v3588_v10, %v8375_v38  ;;  %v9661_v54 = vld [vmem:[#allocation37_spill] sm:$0xff] }
 0x760   : > { %v8659_v5 = vpop.permute.xlu1 %3443  ;;  %v3167_v36 = vadd.f32 %v8308_v32, %v3111_v12  ;;  %v3620_v32 = vstv %s8596_s27  ;;  %v3125_v29 = vadd.f32 %v8272_v42, %v8242_v49  ;;  %v3210_v39 = vadd.f32 %v8348_v53, %v3154_v6  ;;  %s5236_s27 = sshll.u32 %s5324_s16, 4  ;;  %s5237_s27 = int_to_ptr.vmem [resolvable:$false] %s5236_s27 }
 0x761   : > { %3965 = vrot.lane.b32.xlu0 %v3961_v56, %s9362_s30  ;;  %v3321_v35 = vadd.f32 %v8424_v58, %v3265_v27  ;;  %v3126_v0 = vadd.f32 %v8285_v20, %v8260_v60  ;;  %v3139_v56 = vadd.f32 %v8287_v15, %v8267_v63  ;;  %v3168_v10 = vadd.f32 %v8316_v11, %v3112_v21  ;;  %v9658_v20 = vld [vmem:[#allocation26_spill] sm:$0xff]  ;;  %v9659_v11 = vld [vmem:[#allocation28_spill] sm:$0xff] }
 0x762   : > { %3953 = vrot.lane.b32.xlu1 %v3948_v28, %s9362_s30  ;;  %v3223_v23 = vadd.f32 %v8350_v61, %v3167_v36  ;;  %v9657_v49 = vmov %v9656_v30  ;;  %v3181_v53 = vadd.f32 %v8318_v40, %v3125_v29  ;;  %v3266_v61 = vadd.f32 %v8390_v24, %v3210_v39  ;;  %v9660_v24 = vld [vmem:[#allocation30_spill] sm:$0xff]  ;;  %v9665_v30 = vld [vmem:[#allocation27_spill] sm:$0xff] }
 0x763   : > { %v8708_v52 = vpop.permute.xlu0 %3469  ;;  %v8713_v42 = vmul.f32 %v9657_v49, %v8417_v3  ;;  %v3377_v60 = vadd.f32 %v8474_v43, %v3321_v35  ;;  %v3140_v63 = vadd.f32 %v8296_v8, %v8281_v47  ;;  %v3182_v15 = vadd.f32 %v9658_v20, %v3126_v0  ;;  %v9663_v47 = vld [vmem:[#allocation35_spill] sm:$0xff]  ;;  %v9664_v36 = vld [vmem:[#allocation22_spill] sm:$0xff] }
 0x764   : > { %v8706_v28 = vpop.permute.xlu1 %3457  ;;  %v3279_v58 = vadd.f32 %v8392_v7, %v3223_v23  ;;  %v3224_v12 = vadd.f32 %v9659_v11, %v3168_v10  ;;  %v4058_v40 = vstv %s8647_s29  ;;  %v3237_v7 = vadd.f32 %v9660_v24, %v3181_v53  ;;  %v9667_v39 = vld [vmem:[#allocation38_spill] sm:$0xff]  ;;  %v9668_v0 = vld [vmem:[#allocation23_spill] sm:$0xff]  ;;  %v9672_v24 = vld [vmem:[#allocation45_spill] sm:$0xff]  ;;  %s5238_s29 = scalar_lea.vmem %s5237_s27, 256 }
 0x765   : > { %3979 = vrot.lane.b32.xlu0 %v8573_v48, %s9362_s30  ;;  %v3322_v43 = vadd.f32 %v9661_v54, %v3266_v61  ;;  %v3433_v8 = vadd.f32 %v9663_v47, %v3377_v60  ;;  %v3195_v27 = vadd.f32 %v9664_v36, %v3139_v56  ;;  %v3196_v21 = vadd.f32 %v9665_v30, %v3140_v63  ;;  %v9669_v49 = vld [vmem:[#allocation43_spill] sm:$0xff]  ;;  %v9671_v60 = vld [vmem:[#allocation21_spill] sm:$0xff]  ;;  %v9673_v54 = vld [vmem:[#allocation42_spill] sm:$0xff] }
 0x766   : > { %3967 = vrot.lane.b32.xlu1 %v8570_v59, %s9362_s30  ;;  %v3335_v6 = vadd.f32 %v9662_v50, %v3279_v58  ;;  %v9666_v59 = vld [vmem:[#allocation39_spill] sm:$0xff]  ;;  %v3280_v48 = vadd.f32 %v9667_v39, %v3224_v12  ;;  %v3293_v10 = vadd.f32 %v9668_v0, %v3237_v7  ;;  %v9674_v12 = vld [vmem:[#allocation24_spill] sm:$0xff] }
 0x767   : > { %v3238_v29 = vadd.f32 %v9666_v59, %v3182_v15  ;;  %v3484_v35 = vpop.permute.xlu0 %3483  ;;  %v3378_v53 = vadd.f32 %v9669_v49, %v3322_v43  ;;  %v9670_v61 = vld [vmem:[#allocation47_spill] sm:$0xff]  ;;  %v3251_v11 = vadd.f32 %v9671_v60, %v3195_v27  ;;  %v3252_v56 = vadd.f32 %v9672_v24, %v3196_v21  ;;  %v9677_v27 = vld [vmem:[#allocation48_spill] sm:$0xff]  ;;  %v9684_v24 = vld [vmem:[#allocation49_spill] sm:$0xff] }
 0x768   : > { %v8738_v23 = vpop.permute.xlu1 %3471  ;;  %v3391_v58 = vadd.f32 %v9670_v61, %v3335_v6  ;;  %v3489_v20 = vadd.f32 %v3484_v35, %v3433_v8  ;;  %v3336_v63 = vadd.f32 %v9673_v54, %v3280_v48  ;;  %v3600_v15 = vstv %s8694_s6  ;;  %v9675_v6 = vld [vmem:[#allocation53_spill] sm:$0xff]  ;;  %v9676_v8 = vld [vmem:[#allocation51_spill] sm:$0xff]  ;;  %v9679_v59 = vld [vmem:[#allocation32_spill] sm:$0xff] }
 0x769   : > { %3993 = vrot.lane.b32.xlu0 %v8587_v25, %s9362_s30  ;;  %v3349_v7 = vadd.f32 %v9674_v12, %v3293_v10  ;;  %v3434_v43 = vadd.f32 %v8609_v4, %v3378_v53  ;;  %v3294_v36 = vadd.f32 %v9676_v8, %v3238_v29  ;;  %v3307_v30 = vadd.f32 %v9677_v27, %v3251_v11  ;;  %v9680_v35 = vld [vmem:[#allocation50_spill] sm:$0xff]  ;;  %v9681_v10 = vld [vmem:[#allocation20_spill] sm:$0xff]  ;;  %v9685_v54 = vld [vmem:[#allocation31_spill] sm:$0xff] }
 0x76a   : > { %3981 = vrot.lane.b32.xlu1 %v8582_v1, %s9362_s30  ;;  %v3447_v50 = vadd.f32 %v8611_v16, %v3391_v58  ;;  %v3539_v47 = vadd.f32 %v9675_v6, %v3489_v20  ;;  %v9678_v1 = vld [vmem:[#allocation36_spill] sm:$0xff]  ;;  %v3392_v25 = vadd.f32 %v9679_v59, %v3336_v63  ;;  %v9682_v16 = vld [vmem:[#allocation46_spill] sm:$0xff]  ;;  %v3626_v60 = vstv %s8728_s8  ;;  %v9690_v27 = vld [vmem:[#allocation25_spill] sm:$0xff] }
 0x76b   : > { %v3308_v21 = vadd.f32 %v9678_v1, %v3252_v56  ;;  %v3498_v48 = vpop.permute.xlu0 %3497  ;;  %v3405_v0 = vadd.f32 %v9680_v35, %v3349_v7  ;;  %v3350_v61 = vadd.f32 %v9682_v16, %v3294_v36  ;;  %v9683_v58 = vld [vmem:[#allocation34_spill] sm:$0xff]  ;;  %v9686_v7 = vld [vmem:[#allocation41_spill] sm:$0xff]  ;;  %v9689_v8 = vstv %s8556_s7 }
 0x76c   : > { %v3486_v39 = vpop.permute.xlu1 %3485  ;;  %v3565_v49 = vadd.f32 %v9681_v10, %v3539_v47  ;;  %v3503_v53 = vadd.f32 %v3498_v48, %v3447_v50  ;;  %v3363_v20 = vadd.f32 %v9683_v58, %v3307_v30  ;;  %v3448_v29 = vadd.f32 %v8659_v5, %v3392_v25  ;;  %v9691_v30 = vld [vmem:[#allocation54_spill] sm:$0xff] }
 0x76d   : > { %v3490_v4 = vadd.f32 %v3486_v39, %v3434_v43  ;;  %4007 = vrot.lane.b32.xlu0 %v8614_v34, %s9362_s30  ;;  %v3461_v11 = vadd.f32 %v8661_v44, %v3405_v0  ;;  %v3364_v5 = vadd.f32 %v9686_v7, %v3308_v21  ;;  %v9687_v43 = vld [vmem:[#allocation29_spill] sm:$0xff]  ;;  %v3595_v36 = vmul.f32 %v9689_v8, %v8364_v2 }
 0x76e   : > { %3995 = vrot.lane.b32.xlu1 %v8607_v18, %s9362_s30  ;;  %v3545_v63 = vadd.f32 %v9685_v54, %v3503_v53  ;;  %v3591_v12 = vadd.f32 %v8673_v41, %v3565_v49  ;;  %v3406_v50 = vadd.f32 %v9687_v43, %v3350_v61  ;;  %v9688_v18 = vld [vmem:[#allocation44_spill] sm:$0xff]  ;;  %v3606_v48 = vstv %s8751_s28 }
 0x76f   : > { %v3540_v56 = vadd.f32 %v9684_v24, %v3490_v4  ;;  %v3419_v6 = vadd.f32 %v9688_v18, %v3363_v20  ;;  %v3512_v34 = vpop.permute.xlu0 %3511  ;;  %v3601_v16 = vmul.f32 %v3600_v15, %v8364_v2  ;;  %v3632_v20 = vstv %s8771_s0  ;;  %v9696_v18 = vld [vmem:[#allocation33_spill] sm:$0xff] }
 0x770   : > { %v3500_v47 = vpop.permute.xlu1 %3499  ;;  %v3571_v1 = vadd.f32 %v9691_v30, %v3545_v63  ;;  %v3517_v41 = vadd.f32 %v3512_v34, %v3461_v11  ;;  %v3462_v21 = vadd.f32 %v8706_v28, %v3406_v50  ;;  %v8792_v39 = vadd.f32 %v8681_v14, %v3591_v12  ;;  %v9692_v28 = vld [vmem:[#allocation19_spill] sm:$0xff] }
 0x771   : > { %v3566_v44 = vadd.f32 %v9690_v27, %v3540_v56  ;;  %v3504_v59 = vadd.f32 %v3500_v47, %v3448_v29  ;;  %v3475_v25 = vadd.f32 %v8708_v52, %v3419_v6  ;;  %4021 = vrot.lane.b32.xlu0 %v8633_v9, %s9362_s30  ;;  %v3420_v4 = vadd.f32 %v9692_v28, %v3364_v5  ;;  %v9694_v29 = vld [vmem:[#allocation40_spill] sm:$0xff] }
 0x772   : > { %4009 = vrot.lane.b32.xlu1 %v8630_v22, %s9362_s30  ;;  %v3551_v0 = vadd.f32 %v8623_v55, %v3517_v41  ;;  %v3597_v49 = vadd.f32 %v3595_v36, %v3571_v1  ;;  %v3621_v22 = vmul.f32 %v3620_v32, %v8406_v62  ;;  %v9693_v9 = vmov %v9689_v8 }
 0x773   : > { %v3546_v35 = vadd.f32 %v8617_v13, %v3504_v59  ;;  %v3592_v10 = vadd.f32 %v8691_v26, %v3566_v44  ;;  %v3526_v53 = vpop.permute.xlu0 %3525  ;;  %v3596_v14 = vmul.f32 %v9693_v9, %v8375_v38  ;;  %v3476_v58 = vadd.f32 %v8738_v23, %v3420_v4 }
 0x774   : > { %v3514_v52 = vpop.permute.xlu1 %3513  ;;  %v3577_v55 = vadd.f32 %v8627_v45, %v3551_v0  ;;  %v3531_v61 = vadd.f32 %v3526_v53, %v3475_v25  ;;  %v8820_v45 = vadd.f32 %v3621_v22, %v3597_v49  ;;  %v3627_v12 = vmul.f32 %v3626_v60, %v8406_v62 }
 0x775   : > { %v3572_v13 = vadd.f32 %v8620_v51, %v3546_v35  ;;  %v3518_v26 = vadd.f32 %v3514_v52, %v3462_v21  ;;  %4035 = vrot.lane.b32.xlu0 %v8667_v46, %s9362_s30  ;;  %v8818_v51 = vadd.f32 %v8713_v42, %v3592_v10  ;;  %v3622_v42 = vmul.f32 %v3620_v32, %v8417_v3 }
 0x776   : > { %4023 = vrot.lane.b32.xlu1 %v8664_v17, %s9362_s30  ;;  %v3557_v24 = vadd.f32 %v8644_v31, %v3531_v61  ;;  %v3603_v54 = vadd.f32 %v3601_v16, %v3577_v55  ;;  %v9695_v17 = vstv %s8534_s22  ;;  %v3602_v7 = vmul.f32 %v3600_v15, %v8375_v38  ;;  %s4602_s22 = scalar_lea.sflag [#allocation6], %s5483_s5 }
 0x777   : > { %v3552_v11 = vadd.f32 %v9694_v29, %v3518_v26  ;;  %v3598_v56 = vadd.f32 %v3596_v14, %v3572_v13  ;;  %v8825_v63 = vpop.permute.xlu0 %3643  ;;  %v4045_v46 = vmul.f32 %v9695_v17, %v8406_v62  ;;  %v3607_v50 = vmul.f32 %v3606_v48, %v8364_v2 }
 0x778   : > { %v3528_v23 = vpop.permute.xlu1 %3527  ;;  %v3583_v5 = vadd.f32 %v8657_v57, %v3557_v24  ;;  %v9697_v6 = vstv %s8510_s14  ;;  %v8850_v15 = vadd.f32 %v3627_v12, %v3603_v54  ;;  %v3628_v57 = vmul.f32 %v3626_v60, %v8417_v3 }
 0x779   : > { %v3578_v31 = vadd.f32 %v8641_v37, %v3552_v11  ;;  %v3532_v43 = vadd.f32 %v3528_v23, %v3476_v58  ;;  %v3582_v47 = vmul.f32 %v9697_v6, %v9696_v18  ;;  %4049 = vrot.lane.b32.xlu0 %v4045_v46, %s9362_s30  ;;  %v8848_v32 = vadd.f32 %v3622_v42, %v3598_v56 }
 0x77a   : > { %4037 = vrot.lane.b32.xlu1 %v8688_v19, %s9362_s30  ;;  %v3609_v2 = vadd.f32 %v3607_v50, %v3583_v5  ;;  %v9698_v19 = vmov %v9695_v17  ;;  %v4059_v44 = vmul.f32 %v4058_v40, %v8406_v62  ;;  %v3633_v30 = vmul.f32 %v3632_v20, %v8406_v62 }
 0x77b   : > { %v3558_v37 = vadd.f32 %v8670_v33, %v3532_v43  ;;  %v3604_v34 = vadd.f32 %v3602_v7, %v3578_v31  ;;  %v8858_v36 = vpop.permute.xlu0 %3657  ;;  %v4046_v27 = vmul.f32 %v9698_v19, %v8417_v3  ;;  %v4072_v33 = vstv %s8810_s4 }
 0x77c   : > { %v8856_v8 = vpop.permute.xlu1 %3645  ;;  %v3608_v60 = vmul.f32 %v3606_v48, %v8375_v38  ;;  %v8873_v41 = vadd.f32 %v3633_v30, %v3609_v2  ;;  %v3634_v21 = vmul.f32 %v3632_v20, %v8417_v3  ;;  %v4060_v10 = vmul.f32 %v4058_v40, %v8417_v3 }
 0x77d   : > { %v3584_v1 = vadd.f32 %v3582_v47, %v3558_v37  ;;  %v8868_v59 = vadd.f32 %v3628_v57, %v3604_v34  ;;  %4063 = vrot.lane.b32.xlu0 %v4059_v44, %s9362_s30  ;;  %v4073_v49 = vmul.f32 %v4072_v33, %v8406_v62  ;;  %v4074_v4 = vmul.f32 %v4072_v33, %v8417_v3 }
 0x77e   : > { %4051 = vrot.lane.b32.xlu1 %v4046_v27, %s9362_s30  ;;  %v3649_v33 = vadd.f32 %v8825_v63, %v8792_v39 }
 0x77f   : > { %v3610_v25 = vadd.f32 %v3608_v60, %v3584_v1  ;;  %v8878_v0 = vpop.permute.xlu0 %3671 }
 0x780   : > { %v8876_v35 = vpop.permute.xlu1 %3659  ;;  %v3677_v39 = vadd.f32 %v8878_v0, %v8850_v15 }
 0x781   : > { %v8884_v28 = vadd.f32 %v3634_v21, %v3610_v25  ;;  %4077 = vrot.lane.b32.xlu0 %v4073_v49, %s9362_s30  ;;  %v3663_v49 = vadd.f32 %v8858_v36, %v8820_v45 }
 0x782   : > { %4065 = vrot.lane.b32.xlu1 %v4060_v10, %s9362_s30  ;;  %v3650_v10 = vadd.f32 %v8856_v8, %v8818_v51 }
 0x783   : > { %v8890_v48 = vpop.permute.xlu0 %3685 }
 0x784   : > { %v8888_v38 = vpop.permute.xlu1 %3673 }
 0x786   : > { %4079 = vrot.lane.b32.xlu1 %v4074_v4, %s9362_s30  ;;  %s4720_s30 = sshll.u32 %s5483_s5, 3 }
 0x787   : > { %v3700_v53 = vpop.permute.xlu0 %3699  ;;  %s9028_s11 = scalar_lea.vmem [#allocation11], %s4720_s30 }
 0x788   : > { %v8894_v52 = vpop.permute.xlu1 %3687  ;;  %v3705_v25 = vadd.f32 %v3700_v53, %v3649_v33  ;;  %s4616_s14 = sshll.u32 %s9028_s11, 4  ;;  %s9271_s14 = int_to_ptr.vmem [resolvable:$true] %s4616_s14 }
 0x789   : > { %s5232_s7 = scalar_lea.vmem %s9271_s14, 128  ;;  %p5239_p4 = scmp.lt.s32.totalorder %s9271_s14, %s5237_s27 }
 0x78a   : > { %p5233_p5 = scmp.ne.s32.totalorder %s9271_s14, %s5232_s7  ;;  %p5240_p12 = scmp.lt.s32.totalorder %s5238_s29, %s5232_s7 }
 0x78b   : > { %v3714_v22 = vpop.permute.xlu0 %3713 }
 0x78c   : > { %v3702_v40 = vpop.permute.xlu1 %3701  ;;  %p5234_p8 = pnand %p5233_p5, %p9715_p2  ;;  %p5241_p0 = por %p5240_p12, %p5239_p4 }
 0x78e   : > { %p5235_p10 = pneg %p5234_p8 }
 0x78f   : > { %v3728_v9 = vpop.permute.xlu0 %3727 }
 0x790   : > { %v3716_v62 = vpop.permute.xlu1 %3715  ;;  %p5242_p7 = pnand %p5241_p0, %p5235_p10 }
 0x793   : > { %v8898_v16 = vpop.permute.xlu0 %3741 }
 0x794   : > { %v8896_v14 = vpop.permute.xlu1 %3729 }
 0x797   : > { %v3756_v55 = vpop.permute.xlu0 %3755 }
 0x798   : > { %v8900_v13 = vpop.permute.xlu1 %3743  ;;  %v3761_v4 = vadd.f32 %v3756_v55, %v3705_v25 }
 0x79b   : > { %v3770_v61 = vpop.permute.xlu0 %3769 }
 0x79c   : > { %v3758_v26 = vpop.permute.xlu1 %3757 }
 0x79f   : > { %v3784_v3 = vpop.permute.xlu0 %3783 }
 0x7a0   : > { %v3772_v58 = vpop.permute.xlu1 %3771 }
 0x7a3   : > { %v8904_v29 = vpop.permute.xlu0 %3797 }
 0x7a4   : > { %v8902_v20 = vpop.permute.xlu1 %3785 }
 0x7a7   : > { %v3812_v24 = vpop.permute.xlu0 %3811 }
 0x7a8   : > { %v8906_v11 = vpop.permute.xlu1 %3799 }
 0x7a9   : > { %9699 = vst [vmem:[#allocation26_spill] sm:$0xff] %v8906_v11  ;;  %v3733_v11 = vadd.f32 %v3728_v9, %v3677_v39 }
 0x7ab   : > { %v3826_v54 = vpop.permute.xlu0 %3825 }
 0x7ac   : > { %v3814_v56 = vpop.permute.xlu1 %3813 }
 0x7af   : > { %v3840_v17 = vpop.permute.xlu0 %3839 }
 0x7b0   : > { %v3828_v23 = vpop.permute.xlu1 %3827 }
 0x7b3   : > { %v8910_v42 = vpop.permute.xlu0 %3853 }
 0x7b4   : > { %v8908_v46 = vpop.permute.xlu1 %3841 }
 0x7b7   : > { %v3868_v7 = vpop.permute.xlu0 %3867 }
 0x7b8   : > { %v8912_v12 = vpop.permute.xlu1 %3855 }
 0x7b9   : > { %9700 = vst [vmem:[#allocation28_spill] sm:$0xff] %v8912_v12  ;;  %v3706_v12 = vadd.f32 %v3702_v40, %v3650_v10  ;;  %v3678_v40 = vadd.f32 %v8888_v38, %v8868_v59  ;;  %v3692_v59 = vadd.f32 %v8894_v52, %v8884_v28 }
 0x7bb   : > { %v3882_v5 = vpop.permute.xlu0 %3881  ;;  %v3762_v63 = vadd.f32 %v3758_v26, %v3706_v12  ;;  %v3734_v26 = vadd.f32 %v8896_v14, %v3678_v40 }
 0x7bc   : > { %v3870_v31 = vpop.permute.xlu1 %3869 }
 0x7bd   : > { %v3818_v45 = vadd.f32 %v3814_v56, %v3762_v63 }
 0x7bf   : > { %v3896_v50 = vpop.permute.xlu0 %3895 }
 0x7c0   : > { %v3884_v43 = vpop.permute.xlu1 %3883 }
 0x7c3   : > { %v8916_v6 = vpop.permute.xlu0 %3909 }
 0x7c4   : > { %v8914_v18 = vpop.permute.xlu1 %3897  ;;  %9702 = vst [vmem:[#allocation37_spill] sm:$0xff] %v8916_v6  ;;  %v3817_v6 = vadd.f32 %v3812_v24, %v3761_v4  ;;  %v3874_v24 = vadd.f32 %v3870_v31, %v3818_v45 }
 0x7c5   : > { %9701 = vst [vmem:[#allocation30_spill] sm:$0xff] %v8914_v18 }
 0x7c6   : > { %v3873_v33 = vadd.f32 %v3868_v7, %v3817_v6 }
 0x7c7   : > { %v3924_v37 = vpop.permute.xlu0 %3923 }
 0x7c8   : > { %v8918_v47 = vpop.permute.xlu1 %3911  ;;  %v3929_v55 = vadd.f32 %v3924_v37, %v3873_v33 }
 0x7c9   : > { %9703 = vst [vmem:[#allocation52_spill] sm:$0xff] %v8918_v47 }
 0x7cb   : > { %v3938_v34 = vpop.permute.xlu0 %3937 }
 0x7cc   : > { %v3926_v57 = vpop.permute.xlu1 %3925 }
 0x7cd   : > { %v3930_v12 = vadd.f32 %v3926_v57, %v3874_v24  ;;  %v9709_v57 = vld [vmem:[#allocation37_spill] sm:$0xff] }
 0x7cf   : > { %v3952_v19 = vpop.permute.xlu0 %3951 }
 0x7d0   : > { %v3940_v2 = vpop.permute.xlu1 %3939 }
 0x7d3   : > { %v8922_v44 = vpop.permute.xlu0 %3965 }
 0x7d4   : > { %v8920_v27 = vpop.permute.xlu1 %3953  ;;  %9705 = vst [vmem:[#allocation22_spill] sm:$0xff] %v8922_v44  ;;  %v3719_v44 = vadd.f32 %v3714_v22, %v3663_v49  ;;  %v3691_v22 = vadd.f32 %v8890_v48, %v8873_v41  ;;  %v3790_v41 = vadd.f32 %v8902_v20, %v3734_v26 }
 0x7d5   : > { %9704 = vst [vmem:[#allocation35_spill] sm:$0xff] %v8920_v27 }
 0x7d6   : > { %v3775_v53 = vadd.f32 %v3770_v61, %v3719_v44 }
 0x7d7   : > { %v3980_v1 = vpop.permute.xlu0 %3979 }
 0x7d8   : > { %v8924_v30 = vpop.permute.xlu1 %3967  ;;  %v3831_v36 = vadd.f32 %v3826_v54, %v3775_v53  ;;  %v3985_v0 = vadd.f32 %v3980_v1, %v3929_v55 }
 0x7d9   : > { %9706 = vst [vmem:[#allocation27_spill] sm:$0xff] %v8924_v30  ;;  %v3664_v30 = vadd.f32 %v8876_v35, %v8848_v32  ;;  %v3789_v35 = vadd.f32 %v3784_v3, %v3733_v11  ;;  %v3748_v11 = vadd.f32 %v8900_v13, %v3692_v59 }
 0x7da   : > { %v3887_v15 = vadd.f32 %v3882_v5, %v3831_v36 }
 0x7db   : > { %v3994_v21 = vpop.permute.xlu0 %3993  ;;  %v3720_v18 = vadd.f32 %v3716_v62, %v3664_v30  ;;  %v3747_v62 = vadd.f32 %v8898_v16, %v3691_v22  ;;  %v3845_v54 = vadd.f32 %v3840_v17, %v3789_v35  ;;  %v9712_v25 = vld [vmem:[#allocation22_spill] sm:$0xff] }
 0x7dc   : > { %v3982_v60 = vpop.permute.xlu1 %3981  ;;  %v3943_v7 = vadd.f32 %v3938_v34, %v3887_v15 }
 0x7dd   : > { %v3776_v32 = vadd.f32 %v3772_v58, %v3720_v18  ;;  %v3803_v38 = vadd.f32 %v8904_v29, %v3747_v62  ;;  %v3901_v58 = vadd.f32 %v3896_v50, %v3845_v54  ;;  %v3986_v14 = vadd.f32 %v3982_v60, %v3930_v12  ;;  %v9708_v18 = vld [vmem:[#allocation30_spill] sm:$0xff]  ;;  %v9711_v60 = vld [vmem:[#allocation35_spill] sm:$0xff] }
 0x7de   : > { %v3999_v3 = vadd.f32 %v3994_v21, %v3943_v7 }
 0x7df   : > { %v4008_v27 = vpop.permute.xlu0 %4007  ;;  %v3832_v61 = vadd.f32 %v3828_v23, %v3776_v32  ;;  %v3846_v23 = vadd.f32 %v8908_v46, %v3790_v41  ;;  %v3859_v17 = vadd.f32 %v8910_v42, %v3803_v38  ;;  %v3957_v20 = vadd.f32 %v3952_v19, %v3901_v58 }
 0x7e0   : > { %v3996_v47 = vpop.permute.xlu1 %3995  ;;  %v9714_v55 = vld [vmem:[#allocation27_spill] sm:$0xff] }
 0x7e1   : > { %v3888_v48 = vadd.f32 %v3884_v43, %v3832_v61  ;;  %v9707_v43 = vld [vmem:[#allocation26_spill] sm:$0xff]  ;;  %v3902_v37 = vadd.f32 %v9708_v18, %v3846_v23  ;;  %v3915_v34 = vadd.f32 %v9709_v57, %v3859_v17  ;;  %v4013_v44 = vadd.f32 %v4008_v27, %v3957_v20  ;;  %v9713_v27 = vld [vmem:[#allocation52_spill] sm:$0xff] }
 0x7e2   : > { %v3804_v50 = vadd.f32 %v9707_v43, %v3748_v11 }
 0x7e3   : > { %v4022_v8 = vpop.permute.xlu0 %4021  ;;  %v3944_v52 = vadd.f32 %v3940_v2, %v3888_v48  ;;  %v9710_v2 = vld [vmem:[#allocation28_spill] sm:$0xff]  ;;  %v3958_v21 = vadd.f32 %v9711_v60, %v3902_v37  ;;  %v3971_v10 = vadd.f32 %v9712_v25, %v3915_v34 }
 0x7e4   : > { %v4010_v51 = vpop.permute.xlu1 %4009  ;;  %v3860_v19 = vadd.f32 %v9710_v2, %v3804_v50 }
 0x7e5   : > { %v4000_v13 = vadd.f32 %v3996_v47, %v3944_v52  ;;  %v4014_v39 = vadd.f32 %v4010_v51, %v3958_v21  ;;  %v4027_v63 = vadd.f32 %v4022_v8, %v3971_v10 }
 0x7e6   : > { %v3916_v4 = vadd.f32 %v9713_v27, %v3860_v19 }
 0x7e7   : > { %v4036_v56 = vpop.permute.xlu0 %4035 }
 0x7e8   : > { %v4024_v9 = vpop.permute.xlu1 %4023  ;;  %v8942_v6 = vadd.f32 %v4036_v56, %v3985_v0  ;;  %v3972_v40 = vadd.f32 %v9714_v55, %v3916_v4 }
 0x7ea   : > { %v4085_v16 = vsel %vm2077_vm7, %v8942_v6, 0.0  ;;  %v4028_v35 = vadd.f32 %v4024_v9, %v3972_v40  ;;  %v4098_v61 = vmul.f32 %v8942_v6, %v8942_v6 }
 0x7eb   : > { %4086 = vadd.xlane.f32.xlu0 %v4085_v16  ;;  %v4050_v28 = vpop.permute.xlu0 %4049 }
 0x7ec   : > { %v4038_v31 = vpop.permute.xlu1 %4037  ;;  %v8955_v29 = vadd.f32 %v4050_v28, %v3999_v3  ;;  %v4100_v56 = vsel %vm2077_vm7, %v4098_v61, 0.0 }
 0x7ed   : > { %v8953_v5 = vadd.f32 %v4038_v31, %v3986_v14 }
 0x7ee   : > { %v4220_v42 = vsel %vm2077_vm7, %v8955_v29, 0.0  ;;  %v4233_v24 = vmul.f32 %v8955_v29, %v8955_v29 }
 0x7ef   : > { %v4088_v46 = vsel %vm2077_vm7, %v8953_v5, 0.0  ;;  %4221 = vadd.xlane.f32.xlu0 %v4220_v42  ;;  %v4064_v1 = vpop.permute.xlu0 %4063  ;;  %v4099_v12 = vmul.f32 %v8953_v5, %v8953_v5 }
 0x7f0   : > { %v4052_v30 = vpop.permute.xlu1 %4051  ;;  %4089 = vadd.xlane.f32.xlu1 %v4088_v46  ;;  %v8969_v47 = vadd.f32 %v4064_v1, %v4013_v44  ;;  %v4235_v62 = vsel %vm2077_vm7, %v4233_v24, 0.0 }
 0x7f1   : > { %v8967_v49 = vadd.f32 %v4052_v30, %v4000_v13  ;;  %v4103_v59 = vsel %vm2077_vm7, %v4099_v12, 0.0 }
 0x7f2   : > { %v4347_v33 = vsel %vm2077_vm7, %v8969_v47, 0.0  ;;  %v4360_v9 = vmul.f32 %v8969_v47, %v8969_v47 }
 0x7f3   : > { %v4223_v53 = vsel %vm2077_vm7, %v8967_v49, 0.0  ;;  %4348 = vadd.xlane.f32.xlu0 %v4347_v33  ;;  %v4078_v36 = vpop.permute.xlu0 %4077  ;;  %v4234_v38 = vmul.f32 %v8967_v49, %v8967_v49 }
 0x7f4   : > { %v4066_v45 = vpop.permute.xlu1 %4065  ;;  %4224 = vadd.xlane.f32.xlu1 %v4223_v53  ;;  %v8979_v32 = vadd.f32 %v4078_v36, %v4027_v63  ;;  %v4362_v54 = vsel %vm2077_vm7, %v4360_v9, 0.0 }
 0x7f5   : > { %v8977_v22 = vadd.f32 %v4066_v45, %v4014_v39  ;;  %v4238_v48 = vsel %vm2077_vm7, %v4234_v38, 0.0 }
 0x7f6   : > { %v4474_v8 = vsel %vm2077_vm7, %v8979_v32, 0.0  ;;  %v4487_v7 = vmul.f32 %v8979_v32, %v8979_v32 }
 0x7f7   : > { %v4350_v51 = vsel %vm2077_vm7, %v8977_v22, 0.0  ;;  %v4361_v58 = vmul.f32 %v8977_v22, %v8977_v22 }
 0x7f8   : > { %v4080_v15 = vpop.permute.xlu1 %4079  ;;  %4351 = vadd.xlane.f32.xlu0 %v4350_v51  ;;  %4475 = vadd.xlane.f32.xlu1 %v4474_v8  ;;  %v4489_v41 = vsel %vm2077_vm7, %v4487_v7, 0.0 }
 0x7f9   : > { %v8987_v0 = vadd.f32 %v4080_v15, %v4028_v35  ;;  %v4365_v14 = vsel %vm2077_vm7, %v4361_v58, 0.0 }
 0x7fb   : > { %v4477_v26 = vsel %vm2077_vm7, %v8987_v0, 0.0  ;;  %v4488_v3 = vmul.f32 %v8987_v0, %v8987_v0 }
 0x7fc   : > { %4478 = vadd.xlane.f32.xlu0 %v4477_v26  ;;  %4236 = vadd.xlane.f32.xlu1 %v4235_v62 }
 0x7fd   : > { %v4492_v16 = vsel %vm2077_vm7, %v4488_v3, 0.0 }
 0x800   : > { %4101 = vadd.xlane.f32.xlu0 %v4100_v56  ;;  %4363 = vadd.xlane.f32.xlu1 %v4362_v54 }
 0x804   : > { %4104 = vadd.xlane.f32.xlu0 %v4103_v59  ;;  %4490 = vadd.xlane.f32.xlu1 %v4489_v41 }
 0x808   : > { %4239 = vadd.xlane.f32.xlu0 %v4238_v48 }
 0x80c   : > { %4366 = vadd.xlane.f32.xlu0 %v4365_v14 }
 0x810   : > { %4493 = vadd.xlane.f32.xlu0 %v4492_v16 }
 0x878   : > { %v4087_v11 = vpop.xlane.xlu0 %4086 }
 0x87c   : > { %v4222_v17 = vpop.xlane.xlu0 %4221 }
 0x87d   : > { %v4090_v23 = vpop.xlane.xlu1 %4089 }
 0x87e   : > { %v4091_v31 = vadd.f32 %v4090_v23, %v4087_v11 }
 0x880   : > { %v4349_v52 = vpop.xlane.xlu0 %4348  ;;  %v4092_v20 = vrot.slane %v4091_v31, 4 }
 0x881   : > { %v4225_v28 = vpop.xlane.xlu1 %4224 }
 0x882   : > { %v4226_v43 = vadd.f32 %v4225_v28, %v4222_v17  ;;  %v4093_v18 = vadd.f32 %v4092_v20, %v4091_v31 }
 0x884   : > { %v4227_v37 = vrot.slane %v4226_v43, 4  ;;  %v4094_v44 = vrot.slane %v4093_v18, 2 }
 0x885   : > { %v4352_v50 = vpop.xlane.xlu0 %4351  ;;  %v4476_v13 = vpop.xlane.xlu1 %4475 }
 0x886   : > { %v4353_v57 = vadd.f32 %v4352_v50, %v4349_v52  ;;  %v4228_v46 = vadd.f32 %v4227_v37, %v4226_v43  ;;  %v4095_v30 = vadd.f32 %v4094_v44, %v4093_v18 }
 0x888   : > { %v4354_v42 = vrot.slane %v4353_v57, 4  ;;  %v4229_v1 = vrot.slane %v4228_v46, 2  ;;  %v4096_v4 = vrot.slane %v4095_v30, 1 }
 0x889   : > { %v4479_v34 = vpop.xlane.xlu0 %4478  ;;  %v4237_v25 = vpop.xlane.xlu1 %4236 }
 0x88a   : > { %v4480_v2 = vadd.f32 %v4479_v34, %v4476_v13  ;;  %v4355_v60 = vadd.f32 %v4354_v42, %v4353_v57  ;;  %v4230_v39 = vadd.f32 %v4229_v1, %v4228_v46  ;;  %v4097_v40 = vadd.f32 %v4096_v4, %v4095_v30 }
 0x88c   : > { %v4481_v21 = vrot.slane %v4480_v2, 4  ;;  %v4356_v63 = vrot.slane %v4355_v60, 2  ;;  %v4231_v35 = vrot.slane %v4230_v39, 1  ;;  %v4113_v54 = vmul.f32 0.00390625, %v4097_v40 }
 0x88d   : > { %v4102_v19 = vpop.xlane.xlu0 %4101  ;;  %v4364_v24 = vpop.xlane.xlu1 %4363 }
 0x88e   : > { %v4482_v53 = vadd.f32 %v4481_v21, %v4480_v2  ;;  %v4357_v51 = vadd.f32 %v4356_v63, %v4355_v60  ;;  %v4232_v12 = vadd.f32 %v4231_v35, %v4230_v39  ;;  %v4115_v52 = vmul.f32 %v4113_v54, %v4113_v54 }
 0x890   : > { %v4483_v8 = vrot.slane %v4482_v53, 2  ;;  %v4358_v7 = vrot.slane %v4357_v51, 1  ;;  %v4248_v17 = vmul.f32 0.00390625, %v4232_v12 }
 0x891   : > { %v4105_v10 = vpop.xlane.xlu0 %4104  ;;  %v4491_v58 = vpop.xlane.xlu1 %4490 }
 0x892   : > { %v4106_v27 = vadd.f32 %v4105_v10, %v4102_v19  ;;  %v4484_v59 = vadd.f32 %v4483_v8, %v4482_v53  ;;  %v4359_v31 = vadd.f32 %v4358_v7, %v4357_v51  ;;  %v4250_v42 = vmul.f32 %v4248_v17, %v4248_v17 }
 0x893   : > { %v4253_v12 = vsub.f32 %v8955_v29, %v4248_v17  ;;  %v4254_v7 = vsub.f32 %v8967_v49, %v4248_v17 }
 0x894   : > { %v4107_v33 = vrot.slane %v4106_v27, 4  ;;  %v4485_v28 = vrot.slane %v4484_v59, 1  ;;  %v9013_v44 = vmul.f32 0.00390625, %v4359_v31 }
 0x895   : > { %v4240_v45 = vpop.xlane.xlu0 %4239 }
 0x896   : > { %v4108_v36 = vadd.f32 %v4107_v33, %v4106_v27  ;;  %v4241_v55 = vadd.f32 %v4240_v45, %v4237_v25  ;;  %v4486_v46 = vadd.f32 %v4485_v28, %v4484_v59  ;;  %v4377_v4 = vmul.f32 %v9013_v44, %v9013_v44  ;;  %v5164_v59 = vld [vmem:[%s5487_s9] sm:$0xff] }
 0x897   : > { %v4380_v29 = vsub.f32 %v8969_v47, %v9013_v44  ;;  %v4381_v49 = vsub.f32 %v8977_v22, %v9013_v44 }
 0x898   : > { %v4109_v15 = vrot.slane %v4108_v36, 2  ;;  %v4242_v26 = vrot.slane %v4241_v55, 4  ;;  %v9015_v27 = vmul.f32 0.00390625, %v4486_v46 }
 0x899   : > { %v4367_v62 = vpop.xlane.xlu0 %4366 }
 0x89a   : > { %v4110_v61 = vadd.f32 %v4109_v15, %v4108_v36  ;;  %v4243_v9 = vadd.f32 %v4242_v26, %v4241_v55  ;;  %v4368_v56 = vadd.f32 %v4367_v62, %v4364_v24  ;;  %v4504_v40 = vmul.f32 %v9015_v27, %v9015_v27 }
 0x89b   : > { %v4118_v15 = vsub.f32 %v8942_v6, %v4113_v54  ;;  %v4119_v26 = vsub.f32 %v8953_v5, %v4113_v54  ;;  %v4507_v22 = vsub.f32 %v8979_v32, %v9015_v27 }
 0x89c   : > { %v4111_v41 = vrot.slane %v4110_v61, 1  ;;  %v4244_v38 = vrot.slane %v4243_v9, 2  ;;  %v4369_v48 = vrot.slane %v4368_v56, 4 }
 0x89d   : > { %v4494_v14 = vpop.xlane.xlu0 %4493 }
 0x89e   : > { %v4112_v3 = vadd.f32 %v4111_v41, %v4110_v61  ;;  %v4245_v16 = vadd.f32 %v4244_v38, %v4243_v9  ;;  %v4370_v11 = vadd.f32 %v4369_v48, %v4368_v56  ;;  %v4495_v23 = vadd.f32 %v4494_v14, %v4491_v58  ;;  %v5165_v38 = vld [vmem:[%s5487_s9 + $0x8] sm:$0xff] }
 0x8a0   : > { %v4114_v20 = vmul.f32 0.00390625, %v4112_v3  ;;  %v4246_v43 = vrot.slane %v4245_v16, 1  ;;  %v4371_v50 = vrot.slane %v4370_v11, 2  ;;  %v4496_v18 = vrot.slane %v4495_v23, 4  ;;  %v5166_v3 = vld [vmem:[%s5487_s9 + $0x10] sm:$0xff] }
 0x8a2   : > { %v4116_v37 = vsub.f32 %v4114_v20, %v4115_v52  ;;  %v4247_v57 = vadd.f32 %v4246_v43, %v4245_v16  ;;  %v4372_v34 = vadd.f32 %v4371_v50, %v4370_v11  ;;  %v4497_v13 = vadd.f32 %v4496_v18, %v4495_v23  ;;  %v5167_v11 = vld [vmem:[%s5487_s9 + $0x18] sm:$0xff]  ;;  %v5168_v43 = vld [vmem:[%s5487_s9 + $0x20] sm:$0xff]  ;;  %v5169_v18 = vld [vmem:[%s5487_s9 + $0x28] sm:$0xff] }
 0x8a3   : > { %v4508_v20 = vsub.f32 %v8987_v0, %v9015_v27  ;;  %v5170_v0 = vld [vmem:[%s5487_s9 + $0x30] sm:$0xff] }
 0x8a4   : > { %v4117_v2 = vmax.f32 %v4116_v37, 0.0  ;;  %v4249_v19 = vmul.f32 0.00390625, %v4247_v57  ;;  %v4373_v30 = vrot.slane %v4372_v34, 1  ;;  %v4498_v1 = vrot.slane %v4497_v13, 2 }
 0x8a6   : > { %v4120_v60 = vadd.f32 1e-05, %v4117_v2  ;;  %v4251_v21 = vsub.f32 %v4249_v19, %v4250_v42  ;;  %v4374_v25 = vadd.f32 %v4373_v30, %v4372_v34  ;;  %v4499_v10 = vadd.f32 %v4498_v1, %v4497_v13  ;;  %v5171_v42 = vld [vmem:[%s5487_s9 + $0x38] sm:$0xff]  ;;  %s5321_s9 = smov 80  }
 0x8a8   : > { %5156 = vrsqrt.f32 %v4120_v60  ;;  %v4252_v39 = vmax.f32 %v4251_v21, 0.0  ;;  %v4376_v63 = vmul.f32 0.00390625, %v4374_v25  ;;  %v4500_v53 = vrot.slane %v4499_v10, 1 }
 0x8aa   : > { %v4255_v33 = vadd.f32 1e-05, %v4252_v39  ;;  %v4378_v45 = vsub.f32 %v4376_v63, %v4377_v4  ;;  %v4501_v36 = vadd.f32 %v4500_v53, %v4499_v10 }
 0x8ac   : > { %5158 = vrsqrt.f32 %v4255_v33  ;;  %v4379_v55 = vmax.f32 %v4378_v45, 0.0  ;;  %v4503_v35 = vmul.f32 0.00390625, %v4501_v36 }
 0x8ae   : > { %v4382_v51 = vadd.f32 1e-05, %v4379_v55  ;;  %v4505_v8 = vsub.f32 %v4503_v35, %v4504_v40 }
 0x8b0   : > { %5160 = vrsqrt.f32 %v4382_v51  ;;  %v4506_v24 = vmax.f32 %v4505_v8, 0.0 }
 0x8b2   : > { %v5157_v62 = vpop.eup %5156  ;;  %v4509_v61 = vadd.f32 1e-05, %v4506_v24 }
 0x8b3   : > { %v4122_v9 = vmul.f32 %v5157_v62, %v4118_v15  ;;  %v4123_v56 = vmul.f32 %v5157_v62, %v4119_v26 }
 0x8b4   : > { %5162 = vrsqrt.f32 %v4509_v61 }
 0x8b5   : > { %v4124_v41 = vadd.f32 %v5164_v59, %v4122_v9  ;;  %v4125_v48 = vadd.f32 %v5165_v38, %v4123_v56 }
 0x8b6   : > { %v5159_v58 = vpop.eup %5158 }
 0x8b7   : > { %v4257_v6 = vmul.f32 %v5159_v58, %v4253_v12  ;;  %v4258_v5 = vmul.f32 %v5159_v58, %v4254_v7  ;;  %v5014_v54 = vrot.slane %v4124_v41, 10  ;;  %v5013_v14 = vrot.slane %v4124_v41, 9  ;;  %4127 = vst.msk [vmem:[%s9028_s11] sm:$0x1] %vm4126_vm8, %v4124_v41  ;;  %4177 = vst.msk [vmem:[%s9028_s11 + $0x4] sm:$0x1] %vm4126_vm8, %v4125_v48 }
 0x8b8   : > { %v5020_v47 = vrot.slane %v4125_v48, 10  ;;  %v5015_v52 = vrot.slane %v4124_v41, 11  ;;  %v9054_v32 = vcombine.high %v4125_v48, %v4125_v48  ;;  %v9056_v44 = vcombine.high %v4124_v41, %v4124_v41 }
 0x8b9   : > { %4138 = vrot.lane.b32.xlu0 %v5014_v54, %s5317_s2  ;;  %4131 = vrot.lane.b32.xlu1 %v5013_v14, %s5318_s17  ;;  %v4259_v16 = vadd.f32 %v5166_v3, %v4257_v6  ;;  %v4260_v23 = vadd.f32 %v5167_v11, %v4258_v5  ;;  %v5019_v19 = vrot.slane %v4125_v48, 9  ;;  %v5021_v1 = vrot.slane %v4125_v48, 11 }
 0x8ba   : > { %v5161_v17 = vpop.eup %5160  ;;  %v5016_v62 = vrot.slane %v9056_v44, 9  ;;  %v5018_v9 = vrot.slane %v9056_v44, 11  ;;  %v5023_v12 = vrot.slane %v9054_v32, 10  ;;  %v5017_v41 = vrot.slane %v9056_v44, 10 }
 0x8bb   : > { %v4384_v31 = vmul.f32 %v5161_v17, %v4380_v29  ;;  %v4385_v28 = vmul.f32 %v5161_v17, %v4381_v49  ;;  %4261 = vst.msk [vmem:[%s9028_s11 + $0x1] sm:$0x1] %vm4126_vm8, %v4259_v16  ;;  %4304 = vst.msk [vmem:[%s9028_s11 + $0x5] sm:$0x1] %vm4126_vm8, %v4260_v23  ;;  %v5026_v30 = vrot.slane %v4259_v16, 10  ;;  %v5032_v60 = vrot.slane %v4260_v23, 10 }
 0x8bc   : > { %v9079_v21 = vcombine.high %v4260_v23, %v4260_v23  ;;  %v5025_v25 = vrot.slane %v4259_v16, 9  ;;  %v5027_v10 = vrot.slane %v4259_v16, 11  ;;  %v4281_v4 = vcombine.high %v4259_v16, %v4259_v16 }
 0x8bd   : > { %4187 = vrot.lane.b32.xlu0 %v5020_v47, %s5317_s2  ;;  %4145 = vrot.lane.b32.xlu1 %v5015_v52, %s5319_s10  ;;  %v4386_v50 = vadd.f32 %v5168_v43, %v4384_v31  ;;  %v4387_v37 = vadd.f32 %v5169_v18, %v4385_v28  ;;  %v5031_v63 = vrot.slane %v4260_v23, 9  ;;  %v5033_v33 = vrot.slane %v4260_v23, 11 }
 0x8be   : > { %v5163_v57 = vpop.eup %5162  ;;  %v5028_v59 = vrot.slane %v4281_v4, 9  ;;  %v5030_v38 = vrot.slane %v4281_v4, 11  ;;  %v5022_v48 = vrot.slane %v9054_v32, 9  ;;  %v5035_v58 = vrot.slane %v9079_v21, 10 }
 0x8bf   : > { %v4511_v34 = vmul.f32 %v5163_v57, %v4507_v22  ;;  %v4512_v13 = vmul.f32 %v5163_v57, %v4508_v20  ;;  %4388 = vst.msk [vmem:[%s9028_s11 + $0x2] sm:$0x1] %vm4126_vm8, %v4386_v50  ;;  %4431 = vst.msk [vmem:[%s9028_s11 + $0x6] sm:$0x1] %vm4126_vm8, %v4387_v37  ;;  %v5037_v27 = vrot.slane %v4386_v50, 9  ;;  %v5039_v39 = vrot.slane %v4386_v50, 11 }
 0x8c0   : > { %v5044_v53 = vrot.slane %v4387_v37, 10  ;;  %v9090_v45 = vcombine.high %v4387_v37, %v4387_v37  ;;  %v5038_v36 = vrot.slane %v4386_v50, 10  ;;  %v4408_v40 = vcombine.high %v4386_v50, %v4386_v50 }
 0x8c1   : > { %4198 = vrot.lane.b32.xlu0 %v9054_v32, %s5320_s21  ;;  %4151 = vrot.lane.b32.xlu1 %v9056_v44, %s5320_s21  ;;  %v4513_v46 = vadd.f32 %v5170_v0, %v4511_v34  ;;  %v9068_v2 = vadd.f32 %v5171_v42, %v4512_v13  ;;  %v5043_v51 = vrot.slane %v4387_v37, 9  ;;  %v5045_v24 = vrot.slane %v4387_v37, 11 }
 0x8c2   : > { %v5024_v6 = vrot.slane %v9054_v32, 11  ;;  %v5040_v5 = vrot.slane %v4408_v40, 9  ;;  %v5029_v54 = vrot.slane %v4281_v4, 10  ;;  %v5042_v14 = vrot.slane %v4408_v40, 11 }
 0x8c3   : > { %4515 = vst.msk [vmem:[%s9028_s11 + $0x3] sm:$0x1] %vm4126_vm8, %v4513_v46  ;;  %4558 = vst.msk [vmem:[%s9028_s11 + $0x7] sm:$0x1] %vm4126_vm8, %v9068_v2  ;;  %v5049_v55 = vrot.slane %v4513_v46, 9  ;;  %v5051_v35 = vrot.slane %v4513_v46, 11  ;;  %v9104_v15 = vcombine.high %v9068_v2, %v9068_v2  ;;  %v4535_v61 = vcombine.high %v4513_v46, %v4513_v46 }
 0x8c4   : > { %v5056_v8 = vrot.slane %v9068_v2, 10  ;;  %v5050_v26 = vrot.slane %v4513_v46, 10  ;;  %v5055_v56 = vrot.slane %v9068_v2, 9  ;;  %v5057_v7 = vrot.slane %v9068_v2, 11 }
 0x8c5   : > { %4181 = vrot.lane.b32.xlu1 %v5019_v19, %s5318_s17  ;;  %4271 = vrot.lane.b32.xlu0 %v5026_v30, %s5317_s2  ;;  %v5034_v29 = vrot.slane %v9079_v21, 9  ;;  %v5047_v49 = vrot.slane %v9090_v45, 10  ;;  %v5036_v3 = vrot.slane %v9079_v21, 11  ;;  %v5052_v16 = vrot.slane %v4535_v61, 9 }
 0x8c6   : > { %v5041_v11 = vrot.slane %v4408_v40, 10  ;;  %v5053_v23 = vrot.slane %v4535_v61, 10  ;;  %v5046_v17 = vrot.slane %v9090_v45, 9  ;;  %v5054_v31 = vrot.slane %v4535_v61, 11 }
 0x8c7   : > { %v5048_v28 = vrot.slane %v9090_v45, 11  ;;  %v5058_v47 = vrot.slane %v9104_v15, 9  ;;  %v5059_v52 = vrot.slane %v9104_v15, 10  ;;  %v5060_v43 = vrot.slane %v9104_v15, 11 }
 0x8c9   : > { %4193 = vrot.lane.b32.xlu1 %v5021_v1, %s5319_s10  ;;  %4314 = vrot.lane.b32.xlu0 %v5032_v60, %s5317_s2 }
 0x8cd   : > { %4325 = vrot.lane.b32.xlu0 %v9079_v21, %s5320_s21  ;;  %4265 = vrot.lane.b32.xlu1 %v5025_v25, %s5318_s17 }
 0x8d1   : > { %4277 = vrot.lane.b32.xlu1 %v5027_v10, %s5319_s10  ;;  %4392 = vrot.lane.b32.xlu0 %v5037_v27, %s5318_s17 }
 0x8d5   : > { %4282 = vrot.lane.b32.xlu1 %v4281_v4, %s5320_s21  ;;  %4404 = vrot.lane.b32.xlu0 %v5039_v39, %s5319_s10 }
 0x8d9   : > { %4308 = vrot.lane.b32.xlu1 %v5031_v63, %s5318_s17  ;;  %4441 = vrot.lane.b32.xlu0 %v5044_v53, %s5317_s2 }
 0x8dd   : > { %4320 = vrot.lane.b32.xlu1 %v5033_v33, %s5319_s10  ;;  %4452 = vrot.lane.b32.xlu0 %v9090_v45, %s5320_s21 }
 0x8e1   : > { %4398 = vrot.lane.b32.xlu1 %v5038_v36, %s5317_s2  ;;  %4519 = vrot.lane.b32.xlu0 %v5049_v55, %s5318_s17 }
 0x8e5   : > { %4409 = vrot.lane.b32.xlu1 %v4408_v40, %s5320_s21  ;;  %4531 = vrot.lane.b32.xlu0 %v5051_v35, %s5319_s10 }
 0x8e9   : > { %4435 = vrot.lane.b32.xlu1 %v5043_v51, %s5318_s17  ;;  %4568 = vrot.lane.b32.xlu0 %v5056_v8, %s5317_s2 }
 0x8ed   : > { %4447 = vrot.lane.b32.xlu1 %v5045_v24, %s5319_s10  ;;  %4579 = vrot.lane.b32.xlu0 %v9104_v15, %s5320_s21 }
 0x8f1   : > { %4525 = vrot.lane.b32.xlu1 %v5050_v26, %s5317_s2  ;;  %4158 = vrot.lane.b32.xlu0 %v5016_v62, %s5321_s9 }
 0x8f5   : > { %4536 = vrot.lane.b32.xlu1 %v4535_v61, %s5320_s21  ;;  %4172 = vrot.lane.b32.xlu0 %v5018_v9, %s5322_s20 }
 0x8f9   : > { %4562 = vrot.lane.b32.xlu1 %v5055_v56, %s5318_s17  ;;  %4210 = vrot.lane.b32.xlu0 %v5023_v12, %s5323_s23 }
 0x8fd   : > { %4574 = vrot.lane.b32.xlu1 %v5057_v7, %s5319_s10  ;;  %4288 = vrot.lane.b32.xlu0 %v5028_v59, %s5321_s9 }
 0x901   : > { %4165 = vrot.lane.b32.xlu1 %v5017_v41, %s5323_s23  ;;  %4300 = vrot.lane.b32.xlu0 %v5030_v38, %s5322_s20 }
 0x905   : > { %4204 = vrot.lane.b32.xlu1 %v5022_v48, %s5321_s9  ;;  %4337 = vrot.lane.b32.xlu0 %v5035_v58, %s5323_s23 }
 0x909   : > { %4216 = vrot.lane.b32.xlu1 %v5024_v6, %s5322_s20  ;;  %4415 = vrot.lane.b32.xlu0 %v5040_v5, %s5321_s9 }
 0x90d   : > { %4294 = vrot.lane.b32.xlu1 %v5029_v54, %s5323_s23  ;;  %4427 = vrot.lane.b32.xlu0 %v5042_v14, %s5322_s20 }
 0x911   : > { %4331 = vrot.lane.b32.xlu1 %v5034_v29, %s5321_s9  ;;  %4464 = vrot.lane.b32.xlu0 %v5047_v49, %s5323_s23 }
 0x915   : > { %4343 = vrot.lane.b32.xlu1 %v5036_v3, %s5322_s20  ;;  %4542 = vrot.lane.b32.xlu0 %v5052_v16, %s5321_s9 }
 0x919   : > { %4421 = vrot.lane.b32.xlu1 %v5041_v11, %s5323_s23  ;;  %4548 = vrot.lane.b32.xlu0 %v5053_v23, %s5323_s23 }
 0x91d   : > { %4458 = vrot.lane.b32.xlu1 %v5046_v17, %s5321_s9  ;;  %4554 = vrot.lane.b32.xlu0 %v5054_v31, %s5322_s20 }
 0x921   : > { %4470 = vrot.lane.b32.xlu1 %v5048_v28, %s5322_s20 }
 0x925   : > { %4585 = vrot.lane.b32.xlu1 %v5058_v47, %s5321_s9 }
 0x929   : > { %4591 = vrot.lane.b32.xlu1 %v5059_v52, %s5323_s23 }
 0x92b   : > { %v4132_v22 = vpop.permute.xlu1 %4131  ;;  %v4139_v20 = vpop.permute.xlu0 %4138 }
 0x92c   : > { %4135 = vst.msk [vmem:[%s9028_s11] sm:$0x1] %vm4134_vm9, %v4132_v22 }
 0x92d   : > { %4142 = vst.msk [vmem:[%s9028_s11] sm:$0x1] %vm4141_vm10, %v4139_v20  ;;  %4597 = vrot.lane.b32.xlu1 %v5060_v43, %s5322_s20 }
 0x92f   : > { %v4146_v50 = vpop.permute.xlu1 %4145  ;;  %v4188_v18 = vpop.permute.xlu0 %4187 }
 0x930   : > { %4149 = vst.msk [vmem:[%s9028_s11] sm:$0x1] %vm4148_vm11, %v4146_v50 }
 0x933   : > { %v4152_v37 = vpop.permute.xlu1 %4151  ;;  %v4199_v57 = vpop.permute.xlu0 %4198 }
 0x934   : > { %4155 = vst.msk [vmem:[%s9028_s11] sm:$0x1] %vm4154_vm12, %v4152_v37 }
 0x937   : > { %v4182_v34 = vpop.permute.xlu1 %4181  ;;  %v4272_v13 = vpop.permute.xlu0 %4271 }
 0x938   : > { %4184 = vst.msk [vmem:[%s9028_s11 + $0x4] sm:$0x1] %vm4134_vm9, %v4182_v34 }
 0x939   : > { %4190 = vst.msk [vmem:[%s9028_s11 + $0x4] sm:$0x1] %vm4141_vm10, %v4188_v18 }
 0x93b   : > { %v4194_v32 = vpop.permute.xlu1 %4193  ;;  %v4315_v44 = vpop.permute.xlu0 %4314 }
 0x93c   : > { %4196 = vst.msk [vmem:[%s9028_s11 + $0x4] sm:$0x1] %vm4148_vm11, %v4194_v32 }
 0x93d   : > { %4201 = vst.msk [vmem:[%s9028_s11 + $0x4] sm:$0x1] %vm4154_vm12, %v4199_v57 }
 0x93f   : > { %v4266_v0 = vpop.permute.xlu1 %4265  ;;  %v4326_v46 = vpop.permute.xlu0 %4325 }
 0x940   : > { %4268 = vst.msk [vmem:[%s9028_s11 + $0x1] sm:$0x1] %vm4134_vm9, %v4266_v0 }
 0x941   : > { %4274 = vst.msk [vmem:[%s9028_s11 + $0x1] sm:$0x1] %vm4141_vm10, %v4272_v13 }
 0x943   : > { %v4278_v42 = vpop.permute.xlu1 %4277  ;;  %v4393_v2 = vpop.permute.xlu0 %4392 }
 0x944   : > { %4280 = vst.msk [vmem:[%s9028_s11 + $0x1] sm:$0x1] %vm4148_vm11, %v4278_v42 }
 0x945   : > { %4395 = vst.msk [vmem:[%s9028_s11 + $0x2] sm:$0x1] %vm4134_vm9, %v4393_v2 }
 0x947   : > { %v4283_v19 = vpop.permute.xlu1 %4282  ;;  %v4405_v30 = vpop.permute.xlu0 %4404 }
 0x948   : > { %4285 = vst.msk [vmem:[%s9028_s11 + $0x1] sm:$0x1] %vm4154_vm12, %v4283_v19 }
 0x94b   : > { %v4309_v1 = vpop.permute.xlu1 %4308  ;;  %v4442_v60 = vpop.permute.xlu0 %4441 }
 0x94c   : > { %4311 = vst.msk [vmem:[%s9028_s11 + $0x5] sm:$0x1] %vm4134_vm9, %v4309_v1 }
 0x94d   : > { %4317 = vst.msk [vmem:[%s9028_s11 + $0x5] sm:$0x1] %vm4141_vm10, %v4315_v44 }
 0x94f   : > { %v4321_v21 = vpop.permute.xlu1 %4320  ;;  %v4453_v25 = vpop.permute.xlu0 %4452 }
 0x950   : > { %4323 = vst.msk [vmem:[%s9028_s11 + $0x5] sm:$0x1] %vm4148_vm11, %v4321_v21 }
 0x951   : > { %4328 = vst.msk [vmem:[%s9028_s11 + $0x5] sm:$0x1] %vm4154_vm12, %v4326_v46 }
 0x953   : > { %v4399_v10 = vpop.permute.xlu1 %4398  ;;  %v4520_v27 = vpop.permute.xlu0 %4519 }
 0x954   : > { %4401 = vst.msk [vmem:[%s9028_s11 + $0x2] sm:$0x1] %vm4141_vm10, %v4399_v10 }
 0x955   : > { %4522 = vst.msk [vmem:[%s9028_s11 + $0x3] sm:$0x1] %vm4134_vm9, %v4520_v27 }
 0x956   : > { %4407 = vst.msk [vmem:[%s9028_s11 + $0x2] sm:$0x1] %vm4148_vm11, %v4405_v30 }
 0x957   : > { %v4410_v4 = vpop.permute.xlu1 %4409  ;;  %v4532_v39 = vpop.permute.xlu0 %4531 }
 0x958   : > { %4412 = vst.msk [vmem:[%s9028_s11 + $0x2] sm:$0x1] %vm4154_vm12, %v4410_v4 }
 0x95b   : > { %v4436_v63 = vpop.permute.xlu1 %4435  ;;  %v4569_v53 = vpop.permute.xlu0 %4568 }
 0x95c   : > { %4438 = vst.msk [vmem:[%s9028_s11 + $0x6] sm:$0x1] %vm4134_vm9, %v4436_v63 }
 0x95d   : > { %4444 = vst.msk [vmem:[%s9028_s11 + $0x6] sm:$0x1] %vm4141_vm10, %v4442_v60 }
 0x95f   : > { %v4448_v33 = vpop.permute.xlu1 %4447  ;;  %v4580_v45 = vpop.permute.xlu0 %4579 }
 0x960   : > { %4450 = vst.msk [vmem:[%s9028_s11 + $0x6] sm:$0x1] %vm4148_vm11, %v4448_v33 }
 0x961   : > { %4455 = vst.msk [vmem:[%s9028_s11 + $0x6] sm:$0x1] %vm4154_vm12, %v4453_v25 }
 0x963   : > { %v4526_v36 = vpop.permute.xlu1 %4525  ;;  %v4159_v55 = vpop.permute.xlu0 %4158 }
 0x964   : > { %4528 = vst.msk [vmem:[%s9028_s11 + $0x3] sm:$0x1] %vm4141_vm10, %v4526_v36 }
 0x965   : > { %4162 = vst.msk [vmem:[%s9028_s11] sm:$0x1] %vm4161_vm13, %v4159_v55 }
 0x966   : > { %4534 = vst.msk [vmem:[%s9028_s11 + $0x3] sm:$0x1] %vm4148_vm11, %v4532_v39 }
 0x967   : > { %v4537_v40 = vpop.permute.xlu1 %4536  ;;  %v4173_v35 = vpop.permute.xlu0 %4172 }
 0x968   : > { %4539 = vst.msk [vmem:[%s9028_s11 + $0x3] sm:$0x1] %vm4154_vm12, %v4537_v40 }
 0x96b   : > { %v4563_v51 = vpop.permute.xlu1 %4562  ;;  %v4211_v8 = vpop.permute.xlu0 %4210 }
 0x96c   : > { %4565 = vst.msk [vmem:[%s9028_s11 + $0x7] sm:$0x1] %vm4134_vm9, %v4563_v51 }
 0x96d   : > { %4571 = vst.msk [vmem:[%s9028_s11 + $0x7] sm:$0x1] %vm4141_vm10, %v4569_v53 }
 0x96f   : > { %v4575_v24 = vpop.permute.xlu1 %4574  ;;  %v4289_v15 = vpop.permute.xlu0 %4288 }
 0x970   : > { %4577 = vst.msk [vmem:[%s9028_s11 + $0x7] sm:$0x1] %vm4148_vm11, %v4575_v24 }
 0x971   : > { %4291 = vst.msk [vmem:[%s9028_s11 + $0x1] sm:$0x1] %vm4161_vm13, %v4289_v15 }
 0x972   : > { %4582 = vst.msk [vmem:[%s9028_s11 + $0x7] sm:$0x1] %vm4154_vm12, %v4580_v45 }
 0x973   : > { %v4166_v26 = vpop.permute.xlu1 %4165  ;;  %v4301_v62 = vpop.permute.xlu0 %4300 }
 0x974   : > { %4169 = vst.msk [vmem:[%s9028_s11] sm:$0x1] %vm4168_vm14, %v4166_v26 }
 0x975   : > { %4176 = vst.msk [vmem:[%s9028_s11] sm:$0x1] %vm4175_vm15, %v4173_v35 }
 0x977   : > { %v4205_v61 = vpop.permute.xlu1 %4204  ;;  %v4338_v9 = vpop.permute.xlu0 %4337 }
 0x978   : > { %4207 = vst.msk [vmem:[%s9028_s11 + $0x4] sm:$0x1] %vm4161_vm13, %v4205_v61 }
 0x979   : > { %4213 = vst.msk [vmem:[%s9028_s11 + $0x4] sm:$0x1] %vm4168_vm14, %v4211_v8 }
 0x97b   : > { %v4217_v56 = vpop.permute.xlu1 %4216  ;;  %v4416_v12 = vpop.permute.xlu0 %4415 }
 0x97c   : > { %4219 = vst.msk [vmem:[%s9028_s11 + $0x4] sm:$0x1] %vm4175_vm15, %v4217_v56 }
 0x97d   : > { %4418 = vst.msk [vmem:[%s9028_s11 + $0x2] sm:$0x1] %vm4161_vm13, %v4416_v12 }
 0x97f   : > { %v4295_v7 = vpop.permute.xlu1 %4294  ;;  %v4428_v59 = vpop.permute.xlu0 %4427 }
 0x980   : > { %4297 = vst.msk [vmem:[%s9028_s11 + $0x1] sm:$0x1] %vm4168_vm14, %v4295_v7 }
 0x981   : > { %4303 = vst.msk [vmem:[%s9028_s11 + $0x1] sm:$0x1] %vm4175_vm15, %v4301_v62 }
 0x983   : > { %v4332_v41 = vpop.permute.xlu1 %4331  ;;  %v4465_v38 = vpop.permute.xlu0 %4464 }
 0x984   : > { %4334 = vst.msk [vmem:[%s9028_s11 + $0x5] sm:$0x1] %vm4161_vm13, %v4332_v41 }
 0x985   : > { %4340 = vst.msk [vmem:[%s9028_s11 + $0x5] sm:$0x1] %vm4168_vm14, %v4338_v9 }
 0x987   : > { %v4344_v48 = vpop.permute.xlu1 %4343  ;;  %v4543_v58 = vpop.permute.xlu0 %4542 }
 0x988   : > { %4346 = vst.msk [vmem:[%s9028_s11 + $0x5] sm:$0x1] %vm4175_vm15, %v4344_v48 }
 0x989   : > { %4545 = vst.msk [vmem:[%s9028_s11 + $0x3] sm:$0x1] %vm4161_vm13, %v4543_v58 }
 0x98b   : > { %v4422_v6 = vpop.permute.xlu1 %4421  ;;  %v4549_v5 = vpop.permute.xlu0 %4548 }
 0x98c   : > { %4424 = vst.msk [vmem:[%s9028_s11 + $0x2] sm:$0x1] %vm4168_vm14, %v4422_v6  ;;  %4551 = vst.msk [vmem:[%s9028_s11 + $0x3] sm:$0x1] %vm4168_vm14, %v4549_v5 }
 0x98d   : > { %4430 = vst.msk [vmem:[%s9028_s11 + $0x2] sm:$0x1] %vm4175_vm15, %v4428_v59 }
 0x98f   : > { %v4459_v54 = vpop.permute.xlu1 %4458  ;;  %v4555_v14 = vpop.permute.xlu0 %4554 }
 0x990   : > { %4461 = vst.msk [vmem:[%s9028_s11 + $0x6] sm:$0x1] %vm4161_vm13, %v4459_v54 }
 0x991   : > { %4557 = vst.msk [vmem:[%s9028_s11 + $0x3] sm:$0x1] %vm4175_vm15, %v4555_v14 }
 0x992   : > { %4467 = vst.msk [vmem:[%s9028_s11 + $0x6] sm:$0x1] %vm4168_vm14, %v4465_v38 }
 0x993   : > { %v4471_v29 = vpop.permute.xlu1 %4470 }
 0x994   : > { %4473 = vst.msk [vmem:[%s9028_s11 + $0x6] sm:$0x1] %vm4175_vm15, %v4471_v29 }
 0x997   : > { %v4586_v49 = vpop.permute.xlu1 %4585 }
 0x998   : > { %4588 = vst.msk [vmem:[%s9028_s11 + $0x7] sm:$0x1] %vm4161_vm13, %v4586_v49 }
 0x99b   : > { %v4592_v3 = vpop.permute.xlu1 %4591 }
 0x99c   : > { %4594 = vst.msk [vmem:[%s9028_s11 + $0x7] sm:$0x1] %vm4168_vm14, %v4592_v3 }
 0x99f   : > { %v4598_v16 = vpop.permute.xlu1 %4597 }
 0x9a0   : > { %4600 = vst.msk [vmem:[%s9028_s11 + $0x7] sm:$0x1] %vm4175_vm15, %v4598_v16 }
 0x9a1   : > { %5245 = shalt.err (!%p5242_p7)
}
 0x9a2   : > { %s5246_s5 = scalar_lea.hbm %s9269_s19, 128  ;;  %s5250_s28 = scalar_lea.hbm %s9318_s3, 256 }
 0x9a3   : > { %p5247_p11 = scmp.ne.s32.totalorder %s9269_s19, %s5246_s5  ;;  %p5251_p3 = scmp.lt.u32.totalorder %s9269_s19, %s9318_s3 }
 0x9a4   : > { %p5252_p9 = scmp.lt.u32.totalorder %s5250_s28, %s5246_s5  ;;  %p5254_p5 = scmp.lt.u32.totalorder %s5246_s5, %s9269_s19 }
 0x9a5   : > { %p5248_p13 = pnand %p5247_p11, %p9715_p2 }
 0x9a6   : > { %p5253_p1 = por %p5252_p9, %p5251_p3 }
 0x9a7   : > { %p5249_p6 = pneg %p5248_p13 }
 0x9a8   : > { %p5255_p8 = por %p5254_p5, %p5253_p1 }
 0x9aa   : > { %p5256_p10 = pnand %p5255_p8, %p5249_p6 }
 0x9ac   : > { %5259 = shalt.err (!%p5256_p10)
}
 0x9ad   : > { %5078 = dma.vmem_to_hbm [thread:$0]  (%p9715_p2), %s9271_s14, 128, %s9269_s19, %s4602_s22  }
 0x9ae PF: > { %s4628_s30 = sand.u32 1, %s5294_s12   ;;  %p9716_p4 = scmp.ne.s32.totalorder %s9347_s25, 0 }
 0x9af   : > { %p9717_p12 = scmp.ge.s32.totalorder %s5306_s15, 2  ;;  %s4629_s11 = scalar_lea.sflag [#allocation6], %s4628_s30 }
 0x9b1   : > { %p5092_p0 = pnand %p9717_p12, %p9716_p4 }
 0x9b3   : > { %5289 = dma.done.wait (!%p5092_p0), %s4629_s11, 128  }
 0x9b4   : > { %5291 = vsyncadd (!%p5092_p0), %s4629_s11, 4294967168  ;;  %s9718_s12 = sld [smem:[#allocation16_spill]]  ;;  %s9719_s13 = sld [smem:[#allocation17_spill]] }
 0x9b5   : > { %s9720_s14 = sld [smem:[#allocation18_spill]]  ;;  %p18_p7 = scmp.ge.s32.totalorder %s5370_s18, 4  }
 0x9b6   : > { %s9721_s15 = smov %s5370_s18 }
 0x9b7   :  { %20 = sbr.rel (!%p18_p7) target bundleno = 11 (0xb), region = 95 }
 0x9be   :  { %4634 = vsyncpa [#allocation5], 1 }
 0x9bf   :  { %4636 = vsyncpa [#allocation5 + $0x1], 1 }
 0x9c0   :  { %4637 = vsyncpa [#allocation6], 1 }
 0x9c1   :  { %4639 = vsyncpa [#allocation6 + $0x1], 1 }
 0x9c2   :  { %4640 = vsyncpa [#allocation7], 1 }
 0x9c3   :  { %4642 = vsyncpa [#allocation7 + $0x1], 1 }
 0x9c4   :  { %4643 = vsyncpa [#allocation10], 1 }

</bundles_post_ra>
